<compile_context>
chip_gen: v5e
topology: v5e:2x2
jax: 0.10.0
libtpu: 0.0.40
codegen_flags: <defaults>
</compile_context>

<pallas_src>
import jax
import jax.numpy as jnp
from jax.experimental import pallas as pl
from jax.experimental.pallas import tpu as pltpu

# ----------------------------- hyperparameters ------------------------------
BATCH = 2
SEQ = 16
IN_FEAT = 1
CNN_OUT = 32          # cnn_out_channels (small test size)
KSIZE = 3             # kernel_size
HIDDEN = 32           # hidden_size     (small test size)
NUM_LAYERS = 2
NUM_DIRS = 2


# ------------------------------ fused kernel --------------------------------
def _fused_forward_kernel(cols_ref, cw_ref, cb_ref,
                          wih0_ref, b0_ref, whh0_ref,
                          wih1_ref, b1_ref, whh1_ref,
                          fcw_ref, fcb_ref,
                          out_ref,
                          gates_ref, hseq0_ref, hseq1_ref):
    H, B, T = HIDDEN, BATCH, SEQ

    # Conv1d(1 -> C, k=3, pad=1) as an im2col matmul with fused ReLU:
    #   (T*B, K) @ (K, C) + b, time-major rows (row = t*B + b).
    feat = jnp.maximum(
        jnp.dot(cols_ref[...], cw_ref[...], preferred_element_type=jnp.float32)
        + cb_ref[...], 0.0)                                        # (T*B, C)

    def bidir_layer(inp, wih_ref, b_ref, whh_ref, hseq_ref):
        """One bidirectional LSTM layer, both directions fused."""
        # Fused input projection for BOTH directions: lane-dense 8H=256 output.
        # Columns: [fwd i f g o | bwd i f g o]; b_ih + b_hh already folded in.
        gates_ref[...] = (jnp.dot(inp, wih_ref[...],
                                  preferred_element_type=jnp.float32)
                          + b_ref[...])                            # (T*B, 8H)

        whh = whh_ref[...]                                         # (2H, 8H) block-diag
        z = jnp.zeros((B, H), jnp.float32)
        h_f, c_f, h_b, c_b = z, z, z, z

        def cell(g, c):
            s = jax.nn.sigmoid(g)                                  # i, f, _, o
            i, f, o = s[:, :H], s[:, H:2 * H], s[:, 3 * H:]
            gg = jnp.tanh(g[:, 2 * H:3 * H])
            c_new = f * c + i * gg
            return o * jnp.tanh(c_new), c_new

        # Time recurrence fully in-kernel (T is small & static -> unrolled,
        # all slice offsets are compile-time constants).
        for t in range(T):
            tr = T - 1 - t
            # One block-diagonal recurrent matmul covers both directions.
            h_cat = jnp.concatenate([h_f, h_b], axis=-1)           # (B, 2H)
            g_hh = jnp.dot(h_cat, whh,
                           preferred_element_type=jnp.float32)     # (B, 8H)
            g_f = gates_ref[t * B:(t + 1) * B, :4 * H] + g_hh[:, :4 * H]
            g_b = gates_ref[tr * B:(tr + 1) * B, 4 * H:] + g_hh[:, 4 * H:]
            h_f, c_f = cell(g_f, c_f)
            h_b, c_b = cell(g_b, c_b)
            # hseq rows are time-major; columns = [fwd H | bwd H].
            hseq_ref[t * B:(t + 1) * B, :H] = h_f
            hseq_ref[tr * B:(tr + 1) * B, H:] = h_b

    bidir_layer(feat, wih0_ref, b0_ref, whh0_ref, hseq0_ref)
    # TODO(synk): inter-layer dropout (p=0.2) skipped — eval semantics.
    bidir_layer(hseq0_ref[...], wih1_ref, b1_ref, whh1_ref, hseq1_ref)

    # out[:, -1, :] -> rows of the last timestep, then Linear(2H -> 1).
    last = hseq1_ref[(T - 1) * B:, :]                              # (B, 2H)
    out_ref[...] = (jnp.dot(last, fcw_ref[...],
                            preferred_element_type=jnp.float32) + fcb_ref[...])


def _fused_pallas_call(*args):
    in_specs = [pl.BlockSpec(a.shape, lambda i: (0, 0)) for a in args]
    return pl.pallas_call(
        _fused_forward_kernel,
        out_shape=jax.ShapeDtypeStruct((BATCH, 1), jnp.float32),
        grid=(1,),
        in_specs=in_specs,
        out_specs=pl.BlockSpec((BATCH, 1), lambda i: (0, 0)),
        scratch_shapes=[
            pltpu.VMEM((SEQ * BATCH, 8 * HIDDEN), jnp.float32),  # gates (reused per layer)
            pltpu.VMEM((SEQ * BATCH, 2 * HIDDEN), jnp.float32),  # layer-0 hidden sequence
            pltpu.VMEM((SEQ * BATCH, 2 * HIDDEN), jnp.float32),  # layer-1 hidden sequence
        ],
        compiler_params=pltpu.CompilerParams(
            dimension_semantics=("arbitrary",)),
    )(*args)


# ------------------------------ model wrapper -------------------------------
def _im2col_time_major(x):
    """x: (B, T, 1) -> (T*B, K) im2col columns, time-major rows (tiny, one-time)."""
    B, T, _ = x.shape
    pad = KSIZE // 2
    xp = jnp.pad(x[..., 0], ((0, 0), (pad, pad)))                        # (B, T+2p)
    cols = jnp.stack([xp[:, k:k + T] for k in range(KSIZE)], axis=-1)    # (B, T, K)
    return cols.transpose(1, 0, 2).reshape(T * B, KSIZE).astype(jnp.float32)


def _pack_params(params):
    """Fold / pack weights once into the fused-kernel layout (all f32)."""
    H = HIDDEN
    packed = [params["conv_w"][:, 0, :].T,                               # (K, C)
              params["conv_b"][None, :]]                                 # (1, C)
    for layer in range(NUM_LAYERS):
        pf = params["lstm"][(layer, 0)]
        pb = params["lstm"][(layer, 1)]
        wih = jnp.concatenate([pf["w_ih"].T, pb["w_ih"].T], axis=1)      # (F, 8H)
        b = jnp.concatenate([pf["b_ih"] + pf["b_hh"],
                             pb["b_ih"] + pb["b_hh"]])[None, :]          # (1, 8H)
        whh = jnp.zeros((2 * H, 8 * H), jnp.float32)
        whh = whh.at[:H, :4 * H].set(pf["w_hh"].T)                       # fwd block
        whh = whh.at[H:, 4 * H:].set(pb["w_hh"].T)                       # bwd block
        packed += [wih, b, whh]
    packed += [params["fc_w"].T, params["fc_b"][None, :]]                # (2H,1), (1,1)
    return tuple(jnp.asarray(a, jnp.float32) for a in packed)


def cnn_bilstm_forward(x, params):
    """x: (B, T, 1) -> (B, 1), matching CNN_BiLSTM.forward (eval mode)."""
    return _fused_pallas_call(_im2col_time_major(x), *_pack_params(params))


# ------------------------------ parameter init ------------------------------
def init_params(key):
    params = {}
    ks = iter(jax.random.split(key, 64))

    def unif(k, shape, scale):
        return jax.random.uniform(k, shape, jnp.float32, -scale, scale)

    # Conv1d(1, C, K)
    s = 1.0 / (1 * KSIZE) ** 0.5
    params["conv_w"] = unif(next(ks), (CNN_OUT, 1, KSIZE), s)
    params["conv_b"] = unif(next(ks), (CNN_OUT,), s)

    # LSTM: weight_ih_l{k}[_reverse]: (4H, in), weight_hh: (4H, H), biases: (4H,)
    params["lstm"] = {}
    s = 1.0 / HIDDEN ** 0.5
    for layer in range(NUM_LAYERS):
        in_size = CNN_OUT if layer == 0 else 2 * HIDDEN
        for direction in range(NUM_DIRS):
            params["lstm"][(layer, direction)] = {
                "w_ih": unif(next(ks), (4 * HIDDEN, in_size), s),
                "w_hh": unif(next(ks), (4 * HIDDEN, HIDDEN), s),
                "b_ih": unif(next(ks), (4 * HIDDEN,), s),
                "b_hh": unif(next(ks), (4 * HIDDEN,), s),
            }

    # Linear(2H, 1)
    s = 1.0 / (2 * HIDDEN) ** 0.5
    params["fc_w"] = unif(next(ks), (1, 2 * HIDDEN), s)
    params["fc_b"] = unif(next(ks), (1,), s)
    return params


# ---------------------------- pure-JAX reference ----------------------------
def _lstm_ref_dir(x, w_ih, w_hh, b_ih, b_hh, reverse):
    B, T, _ = x.shape
    H = w_hh.shape[1]
    h = jnp.zeros((B, H), jnp.float32)
    c = jnp.zeros((B, H), jnp.float32)
    outs = [None] * T
    order = range(T - 1, -1, -1) if reverse else range(T)
    for t in order:
        g = x[:, t] @ w_ih.T + b_ih + h @ w_hh.T + b_hh
        i = jax.nn.sigmoid(g[:, :H])
        f = jax.nn.sigmoid(g[:, H:2 * H])
        gg = jnp.tanh(g[:, 2 * H:3 * H])
        o = jax.nn.sigmoid(g[:, 3 * H:])
        c = f * c + i * gg
        h = o * jnp.tanh(c)
        outs[t] = h
    return jnp.stack(outs, axis=1)


def reference_forward(x, params):
    B, T, _ = x.shape
    wc, bc = params["conv_w"], params["conv_b"]
    pad = wc.shape[-1] // 2
    xp = jnp.pad(x[..., 0], ((0, 0), (pad, pad)))
    cols = jnp.stack([xp[:, k:k + T] for k in range(wc.shape[-1])], axis=-1)
    feat = jnp.maximum(cols @ wc[:, 0, :].T + bc, 0.0)
    inp = feat
    for layer in range(NUM_LAYERS):
        outs = []
        for d in range(NUM_DIRS):
            p = params["lstm"][(layer, d)]
            outs.append(_lstm_ref_dir(inp, p["w_ih"], p["w_hh"],
                                      p["b_ih"], p["b_hh"], reverse=(d == 1)))
        inp = jnp.concatenate(outs, axis=-1)
    return inp[:, -1, :] @ params["fc_w"].T + params["fc_b"]


# ----------------------------------- main ------------------------------------
if __name__ == "__main__":
    key = jax.random.PRNGKey(0)
    pkey, xkey = jax.random.split(key)
    params = init_params(pkey)
    x = jax.random.normal(xkey, (BATCH, SEQ, IN_FEAT), jnp.float32)

    fwd = jax.jit(cnn_bilstm_forward)
    out = jax.block_until_ready(fwd(x, params))
    assert out.shape == (BATCH, 1), out.shape

    ref = jax.block_until_ready(reference_forward(x, params))
    assert jnp.allclose(out, ref, atol=1e-4, rtol=1e-4), (out, ref)

    print("KERNEL_OK")
</pallas_src>

<mosaic_0001>
module attributes {stable_mosaic.version = 11 : i64} {
  func.func @_fused_forward_kernel(%arg0: i32, %arg1: memref<32x3xf32, #tpu.memory_space<vmem>>, %arg2: memref<3x32xf32, #tpu.memory_space<vmem>>, %arg3: memref<1x32xf32, #tpu.memory_space<vmem>>, %arg4: memref<32x256xf32, #tpu.memory_space<vmem>>, %arg5: memref<1x256xf32, #tpu.memory_space<vmem>>, %arg6: memref<64x256xf32, #tpu.memory_space<vmem>>, %arg7: memref<64x256xf32, #tpu.memory_space<vmem>>, %arg8: memref<1x256xf32, #tpu.memory_space<vmem>>, %arg9: memref<64x256xf32, #tpu.memory_space<vmem>>, %arg10: memref<64x1xf32, #tpu.memory_space<vmem>>, %arg11: memref<1x1xf32, #tpu.memory_space<vmem>>, %arg12: memref<2x1xf32, #tpu.memory_space<vmem>>, %arg13: memref<32x256xf32, #tpu.memory_space<vmem>>, %arg14: memref<32x64xf32, #tpu.memory_space<vmem>>, %arg15: memref<32x64xf32, #tpu.memory_space<vmem>>) attributes {dimension_semantics = [#tpu.dimension_semantics<arbitrary>], iteration_bounds = array<i64: 1>, scalar_prefetch = 0 : i64, scratch_operands = 3 : i64, tpu.core_type = #tpu.core_type<tc>, window_params = [{pipeline_mode = #tpu.pipeline_mode<synchronous>, transform_indices = @transform_0, window_bounds = array<i64: 32, 3>}, {pipeline_mode = #tpu.pipeline_mode<synchronous>, transform_indices = @transform_1, window_bounds = array<i64: 3, 32>}, {pipeline_mode = #tpu.pipeline_mode<synchronous>, transform_indices = @transform_2, window_bounds = array<i64: 1, 32>}, {pipeline_mode = #tpu.pipeline_mode<synchronous>, transform_indices = @transform_3, window_bounds = array<i64: 32, 256>}, {pipeline_mode = #tpu.pipeline_mode<synchronous>, transform_indices = @transform_4, window_bounds = array<i64: 1, 256>}, {pipeline_mode = #tpu.pipeline_mode<synchronous>, transform_indices = @transform_5, window_bounds = array<i64: 64, 256>}, {pipeline_mode = #tpu.pipeline_mode<synchronous>, transform_indices = @transform_6, window_bounds = array<i64: 64, 256>}, {pipeline_mode = #tpu.pipeline_mode<synchronous>, transform_indices = @transform_7, window_bounds = array<i64: 1, 256>}, {pipeline_mode = #tpu.pipeline_mode<synchronous>, transform_indices = @transform_8, window_bounds = array<i64: 64, 256>}, {pipeline_mode = #tpu.pipeline_mode<synchronous>, transform_indices = @transform_9, window_bounds = array<i64: 64, 1>}, {pipeline_mode = #tpu.pipeline_mode<synchronous>, transform_indices = @transform_10, window_bounds = array<i64: 1, 1>}, {pipeline_mode = #tpu.pipeline_mode<synchronous>, transform_indices = @transform_11, window_bounds = array<i64: 2, 1>}]} {
    %c0 = arith.constant 0 : index
    %c0_0 = arith.constant 0 : index
    %0 = vector.load %arg1[%c0, %c0_0] : memref<32x3xf32, #tpu.memory_space<vmem>>, vector<32x3xf32>
    %c0_1 = arith.constant 0 : index
    %c0_2 = arith.constant 0 : index
    %1 = vector.load %arg2[%c0_1, %c0_2] : memref<3x32xf32, #tpu.memory_space<vmem>>, vector<3x32xf32>
    %cst = arith.constant dense<0.000000e+00> : vector<32x32xf32>
    %2 = tpu.matmul %0, %1, %cst {dimension_numbers = #tpu.dot_dimension_numbers<[1], [0], [0], [1], [0, 0, 1, 1], [], []>} : vector<32x3xf32>, vector<3x32xf32>, vector<32x32xf32> -> vector<32x32xf32>
    %c0_3 = arith.constant 0 : index
    %c0_4 = arith.constant 0 : index
    %3 = vector.load %arg3[%c0_3, %c0_4] : memref<1x32xf32, #tpu.memory_space<vmem>>, vector<1x32xf32>
    %4 = vector.broadcast %3 : vector<1x32xf32> to vector<32x32xf32>
    %5 = arith.addf %2, %4 : vector<32x32xf32>
    %cst_5 = arith.constant 0.000000e+00 : f32
    %6 = vector.broadcast %cst_5 : f32 to vector<32x32xf32>
    %7 = arith.maximumf %5, %6 : vector<32x32xf32>
    %c0_6 = arith.constant 0 : index
    %c0_7 = arith.constant 0 : index
    %8 = vector.load %arg4[%c0_6, %c0_7] : memref<32x256xf32, #tpu.memory_space<vmem>>, vector<32x256xf32>
    %cst_8 = arith.constant dense<0.000000e+00> : vector<32x256xf32>
    %9 = tpu.matmul %7, %8, %cst_8 {dimension_numbers = #tpu.dot_dimension_numbers<[1], [0], [0], [1], [0, 0, 1, 1], [], []>} : vector<32x32xf32>, vector<32x256xf32>, vector<32x256xf32> -> vector<32x256xf32>
    %c0_9 = arith.constant 0 : index
    %c0_10 = arith.constant 0 : index
    %10 = vector.load %arg5[%c0_9, %c0_10] : memref<1x256xf32, #tpu.memory_space<vmem>>, vector<1x256xf32>
    %11 = vector.broadcast %10 : vector<1x256xf32> to vector<32x256xf32>
    %12 = arith.addf %9, %11 : vector<32x256xf32>
    %c0_11 = arith.constant 0 : index
    %c0_12 = arith.constant 0 : index
    %13 = vector.load %arg13[%c0_11, %c0_12] : memref<32x256xf32, #tpu.memory_space<vmem>>, vector<32x256xf32>
    tpu.vector_store %arg13[%c0_11, %c0_12], %12 {strides = array<i32>} : memref<32x256xf32, #tpu.memory_space<vmem>>, vector<32x256xf32>,
    %c0_13 = arith.constant 0 : index
    %c0_14 = arith.constant 0 : index
    %14 = vector.load %arg6[%c0_13, %c0_14] : memref<64x256xf32, #tpu.memory_space<vmem>>, vector<64x256xf32>
    %cst_15 = arith.constant 0.000000e+00 : f32
    %15 = vector.broadcast %cst_15 : f32 to vector<2x32xf32>
    %16 = tpu.concatenate %15, %15 in 1 : vector<2x32xf32>, vector<2x32xf32> -> vector<2x64xf32>
    %cst_16 = arith.constant dense<0.000000e+00> : vector<2x256xf32>
    %17 = tpu.matmul %16, %14, %cst_16 {dimension_numbers = #tpu.dot_dimension_numbers<[1], [0], [0], [1], [0, 0, 1, 1], [], []>} : vector<2x64xf32>, vector<64x256xf32>, vector<2x256xf32> -> vector<2x256xf32>
    %c0_17 = arith.constant 0 : index
    %c0_18 = arith.constant 0 : index
    %18 = vector.load %arg13[%c0_17, %c0_18] : memref<32x256xf32, #tpu.memory_space<vmem>>, vector<2x128xf32>
    %19 = vector.extract_strided_slice %17 {offsets = [0, 0], sizes = [2, 128], strides = [1, 1]} : vector<2x256xf32> to vector<2x128xf32>
    %20 = arith.addf %18, %19 : vector<2x128xf32>
    %c30 = arith.constant 30 : index
    %c128 = arith.constant 128 : index
    %21 = vector.load %arg13[%c30, %c128] : memref<32x256xf32, #tpu.memory_space<vmem>>, vector<2x128xf32>
    %22 = vector.extract_strided_slice %17 {offsets = [0, 128], sizes = [2, 128], strides = [1, 1]} : vector<2x256xf32> to vector<2x128xf32>
    %23 = arith.addf %21, %22 : vector<2x128xf32>
    %24 = arith.negf %20 : vector<2x128xf32>
    %25 = math.exp %24 : vector<2x128xf32>
    %cst_19 = arith.constant 1.000000e+00 : f32
    %26 = vector.broadcast %cst_19 : f32 to vector<2x128xf32>
    %27 = arith.addf %26, %25 : vector<2x128xf32>
    %28 = arith.divf %26, %27 : vector<2x128xf32>
    %29 = vector.extract_strided_slice %28 {offsets = [0, 0], sizes = [2, 32], strides = [1, 1]} : vector<2x128xf32> to vector<2x32xf32>
    %30 = vector.extract_strided_slice %28 {offsets = [0, 32], sizes = [2, 32], strides = [1, 1]} : vector<2x128xf32> to vector<2x32xf32>
    %31 = vector.extract_strided_slice %28 {offsets = [0, 96], sizes = [2, 32], strides = [1, 1]} : vector<2x128xf32> to vector<2x32xf32>
    %32 = vector.extract_strided_slice %20 {offsets = [0, 64], sizes = [2, 32], strides = [1, 1]} : vector<2x128xf32> to vector<2x32xf32>
    %33 = math.tanh %32 : vector<2x32xf32>
    %34 = arith.mulf %30, %15 : vector<2x32xf32>
    %35 = arith.mulf %29, %33 : vector<2x32xf32>
    %36 = arith.addf %34, %35 : vector<2x32xf32>
    %37 = math.tanh %36 : vector<2x32xf32>
    %38 = arith.mulf %31, %37 : vector<2x32xf32>
    %39 = arith.negf %23 : vector<2x128xf32>
    %40 = math.exp %39 : vector<2x128xf32>
    %cst_20 = arith.constant 1.000000e+00 : f32
    %41 = vector.broadcast %cst_20 : f32 to vector<2x128xf32>
    %42 = arith.addf %41, %40 : vector<2x128xf32>
    %43 = arith.divf %41, %42 : vector<2x128xf32>
    %44 = vector.extract_strided_slice %43 {offsets = [0, 0], sizes = [2, 32], strides = [1, 1]} : vector<2x128xf32> to vector<2x32xf32>
    %45 = vector.extract_strided_slice %43 {offsets = [0, 32], sizes = [2, 32], strides = [1, 1]} : vector<2x128xf32> to vector<2x32xf32>
    %46 = vector.extract_strided_slice %43 {offsets = [0, 96], sizes = [2, 32], strides = [1, 1]} : vector<2x128xf32> to vector<2x32xf32>
    %47 = vector.extract_strided_slice %23 {offsets = [0, 64], sizes = [2, 32], strides = [1, 1]} : vector<2x128xf32> to vector<2x32xf32>
    %48 = math.tanh %47 : vector<2x32xf32>
    %49 = arith.mulf %45, %15 : vector<2x32xf32>
    %50 = arith.mulf %44, %48 : vector<2x32xf32>
    %51 = arith.addf %49, %50 : vector<2x32xf32>
    %52 = math.tanh %51 : vector<2x32xf32>
    %53 = arith.mulf %46, %52 : vector<2x32xf32>
    %c0_21 = arith.constant 0 : index
    %c0_22 = arith.constant 0 : index
    %54 = vector.load %arg14[%c0_21, %c0_22] : memref<32x64xf32, #tpu.memory_space<vmem>>, vector<2x32xf32>
    tpu.vector_store %arg14[%c0_21, %c0_22], %38 {strides = array<i32>} : memref<32x64xf32, #tpu.memory_space<vmem>>, vector<2x32xf32>,
    %c30_23 = arith.constant 30 : index
    %c32 = arith.constant 32 : index
    %55 = vector.load %arg14[%c30_23, %c32] : memref<32x64xf32, #tpu.memory_space<vmem>>, vector<2x32xf32>
    tpu.vector_store %arg14[%c30_23, %c32], %53 {strides = array<i32>} : memref<32x64xf32, #tpu.memory_space<vmem>>, vector<2x32xf32>,
    %56 = tpu.concatenate %38, %53 in 1 : vector<2x32xf32>, vector<2x32xf32> -> vector<2x64xf32>
    %cst_24 = arith.constant dense<0.000000e+00> : vector<2x256xf32>
    %57 = tpu.matmul %56, %14, %cst_24 {dimension_numbers = #tpu.dot_dimension_numbers<[1], [0], [0], [1], [0, 0, 1, 1], [], []>} : vector<2x64xf32>, vector<64x256xf32>, vector<2x256xf32> -> vector<2x256xf32>
    %c2 = arith.constant 2 : index
    %c0_25 = arith.constant 0 : index
    %58 = vector.load %arg13[%c2, %c0_25] : memref<32x256xf32, #tpu.memory_space<vmem>>, vector<2x128xf32>
    %59 = vector.extract_strided_slice %57 {offsets = [0, 0], sizes = [2, 128], strides = [1, 1]} : vector<2x256xf32> to vector<2x128xf32>
    %60 = arith.addf %58, %59 : vector<2x128xf32>
    %c28 = arith.constant 28 : index
    %c128_26 = arith.constant 128 : index
    %61 = vector.load %arg13[%c28, %c128_26] : memref<32x256xf32, #tpu.memory_space<vmem>>, vector<2x128xf32>
    %62 = vector.extract_strided_slice %57 {offsets = [0, 128], sizes = [2, 128], strides = [1, 1]} : vector<2x256xf32> to vector<2x128xf32>
    %63 = arith.addf %61, %62 : vector<2x128xf32>
    %64 = arith.negf %60 : vector<2x128xf32>
    %65 = math.exp %64 : vector<2x128xf32>
    %cst_27 = arith.constant 1.000000e+00 : f32
    %66 = vector.broadcast %cst_27 : f32 to vector<2x128xf32>
    %67 = arith.addf %66, %65 : vector<2x128xf32>
    %68 = arith.divf %66, %67 : vector<2x128xf32>
    %69 = vector.extract_strided_slice %68 {offsets = [0, 0], sizes = [2, 32], strides = [1, 1]} : vector<2x128xf32> to vector<2x32xf32>
    %70 = vector.extract_strided_slice %68 {offsets = [0, 32], sizes = [2, 32], strides = [1, 1]} : vector<2x128xf32> to vector<2x32xf32>
    %71 = vector.extract_strided_slice %68 {offsets = [0, 96], sizes = [2, 32], strides = [1, 1]} : vector<2x128xf32> to vector<2x32xf32>
    %72 = vector.extract_strided_slice %60 {offsets = [0, 64], sizes = [2, 32], strides = [1, 1]} : vector<2x128xf32> to vector<2x32xf32>
    %73 = math.tanh %72 : vector<2x32xf32>
    %74 = arith.mulf %70, %36 : vector<2x32xf32>
    %75 = arith.mulf %69, %73 : vector<2x32xf32>
    %76 = arith.addf %74, %75 : vector<2x32xf32>
    %77 = math.tanh %76 : vector<2x32xf32>
    %78 = arith.mulf %71, %77 : vector<2x32xf32>
    %79 = arith.negf %63 : vector<2x128xf32>
    %80 = math.exp %79 : vector<2x128xf32>
    %cst_28 = arith.constant 1.000000e+00 : f32
    %81 = vector.broadcast %cst_28 : f32 to vector<2x128xf32>
    %82 = arith.addf %81, %80 : vector<2x128xf32>
    %83 = arith.divf %81, %82 : vector<2x128xf32>
    %84 = vector.extract_strided_slice %83 {offsets = [0, 0], sizes = [2, 32], strides = [1, 1]} : vector<2x128xf32> to vector<2x32xf32>
    %85 = vector.extract_strided_slice %83 {offsets = [0, 32], sizes = [2, 32], strides = [1, 1]} : vector<2x128xf32> to vector<2x32xf32>
    %86 = vector.extract_strided_slice %83 {offsets = [0, 96], sizes = [2, 32], strides = [1, 1]} : vector<2x128xf32> to vector<2x32xf32>
    %87 = vector.extract_strided_slice %63 {offsets = [0, 64], sizes = [2, 32], strides = [1, 1]} : vector<2x128xf32> to vector<2x32xf32>
    %88 = math.tanh %87 : vector<2x32xf32>
    %89 = arith.mulf %85, %51 : vector<2x32xf32>
    %90 = arith.mulf %84, %88 : vector<2x32xf32>
    %91 = arith.addf %89, %90 : vector<2x32xf32>
    %92 = math.tanh %91 : vector<2x32xf32>
    %93 = arith.mulf %86, %92 : vector<2x32xf32>
    %c2_29 = arith.constant 2 : index
    %c0_30 = arith.constant 0 : index
    %94 = vector.load %arg14[%c2_29, %c0_30] : memref<32x64xf32, #tpu.memory_space<vmem>>, vector<2x32xf32>
    tpu.vector_store %arg14[%c2_29, %c0_30], %78 {strides = array<i32>} : memref<32x64xf32, #tpu.memory_space<vmem>>, vector<2x32xf32>,
    %c28_31 = arith.constant 28 : index
    %c32_32 = arith.constant 32 : index
    %95 = vector.load %arg14[%c28_31, %c32_32] : memref<32x64xf32, #tpu.memory_space<vmem>>, vector<2x32xf32>
    tpu.vector_store %arg14[%c28_31, %c32_32], %93 {strides = array<i32>} : memref<32x64xf32, #tpu.memory_space<vmem>>, vector<2x32xf32>,
    %96 = tpu.concatenate %78, %93 in 1 : vector<2x32xf32>, vector<2x32xf32> -> vector<2x64xf32>
    %cst_33 = arith.constant dense<0.000000e+00> : vector<2x256xf32>
    %97 = tpu.matmul %96, %14, %cst_33 {dimension_numbers = #tpu.dot_dimension_numbers<[1], [0], [0], [1], [0, 0, 1, 1], [], []>} : vector<2x64xf32>, vector<64x256xf32>, vector<2x256xf32> -> vector<2x256xf32>
    %c4 = arith.constant 4 : index
    %c0_34 = arith.constant 0 : index
    %98 = vector.load %arg13[%c4, %c0_34] : memref<32x256xf32, #tpu.memory_space<vmem>>, vector<2x128xf32>
    %99 = vector.extract_strided_slice %97 {offsets = [0, 0], sizes = [2, 128], strides = [1, 1]} : vector<2x256xf32> to vector<2x128xf32>
    %100 = arith.addf %98, %99 : vector<2x128xf32>
    %c26 = arith.constant 26 : index
    %c128_35 = arith.constant 128 : index
    %101 = vector.load %arg13[%c26, %c128_35] : memref<32x256xf32, #tpu.memory_space<vmem>>, vector<2x128xf32>
    %102 = vector.extract_strided_slice %97 {offsets = [0, 128], sizes = [2, 128], strides = [1, 1]} : vector<2x256xf32> to vector<2x128xf32>
    %103 = arith.addf %101, %102 : vector<2x128xf32>
    %104 = arith.negf %100 : vector<2x128xf32>
    %105 = math.exp %104 : vector<2x128xf32>
    %cst_36 = arith.constant 1.000000e+00 : f32
    %106 = vector.broadcast %cst_36 : f32 to vector<2x128xf32>
    %107 = arith.addf %106, %105 : vector<2x128xf32>
    %108 = arith.divf %106, %107 : vector<2x128xf32>
    %109 = vector.extract_strided_slice %108 {offsets = [0, 0], sizes = [2, 32], strides = [1, 1]} : vector<2x128xf32> to vector<2x32xf32>
    %110 = vector.extract_strided_slice %108 {offsets = [0, 32], sizes = [2, 32], strides = [1, 1]} : vector<2x128xf32> to vector<2x32xf32>
    %111 = vector.extract_strided_slice %108 {offsets = [0, 96], sizes = [2, 32], strides = [1, 1]} : vector<2x128xf32> to vector<2x32xf32>
    %112 = vector.extract_strided_slice %100 {offsets = [0, 64], sizes = [2, 32], strides = [1, 1]} : vector<2x128xf32> to vector<2x32xf32>
    %113 = math.tanh %112 : vector<2x32xf32>
    %114 = arith.mulf %110, %76 : vector<2x32xf32>
    %115 = arith.mulf %109, %113 : vector<2x32xf32>
    %116 = arith.addf %114, %115 : vector<2x32xf32>
    %117 = math.tanh %116 : vector<2x32xf32>
    %118 = arith.mulf %111, %117 : vector<2x32xf32>
    %119 = arith.negf %103 : vector<2x128xf32>
    %120 = math.exp %119 : vector<2x128xf32>
    %cst_37 = arith.constant 1.000000e+00 : f32
    %121 = vector.broadcast %cst_37 : f32 to vector<2x128xf32>
    %122 = arith.addf %121, %120 : vector<2x128xf32>
    %123 = arith.divf %121, %122 : vector<2x128xf32>
    %124 = vector.extract_strided_slice %123 {offsets = [0, 0], sizes = [2, 32], strides = [1, 1]} : vector<2x128xf32> to vector<2x32xf32>
    %125 = vector.extract_strided_slice %123 {offsets = [0, 32], sizes = [2, 32], strides = [1, 1]} : vector<2x128xf32> to vector<2x32xf32>
    %126 = vector.extract_strided_slice %123 {offsets = [0, 96], sizes = [2, 32], strides = [1, 1]} : vector<2x128xf32> to vector<2x32xf32>
    %127 = vector.extract_strided_slice %103 {offsets = [0, 64], sizes = [2, 32], strides = [1, 1]} : vector<2x128xf32> to vector<2x32xf32>
    %128 = math.tanh %127 : vector<2x32xf32>
    %129 = arith.mulf %125, %91 : vector<2x32xf32>
    %130 = arith.mulf %124, %128 : vector<2x32xf32>
    %131 = arith.addf %129, %130 : vector<2x32xf32>
    %132 = math.tanh %131 : vector<2x32xf32>
    %133 = arith.mulf %126, %132 : vector<2x32xf32>
    %c4_38 = arith.constant 4 : index
    %c0_39 = arith.constant 0 : index
    %134 = vector.load %arg14[%c4_38, %c0_39] : memref<32x64xf32, #tpu.memory_space<vmem>>, vector<2x32xf32>
    tpu.vector_store %arg14[%c4_38, %c0_39], %118 {strides = array<i32>} : memref<32x64xf32, #tpu.memory_space<vmem>>, vector<2x32xf32>,
    %c26_40 = arith.constant 26 : index
    %c32_41 = arith.constant 32 : index
    %135 = vector.load %arg14[%c26_40, %c32_41] : memref<32x64xf32, #tpu.memory_space<vmem>>, vector<2x32xf32>
    tpu.vector_store %arg14[%c26_40, %c32_41], %133 {strides = array<i32>} : memref<32x64xf32, #tpu.memory_space<vmem>>, vector<2x32xf32>,
    %136 = tpu.concatenate %118, %133 in 1 : vector<2x32xf32>, vector<2x32xf32> -> vector<2x64xf32>
    %cst_42 = arith.constant dense<0.000000e+00> : vector<2x256xf32>
    %137 = tpu.matmul %136, %14, %cst_42 {dimension_numbers = #tpu.dot_dimension_numbers<[1], [0], [0], [1], [0, 0, 1, 1], [], []>} : vector<2x64xf32>, vector<64x256xf32>, vector<2x256xf32> -> vector<2x256xf32>
    %c6 = arith.constant 6 : index
    %c0_43 = arith.constant 0 : index
    %138 = vector.load %arg13[%c6, %c0_43] : memref<32x256xf32, #tpu.memory_space<vmem>>, vector<2x128xf32>
    %139 = vector.extract_strided_slice %137 {offsets = [0, 0], sizes = [2, 128], strides = [1, 1]} : vector<2x256xf32> to vector<2x128xf32>
    %140 = arith.addf %138, %139 : vector<2x128xf32>
    %c24 = arith.constant 24 : index
    %c128_44 = arith.constant 128 : index
    %141 = vector.load %arg13[%c24, %c128_44] : memref<32x256xf32, #tpu.memory_space<vmem>>, vector<2x128xf32>
    %142 = vector.extract_strided_slice %137 {offsets = [0, 128], sizes = [2, 128], strides = [1, 1]} : vector<2x256xf32> to vector<2x128xf32>
    %143 = arith.addf %141, %142 : vector<2x128xf32>
    %144 = arith.negf %140 : vector<2x128xf32>
    %145 = math.exp %144 : vector<2x128xf32>
    %cst_45 = arith.constant 1.000000e+00 : f32
    %146 = vector.broadcast %cst_45 : f32 to vector<2x128xf32>
    %147 = arith.addf %146, %145 : vector<2x128xf32>
    %148 = arith.divf %146, %147 : vector<2x128xf32>
    %149 = vector.extract_strided_slice %148 {offsets = [0, 0], sizes = [2, 32], strides = [1, 1]} : vector<2x128xf32> to vector<2x32xf32>
    %150 = vector.extract_strided_slice %148 {offsets = [0, 32], sizes = [2, 32], strides = [1, 1]} : vector<2x128xf32> to vector<2x32xf32>
    %151 = vector.extract_strided_slice %148 {offsets = [0, 96], sizes = [2, 32], strides = [1, 1]} : vector<2x128xf32> to vector<2x32xf32>
    %152 = vector.extract_strided_slice %140 {offsets = [0, 64], sizes = [2, 32], strides = [1, 1]} : vector<2x128xf32> to vector<2x32xf32>
    %153 = math.tanh %152 : vector<2x32xf32>
    %154 = arith.mulf %150, %116 : vector<2x32xf32>
    %155 = arith.mulf %149, %153 : vector<2x32xf32>
    %156 = arith.addf %154, %155 : vector<2x32xf32>
    %157 = math.tanh %156 : vector<2x32xf32>
    %158 = arith.mulf %151, %157 : vector<2x32xf32>
    %159 = arith.negf %143 : vector<2x128xf32>
    %160 = math.exp %159 : vector<2x128xf32>
    %cst_46 = arith.constant 1.000000e+00 : f32
    %161 = vector.broadcast %cst_46 : f32 to vector<2x128xf32>
    %162 = arith.addf %161, %160 : vector<2x128xf32>
    %163 = arith.divf %161, %162 : vector<2x128xf32>
    %164 = vector.extract_strided_slice %163 {offsets = [0, 0], sizes = [2, 32], strides = [1, 1]} : vector<2x128xf32> to vector<2x32xf32>
    %165 = vector.extract_strided_slice %163 {offsets = [0, 32], sizes = [2, 32], strides = [1, 1]} : vector<2x128xf32> to vector<2x32xf32>
    %166 = vector.extract_strided_slice %163 {offsets = [0, 96], sizes = [2, 32], strides = [1, 1]} : vector<2x128xf32> to vector<2x32xf32>
    %167 = vector.extract_strided_slice %143 {offsets = [0, 64], sizes = [2, 32], strides = [1, 1]} : vector<2x128xf32> to vector<2x32xf32>
    %168 = math.tanh %167 : vector<2x32xf32>
    %169 = arith.mulf %165, %131 : vector<2x32xf32>
    %170 = arith.mulf %164, %168 : vector<2x32xf32>
    %171 = arith.addf %169, %170 : vector<2x32xf32>
    %172 = math.tanh %171 : vector<2x32xf32>
    %173 = arith.mulf %166, %172 : vector<2x32xf32>
    %c6_47 = arith.constant 6 : index
    %c0_48 = arith.constant 0 : index
    %174 = vector.load %arg14[%c6_47, %c0_48] : memref<32x64xf32, #tpu.memory_space<vmem>>, vector<2x32xf32>
    tpu.vector_store %arg14[%c6_47, %c0_48], %158 {strides = array<i32>} : memref<32x64xf32, #tpu.memory_space<vmem>>, vector<2x32xf32>,
    %c24_49 = arith.constant 24 : index
    %c32_50 = arith.constant 32 : index
    %175 = vector.load %arg14[%c24_49, %c32_50] : memref<32x64xf32, #tpu.memory_space<vmem>>, vector<2x32xf32>
    tpu.vector_store %arg14[%c24_49, %c32_50], %173 {strides = array<i32>} : memref<32x64xf32, #tpu.memory_space<vmem>>, vector<2x32xf32>,
    %176 = tpu.concatenate %158, %173 in 1 : vector<2x32xf32>, vector<2x32xf32> -> vector<2x64xf32>
    %cst_51 = arith.constant dense<0.000000e+00> : vector<2x256xf32>
    %177 = tpu.matmul %176, %14, %cst_51 {dimension_numbers = #tpu.dot_dimension_numbers<[1], [0], [0], [1], [0, 0, 1, 1], [], []>} : vector<2x64xf32>, vector<64x256xf32>, vector<2x256xf32> -> vector<2x256xf32>
    %c8 = arith.constant 8 : index
    %c0_52 = arith.constant 0 : index
    %178 = vector.load %arg13[%c8, %c0_52] : memref<32x256xf32, #tpu.memory_space<vmem>>, vector<2x128xf32>
    %179 = vector.extract_strided_slice %177 {offsets = [0, 0], sizes = [2, 128], strides = [1, 1]} : vector<2x256xf32> to vector<2x128xf32>
    %180 = arith.addf %178, %179 : vector<2x128xf32>
    %c22 = arith.constant 22 : index
    %c128_53 = arith.constant 128 : index
    %181 = vector.load %arg13[%c22, %c128_53] : memref<32x256xf32, #tpu.memory_space<vmem>>, vector<2x128xf32>
    %182 = vector.extract_strided_slice %177 {offsets = [0, 128], sizes = [2, 128], strides = [1, 1]} : vector<2x256xf32> to vector<2x128xf32>
    %183 = arith.addf %181, %182 : vector<2x128xf32>
    %184 = arith.negf %180 : vector<2x128xf32>
    %185 = math.exp %184 : vector<2x128xf32>
    %cst_54 = arith.constant 1.000000e+00 : f32
    %186 = vector.broadcast %cst_54 : f32 to vector<2x128xf32>
    %187 = arith.addf %186, %185 : vector<2x128xf32>
    %188 = arith.divf %186, %187 : vector<2x128xf32>
    %189 = vector.extract_strided_slice %188 {offsets = [0, 0], sizes = [2, 32], strides = [1, 1]} : vector<2x128xf32> to vector<2x32xf32>
    %190 = vector.extract_strided_slice %188 {offsets = [0, 32], sizes = [2, 32], strides = [1, 1]} : vector<2x128xf32> to vector<2x32xf32>
    %191 = vector.extract_strided_slice %188 {offsets = [0, 96], sizes = [2, 32], strides = [1, 1]} : vector<2x128xf32> to vector<2x32xf32>
    %192 = vector.extract_strided_slice %180 {offsets = [0, 64], sizes = [2, 32], strides = [1, 1]} : vector<2x128xf32> to vector<2x32xf32>
    %193 = math.tanh %192 : vector<2x32xf32>
    %194 = arith.mulf %190, %156 : vector<2x32xf32>
    %195 = arith.mulf %189, %193 : vector<2x32xf32>
    %196 = arith.addf %194, %195 : vector<2x32xf32>
    %197 = math.tanh %196 : vector<2x32xf32>
    %198 = arith.mulf %191, %197 : vector<2x32xf32>
    %199 = arith.negf %183 : vector<2x128xf32>
    %200 = math.exp %199 : vector<2x128xf32>
    %cst_55 = arith.constant 1.000000e+00 : f32
    %201 = vector.broadcast %cst_55 : f32 to vector<2x128xf32>
    %202 = arith.addf %201, %200 : vector<2x128xf32>
    %203 = arith.divf %201, %202 : vector<2x128xf32>
    %204 = vector.extract_strided_slice %203 {offsets = [0, 0], sizes = [2, 32], strides = [1, 1]} : vector<2x128xf32> to vector<2x32xf32>
    %205 = vector.extract_strided_slice %203 {offsets = [0, 32], sizes = [2, 32], strides = [1, 1]} : vector<2x128xf32> to vector<2x32xf32>
    %206 = vector.extract_strided_slice %203 {offsets = [0, 96], sizes = [2, 32], strides = [1, 1]} : vector<2x128xf32> to vector<2x32xf32>
    %207 = vector.extract_strided_slice %183 {offsets = [0, 64], sizes = [2, 32], strides = [1, 1]} : vector<2x128xf32> to vector<2x32xf32>
    %208 = math.tanh %207 : vector<2x32xf32>
    %209 = arith.mulf %205, %171 : vector<2x32xf32>
    %210 = arith.mulf %204, %208 : vector<2x32xf32>
    %211 = arith.addf %209, %210 : vector<2x32xf32>
    %212 = math.tanh %211 : vector<2x32xf32>
    %213 = arith.mulf %206, %212 : vector<2x32xf32>
    %c8_56 = arith.constant 8 : index
    %c0_57 = arith.constant 0 : index
    %214 = vector.load %arg14[%c8_56, %c0_57] : memref<32x64xf32, #tpu.memory_space<vmem>>, vector<2x32xf32>
    tpu.vector_store %arg14[%c8_56, %c0_57], %198 {strides = array<i32>} : memref<32x64xf32, #tpu.memory_space<vmem>>, vector<2x32xf32>,
    %c22_58 = arith.constant 22 : index
    %c32_59 = arith.constant 32 : index
    %215 = vector.load %arg14[%c22_58, %c32_59] : memref<32x64xf32, #tpu.memory_space<vmem>>, vector<2x32xf32>
    tpu.vector_store %arg14[%c22_58, %c32_59], %213 {strides = array<i32>} : memref<32x64xf32, #tpu.memory_space<vmem>>, vector<2x32xf32>,
    %216 = tpu.concatenate %198, %213 in 1 : vector<2x32xf32>, vector<2x32xf32> -> vector<2x64xf32>
    %cst_60 = arith.constant dense<0.000000e+00> : vector<2x256xf32>
    %217 = tpu.matmul %216, %14, %cst_60 {dimension_numbers = #tpu.dot_dimension_numbers<[1], [0], [0], [1], [0, 0, 1, 1], [], []>} : vector<2x64xf32>, vector<64x256xf32>, vector<2x256xf32> -> vector<2x256xf32>
    %c10 = arith.constant 10 : index
    %c0_61 = arith.constant 0 : index
    %218 = vector.load %arg13[%c10, %c0_61] : memref<32x256xf32, #tpu.memory_space<vmem>>, vector<2x128xf32>
    %219 = vector.extract_strided_slice %217 {offsets = [0, 0], sizes = [2, 128], strides = [1, 1]} : vector<2x256xf32> to vector<2x128xf32>
    %220 = arith.addf %218, %219 : vector<2x128xf32>
    %c20 = arith.constant 20 : index
    %c128_62 = arith.constant 128 : index
    %221 = vector.load %arg13[%c20, %c128_62] : memref<32x256xf32, #tpu.memory_space<vmem>>, vector<2x128xf32>
    %222 = vector.extract_strided_slice %217 {offsets = [0, 128], sizes = [2, 128], strides = [1, 1]} : vector<2x256xf32> to vector<2x128xf32>
    %223 = arith.addf %221, %222 : vector<2x128xf32>
    %224 = arith.negf %220 : vector<2x128xf32>
    %225 = math.exp %224 : vector<2x128xf32>
    %cst_63 = arith.constant 1.000000e+00 : f32
    %226 = vector.broadcast %cst_63 : f32 to vector<2x128xf32>
    %227 = arith.addf %226, %225 : vector<2x128xf32>
    %228 = arith.divf %226, %227 : vector<2x128xf32>
    %229 = vector.extract_strided_slice %228 {offsets = [0, 0], sizes = [2, 32], strides = [1, 1]} : vector<2x128xf32> to vector<2x32xf32>
    %230 = vector.extract_strided_slice %228 {offsets = [0, 32], sizes = [2, 32], strides = [1, 1]} : vector<2x128xf32> to vector<2x32xf32>
    %231 = vector.extract_strided_slice %228 {offsets = [0, 96], sizes = [2, 32], strides = [1, 1]} : vector<2x128xf32> to vector<2x32xf32>
    %232 = vector.extract_strided_slice %220 {offsets = [0, 64], sizes = [2, 32], strides = [1, 1]} : vector<2x128xf32> to vector<2x32xf32>
    %233 = math.tanh %232 : vector<2x32xf32>
    %234 = arith.mulf %230, %196 : vector<2x32xf32>
    %235 = arith.mulf %229, %233 : vector<2x32xf32>
    %236 = arith.addf %234, %235 : vector<2x32xf32>
    %237 = math.tanh %236 : vector<2x32xf32>
    %238 = arith.mulf %231, %237 : vector<2x32xf32>
    %239 = arith.negf %223 : vector<2x128xf32>
    %240 = math.exp %239 : vector<2x128xf32>
    %cst_64 = arith.constant 1.000000e+00 : f32
    %241 = vector.broadcast %cst_64 : f32 to vector<2x128xf32>
    %242 = arith.addf %241, %240 : vector<2x128xf32>
    %243 = arith.divf %241, %242 : vector<2x128xf32>
    %244 = vector.extract_strided_slice %243 {offsets = [0, 0], sizes = [2, 32], strides = [1, 1]} : vector<2x128xf32> to vector<2x32xf32>
    %245 = vector.extract_strided_slice %243 {offsets = [0, 32], sizes = [2, 32], strides = [1, 1]} : vector<2x128xf32> to vector<2x32xf32>
    %246 = vector.extract_strided_slice %243 {offsets = [0, 96], sizes = [2, 32], strides = [1, 1]} : vector<2x128xf32> to vector<2x32xf32>
    %247 = vector.extract_strided_slice %223 {offsets = [0, 64], sizes = [2, 32], strides = [1, 1]} : vector<2x128xf32> to vector<2x32xf32>
    %248 = math.tanh %247 : vector<2x32xf32>
    %249 = arith.mulf %245, %211 : vector<2x32xf32>
    %250 = arith.mulf %244, %248 : vector<2x32xf32>
    %251 = arith.addf %249, %250 : vector<2x32xf32>
    %252 = math.tanh %251 : vector<2x32xf32>
    %253 = arith.mulf %246, %252 : vector<2x32xf32>
    %c10_65 = arith.constant 10 : index
    %c0_66 = arith.constant 0 : index
    %254 = vector.load %arg14[%c10_65, %c0_66] : memref<32x64xf32, #tpu.memory_space<vmem>>, vector<2x32xf32>
    tpu.vector_store %arg14[%c10_65, %c0_66], %238 {strides = array<i32>} : memref<32x64xf32, #tpu.memory_space<vmem>>, vector<2x32xf32>,
    %c20_67 = arith.constant 20 : index
    %c32_68 = arith.constant 32 : index
    %255 = vector.load %arg14[%c20_67, %c32_68] : memref<32x64xf32, #tpu.memory_space<vmem>>, vector<2x32xf32>
    tpu.vector_store %arg14[%c20_67, %c32_68], %253 {strides = array<i32>} : memref<32x64xf32, #tpu.memory_space<vmem>>, vector<2x32xf32>,
    %256 = tpu.concatenate %238, %253 in 1 : vector<2x32xf32>, vector<2x32xf32> -> vector<2x64xf32>
    %cst_69 = arith.constant dense<0.000000e+00> : vector<2x256xf32>
    %257 = tpu.matmul %256, %14, %cst_69 {dimension_numbers = #tpu.dot_dimension_numbers<[1], [0], [0], [1], [0, 0, 1, 1], [], []>} : vector<2x64xf32>, vector<64x256xf32>, vector<2x256xf32> -> vector<2x256xf32>
    %c12 = arith.constant 12 : index
    %c0_70 = arith.constant 0 : index
    %258 = vector.load %arg13[%c12, %c0_70] : memref<32x256xf32, #tpu.memory_space<vmem>>, vector<2x128xf32>
    %259 = vector.extract_strided_slice %257 {offsets = [0, 0], sizes = [2, 128], strides = [1, 1]} : vector<2x256xf32> to vector<2x128xf32>
    %260 = arith.addf %258, %259 : vector<2x128xf32>
    %c18 = arith.constant 18 : index
    %c128_71 = arith.constant 128 : index
    %261 = vector.load %arg13[%c18, %c128_71] : memref<32x256xf32, #tpu.memory_space<vmem>>, vector<2x128xf32>
    %262 = vector.extract_strided_slice %257 {offsets = [0, 128], sizes = [2, 128], strides = [1, 1]} : vector<2x256xf32> to vector<2x128xf32>
    %263 = arith.addf %261, %262 : vector<2x128xf32>
    %264 = arith.negf %260 : vector<2x128xf32>
    %265 = math.exp %264 : vector<2x128xf32>
    %cst_72 = arith.constant 1.000000e+00 : f32
    %266 = vector.broadcast %cst_72 : f32 to vector<2x128xf32>
    %267 = arith.addf %266, %265 : vector<2x128xf32>
    %268 = arith.divf %266, %267 : vector<2x128xf32>
    %269 = vector.extract_strided_slice %268 {offsets = [0, 0], sizes = [2, 32], strides = [1, 1]} : vector<2x128xf32> to vector<2x32xf32>
    %270 = vector.extract_strided_slice %268 {offsets = [0, 32], sizes = [2, 32], strides = [1, 1]} : vector<2x128xf32> to vector<2x32xf32>
    %271 = vector.extract_strided_slice %268 {offsets = [0, 96], sizes = [2, 32], strides = [1, 1]} : vector<2x128xf32> to vector<2x32xf32>
    %272 = vector.extract_strided_slice %260 {offsets = [0, 64], sizes = [2, 32], strides = [1, 1]} : vector<2x128xf32> to vector<2x32xf32>
    %273 = math.tanh %272 : vector<2x32xf32>
    %274 = arith.mulf %270, %236 : vector<2x32xf32>
    %275 = arith.mulf %269, %273 : vector<2x32xf32>
    %276 = arith.addf %274, %275 : vector<2x32xf32>
    %277 = math.tanh %276 : vector<2x32xf32>
    %278 = arith.mulf %271, %277 : vector<2x32xf32>
    %279 = arith.negf %263 : vector<2x128xf32>
    %280 = math.exp %279 : vector<2x128xf32>
    %cst_73 = arith.constant 1.000000e+00 : f32
    %281 = vector.broadcast %cst_73 : f32 to vector<2x128xf32>
    %282 = arith.addf %281, %280 : vector<2x128xf32>
    %283 = arith.divf %281, %282 : vector<2x128xf32>
    %284 = vector.extract_strided_slice %283 {offsets = [0, 0], sizes = [2, 32], strides = [1, 1]} : vector<2x128xf32> to vector<2x32xf32>
    %285 = vector.extract_strided_slice %283 {offsets = [0, 32], sizes = [2, 32], strides = [1, 1]} : vector<2x128xf32> to vector<2x32xf32>
    %286 = vector.extract_strided_slice %283 {offsets = [0, 96], sizes = [2, 32], strides = [1, 1]} : vector<2x128xf32> to vector<2x32xf32>
    %287 = vector.extract_strided_slice %263 {offsets = [0, 64], sizes = [2, 32], strides = [1, 1]} : vector<2x128xf32> to vector<2x32xf32>
    %288 = math.tanh %287 : vector<2x32xf32>
    %289 = arith.mulf %285, %251 : vector<2x32xf32>
    %290 = arith.mulf %284, %288 : vector<2x32xf32>
    %291 = arith.addf %289, %290 : vector<2x32xf32>
    %292 = math.tanh %291 : vector<2x32xf32>
    %293 = arith.mulf %286, %292 : vector<2x32xf32>
    %c12_74 = arith.constant 12 : index
    %c0_75 = arith.constant 0 : index
    %294 = vector.load %arg14[%c12_74, %c0_75] : memref<32x64xf32, #tpu.memory_space<vmem>>, vector<2x32xf32>
    tpu.vector_store %arg14[%c12_74, %c0_75], %278 {strides = array<i32>} : memref<32x64xf32, #tpu.memory_space<vmem>>, vector<2x32xf32>,
    %c18_76 = arith.constant 18 : index
    %c32_77 = arith.constant 32 : index
    %295 = vector.load %arg14[%c18_76, %c32_77] : memref<32x64xf32, #tpu.memory_space<vmem>>, vector<2x32xf32>
    tpu.vector_store %arg14[%c18_76, %c32_77], %293 {strides = array<i32>} : memref<32x64xf32, #tpu.memory_space<vmem>>, vector<2x32xf32>,
    %296 = tpu.concatenate %278, %293 in 1 : vector<2x32xf32>, vector<2x32xf32> -> vector<2x64xf32>
    %cst_78 = arith.constant dense<0.000000e+00> : vector<2x256xf32>
    %297 = tpu.matmul %296, %14, %cst_78 {dimension_numbers = #tpu.dot_dimension_numbers<[1], [0], [0], [1], [0, 0, 1, 1], [], []>} : vector<2x64xf32>, vector<64x256xf32>, vector<2x256xf32> -> vector<2x256xf32>
    %c14 = arith.constant 14 : index
    %c0_79 = arith.constant 0 : index
    %298 = vector.load %arg13[%c14, %c0_79] : memref<32x256xf32, #tpu.memory_space<vmem>>, vector<2x128xf32>
    %299 = vector.extract_strided_slice %297 {offsets = [0, 0], sizes = [2, 128], strides = [1, 1]} : vector<2x256xf32> to vector<2x128xf32>
    %300 = arith.addf %298, %299 : vector<2x128xf32>
    %c16 = arith.constant 16 : index
    %c128_80 = arith.constant 128 : index
    %301 = vector.load %arg13[%c16, %c128_80] : memref<32x256xf32, #tpu.memory_space<vmem>>, vector<2x128xf32>
    %302 = vector.extract_strided_slice %297 {offsets = [0, 128], sizes = [2, 128], strides = [1, 1]} : vector<2x256xf32> to vector<2x128xf32>
    %303 = arith.addf %301, %302 : vector<2x128xf32>
    %304 = arith.negf %300 : vector<2x128xf32>
    %305 = math.exp %304 : vector<2x128xf32>
    %cst_81 = arith.constant 1.000000e+00 : f32
    %306 = vector.broadcast %cst_81 : f32 to vector<2x128xf32>
    %307 = arith.addf %306, %305 : vector<2x128xf32>
    %308 = arith.divf %306, %307 : vector<2x128xf32>
    %309 = vector.extract_strided_slice %308 {offsets = [0, 0], sizes = [2, 32], strides = [1, 1]} : vector<2x128xf32> to vector<2x32xf32>
    %310 = vector.extract_strided_slice %308 {offsets = [0, 32], sizes = [2, 32], strides = [1, 1]} : vector<2x128xf32> to vector<2x32xf32>
    %311 = vector.extract_strided_slice %308 {offsets = [0, 96], sizes = [2, 32], strides = [1, 1]} : vector<2x128xf32> to vector<2x32xf32>
    %312 = vector.extract_strided_slice %300 {offsets = [0, 64], sizes = [2, 32], strides = [1, 1]} : vector<2x128xf32> to vector<2x32xf32>
    %313 = math.tanh %312 : vector<2x32xf32>
    %314 = arith.mulf %310, %276 : vector<2x32xf32>
    %315 = arith.mulf %309, %313 : vector<2x32xf32>
    %316 = arith.addf %314, %315 : vector<2x32xf32>
    %317 = math.tanh %316 : vector<2x32xf32>
    %318 = arith.mulf %311, %317 : vector<2x32xf32>
    %319 = arith.negf %303 : vector<2x128xf32>
    %320 = math.exp %319 : vector<2x128xf32>
    %cst_82 = arith.constant 1.000000e+00 : f32
    %321 = vector.broadcast %cst_82 : f32 to vector<2x128xf32>
    %322 = arith.addf %321, %320 : vector<2x128xf32>
    %323 = arith.divf %321, %322 : vector<2x128xf32>
    %324 = vector.extract_strided_slice %323 {offsets = [0, 0], sizes = [2, 32], strides = [1, 1]} : vector<2x128xf32> to vector<2x32xf32>
    %325 = vector.extract_strided_slice %323 {offsets = [0, 32], sizes = [2, 32], strides = [1, 1]} : vector<2x128xf32> to vector<2x32xf32>
    %326 = vector.extract_strided_slice %323 {offsets = [0, 96], sizes = [2, 32], strides = [1, 1]} : vector<2x128xf32> to vector<2x32xf32>
    %327 = vector.extract_strided_slice %303 {offsets = [0, 64], sizes = [2, 32], strides = [1, 1]} : vector<2x128xf32> to vector<2x32xf32>
    %328 = math.tanh %327 : vector<2x32xf32>
    %329 = arith.mulf %325, %291 : vector<2x32xf32>
    %330 = arith.mulf %324, %328 : vector<2x32xf32>
    %331 = arith.addf %329, %330 : vector<2x32xf32>
    %332 = math.tanh %331 : vector<2x32xf32>
    %333 = arith.mulf %326, %332 : vector<2x32xf32>
    %c14_83 = arith.constant 14 : index
    %c0_84 = arith.constant 0 : index
    %334 = vector.load %arg14[%c14_83, %c0_84] : memref<32x64xf32, #tpu.memory_space<vmem>>, vector<2x32xf32>
    tpu.vector_store %arg14[%c14_83, %c0_84], %318 {strides = array<i32>} : memref<32x64xf32, #tpu.memory_space<vmem>>, vector<2x32xf32>,
    %c16_85 = arith.constant 16 : index
    %c32_86 = arith.constant 32 : index
    %335 = vector.load %arg14[%c16_85, %c32_86] : memref<32x64xf32, #tpu.memory_space<vmem>>, vector<2x32xf32>
    tpu.vector_store %arg14[%c16_85, %c32_86], %333 {strides = array<i32>} : memref<32x64xf32, #tpu.memory_space<vmem>>, vector<2x32xf32>,
    %336 = tpu.concatenate %318, %333 in 1 : vector<2x32xf32>, vector<2x32xf32> -> vector<2x64xf32>
    %cst_87 = arith.constant dense<0.000000e+00> : vector<2x256xf32>
    %337 = tpu.matmul %336, %14, %cst_87 {dimension_numbers = #tpu.dot_dimension_numbers<[1], [0], [0], [1], [0, 0, 1, 1], [], []>} : vector<2x64xf32>, vector<64x256xf32>, vector<2x256xf32> -> vector<2x256xf32>
    %c16_88 = arith.constant 16 : index
    %c0_89 = arith.constant 0 : index
    %338 = vector.load %arg13[%c16_88, %c0_89] : memref<32x256xf32, #tpu.memory_space<vmem>>, vector<2x128xf32>
    %339 = vector.extract_strided_slice %337 {offsets = [0, 0], sizes = [2, 128], strides = [1, 1]} : vector<2x256xf32> to vector<2x128xf32>
    %340 = arith.addf %338, %339 : vector<2x128xf32>
    %c14_90 = arith.constant 14 : index
    %c128_91 = arith.constant 128 : index
    %341 = vector.load %arg13[%c14_90, %c128_91] : memref<32x256xf32, #tpu.memory_space<vmem>>, vector<2x128xf32>
    %342 = vector.extract_strided_slice %337 {offsets = [0, 128], sizes = [2, 128], strides = [1, 1]} : vector<2x256xf32> to vector<2x128xf32>
    %343 = arith.addf %341, %342 : vector<2x128xf32>
    %344 = arith.negf %340 : vector<2x128xf32>
    %345 = math.exp %344 : vector<2x128xf32>
    %cst_92 = arith.constant 1.000000e+00 : f32
    %346 = vector.broadcast %cst_92 : f32 to vector<2x128xf32>
    %347 = arith.addf %346, %345 : vector<2x128xf32>
    %348 = arith.divf %346, %347 : vector<2x128xf32>
    %349 = vector.extract_strided_slice %348 {offsets = [0, 0], sizes = [2, 32], strides = [1, 1]} : vector<2x128xf32> to vector<2x32xf32>
    %350 = vector.extract_strided_slice %348 {offsets = [0, 32], sizes = [2, 32], strides = [1, 1]} : vector<2x128xf32> to vector<2x32xf32>
    %351 = vector.extract_strided_slice %348 {offsets = [0, 96], sizes = [2, 32], strides = [1, 1]} : vector<2x128xf32> to vector<2x32xf32>
    %352 = vector.extract_strided_slice %340 {offsets = [0, 64], sizes = [2, 32], strides = [1, 1]} : vector<2x128xf32> to vector<2x32xf32>
    %353 = math.tanh %352 : vector<2x32xf32>
    %354 = arith.mulf %350, %316 : vector<2x32xf32>
    %355 = arith.mulf %349, %353 : vector<2x32xf32>
    %356 = arith.addf %354, %355 : vector<2x32xf32>
    %357 = math.tanh %356 : vector<2x32xf32>
    %358 = arith.mulf %351, %357 : vector<2x32xf32>
    %359 = arith.negf %343 : vector<2x128xf32>
    %360 = math.exp %359 : vector<2x128xf32>
    %cst_93 = arith.constant 1.000000e+00 : f32
    %361 = vector.broadcast %cst_93 : f32 to vector<2x128xf32>
    %362 = arith.addf %361, %360 : vector<2x128xf32>
    %363 = arith.divf %361, %362 : vector<2x128xf32>
    %364 = vector.extract_strided_slice %363 {offsets = [0, 0], sizes = [2, 32], strides = [1, 1]} : vector<2x128xf32> to vector<2x32xf32>
    %365 = vector.extract_strided_slice %363 {offsets = [0, 32], sizes = [2, 32], strides = [1, 1]} : vector<2x128xf32> to vector<2x32xf32>
    %366 = vector.extract_strided_slice %363 {offsets = [0, 96], sizes = [2, 32], strides = [1, 1]} : vector<2x128xf32> to vector<2x32xf32>
    %367 = vector.extract_strided_slice %343 {offsets = [0, 64], sizes = [2, 32], strides = [1, 1]} : vector<2x128xf32> to vector<2x32xf32>
    %368 = math.tanh %367 : vector<2x32xf32>
    %369 = arith.mulf %365, %331 : vector<2x32xf32>
    %370 = arith.mulf %364, %368 : vector<2x32xf32>
    %371 = arith.addf %369, %370 : vector<2x32xf32>
    %372 = math.tanh %371 : vector<2x32xf32>
    %373 = arith.mulf %366, %372 : vector<2x32xf32>
    %c16_94 = arith.constant 16 : index
    %c0_95 = arith.constant 0 : index
    %374 = vector.load %arg14[%c16_94, %c0_95] : memref<32x64xf32, #tpu.memory_space<vmem>>, vector<2x32xf32>
    tpu.vector_store %arg14[%c16_94, %c0_95], %358 {strides = array<i32>} : memref<32x64xf32, #tpu.memory_space<vmem>>, vector<2x32xf32>,
    %c14_96 = arith.constant 14 : index
    %c32_97 = arith.constant 32 : index
    %375 = vector.load %arg14[%c14_96, %c32_97] : memref<32x64xf32, #tpu.memory_space<vmem>>, vector<2x32xf32>
    tpu.vector_store %arg14[%c14_96, %c32_97], %373 {strides = array<i32>} : memref<32x64xf32, #tpu.memory_space<vmem>>, vector<2x32xf32>,
    %376 = tpu.concatenate %358, %373 in 1 : vector<2x32xf32>, vector<2x32xf32> -> vector<2x64xf32>
    %cst_98 = arith.constant dense<0.000000e+00> : vector<2x256xf32>
    %377 = tpu.matmul %376, %14, %cst_98 {dimension_numbers = #tpu.dot_dimension_numbers<[1], [0], [0], [1], [0, 0, 1, 1], [], []>} : vector<2x64xf32>, vector<64x256xf32>, vector<2x256xf32> -> vector<2x256xf32>
    %c18_99 = arith.constant 18 : index
    %c0_100 = arith.constant 0 : index
    %378 = vector.load %arg13[%c18_99, %c0_100] : memref<32x256xf32, #tpu.memory_space<vmem>>, vector<2x128xf32>
    %379 = vector.extract_strided_slice %377 {offsets = [0, 0], sizes = [2, 128], strides = [1, 1]} : vector<2x256xf32> to vector<2x128xf32>
    %380 = arith.addf %378, %379 : vector<2x128xf32>
    %c12_101 = arith.constant 12 : index
    %c128_102 = arith.constant 128 : index
    %381 = vector.load %arg13[%c12_101, %c128_102] : memref<32x256xf32, #tpu.memory_space<vmem>>, vector<2x128xf32>
    %382 = vector.extract_strided_slice %377 {offsets = [0, 128], sizes = [2, 128], strides = [1, 1]} : vector<2x256xf32> to vector<2x128xf32>
    %383 = arith.addf %381, %382 : vector<2x128xf32>
    %384 = arith.negf %380 : vector<2x128xf32>
    %385 = math.exp %384 : vector<2x128xf32>
    %cst_103 = arith.constant 1.000000e+00 : f32
    %386 = vector.broadcast %cst_103 : f32 to vector<2x128xf32>
    %387 = arith.addf %386, %385 : vector<2x128xf32>
    %388 = arith.divf %386, %387 : vector<2x128xf32>
    %389 = vector.extract_strided_slice %388 {offsets = [0, 0], sizes = [2, 32], strides = [1, 1]} : vector<2x128xf32> to vector<2x32xf32>
    %390 = vector.extract_strided_slice %388 {offsets = [0, 32], sizes = [2, 32], strides = [1, 1]} : vector<2x128xf32> to vector<2x32xf32>
    %391 = vector.extract_strided_slice %388 {offsets = [0, 96], sizes = [2, 32], strides = [1, 1]} : vector<2x128xf32> to vector<2x32xf32>
    %392 = vector.extract_strided_slice %380 {offsets = [0, 64], sizes = [2, 32], strides = [1, 1]} : vector<2x128xf32> to vector<2x32xf32>
    %393 = math.tanh %392 : vector<2x32xf32>
    %394 = arith.mulf %390, %356 : vector<2x32xf32>
    %395 = arith.mulf %389, %393 : vector<2x32xf32>
    %396 = arith.addf %394, %395 : vector<2x32xf32>
    %397 = math.tanh %396 : vector<2x32xf32>
    %398 = arith.mulf %391, %397 : vector<2x32xf32>
    %399 = arith.negf %383 : vector<2x128xf32>
    %400 = math.exp %399 : vector<2x128xf32>
    %cst_104 = arith.constant 1.000000e+00 : f32
    %401 = vector.broadcast %cst_104 : f32 to vector<2x128xf32>
    %402 = arith.addf %401, %400 : vector<2x128xf32>
    %403 = arith.divf %401, %402 : vector<2x128xf32>
    %404 = vector.extract_strided_slice %403 {offsets = [0, 0], sizes = [2, 32], strides = [1, 1]} : vector<2x128xf32> to vector<2x32xf32>
    %405 = vector.extract_strided_slice %403 {offsets = [0, 32], sizes = [2, 32], strides = [1, 1]} : vector<2x128xf32> to vector<2x32xf32>
    %406 = vector.extract_strided_slice %403 {offsets = [0, 96], sizes = [2, 32], strides = [1, 1]} : vector<2x128xf32> to vector<2x32xf32>
    %407 = vector.extract_strided_slice %383 {offsets = [0, 64], sizes = [2, 32], strides = [1, 1]} : vector<2x128xf32> to vector<2x32xf32>
    %408 = math.tanh %407 : vector<2x32xf32>
    %409 = arith.mulf %405, %371 : vector<2x32xf32>
    %410 = arith.mulf %404, %408 : vector<2x32xf32>
    %411 = arith.addf %409, %410 : vector<2x32xf32>
    %412 = math.tanh %411 : vector<2x32xf32>
    %413 = arith.mulf %406, %412 : vector<2x32xf32>
    %c18_105 = arith.constant 18 : index
    %c0_106 = arith.constant 0 : index
    %414 = vector.load %arg14[%c18_105, %c0_106] : memref<32x64xf32, #tpu.memory_space<vmem>>, vector<2x32xf32>
    tpu.vector_store %arg14[%c18_105, %c0_106], %398 {strides = array<i32>} : memref<32x64xf32, #tpu.memory_space<vmem>>, vector<2x32xf32>,
    %c12_107 = arith.constant 12 : index
    %c32_108 = arith.constant 32 : index
    %415 = vector.load %arg14[%c12_107, %c32_108] : memref<32x64xf32, #tpu.memory_space<vmem>>, vector<2x32xf32>
    tpu.vector_store %arg14[%c12_107, %c32_108], %413 {strides = array<i32>} : memref<32x64xf32, #tpu.memory_space<vmem>>, vector<2x32xf32>,
    %416 = tpu.concatenate %398, %413 in 1 : vector<2x32xf32>, vector<2x32xf32> -> vector<2x64xf32>
    %cst_109 = arith.constant dense<0.000000e+00> : vector<2x256xf32>
    %417 = tpu.matmul %416, %14, %cst_109 {dimension_numbers = #tpu.dot_dimension_numbers<[1], [0], [0], [1], [0, 0, 1, 1], [], []>} : vector<2x64xf32>, vector<64x256xf32>, vector<2x256xf32> -> vector<2x256xf32>
    %c20_110 = arith.constant 20 : index
    %c0_111 = arith.constant 0 : index
    %418 = vector.load %arg13[%c20_110, %c0_111] : memref<32x256xf32, #tpu.memory_space<vmem>>, vector<2x128xf32>
    %419 = vector.extract_strided_slice %417 {offsets = [0, 0], sizes = [2, 128], strides = [1, 1]} : vector<2x256xf32> to vector<2x128xf32>
    %420 = arith.addf %418, %419 : vector<2x128xf32>
    %c10_112 = arith.constant 10 : index
    %c128_113 = arith.constant 128 : index
    %421 = vector.load %arg13[%c10_112, %c128_113] : memref<32x256xf32, #tpu.memory_space<vmem>>, vector<2x128xf32>
    %422 = vector.extract_strided_slice %417 {offsets = [0, 128], sizes = [2, 128], strides = [1, 1]} : vector<2x256xf32> to vector<2x128xf32>
    %423 = arith.addf %421, %422 : vector<2x128xf32>
    %424 = arith.negf %420 : vector<2x128xf32>
    %425 = math.exp %424 : vector<2x128xf32>
    %cst_114 = arith.constant 1.000000e+00 : f32
    %426 = vector.broadcast %cst_114 : f32 to vector<2x128xf32>
    %427 = arith.addf %426, %425 : vector<2x128xf32>
    %428 = arith.divf %426, %427 : vector<2x128xf32>
    %429 = vector.extract_strided_slice %428 {offsets = [0, 0], sizes = [2, 32], strides = [1, 1]} : vector<2x128xf32> to vector<2x32xf32>
    %430 = vector.extract_strided_slice %428 {offsets = [0, 32], sizes = [2, 32], strides = [1, 1]} : vector<2x128xf32> to vector<2x32xf32>
    %431 = vector.extract_strided_slice %428 {offsets = [0, 96], sizes = [2, 32], strides = [1, 1]} : vector<2x128xf32> to vector<2x32xf32>
    %432 = vector.extract_strided_slice %420 {offsets = [0, 64], sizes = [2, 32], strides = [1, 1]} : vector<2x128xf32> to vector<2x32xf32>
    %433 = math.tanh %432 : vector<2x32xf32>
    %434 = arith.mulf %430, %396 : vector<2x32xf32>
    %435 = arith.mulf %429, %433 : vector<2x32xf32>
    %436 = arith.addf %434, %435 : vector<2x32xf32>
    %437 = math.tanh %436 : vector<2x32xf32>
    %438 = arith.mulf %431, %437 : vector<2x32xf32>
    %439 = arith.negf %423 : vector<2x128xf32>
    %440 = math.exp %439 : vector<2x128xf32>
    %cst_115 = arith.constant 1.000000e+00 : f32
    %441 = vector.broadcast %cst_115 : f32 to vector<2x128xf32>
    %442 = arith.addf %441, %440 : vector<2x128xf32>
    %443 = arith.divf %441, %442 : vector<2x128xf32>
    %444 = vector.extract_strided_slice %443 {offsets = [0, 0], sizes = [2, 32], strides = [1, 1]} : vector<2x128xf32> to vector<2x32xf32>
    %445 = vector.extract_strided_slice %443 {offsets = [0, 32], sizes = [2, 32], strides = [1, 1]} : vector<2x128xf32> to vector<2x32xf32>
    %446 = vector.extract_strided_slice %443 {offsets = [0, 96], sizes = [2, 32], strides = [1, 1]} : vector<2x128xf32> to vector<2x32xf32>
    %447 = vector.extract_strided_slice %423 {offsets = [0, 64], sizes = [2, 32], strides = [1, 1]} : vector<2x128xf32> to vector<2x32xf32>
    %448 = math.tanh %447 : vector<2x32xf32>
    %449 = arith.mulf %445, %411 : vector<2x32xf32>
    %450 = arith.mulf %444, %448 : vector<2x32xf32>
    %451 = arith.addf %449, %450 : vector<2x32xf32>
    %452 = math.tanh %451 : vector<2x32xf32>
    %453 = arith.mulf %446, %452 : vector<2x32xf32>
    %c20_116 = arith.constant 20 : index
    %c0_117 = arith.constant 0 : index
    %454 = vector.load %arg14[%c20_116, %c0_117] : memref<32x64xf32, #tpu.memory_space<vmem>>, vector<2x32xf32>
    tpu.vector_store %arg14[%c20_116, %c0_117], %438 {strides = array<i32>} : memref<32x64xf32, #tpu.memory_space<vmem>>, vector<2x32xf32>,
    %c10_118 = arith.constant 10 : index
    %c32_119 = arith.constant 32 : index
    %455 = vector.load %arg14[%c10_118, %c32_119] : memref<32x64xf32, #tpu.memory_space<vmem>>, vector<2x32xf32>
    tpu.vector_store %arg14[%c10_118, %c32_119], %453 {strides = array<i32>} : memref<32x64xf32, #tpu.memory_space<vmem>>, vector<2x32xf32>,
    %456 = tpu.concatenate %438, %453 in 1 : vector<2x32xf32>, vector<2x32xf32> -> vector<2x64xf32>
    %cst_120 = arith.constant dense<0.000000e+00> : vector<2x256xf32>
    %457 = tpu.matmul %456, %14, %cst_120 {dimension_numbers = #tpu.dot_dimension_numbers<[1], [0], [0], [1], [0, 0, 1, 1], [], []>} : vector<2x64xf32>, vector<64x256xf32>, vector<2x256xf32> -> vector<2x256xf32>
    %c22_121 = arith.constant 22 : index
    %c0_122 = arith.constant 0 : index
    %458 = vector.load %arg13[%c22_121, %c0_122] : memref<32x256xf32, #tpu.memory_space<vmem>>, vector<2x128xf32>
    %459 = vector.extract_strided_slice %457 {offsets = [0, 0], sizes = [2, 128], strides = [1, 1]} : vector<2x256xf32> to vector<2x128xf32>
    %460 = arith.addf %458, %459 : vector<2x128xf32>
    %c8_123 = arith.constant 8 : index
    %c128_124 = arith.constant 128 : index
    %461 = vector.load %arg13[%c8_123, %c128_124] : memref<32x256xf32, #tpu.memory_space<vmem>>, vector<2x128xf32>
    %462 = vector.extract_strided_slice %457 {offsets = [0, 128], sizes = [2, 128], strides = [1, 1]} : vector<2x256xf32> to vector<2x128xf32>
    %463 = arith.addf %461, %462 : vector<2x128xf32>
    %464 = arith.negf %460 : vector<2x128xf32>
    %465 = math.exp %464 : vector<2x128xf32>
    %cst_125 = arith.constant 1.000000e+00 : f32
    %466 = vector.broadcast %cst_125 : f32 to vector<2x128xf32>
    %467 = arith.addf %466, %465 : vector<2x128xf32>
    %468 = arith.divf %466, %467 : vector<2x128xf32>
    %469 = vector.extract_strided_slice %468 {offsets = [0, 0], sizes = [2, 32], strides = [1, 1]} : vector<2x128xf32> to vector<2x32xf32>
    %470 = vector.extract_strided_slice %468 {offsets = [0, 32], sizes = [2, 32], strides = [1, 1]} : vector<2x128xf32> to vector<2x32xf32>
    %471 = vector.extract_strided_slice %468 {offsets = [0, 96], sizes = [2, 32], strides = [1, 1]} : vector<2x128xf32> to vector<2x32xf32>
    %472 = vector.extract_strided_slice %460 {offsets = [0, 64], sizes = [2, 32], strides = [1, 1]} : vector<2x128xf32> to vector<2x32xf32>
    %473 = math.tanh %472 : vector<2x32xf32>
    %474 = arith.mulf %470, %436 : vector<2x32xf32>
    %475 = arith.mulf %469, %473 : vector<2x32xf32>
    %476 = arith.addf %474, %475 : vector<2x32xf32>
    %477 = math.tanh %476 : vector<2x32xf32>
    %478 = arith.mulf %471, %477 : vector<2x32xf32>
    %479 = arith.negf %463 : vector<2x128xf32>
    %480 = math.exp %479 : vector<2x128xf32>
    %cst_126 = arith.constant 1.000000e+00 : f32
    %481 = vector.broadcast %cst_126 : f32 to vector<2x128xf32>
    %482 = arith.addf %481, %480 : vector<2x128xf32>
    %483 = arith.divf %481, %482 : vector<2x128xf32>
    %484 = vector.extract_strided_slice %483 {offsets = [0, 0], sizes = [2, 32], strides = [1, 1]} : vector<2x128xf32> to vector<2x32xf32>
    %485 = vector.extract_strided_slice %483 {offsets = [0, 32], sizes = [2, 32], strides = [1, 1]} : vector<2x128xf32> to vector<2x32xf32>
    %486 = vector.extract_strided_slice %483 {offsets = [0, 96], sizes = [2, 32], strides = [1, 1]} : vector<2x128xf32> to vector<2x32xf32>
    %487 = vector.extract_strided_slice %463 {offsets = [0, 64], sizes = [2, 32], strides = [1, 1]} : vector<2x128xf32> to vector<2x32xf32>
    %488 = math.tanh %487 : vector<2x32xf32>
    %489 = arith.mulf %485, %451 : vector<2x32xf32>
    %490 = arith.mulf %484, %488 : vector<2x32xf32>
    %491 = arith.addf %489, %490 : vector<2x32xf32>
    %492 = math.tanh %491 : vector<2x32xf32>
    %493 = arith.mulf %486, %492 : vector<2x32xf32>
    %c22_127 = arith.constant 22 : index
    %c0_128 = arith.constant 0 : index
    %494 = vector.load %arg14[%c22_127, %c0_128] : memref<32x64xf32, #tpu.memory_space<vmem>>, vector<2x32xf32>
    tpu.vector_store %arg14[%c22_127, %c0_128], %478 {strides = array<i32>} : memref<32x64xf32, #tpu.memory_space<vmem>>, vector<2x32xf32>,
    %c8_129 = arith.constant 8 : index
    %c32_130 = arith.constant 32 : index
    %495 = vector.load %arg14[%c8_129, %c32_130] : memref<32x64xf32, #tpu.memory_space<vmem>>, vector<2x32xf32>
    tpu.vector_store %arg14[%c8_129, %c32_130], %493 {strides = array<i32>} : memref<32x64xf32, #tpu.memory_space<vmem>>, vector<2x32xf32>,
    %496 = tpu.concatenate %478, %493 in 1 : vector<2x32xf32>, vector<2x32xf32> -> vector<2x64xf32>
    %cst_131 = arith.constant dense<0.000000e+00> : vector<2x256xf32>
    %497 = tpu.matmul %496, %14, %cst_131 {dimension_numbers = #tpu.dot_dimension_numbers<[1], [0], [0], [1], [0, 0, 1, 1], [], []>} : vector<2x64xf32>, vector<64x256xf32>, vector<2x256xf32> -> vector<2x256xf32>
    %c24_132 = arith.constant 24 : index
    %c0_133 = arith.constant 0 : index
    %498 = vector.load %arg13[%c24_132, %c0_133] : memref<32x256xf32, #tpu.memory_space<vmem>>, vector<2x128xf32>
    %499 = vector.extract_strided_slice %497 {offsets = [0, 0], sizes = [2, 128], strides = [1, 1]} : vector<2x256xf32> to vector<2x128xf32>
    %500 = arith.addf %498, %499 : vector<2x128xf32>
    %c6_134 = arith.constant 6 : index
    %c128_135 = arith.constant 128 : index
    %501 = vector.load %arg13[%c6_134, %c128_135] : memref<32x256xf32, #tpu.memory_space<vmem>>, vector<2x128xf32>
    %502 = vector.extract_strided_slice %497 {offsets = [0, 128], sizes = [2, 128], strides = [1, 1]} : vector<2x256xf32> to vector<2x128xf32>
    %503 = arith.addf %501, %502 : vector<2x128xf32>
    %504 = arith.negf %500 : vector<2x128xf32>
    %505 = math.exp %504 : vector<2x128xf32>
    %cst_136 = arith.constant 1.000000e+00 : f32
    %506 = vector.broadcast %cst_136 : f32 to vector<2x128xf32>
    %507 = arith.addf %506, %505 : vector<2x128xf32>
    %508 = arith.divf %506, %507 : vector<2x128xf32>
    %509 = vector.extract_strided_slice %508 {offsets = [0, 0], sizes = [2, 32], strides = [1, 1]} : vector<2x128xf32> to vector<2x32xf32>
    %510 = vector.extract_strided_slice %508 {offsets = [0, 32], sizes = [2, 32], strides = [1, 1]} : vector<2x128xf32> to vector<2x32xf32>
    %511 = vector.extract_strided_slice %508 {offsets = [0, 96], sizes = [2, 32], strides = [1, 1]} : vector<2x128xf32> to vector<2x32xf32>
    %512 = vector.extract_strided_slice %500 {offsets = [0, 64], sizes = [2, 32], strides = [1, 1]} : vector<2x128xf32> to vector<2x32xf32>
    %513 = math.tanh %512 : vector<2x32xf32>
    %514 = arith.mulf %510, %476 : vector<2x32xf32>
    %515 = arith.mulf %509, %513 : vector<2x32xf32>
    %516 = arith.addf %514, %515 : vector<2x32xf32>
    %517 = math.tanh %516 : vector<2x32xf32>
    %518 = arith.mulf %511, %517 : vector<2x32xf32>
    %519 = arith.negf %503 : vector<2x128xf32>
    %520 = math.exp %519 : vector<2x128xf32>
    %cst_137 = arith.constant 1.000000e+00 : f32
    %521 = vector.broadcast %cst_137 : f32 to vector<2x128xf32>
    %522 = arith.addf %521, %520 : vector<2x128xf32>
    %523 = arith.divf %521, %522 : vector<2x128xf32>
    %524 = vector.extract_strided_slice %523 {offsets = [0, 0], sizes = [2, 32], strides = [1, 1]} : vector<2x128xf32> to vector<2x32xf32>
    %525 = vector.extract_strided_slice %523 {offsets = [0, 32], sizes = [2, 32], strides = [1, 1]} : vector<2x128xf32> to vector<2x32xf32>
    %526 = vector.extract_strided_slice %523 {offsets = [0, 96], sizes = [2, 32], strides = [1, 1]} : vector<2x128xf32> to vector<2x32xf32>
    %527 = vector.extract_strided_slice %503 {offsets = [0, 64], sizes = [2, 32], strides = [1, 1]} : vector<2x128xf32> to vector<2x32xf32>
    %528 = math.tanh %527 : vector<2x32xf32>
    %529 = arith.mulf %525, %491 : vector<2x32xf32>
    %530 = arith.mulf %524, %528 : vector<2x32xf32>
    %531 = arith.addf %529, %530 : vector<2x32xf32>
    %532 = math.tanh %531 : vector<2x32xf32>
    %533 = arith.mulf %526, %532 : vector<2x32xf32>
    %c24_138 = arith.constant 24 : index
    %c0_139 = arith.constant 0 : index
    %534 = vector.load %arg14[%c24_138, %c0_139] : memref<32x64xf32, #tpu.memory_space<vmem>>, vector<2x32xf32>
    tpu.vector_store %arg14[%c24_138, %c0_139], %518 {strides = array<i32>} : memref<32x64xf32, #tpu.memory_space<vmem>>, vector<2x32xf32>,
    %c6_140 = arith.constant 6 : index
    %c32_141 = arith.constant 32 : index
    %535 = vector.load %arg14[%c6_140, %c32_141] : memref<32x64xf32, #tpu.memory_space<vmem>>, vector<2x32xf32>
    tpu.vector_store %arg14[%c6_140, %c32_141], %533 {strides = array<i32>} : memref<32x64xf32, #tpu.memory_space<vmem>>, vector<2x32xf32>,
    %536 = tpu.concatenate %518, %533 in 1 : vector<2x32xf32>, vector<2x32xf32> -> vector<2x64xf32>
    %cst_142 = arith.constant dense<0.000000e+00> : vector<2x256xf32>
    %537 = tpu.matmul %536, %14, %cst_142 {dimension_numbers = #tpu.dot_dimension_numbers<[1], [0], [0], [1], [0, 0, 1, 1], [], []>} : vector<2x64xf32>, vector<64x256xf32>, vector<2x256xf32> -> vector<2x256xf32>
    %c26_143 = arith.constant 26 : index
    %c0_144 = arith.constant 0 : index
    %538 = vector.load %arg13[%c26_143, %c0_144] : memref<32x256xf32, #tpu.memory_space<vmem>>, vector<2x128xf32>
    %539 = vector.extract_strided_slice %537 {offsets = [0, 0], sizes = [2, 128], strides = [1, 1]} : vector<2x256xf32> to vector<2x128xf32>
    %540 = arith.addf %538, %539 : vector<2x128xf32>
    %c4_145 = arith.constant 4 : index
    %c128_146 = arith.constant 128 : index
    %541 = vector.load %arg13[%c4_145, %c128_146] : memref<32x256xf32, #tpu.memory_space<vmem>>, vector<2x128xf32>
    %542 = vector.extract_strided_slice %537 {offsets = [0, 128], sizes = [2, 128], strides = [1, 1]} : vector<2x256xf32> to vector<2x128xf32>
    %543 = arith.addf %541, %542 : vector<2x128xf32>
    %544 = arith.negf %540 : vector<2x128xf32>
    %545 = math.exp %544 : vector<2x128xf32>
    %cst_147 = arith.constant 1.000000e+00 : f32
    %546 = vector.broadcast %cst_147 : f32 to vector<2x128xf32>
    %547 = arith.addf %546, %545 : vector<2x128xf32>
    %548 = arith.divf %546, %547 : vector<2x128xf32>
    %549 = vector.extract_strided_slice %548 {offsets = [0, 0], sizes = [2, 32], strides = [1, 1]} : vector<2x128xf32> to vector<2x32xf32>
    %550 = vector.extract_strided_slice %548 {offsets = [0, 32], sizes = [2, 32], strides = [1, 1]} : vector<2x128xf32> to vector<2x32xf32>
    %551 = vector.extract_strided_slice %548 {offsets = [0, 96], sizes = [2, 32], strides = [1, 1]} : vector<2x128xf32> to vector<2x32xf32>
    %552 = vector.extract_strided_slice %540 {offsets = [0, 64], sizes = [2, 32], strides = [1, 1]} : vector<2x128xf32> to vector<2x32xf32>
    %553 = math.tanh %552 : vector<2x32xf32>
    %554 = arith.mulf %550, %516 : vector<2x32xf32>
    %555 = arith.mulf %549, %553 : vector<2x32xf32>
    %556 = arith.addf %554, %555 : vector<2x32xf32>
    %557 = math.tanh %556 : vector<2x32xf32>
    %558 = arith.mulf %551, %557 : vector<2x32xf32>
    %559 = arith.negf %543 : vector<2x128xf32>
    %560 = math.exp %559 : vector<2x128xf32>
    %cst_148 = arith.constant 1.000000e+00 : f32
    %561 = vector.broadcast %cst_148 : f32 to vector<2x128xf32>
    %562 = arith.addf %561, %560 : vector<2x128xf32>
    %563 = arith.divf %561, %562 : vector<2x128xf32>
    %564 = vector.extract_strided_slice %563 {offsets = [0, 0], sizes = [2, 32], strides = [1, 1]} : vector<2x128xf32> to vector<2x32xf32>
    %565 = vector.extract_strided_slice %563 {offsets = [0, 32], sizes = [2, 32], strides = [1, 1]} : vector<2x128xf32> to vector<2x32xf32>
    %566 = vector.extract_strided_slice %563 {offsets = [0, 96], sizes = [2, 32], strides = [1, 1]} : vector<2x128xf32> to vector<2x32xf32>
    %567 = vector.extract_strided_slice %543 {offsets = [0, 64], sizes = [2, 32], strides = [1, 1]} : vector<2x128xf32> to vector<2x32xf32>
    %568 = math.tanh %567 : vector<2x32xf32>
    %569 = arith.mulf %565, %531 : vector<2x32xf32>
    %570 = arith.mulf %564, %568 : vector<2x32xf32>
    %571 = arith.addf %569, %570 : vector<2x32xf32>
    %572 = math.tanh %571 : vector<2x32xf32>
    %573 = arith.mulf %566, %572 : vector<2x32xf32>
    %c26_149 = arith.constant 26 : index
    %c0_150 = arith.constant 0 : index
    %574 = vector.load %arg14[%c26_149, %c0_150] : memref<32x64xf32, #tpu.memory_space<vmem>>, vector<2x32xf32>
    tpu.vector_store %arg14[%c26_149, %c0_150], %558 {strides = array<i32>} : memref<32x64xf32, #tpu.memory_space<vmem>>, vector<2x32xf32>,
    %c4_151 = arith.constant 4 : index
    %c32_152 = arith.constant 32 : index
    %575 = vector.load %arg14[%c4_151, %c32_152] : memref<32x64xf32, #tpu.memory_space<vmem>>, vector<2x32xf32>
    tpu.vector_store %arg14[%c4_151, %c32_152], %573 {strides = array<i32>} : memref<32x64xf32, #tpu.memory_space<vmem>>, vector<2x32xf32>,
    %576 = tpu.concatenate %558, %573 in 1 : vector<2x32xf32>, vector<2x32xf32> -> vector<2x64xf32>
    %cst_153 = arith.constant dense<0.000000e+00> : vector<2x256xf32>
    %577 = tpu.matmul %576, %14, %cst_153 {dimension_numbers = #tpu.dot_dimension_numbers<[1], [0], [0], [1], [0, 0, 1, 1], [], []>} : vector<2x64xf32>, vector<64x256xf32>, vector<2x256xf32> -> vector<2x256xf32>
    %c28_154 = arith.constant 28 : index
    %c0_155 = arith.constant 0 : index
    %578 = vector.load %arg13[%c28_154, %c0_155] : memref<32x256xf32, #tpu.memory_space<vmem>>, vector<2x128xf32>
    %579 = vector.extract_strided_slice %577 {offsets = [0, 0], sizes = [2, 128], strides = [1, 1]} : vector<2x256xf32> to vector<2x128xf32>
    %580 = arith.addf %578, %579 : vector<2x128xf32>
    %c2_156 = arith.constant 2 : index
    %c128_157 = arith.constant 128 : index
    %581 = vector.load %arg13[%c2_156, %c128_157] : memref<32x256xf32, #tpu.memory_space<vmem>>, vector<2x128xf32>
    %582 = vector.extract_strided_slice %577 {offsets = [0, 128], sizes = [2, 128], strides = [1, 1]} : vector<2x256xf32> to vector<2x128xf32>
    %583 = arith.addf %581, %582 : vector<2x128xf32>
    %584 = arith.negf %580 : vector<2x128xf32>
    %585 = math.exp %584 : vector<2x128xf32>
    %cst_158 = arith.constant 1.000000e+00 : f32
    %586 = vector.broadcast %cst_158 : f32 to vector<2x128xf32>
    %587 = arith.addf %586, %585 : vector<2x128xf32>
    %588 = arith.divf %586, %587 : vector<2x128xf32>
    %589 = vector.extract_strided_slice %588 {offsets = [0, 0], sizes = [2, 32], strides = [1, 1]} : vector<2x128xf32> to vector<2x32xf32>
    %590 = vector.extract_strided_slice %588 {offsets = [0, 32], sizes = [2, 32], strides = [1, 1]} : vector<2x128xf32> to vector<2x32xf32>
    %591 = vector.extract_strided_slice %588 {offsets = [0, 96], sizes = [2, 32], strides = [1, 1]} : vector<2x128xf32> to vector<2x32xf32>
    %592 = vector.extract_strided_slice %580 {offsets = [0, 64], sizes = [2, 32], strides = [1, 1]} : vector<2x128xf32> to vector<2x32xf32>
    %593 = math.tanh %592 : vector<2x32xf32>
    %594 = arith.mulf %590, %556 : vector<2x32xf32>
    %595 = arith.mulf %589, %593 : vector<2x32xf32>
    %596 = arith.addf %594, %595 : vector<2x32xf32>
    %597 = math.tanh %596 : vector<2x32xf32>
    %598 = arith.mulf %591, %597 : vector<2x32xf32>
    %599 = arith.negf %583 : vector<2x128xf32>
    %600 = math.exp %599 : vector<2x128xf32>
    %cst_159 = arith.constant 1.000000e+00 : f32
    %601 = vector.broadcast %cst_159 : f32 to vector<2x128xf32>
    %602 = arith.addf %601, %600 : vector<2x128xf32>
    %603 = arith.divf %601, %602 : vector<2x128xf32>
    %604 = vector.extract_strided_slice %603 {offsets = [0, 0], sizes = [2, 32], strides = [1, 1]} : vector<2x128xf32> to vector<2x32xf32>
    %605 = vector.extract_strided_slice %603 {offsets = [0, 32], sizes = [2, 32], strides = [1, 1]} : vector<2x128xf32> to vector<2x32xf32>
    %606 = vector.extract_strided_slice %603 {offsets = [0, 96], sizes = [2, 32], strides = [1, 1]} : vector<2x128xf32> to vector<2x32xf32>
    %607 = vector.extract_strided_slice %583 {offsets = [0, 64], sizes = [2, 32], strides = [1, 1]} : vector<2x128xf32> to vector<2x32xf32>
    %608 = math.tanh %607 : vector<2x32xf32>
    %609 = arith.mulf %605, %571 : vector<2x32xf32>
    %610 = arith.mulf %604, %608 : vector<2x32xf32>
    %611 = arith.addf %609, %610 : vector<2x32xf32>
    %612 = math.tanh %611 : vector<2x32xf32>
    %613 = arith.mulf %606, %612 : vector<2x32xf32>
    %c28_160 = arith.constant 28 : index
    %c0_161 = arith.constant 0 : index
    %614 = vector.load %arg14[%c28_160, %c0_161] : memref<32x64xf32, #tpu.memory_space<vmem>>, vector<2x32xf32>
    tpu.vector_store %arg14[%c28_160, %c0_161], %598 {strides = array<i32>} : memref<32x64xf32, #tpu.memory_space<vmem>>, vector<2x32xf32>,
    %c2_162 = arith.constant 2 : index
    %c32_163 = arith.constant 32 : index
    %615 = vector.load %arg14[%c2_162, %c32_163] : memref<32x64xf32, #tpu.memory_space<vmem>>, vector<2x32xf32>
    tpu.vector_store %arg14[%c2_162, %c32_163], %613 {strides = array<i32>} : memref<32x64xf32, #tpu.memory_space<vmem>>, vector<2x32xf32>,
    %616 = tpu.concatenate %598, %613 in 1 : vector<2x32xf32>, vector<2x32xf32> -> vector<2x64xf32>
    %cst_164 = arith.constant dense<0.000000e+00> : vector<2x256xf32>
    %617 = tpu.matmul %616, %14, %cst_164 {dimension_numbers = #tpu.dot_dimension_numbers<[1], [0], [0], [1], [0, 0, 1, 1], [], []>} : vector<2x64xf32>, vector<64x256xf32>, vector<2x256xf32> -> vector<2x256xf32>
    %c30_165 = arith.constant 30 : index
    %c0_166 = arith.constant 0 : index
    %618 = vector.load %arg13[%c30_165, %c0_166] : memref<32x256xf32, #tpu.memory_space<vmem>>, vector<2x128xf32>
    %619 = vector.extract_strided_slice %617 {offsets = [0, 0], sizes = [2, 128], strides = [1, 1]} : vector<2x256xf32> to vector<2x128xf32>
    %620 = arith.addf %618, %619 : vector<2x128xf32>
    %c0_167 = arith.constant 0 : index
    %c128_168 = arith.constant 128 : index
    %621 = vector.load %arg13[%c0_167, %c128_168] : memref<32x256xf32, #tpu.memory_space<vmem>>, vector<2x128xf32>
    %622 = vector.extract_strided_slice %617 {offsets = [0, 128], sizes = [2, 128], strides = [1, 1]} : vector<2x256xf32> to vector<2x128xf32>
    %623 = arith.addf %621, %622 : vector<2x128xf32>
    %624 = arith.negf %620 : vector<2x128xf32>
    %625 = math.exp %624 : vector<2x128xf32>
    %cst_169 = arith.constant 1.000000e+00 : f32
    %626 = vector.broadcast %cst_169 : f32 to vector<2x128xf32>
    %627 = arith.addf %626, %625 : vector<2x128xf32>
    %628 = arith.divf %626, %627 : vector<2x128xf32>
    %629 = vector.extract_strided_slice %628 {offsets = [0, 0], sizes = [2, 32], strides = [1, 1]} : vector<2x128xf32> to vector<2x32xf32>
    %630 = vector.extract_strided_slice %628 {offsets = [0, 32], sizes = [2, 32], strides = [1, 1]} : vector<2x128xf32> to vector<2x32xf32>
    %631 = vector.extract_strided_slice %628 {offsets = [0, 96], sizes = [2, 32], strides = [1, 1]} : vector<2x128xf32> to vector<2x32xf32>
    %632 = vector.extract_strided_slice %620 {offsets = [0, 64], sizes = [2, 32], strides = [1, 1]} : vector<2x128xf32> to vector<2x32xf32>
    %633 = math.tanh %632 : vector<2x32xf32>
    %634 = arith.mulf %630, %596 : vector<2x32xf32>
    %635 = arith.mulf %629, %633 : vector<2x32xf32>
    %636 = arith.addf %634, %635 : vector<2x32xf32>
    %637 = math.tanh %636 : vector<2x32xf32>
    %638 = arith.mulf %631, %637 : vector<2x32xf32>
    %639 = arith.negf %623 : vector<2x128xf32>
    %640 = math.exp %639 : vector<2x128xf32>
    %cst_170 = arith.constant 1.000000e+00 : f32
    %641 = vector.broadcast %cst_170 : f32 to vector<2x128xf32>
    %642 = arith.addf %641, %640 : vector<2x128xf32>
    %643 = arith.divf %641, %642 : vector<2x128xf32>
    %644 = vector.extract_strided_slice %643 {offsets = [0, 0], sizes = [2, 32], strides = [1, 1]} : vector<2x128xf32> to vector<2x32xf32>
    %645 = vector.extract_strided_slice %643 {offsets = [0, 32], sizes = [2, 32], strides = [1, 1]} : vector<2x128xf32> to vector<2x32xf32>
    %646 = vector.extract_strided_slice %643 {offsets = [0, 96], sizes = [2, 32], strides = [1, 1]} : vector<2x128xf32> to vector<2x32xf32>
    %647 = vector.extract_strided_slice %623 {offsets = [0, 64], sizes = [2, 32], strides = [1, 1]} : vector<2x128xf32> to vector<2x32xf32>
    %648 = math.tanh %647 : vector<2x32xf32>
    %649 = arith.mulf %645, %611 : vector<2x32xf32>
    %650 = arith.mulf %644, %648 : vector<2x32xf32>
    %651 = arith.addf %649, %650 : vector<2x32xf32>
    %652 = math.tanh %651 : vector<2x32xf32>
    %653 = arith.mulf %646, %652 : vector<2x32xf32>
    %c30_171 = arith.constant 30 : index
    %c0_172 = arith.constant 0 : index
    %654 = vector.load %arg14[%c30_171, %c0_172] : memref<32x64xf32, #tpu.memory_space<vmem>>, vector<2x32xf32>
    tpu.vector_store %arg14[%c30_171, %c0_172], %638 {strides = array<i32>} : memref<32x64xf32, #tpu.memory_space<vmem>>, vector<2x32xf32>,
    %c0_173 = arith.constant 0 : index
    %c32_174 = arith.constant 32 : index
    %655 = vector.load %arg14[%c0_173, %c32_174] : memref<32x64xf32, #tpu.memory_space<vmem>>, vector<2x32xf32>
    tpu.vector_store %arg14[%c0_173, %c32_174], %653 {strides = array<i32>} : memref<32x64xf32, #tpu.memory_space<vmem>>, vector<2x32xf32>,
    %c0_175 = arith.constant 0 : index
    %c0_176 = arith.constant 0 : index
    %656 = vector.load %arg14[%c0_175, %c0_176] : memref<32x64xf32, #tpu.memory_space<vmem>>, vector<32x64xf32>
    %c0_177 = arith.constant 0 : index
    %c0_178 = arith.constant 0 : index
    %657 = vector.load %arg7[%c0_177, %c0_178] : memref<64x256xf32, #tpu.memory_space<vmem>>, vector<64x256xf32>
    %cst_179 = arith.constant dense<0.000000e+00> : vector<32x256xf32>
    %658 = tpu.matmul %656, %657, %cst_179 {dimension_numbers = #tpu.dot_dimension_numbers<[1], [0], [0], [1], [0, 0, 1, 1], [], []>} : vector<32x64xf32>, vector<64x256xf32>, vector<32x256xf32> -> vector<32x256xf32>
    %c0_180 = arith.constant 0 : index
    %c0_181 = arith.constant 0 : index
    %659 = vector.load %arg8[%c0_180, %c0_181] : memref<1x256xf32, #tpu.memory_space<vmem>>, vector<1x256xf32>
    %660 = vector.broadcast %659 : vector<1x256xf32> to vector<32x256xf32>
    %661 = arith.addf %658, %660 : vector<32x256xf32>
    %c0_182 = arith.constant 0 : index
    %c0_183 = arith.constant 0 : index
    %662 = vector.load %arg13[%c0_182, %c0_183] : memref<32x256xf32, #tpu.memory_space<vmem>>, vector<32x256xf32>
    tpu.vector_store %arg13[%c0_182, %c0_183], %661 {strides = array<i32>} : memref<32x256xf32, #tpu.memory_space<vmem>>, vector<32x256xf32>,
    %c0_184 = arith.constant 0 : index
    %c0_185 = arith.constant 0 : index
    %663 = vector.load %arg9[%c0_184, %c0_185] : memref<64x256xf32, #tpu.memory_space<vmem>>, vector<64x256xf32>
    %cst_186 = arith.constant 0.000000e+00 : f32
    %664 = vector.broadcast %cst_186 : f32 to vector<2x32xf32>
    %665 = tpu.concatenate %664, %664 in 1 : vector<2x32xf32>, vector<2x32xf32> -> vector<2x64xf32>
    %cst_187 = arith.constant dense<0.000000e+00> : vector<2x256xf32>
    %666 = tpu.matmul %665, %663, %cst_187 {dimension_numbers = #tpu.dot_dimension_numbers<[1], [0], [0], [1], [0, 0, 1, 1], [], []>} : vector<2x64xf32>, vector<64x256xf32>, vector<2x256xf32> -> vector<2x256xf32>
    %c0_188 = arith.constant 0 : index
    %c0_189 = arith.constant 0 : index
    %667 = vector.load %arg13[%c0_188, %c0_189] : memref<32x256xf32, #tpu.memory_space<vmem>>, vector<2x128xf32>
    %668 = vector.extract_strided_slice %666 {offsets = [0, 0], sizes = [2, 128], strides = [1, 1]} : vector<2x256xf32> to vector<2x128xf32>
    %669 = arith.addf %667, %668 : vector<2x128xf32>
    %c30_190 = arith.constant 30 : index
    %c128_191 = arith.constant 128 : index
    %670 = vector.load %arg13[%c30_190, %c128_191] : memref<32x256xf32, #tpu.memory_space<vmem>>, vector<2x128xf32>
    %671 = vector.extract_strided_slice %666 {offsets = [0, 128], sizes = [2, 128], strides = [1, 1]} : vector<2x256xf32> to vector<2x128xf32>
    %672 = arith.addf %670, %671 : vector<2x128xf32>
    %673 = arith.negf %669 : vector<2x128xf32>
    %674 = math.exp %673 : vector<2x128xf32>
    %cst_192 = arith.constant 1.000000e+00 : f32
    %675 = vector.broadcast %cst_192 : f32 to vector<2x128xf32>
    %676 = arith.addf %675, %674 : vector<2x128xf32>
    %677 = arith.divf %675, %676 : vector<2x128xf32>
    %678 = vector.extract_strided_slice %677 {offsets = [0, 0], sizes = [2, 32], strides = [1, 1]} : vector<2x128xf32> to vector<2x32xf32>
    %679 = vector.extract_strided_slice %677 {offsets = [0, 32], sizes = [2, 32], strides = [1, 1]} : vector<2x128xf32> to vector<2x32xf32>
    %680 = vector.extract_strided_slice %677 {offsets = [0, 96], sizes = [2, 32], strides = [1, 1]} : vector<2x128xf32> to vector<2x32xf32>
    %681 = vector.extract_strided_slice %669 {offsets = [0, 64], sizes = [2, 32], strides = [1, 1]} : vector<2x128xf32> to vector<2x32xf32>
    %682 = math.tanh %681 : vector<2x32xf32>
    %683 = arith.mulf %679, %664 : vector<2x32xf32>
    %684 = arith.mulf %678, %682 : vector<2x32xf32>
    %685 = arith.addf %683, %684 : vector<2x32xf32>
    %686 = math.tanh %685 : vector<2x32xf32>
    %687 = arith.mulf %680, %686 : vector<2x32xf32>
    %688 = arith.negf %672 : vector<2x128xf32>
    %689 = math.exp %688 : vector<2x128xf32>
    %cst_193 = arith.constant 1.000000e+00 : f32
    %690 = vector.broadcast %cst_193 : f32 to vector<2x128xf32>
    %691 = arith.addf %690, %689 : vector<2x128xf32>
    %692 = arith.divf %690, %691 : vector<2x128xf32>
    %693 = vector.extract_strided_slice %692 {offsets = [0, 0], sizes = [2, 32], strides = [1, 1]} : vector<2x128xf32> to vector<2x32xf32>
    %694 = vector.extract_strided_slice %692 {offsets = [0, 32], sizes = [2, 32], strides = [1, 1]} : vector<2x128xf32> to vector<2x32xf32>
    %695 = vector.extract_strided_slice %692 {offsets = [0, 96], sizes = [2, 32], strides = [1, 1]} : vector<2x128xf32> to vector<2x32xf32>
    %696 = vector.extract_strided_slice %672 {offsets = [0, 64], sizes = [2, 32], strides = [1, 1]} : vector<2x128xf32> to vector<2x32xf32>
    %697 = math.tanh %696 : vector<2x32xf32>
    %698 = arith.mulf %694, %664 : vector<2x32xf32>
    %699 = arith.mulf %693, %697 : vector<2x32xf32>
    %700 = arith.addf %698, %699 : vector<2x32xf32>
    %701 = math.tanh %700 : vector<2x32xf32>
    %702 = arith.mulf %695, %701 : vector<2x32xf32>
    %c0_194 = arith.constant 0 : index
    %c0_195 = arith.constant 0 : index
    %703 = vector.load %arg15[%c0_194, %c0_195] : memref<32x64xf32, #tpu.memory_space<vmem>>, vector<2x32xf32>
    tpu.vector_store %arg15[%c0_194, %c0_195], %687 {strides = array<i32>} : memref<32x64xf32, #tpu.memory_space<vmem>>, vector<2x32xf32>,
    %c30_196 = arith.constant 30 : index
    %c32_197 = arith.constant 32 : index
    %704 = vector.load %arg15[%c30_196, %c32_197] : memref<32x64xf32, #tpu.memory_space<vmem>>, vector<2x32xf32>
    tpu.vector_store %arg15[%c30_196, %c32_197], %702 {strides = array<i32>} : memref<32x64xf32, #tpu.memory_space<vmem>>, vector<2x32xf32>,
    %705 = tpu.concatenate %687, %702 in 1 : vector<2x32xf32>, vector<2x32xf32> -> vector<2x64xf32>
    %cst_198 = arith.constant dense<0.000000e+00> : vector<2x256xf32>
    %706 = tpu.matmul %705, %663, %cst_198 {dimension_numbers = #tpu.dot_dimension_numbers<[1], [0], [0], [1], [0, 0, 1, 1], [], []>} : vector<2x64xf32>, vector<64x256xf32>, vector<2x256xf32> -> vector<2x256xf32>
    %c2_199 = arith.constant 2 : index
    %c0_200 = arith.constant 0 : index
    %707 = vector.load %arg13[%c2_199, %c0_200] : memref<32x256xf32, #tpu.memory_space<vmem>>, vector<2x128xf32>
    %708 = vector.extract_strided_slice %706 {offsets = [0, 0], sizes = [2, 128], strides = [1, 1]} : vector<2x256xf32> to vector<2x128xf32>
    %709 = arith.addf %707, %708 : vector<2x128xf32>
    %c28_201 = arith.constant 28 : index
    %c128_202 = arith.constant 128 : index
    %710 = vector.load %arg13[%c28_201, %c128_202] : memref<32x256xf32, #tpu.memory_space<vmem>>, vector<2x128xf32>
    %711 = vector.extract_strided_slice %706 {offsets = [0, 128], sizes = [2, 128], strides = [1, 1]} : vector<2x256xf32> to vector<2x128xf32>
    %712 = arith.addf %710, %711 : vector<2x128xf32>
    %713 = arith.negf %709 : vector<2x128xf32>
    %714 = math.exp %713 : vector<2x128xf32>
    %cst_203 = arith.constant 1.000000e+00 : f32
    %715 = vector.broadcast %cst_203 : f32 to vector<2x128xf32>
    %716 = arith.addf %715, %714 : vector<2x128xf32>
    %717 = arith.divf %715, %716 : vector<2x128xf32>
    %718 = vector.extract_strided_slice %717 {offsets = [0, 0], sizes = [2, 32], strides = [1, 1]} : vector<2x128xf32> to vector<2x32xf32>
    %719 = vector.extract_strided_slice %717 {offsets = [0, 32], sizes = [2, 32], strides = [1, 1]} : vector<2x128xf32> to vector<2x32xf32>
    %720 = vector.extract_strided_slice %717 {offsets = [0, 96], sizes = [2, 32], strides = [1, 1]} : vector<2x128xf32> to vector<2x32xf32>
    %721 = vector.extract_strided_slice %709 {offsets = [0, 64], sizes = [2, 32], strides = [1, 1]} : vector<2x128xf32> to vector<2x32xf32>
    %722 = math.tanh %721 : vector<2x32xf32>
    %723 = arith.mulf %719, %685 : vector<2x32xf32>
    %724 = arith.mulf %718, %722 : vector<2x32xf32>
    %725 = arith.addf %723, %724 : vector<2x32xf32>
    %726 = math.tanh %725 : vector<2x32xf32>
    %727 = arith.mulf %720, %726 : vector<2x32xf32>
    %728 = arith.negf %712 : vector<2x128xf32>
    %729 = math.exp %728 : vector<2x128xf32>
    %cst_204 = arith.constant 1.000000e+00 : f32
    %730 = vector.broadcast %cst_204 : f32 to vector<2x128xf32>
    %731 = arith.addf %730, %729 : vector<2x128xf32>
    %732 = arith.divf %730, %731 : vector<2x128xf32>
    %733 = vector.extract_strided_slice %732 {offsets = [0, 0], sizes = [2, 32], strides = [1, 1]} : vector<2x128xf32> to vector<2x32xf32>
    %734 = vector.extract_strided_slice %732 {offsets = [0, 32], sizes = [2, 32], strides = [1, 1]} : vector<2x128xf32> to vector<2x32xf32>
    %735 = vector.extract_strided_slice %732 {offsets = [0, 96], sizes = [2, 32], strides = [1, 1]} : vector<2x128xf32> to vector<2x32xf32>
    %736 = vector.extract_strided_slice %712 {offsets = [0, 64], sizes = [2, 32], strides = [1, 1]} : vector<2x128xf32> to vector<2x32xf32>
    %737 = math.tanh %736 : vector<2x32xf32>
    %738 = arith.mulf %734, %700 : vector<2x32xf32>
    %739 = arith.mulf %733, %737 : vector<2x32xf32>
    %740 = arith.addf %738, %739 : vector<2x32xf32>
    %741 = math.tanh %740 : vector<2x32xf32>
    %742 = arith.mulf %735, %741 : vector<2x32xf32>
    %c2_205 = arith.constant 2 : index
    %c0_206 = arith.constant 0 : index
    %743 = vector.load %arg15[%c2_205, %c0_206] : memref<32x64xf32, #tpu.memory_space<vmem>>, vector<2x32xf32>
    tpu.vector_store %arg15[%c2_205, %c0_206], %727 {strides = array<i32>} : memref<32x64xf32, #tpu.memory_space<vmem>>, vector<2x32xf32>,
    %c28_207 = arith.constant 28 : index
    %c32_208 = arith.constant 32 : index
    %744 = vector.load %arg15[%c28_207, %c32_208] : memref<32x64xf32, #tpu.memory_space<vmem>>, vector<2x32xf32>
    tpu.vector_store %arg15[%c28_207, %c32_208], %742 {strides = array<i32>} : memref<32x64xf32, #tpu.memory_space<vmem>>, vector<2x32xf32>,
    %745 = tpu.concatenate %727, %742 in 1 : vector<2x32xf32>, vector<2x32xf32> -> vector<2x64xf32>
    %cst_209 = arith.constant dense<0.000000e+00> : vector<2x256xf32>
    %746 = tpu.matmul %745, %663, %cst_209 {dimension_numbers = #tpu.dot_dimension_numbers<[1], [0], [0], [1], [0, 0, 1, 1], [], []>} : vector<2x64xf32>, vector<64x256xf32>, vector<2x256xf32> -> vector<2x256xf32>
    %c4_210 = arith.constant 4 : index
    %c0_211 = arith.constant 0 : index
    %747 = vector.load %arg13[%c4_210, %c0_211] : memref<32x256xf32, #tpu.memory_space<vmem>>, vector<2x128xf32>
    %748 = vector.extract_strided_slice %746 {offsets = [0, 0], sizes = [2, 128], strides = [1, 1]} : vector<2x256xf32> to vector<2x128xf32>
    %749 = arith.addf %747, %748 : vector<2x128xf32>
    %c26_212 = arith.constant 26 : index
    %c128_213 = arith.constant 128 : index
    %750 = vector.load %arg13[%c26_212, %c128_213] : memref<32x256xf32, #tpu.memory_space<vmem>>, vector<2x128xf32>
    %751 = vector.extract_strided_slice %746 {offsets = [0, 128], sizes = [2, 128], strides = [1, 1]} : vector<2x256xf32> to vector<2x128xf32>
    %752 = arith.addf %750, %751 : vector<2x128xf32>
    %753 = arith.negf %749 : vector<2x128xf32>
    %754 = math.exp %753 : vector<2x128xf32>
    %cst_214 = arith.constant 1.000000e+00 : f32
    %755 = vector.broadcast %cst_214 : f32 to vector<2x128xf32>
    %756 = arith.addf %755, %754 : vector<2x128xf32>
    %757 = arith.divf %755, %756 : vector<2x128xf32>
    %758 = vector.extract_strided_slice %757 {offsets = [0, 0], sizes = [2, 32], strides = [1, 1]} : vector<2x128xf32> to vector<2x32xf32>
    %759 = vector.extract_strided_slice %757 {offsets = [0, 32], sizes = [2, 32], strides = [1, 1]} : vector<2x128xf32> to vector<2x32xf32>
    %760 = vector.extract_strided_slice %757 {offsets = [0, 96], sizes = [2, 32], strides = [1, 1]} : vector<2x128xf32> to vector<2x32xf32>
    %761 = vector.extract_strided_slice %749 {offsets = [0, 64], sizes = [2, 32], strides = [1, 1]} : vector<2x128xf32> to vector<2x32xf32>
    %762 = math.tanh %761 : vector<2x32xf32>
    %763 = arith.mulf %759, %725 : vector<2x32xf32>
    %764 = arith.mulf %758, %762 : vector<2x32xf32>
    %765 = arith.addf %763, %764 : vector<2x32xf32>
    %766 = math.tanh %765 : vector<2x32xf32>
    %767 = arith.mulf %760, %766 : vector<2x32xf32>
    %768 = arith.negf %752 : vector<2x128xf32>
    %769 = math.exp %768 : vector<2x128xf32>
    %cst_215 = arith.constant 1.000000e+00 : f32
    %770 = vector.broadcast %cst_215 : f32 to vector<2x128xf32>
    %771 = arith.addf %770, %769 : vector<2x128xf32>
    %772 = arith.divf %770, %771 : vector<2x128xf32>
    %773 = vector.extract_strided_slice %772 {offsets = [0, 0], sizes = [2, 32], strides = [1, 1]} : vector<2x128xf32> to vector<2x32xf32>
    %774 = vector.extract_strided_slice %772 {offsets = [0, 32], sizes = [2, 32], strides = [1, 1]} : vector<2x128xf32> to vector<2x32xf32>
    %775 = vector.extract_strided_slice %772 {offsets = [0, 96], sizes = [2, 32], strides = [1, 1]} : vector<2x128xf32> to vector<2x32xf32>
    %776 = vector.extract_strided_slice %752 {offsets = [0, 64], sizes = [2, 32], strides = [1, 1]} : vector<2x128xf32> to vector<2x32xf32>
    %777 = math.tanh %776 : vector<2x32xf32>
    %778 = arith.mulf %774, %740 : vector<2x32xf32>
    %779 = arith.mulf %773, %777 : vector<2x32xf32>
    %780 = arith.addf %778, %779 : vector<2x32xf32>
    %781 = math.tanh %780 : vector<2x32xf32>
    %782 = arith.mulf %775, %781 : vector<2x32xf32>
    %c4_216 = arith.constant 4 : index
    %c0_217 = arith.constant 0 : index
    %783 = vector.load %arg15[%c4_216, %c0_217] : memref<32x64xf32, #tpu.memory_space<vmem>>, vector<2x32xf32>
    tpu.vector_store %arg15[%c4_216, %c0_217], %767 {strides = array<i32>} : memref<32x64xf32, #tpu.memory_space<vmem>>, vector<2x32xf32>,
    %c26_218 = arith.constant 26 : index
    %c32_219 = arith.constant 32 : index
    %784 = vector.load %arg15[%c26_218, %c32_219] : memref<32x64xf32, #tpu.memory_space<vmem>>, vector<2x32xf32>
    tpu.vector_store %arg15[%c26_218, %c32_219], %782 {strides = array<i32>} : memref<32x64xf32, #tpu.memory_space<vmem>>, vector<2x32xf32>,
    %785 = tpu.concatenate %767, %782 in 1 : vector<2x32xf32>, vector<2x32xf32> -> vector<2x64xf32>
    %cst_220 = arith.constant dense<0.000000e+00> : vector<2x256xf32>
    %786 = tpu.matmul %785, %663, %cst_220 {dimension_numbers = #tpu.dot_dimension_numbers<[1], [0], [0], [1], [0, 0, 1, 1], [], []>} : vector<2x64xf32>, vector<64x256xf32>, vector<2x256xf32> -> vector<2x256xf32>
    %c6_221 = arith.constant 6 : index
    %c0_222 = arith.constant 0 : index
    %787 = vector.load %arg13[%c6_221, %c0_222] : memref<32x256xf32, #tpu.memory_space<vmem>>, vector<2x128xf32>
    %788 = vector.extract_strided_slice %786 {offsets = [0, 0], sizes = [2, 128], strides = [1, 1]} : vector<2x256xf32> to vector<2x128xf32>
    %789 = arith.addf %787, %788 : vector<2x128xf32>
    %c24_223 = arith.constant 24 : index
    %c128_224 = arith.constant 128 : index
    %790 = vector.load %arg13[%c24_223, %c128_224] : memref<32x256xf32, #tpu.memory_space<vmem>>, vector<2x128xf32>
    %791 = vector.extract_strided_slice %786 {offsets = [0, 128], sizes = [2, 128], strides = [1, 1]} : vector<2x256xf32> to vector<2x128xf32>
    %792 = arith.addf %790, %791 : vector<2x128xf32>
    %793 = arith.negf %789 : vector<2x128xf32>
    %794 = math.exp %793 : vector<2x128xf32>
    %cst_225 = arith.constant 1.000000e+00 : f32
    %795 = vector.broadcast %cst_225 : f32 to vector<2x128xf32>
    %796 = arith.addf %795, %794 : vector<2x128xf32>
    %797 = arith.divf %795, %796 : vector<2x128xf32>
    %798 = vector.extract_strided_slice %797 {offsets = [0, 0], sizes = [2, 32], strides = [1, 1]} : vector<2x128xf32> to vector<2x32xf32>
    %799 = vector.extract_strided_slice %797 {offsets = [0, 32], sizes = [2, 32], strides = [1, 1]} : vector<2x128xf32> to vector<2x32xf32>
    %800 = vector.extract_strided_slice %797 {offsets = [0, 96], sizes = [2, 32], strides = [1, 1]} : vector<2x128xf32> to vector<2x32xf32>
    %801 = vector.extract_strided_slice %789 {offsets = [0, 64], sizes = [2, 32], strides = [1, 1]} : vector<2x128xf32> to vector<2x32xf32>
    %802 = math.tanh %801 : vector<2x32xf32>
    %803 = arith.mulf %799, %765 : vector<2x32xf32>
    %804 = arith.mulf %798, %802 : vector<2x32xf32>
    %805 = arith.addf %803, %804 : vector<2x32xf32>
    %806 = math.tanh %805 : vector<2x32xf32>
    %807 = arith.mulf %800, %806 : vector<2x32xf32>
    %808 = arith.negf %792 : vector<2x128xf32>
    %809 = math.exp %808 : vector<2x128xf32>
    %cst_226 = arith.constant 1.000000e+00 : f32
    %810 = vector.broadcast %cst_226 : f32 to vector<2x128xf32>
    %811 = arith.addf %810, %809 : vector<2x128xf32>
    %812 = arith.divf %810, %811 : vector<2x128xf32>
    %813 = vector.extract_strided_slice %812 {offsets = [0, 0], sizes = [2, 32], strides = [1, 1]} : vector<2x128xf32> to vector<2x32xf32>
    %814 = vector.extract_strided_slice %812 {offsets = [0, 32], sizes = [2, 32], strides = [1, 1]} : vector<2x128xf32> to vector<2x32xf32>
    %815 = vector.extract_strided_slice %812 {offsets = [0, 96], sizes = [2, 32], strides = [1, 1]} : vector<2x128xf32> to vector<2x32xf32>
    %816 = vector.extract_strided_slice %792 {offsets = [0, 64], sizes = [2, 32], strides = [1, 1]} : vector<2x128xf32> to vector<2x32xf32>
    %817 = math.tanh %816 : vector<2x32xf32>
    %818 = arith.mulf %814, %780 : vector<2x32xf32>
    %819 = arith.mulf %813, %817 : vector<2x32xf32>
    %820 = arith.addf %818, %819 : vector<2x32xf32>
    %821 = math.tanh %820 : vector<2x32xf32>
    %822 = arith.mulf %815, %821 : vector<2x32xf32>
    %c6_227 = arith.constant 6 : index
    %c0_228 = arith.constant 0 : index
    %823 = vector.load %arg15[%c6_227, %c0_228] : memref<32x64xf32, #tpu.memory_space<vmem>>, vector<2x32xf32>
    tpu.vector_store %arg15[%c6_227, %c0_228], %807 {strides = array<i32>} : memref<32x64xf32, #tpu.memory_space<vmem>>, vector<2x32xf32>,
    %c24_229 = arith.constant 24 : index
    %c32_230 = arith.constant 32 : index
    %824 = vector.load %arg15[%c24_229, %c32_230] : memref<32x64xf32, #tpu.memory_space<vmem>>, vector<2x32xf32>
    tpu.vector_store %arg15[%c24_229, %c32_230], %822 {strides = array<i32>} : memref<32x64xf32, #tpu.memory_space<vmem>>, vector<2x32xf32>,
    %825 = tpu.concatenate %807, %822 in 1 : vector<2x32xf32>, vector<2x32xf32> -> vector<2x64xf32>
    %cst_231 = arith.constant dense<0.000000e+00> : vector<2x256xf32>
    %826 = tpu.matmul %825, %663, %cst_231 {dimension_numbers = #tpu.dot_dimension_numbers<[1], [0], [0], [1], [0, 0, 1, 1], [], []>} : vector<2x64xf32>, vector<64x256xf32>, vector<2x256xf32> -> vector<2x256xf32>
    %c8_232 = arith.constant 8 : index
    %c0_233 = arith.constant 0 : index
    %827 = vector.load %arg13[%c8_232, %c0_233] : memref<32x256xf32, #tpu.memory_space<vmem>>, vector<2x128xf32>
    %828 = vector.extract_strided_slice %826 {offsets = [0, 0], sizes = [2, 128], strides = [1, 1]} : vector<2x256xf32> to vector<2x128xf32>
    %829 = arith.addf %827, %828 : vector<2x128xf32>
    %c22_234 = arith.constant 22 : index
    %c128_235 = arith.constant 128 : index
    %830 = vector.load %arg13[%c22_234, %c128_235] : memref<32x256xf32, #tpu.memory_space<vmem>>, vector<2x128xf32>
    %831 = vector.extract_strided_slice %826 {offsets = [0, 128], sizes = [2, 128], strides = [1, 1]} : vector<2x256xf32> to vector<2x128xf32>
    %832 = arith.addf %830, %831 : vector<2x128xf32>
    %833 = arith.negf %829 : vector<2x128xf32>
    %834 = math.exp %833 : vector<2x128xf32>
    %cst_236 = arith.constant 1.000000e+00 : f32
    %835 = vector.broadcast %cst_236 : f32 to vector<2x128xf32>
    %836 = arith.addf %835, %834 : vector<2x128xf32>
    %837 = arith.divf %835, %836 : vector<2x128xf32>
    %838 = vector.extract_strided_slice %837 {offsets = [0, 0], sizes = [2, 32], strides = [1, 1]} : vector<2x128xf32> to vector<2x32xf32>
    %839 = vector.extract_strided_slice %837 {offsets = [0, 32], sizes = [2, 32], strides = [1, 1]} : vector<2x128xf32> to vector<2x32xf32>
    %840 = vector.extract_strided_slice %837 {offsets = [0, 96], sizes = [2, 32], strides = [1, 1]} : vector<2x128xf32> to vector<2x32xf32>
    %841 = vector.extract_strided_slice %829 {offsets = [0, 64], sizes = [2, 32], strides = [1, 1]} : vector<2x128xf32> to vector<2x32xf32>
    %842 = math.tanh %841 : vector<2x32xf32>
    %843 = arith.mulf %839, %805 : vector<2x32xf32>
    %844 = arith.mulf %838, %842 : vector<2x32xf32>
    %845 = arith.addf %843, %844 : vector<2x32xf32>
    %846 = math.tanh %845 : vector<2x32xf32>
    %847 = arith.mulf %840, %846 : vector<2x32xf32>
    %848 = arith.negf %832 : vector<2x128xf32>
    %849 = math.exp %848 : vector<2x128xf32>
    %cst_237 = arith.constant 1.000000e+00 : f32
    %850 = vector.broadcast %cst_237 : f32 to vector<2x128xf32>
    %851 = arith.addf %850, %849 : vector<2x128xf32>
    %852 = arith.divf %850, %851 : vector<2x128xf32>
    %853 = vector.extract_strided_slice %852 {offsets = [0, 0], sizes = [2, 32], strides = [1, 1]} : vector<2x128xf32> to vector<2x32xf32>
    %854 = vector.extract_strided_slice %852 {offsets = [0, 32], sizes = [2, 32], strides = [1, 1]} : vector<2x128xf32> to vector<2x32xf32>
    %855 = vector.extract_strided_slice %852 {offsets = [0, 96], sizes = [2, 32], strides = [1, 1]} : vector<2x128xf32> to vector<2x32xf32>
    %856 = vector.extract_strided_slice %832 {offsets = [0, 64], sizes = [2, 32], strides = [1, 1]} : vector<2x128xf32> to vector<2x32xf32>
    %857 = math.tanh %856 : vector<2x32xf32>
    %858 = arith.mulf %854, %820 : vector<2x32xf32>
    %859 = arith.mulf %853, %857 : vector<2x32xf32>
    %860 = arith.addf %858, %859 : vector<2x32xf32>
    %861 = math.tanh %860 : vector<2x32xf32>
    %862 = arith.mulf %855, %861 : vector<2x32xf32>
    %c8_238 = arith.constant 8 : index
    %c0_239 = arith.constant 0 : index
    %863 = vector.load %arg15[%c8_238, %c0_239] : memref<32x64xf32, #tpu.memory_space<vmem>>, vector<2x32xf32>
    tpu.vector_store %arg15[%c8_238, %c0_239], %847 {strides = array<i32>} : memref<32x64xf32, #tpu.memory_space<vmem>>, vector<2x32xf32>,
    %c22_240 = arith.constant 22 : index
    %c32_241 = arith.constant 32 : index
    %864 = vector.load %arg15[%c22_240, %c32_241] : memref<32x64xf32, #tpu.memory_space<vmem>>, vector<2x32xf32>
    tpu.vector_store %arg15[%c22_240, %c32_241], %862 {strides = array<i32>} : memref<32x64xf32, #tpu.memory_space<vmem>>, vector<2x32xf32>,
    %865 = tpu.concatenate %847, %862 in 1 : vector<2x32xf32>, vector<2x32xf32> -> vector<2x64xf32>
    %cst_242 = arith.constant dense<0.000000e+00> : vector<2x256xf32>
    %866 = tpu.matmul %865, %663, %cst_242 {dimension_numbers = #tpu.dot_dimension_numbers<[1], [0], [0], [1], [0, 0, 1, 1], [], []>} : vector<2x64xf32>, vector<64x256xf32>, vector<2x256xf32> -> vector<2x256xf32>
    %c10_243 = arith.constant 10 : index
    %c0_244 = arith.constant 0 : index
    %867 = vector.load %arg13[%c10_243, %c0_244] : memref<32x256xf32, #tpu.memory_space<vmem>>, vector<2x128xf32>
    %868 = vector.extract_strided_slice %866 {offsets = [0, 0], sizes = [2, 128], strides = [1, 1]} : vector<2x256xf32> to vector<2x128xf32>
    %869 = arith.addf %867, %868 : vector<2x128xf32>
    %c20_245 = arith.constant 20 : index
    %c128_246 = arith.constant 128 : index
    %870 = vector.load %arg13[%c20_245, %c128_246] : memref<32x256xf32, #tpu.memory_space<vmem>>, vector<2x128xf32>
    %871 = vector.extract_strided_slice %866 {offsets = [0, 128], sizes = [2, 128], strides = [1, 1]} : vector<2x256xf32> to vector<2x128xf32>
    %872 = arith.addf %870, %871 : vector<2x128xf32>
    %873 = arith.negf %869 : vector<2x128xf32>
    %874 = math.exp %873 : vector<2x128xf32>
    %cst_247 = arith.constant 1.000000e+00 : f32
    %875 = vector.broadcast %cst_247 : f32 to vector<2x128xf32>
    %876 = arith.addf %875, %874 : vector<2x128xf32>
    %877 = arith.divf %875, %876 : vector<2x128xf32>
    %878 = vector.extract_strided_slice %877 {offsets = [0, 0], sizes = [2, 32], strides = [1, 1]} : vector<2x128xf32> to vector<2x32xf32>
    %879 = vector.extract_strided_slice %877 {offsets = [0, 32], sizes = [2, 32], strides = [1, 1]} : vector<2x128xf32> to vector<2x32xf32>
    %880 = vector.extract_strided_slice %877 {offsets = [0, 96], sizes = [2, 32], strides = [1, 1]} : vector<2x128xf32> to vector<2x32xf32>
    %881 = vector.extract_strided_slice %869 {offsets = [0, 64], sizes = [2, 32], strides = [1, 1]} : vector<2x128xf32> to vector<2x32xf32>
    %882 = math.tanh %881 : vector<2x32xf32>
    %883 = arith.mulf %879, %845 : vector<2x32xf32>
    %884 = arith.mulf %878, %882 : vector<2x32xf32>
    %885 = arith.addf %883, %884 : vector<2x32xf32>
    %886 = math.tanh %885 : vector<2x32xf32>
    %887 = arith.mulf %880, %886 : vector<2x32xf32>
    %888 = arith.negf %872 : vector<2x128xf32>
    %889 = math.exp %888 : vector<2x128xf32>
    %cst_248 = arith.constant 1.000000e+00 : f32
    %890 = vector.broadcast %cst_248 : f32 to vector<2x128xf32>
    %891 = arith.addf %890, %889 : vector<2x128xf32>
    %892 = arith.divf %890, %891 : vector<2x128xf32>
    %893 = vector.extract_strided_slice %892 {offsets = [0, 0], sizes = [2, 32], strides = [1, 1]} : vector<2x128xf32> to vector<2x32xf32>
    %894 = vector.extract_strided_slice %892 {offsets = [0, 32], sizes = [2, 32], strides = [1, 1]} : vector<2x128xf32> to vector<2x32xf32>
    %895 = vector.extract_strided_slice %892 {offsets = [0, 96], sizes = [2, 32], strides = [1, 1]} : vector<2x128xf32> to vector<2x32xf32>
    %896 = vector.extract_strided_slice %872 {offsets = [0, 64], sizes = [2, 32], strides = [1, 1]} : vector<2x128xf32> to vector<2x32xf32>
    %897 = math.tanh %896 : vector<2x32xf32>
    %898 = arith.mulf %894, %860 : vector<2x32xf32>
    %899 = arith.mulf %893, %897 : vector<2x32xf32>
    %900 = arith.addf %898, %899 : vector<2x32xf32>
    %901 = math.tanh %900 : vector<2x32xf32>
    %902 = arith.mulf %895, %901 : vector<2x32xf32>
    %c10_249 = arith.constant 10 : index
    %c0_250 = arith.constant 0 : index
    %903 = vector.load %arg15[%c10_249, %c0_250] : memref<32x64xf32, #tpu.memory_space<vmem>>, vector<2x32xf32>
    tpu.vector_store %arg15[%c10_249, %c0_250], %887 {strides = array<i32>} : memref<32x64xf32, #tpu.memory_space<vmem>>, vector<2x32xf32>,
    %c20_251 = arith.constant 20 : index
    %c32_252 = arith.constant 32 : index
    %904 = vector.load %arg15[%c20_251, %c32_252] : memref<32x64xf32, #tpu.memory_space<vmem>>, vector<2x32xf32>
    tpu.vector_store %arg15[%c20_251, %c32_252], %902 {strides = array<i32>} : memref<32x64xf32, #tpu.memory_space<vmem>>, vector<2x32xf32>,
    %905 = tpu.concatenate %887, %902 in 1 : vector<2x32xf32>, vector<2x32xf32> -> vector<2x64xf32>
    %cst_253 = arith.constant dense<0.000000e+00> : vector<2x256xf32>
    %906 = tpu.matmul %905, %663, %cst_253 {dimension_numbers = #tpu.dot_dimension_numbers<[1], [0], [0], [1], [0, 0, 1, 1], [], []>} : vector<2x64xf32>, vector<64x256xf32>, vector<2x256xf32> -> vector<2x256xf32>
    %c12_254 = arith.constant 12 : index
    %c0_255 = arith.constant 0 : index
    %907 = vector.load %arg13[%c12_254, %c0_255] : memref<32x256xf32, #tpu.memory_space<vmem>>, vector<2x128xf32>
    %908 = vector.extract_strided_slice %906 {offsets = [0, 0], sizes = [2, 128], strides = [1, 1]} : vector<2x256xf32> to vector<2x128xf32>
    %909 = arith.addf %907, %908 : vector<2x128xf32>
    %c18_256 = arith.constant 18 : index
    %c128_257 = arith.constant 128 : index
    %910 = vector.load %arg13[%c18_256, %c128_257] : memref<32x256xf32, #tpu.memory_space<vmem>>, vector<2x128xf32>
    %911 = vector.extract_strided_slice %906 {offsets = [0, 128], sizes = [2, 128], strides = [1, 1]} : vector<2x256xf32> to vector<2x128xf32>
    %912 = arith.addf %910, %911 : vector<2x128xf32>
    %913 = arith.negf %909 : vector<2x128xf32>
    %914 = math.exp %913 : vector<2x128xf32>
    %cst_258 = arith.constant 1.000000e+00 : f32
    %915 = vector.broadcast %cst_258 : f32 to vector<2x128xf32>
    %916 = arith.addf %915, %914 : vector<2x128xf32>
    %917 = arith.divf %915, %916 : vector<2x128xf32>
    %918 = vector.extract_strided_slice %917 {offsets = [0, 0], sizes = [2, 32], strides = [1, 1]} : vector<2x128xf32> to vector<2x32xf32>
    %919 = vector.extract_strided_slice %917 {offsets = [0, 32], sizes = [2, 32], strides = [1, 1]} : vector<2x128xf32> to vector<2x32xf32>
    %920 = vector.extract_strided_slice %917 {offsets = [0, 96], sizes = [2, 32], strides = [1, 1]} : vector<2x128xf32> to vector<2x32xf32>
    %921 = vector.extract_strided_slice %909 {offsets = [0, 64], sizes = [2, 32], strides = [1, 1]} : vector<2x128xf32> to vector<2x32xf32>
    %922 = math.tanh %921 : vector<2x32xf32>
    %923 = arith.mulf %919, %885 : vector<2x32xf32>
    %924 = arith.mulf %918, %922 : vector<2x32xf32>
    %925 = arith.addf %923, %924 : vector<2x32xf32>
    %926 = math.tanh %925 : vector<2x32xf32>
    %927 = arith.mulf %920, %926 : vector<2x32xf32>
    %928 = arith.negf %912 : vector<2x128xf32>
    %929 = math.exp %928 : vector<2x128xf32>
    %cst_259 = arith.constant 1.000000e+00 : f32
    %930 = vector.broadcast %cst_259 : f32 to vector<2x128xf32>
    %931 = arith.addf %930, %929 : vector<2x128xf32>
    %932 = arith.divf %930, %931 : vector<2x128xf32>
    %933 = vector.extract_strided_slice %932 {offsets = [0, 0], sizes = [2, 32], strides = [1, 1]} : vector<2x128xf32> to vector<2x32xf32>
    %934 = vector.extract_strided_slice %932 {offsets = [0, 32], sizes = [2, 32], strides = [1, 1]} : vector<2x128xf32> to vector<2x32xf32>
    %935 = vector.extract_strided_slice %932 {offsets = [0, 96], sizes = [2, 32], strides = [1, 1]} : vector<2x128xf32> to vector<2x32xf32>
    %936 = vector.extract_strided_slice %912 {offsets = [0, 64], sizes = [2, 32], strides = [1, 1]} : vector<2x128xf32> to vector<2x32xf32>
    %937 = math.tanh %936 : vector<2x32xf32>
    %938 = arith.mulf %934, %900 : vector<2x32xf32>
    %939 = arith.mulf %933, %937 : vector<2x32xf32>
    %940 = arith.addf %938, %939 : vector<2x32xf32>
    %941 = math.tanh %940 : vector<2x32xf32>
    %942 = arith.mulf %935, %941 : vector<2x32xf32>
    %c12_260 = arith.constant 12 : index
    %c0_261 = arith.constant 0 : index
    %943 = vector.load %arg15[%c12_260, %c0_261] : memref<32x64xf32, #tpu.memory_space<vmem>>, vector<2x32xf32>
    tpu.vector_store %arg15[%c12_260, %c0_261], %927 {strides = array<i32>} : memref<32x64xf32, #tpu.memory_space<vmem>>, vector<2x32xf32>,
    %c18_262 = arith.constant 18 : index
    %c32_263 = arith.constant 32 : index
    %944 = vector.load %arg15[%c18_262, %c32_263] : memref<32x64xf32, #tpu.memory_space<vmem>>, vector<2x32xf32>
    tpu.vector_store %arg15[%c18_262, %c32_263], %942 {strides = array<i32>} : memref<32x64xf32, #tpu.memory_space<vmem>>, vector<2x32xf32>,
    %945 = tpu.concatenate %927, %942 in 1 : vector<2x32xf32>, vector<2x32xf32> -> vector<2x64xf32>
    %cst_264 = arith.constant dense<0.000000e+00> : vector<2x256xf32>
    %946 = tpu.matmul %945, %663, %cst_264 {dimension_numbers = #tpu.dot_dimension_numbers<[1], [0], [0], [1], [0, 0, 1, 1], [], []>} : vector<2x64xf32>, vector<64x256xf32>, vector<2x256xf32> -> vector<2x256xf32>
    %c14_265 = arith.constant 14 : index
    %c0_266 = arith.constant 0 : index
    %947 = vector.load %arg13[%c14_265, %c0_266] : memref<32x256xf32, #tpu.memory_space<vmem>>, vector<2x128xf32>
    %948 = vector.extract_strided_slice %946 {offsets = [0, 0], sizes = [2, 128], strides = [1, 1]} : vector<2x256xf32> to vector<2x128xf32>
    %949 = arith.addf %947, %948 : vector<2x128xf32>
    %c16_267 = arith.constant 16 : index
    %c128_268 = arith.constant 128 : index
    %950 = vector.load %arg13[%c16_267, %c128_268] : memref<32x256xf32, #tpu.memory_space<vmem>>, vector<2x128xf32>
    %951 = vector.extract_strided_slice %946 {offsets = [0, 128], sizes = [2, 128], strides = [1, 1]} : vector<2x256xf32> to vector<2x128xf32>
    %952 = arith.addf %950, %951 : vector<2x128xf32>
    %953 = arith.negf %949 : vector<2x128xf32>
    %954 = math.exp %953 : vector<2x128xf32>
    %cst_269 = arith.constant 1.000000e+00 : f32
    %955 = vector.broadcast %cst_269 : f32 to vector<2x128xf32>
    %956 = arith.addf %955, %954 : vector<2x128xf32>
    %957 = arith.divf %955, %956 : vector<2x128xf32>
    %958 = vector.extract_strided_slice %957 {offsets = [0, 0], sizes = [2, 32], strides = [1, 1]} : vector<2x128xf32> to vector<2x32xf32>
    %959 = vector.extract_strided_slice %957 {offsets = [0, 32], sizes = [2, 32], strides = [1, 1]} : vector<2x128xf32> to vector<2x32xf32>
    %960 = vector.extract_strided_slice %957 {offsets = [0, 96], sizes = [2, 32], strides = [1, 1]} : vector<2x128xf32> to vector<2x32xf32>
    %961 = vector.extract_strided_slice %949 {offsets = [0, 64], sizes = [2, 32], strides = [1, 1]} : vector<2x128xf32> to vector<2x32xf32>
    %962 = math.tanh %961 : vector<2x32xf32>
    %963 = arith.mulf %959, %925 : vector<2x32xf32>
    %964 = arith.mulf %958, %962 : vector<2x32xf32>
    %965 = arith.addf %963, %964 : vector<2x32xf32>
    %966 = math.tanh %965 : vector<2x32xf32>
    %967 = arith.mulf %960, %966 : vector<2x32xf32>
    %968 = arith.negf %952 : vector<2x128xf32>
    %969 = math.exp %968 : vector<2x128xf32>
    %cst_270 = arith.constant 1.000000e+00 : f32
    %970 = vector.broadcast %cst_270 : f32 to vector<2x128xf32>
    %971 = arith.addf %970, %969 : vector<2x128xf32>
    %972 = arith.divf %970, %971 : vector<2x128xf32>
    %973 = vector.extract_strided_slice %972 {offsets = [0, 0], sizes = [2, 32], strides = [1, 1]} : vector<2x128xf32> to vector<2x32xf32>
    %974 = vector.extract_strided_slice %972 {offsets = [0, 32], sizes = [2, 32], strides = [1, 1]} : vector<2x128xf32> to vector<2x32xf32>
    %975 = vector.extract_strided_slice %972 {offsets = [0, 96], sizes = [2, 32], strides = [1, 1]} : vector<2x128xf32> to vector<2x32xf32>
    %976 = vector.extract_strided_slice %952 {offsets = [0, 64], sizes = [2, 32], strides = [1, 1]} : vector<2x128xf32> to vector<2x32xf32>
    %977 = math.tanh %976 : vector<2x32xf32>
    %978 = arith.mulf %974, %940 : vector<2x32xf32>
    %979 = arith.mulf %973, %977 : vector<2x32xf32>
    %980 = arith.addf %978, %979 : vector<2x32xf32>
    %981 = math.tanh %980 : vector<2x32xf32>
    %982 = arith.mulf %975, %981 : vector<2x32xf32>
    %c14_271 = arith.constant 14 : index
    %c0_272 = arith.constant 0 : index
    %983 = vector.load %arg15[%c14_271, %c0_272] : memref<32x64xf32, #tpu.memory_space<vmem>>, vector<2x32xf32>
    tpu.vector_store %arg15[%c14_271, %c0_272], %967 {strides = array<i32>} : memref<32x64xf32, #tpu.memory_space<vmem>>, vector<2x32xf32>,
    %c16_273 = arith.constant 16 : index
    %c32_274 = arith.constant 32 : index
    %984 = vector.load %arg15[%c16_273, %c32_274] : memref<32x64xf32, #tpu.memory_space<vmem>>, vector<2x32xf32>
    tpu.vector_store %arg15[%c16_273, %c32_274], %982 {strides = array<i32>} : memref<32x64xf32, #tpu.memory_space<vmem>>, vector<2x32xf32>,
    %985 = tpu.concatenate %967, %982 in 1 : vector<2x32xf32>, vector<2x32xf32> -> vector<2x64xf32>
    %cst_275 = arith.constant dense<0.000000e+00> : vector<2x256xf32>
    %986 = tpu.matmul %985, %663, %cst_275 {dimension_numbers = #tpu.dot_dimension_numbers<[1], [0], [0], [1], [0, 0, 1, 1], [], []>} : vector<2x64xf32>, vector<64x256xf32>, vector<2x256xf32> -> vector<2x256xf32>
    %c16_276 = arith.constant 16 : index
    %c0_277 = arith.constant 0 : index
    %987 = vector.load %arg13[%c16_276, %c0_277] : memref<32x256xf32, #tpu.memory_space<vmem>>, vector<2x128xf32>
    %988 = vector.extract_strided_slice %986 {offsets = [0, 0], sizes = [2, 128], strides = [1, 1]} : vector<2x256xf32> to vector<2x128xf32>
    %989 = arith.addf %987, %988 : vector<2x128xf32>
    %c14_278 = arith.constant 14 : index
    %c128_279 = arith.constant 128 : index
    %990 = vector.load %arg13[%c14_278, %c128_279] : memref<32x256xf32, #tpu.memory_space<vmem>>, vector<2x128xf32>
    %991 = vector.extract_strided_slice %986 {offsets = [0, 128], sizes = [2, 128], strides = [1, 1]} : vector<2x256xf32> to vector<2x128xf32>
    %992 = arith.addf %990, %991 : vector<2x128xf32>
    %993 = arith.negf %989 : vector<2x128xf32>
    %994 = math.exp %993 : vector<2x128xf32>
    %cst_280 = arith.constant 1.000000e+00 : f32
    %995 = vector.broadcast %cst_280 : f32 to vector<2x128xf32>
    %996 = arith.addf %995, %994 : vector<2x128xf32>
    %997 = arith.divf %995, %996 : vector<2x128xf32>
    %998 = vector.extract_strided_slice %997 {offsets = [0, 0], sizes = [2, 32], strides = [1, 1]} : vector<2x128xf32> to vector<2x32xf32>
    %999 = vector.extract_strided_slice %997 {offsets = [0, 32], sizes = [2, 32], strides = [1, 1]} : vector<2x128xf32> to vector<2x32xf32>
    %1000 = vector.extract_strided_slice %997 {offsets = [0, 96], sizes = [2, 32], strides = [1, 1]} : vector<2x128xf32> to vector<2x32xf32>
    %1001 = vector.extract_strided_slice %989 {offsets = [0, 64], sizes = [2, 32], strides = [1, 1]} : vector<2x128xf32> to vector<2x32xf32>
    %1002 = math.tanh %1001 : vector<2x32xf32>
    %1003 = arith.mulf %999, %965 : vector<2x32xf32>
    %1004 = arith.mulf %998, %1002 : vector<2x32xf32>
    %1005 = arith.addf %1003, %1004 : vector<2x32xf32>
    %1006 = math.tanh %1005 : vector<2x32xf32>
    %1007 = arith.mulf %1000, %1006 : vector<2x32xf32>
    %1008 = arith.negf %992 : vector<2x128xf32>
    %1009 = math.exp %1008 : vector<2x128xf32>
    %cst_281 = arith.constant 1.000000e+00 : f32
    %1010 = vector.broadcast %cst_281 : f32 to vector<2x128xf32>
    %1011 = arith.addf %1010, %1009 : vector<2x128xf32>
    %1012 = arith.divf %1010, %1011 : vector<2x128xf32>
    %1013 = vector.extract_strided_slice %1012 {offsets = [0, 0], sizes = [2, 32], strides = [1, 1]} : vector<2x128xf32> to vector<2x32xf32>
    %1014 = vector.extract_strided_slice %1012 {offsets = [0, 32], sizes = [2, 32], strides = [1, 1]} : vector<2x128xf32> to vector<2x32xf32>
    %1015 = vector.extract_strided_slice %1012 {offsets = [0, 96], sizes = [2, 32], strides = [1, 1]} : vector<2x128xf32> to vector<2x32xf32>
    %1016 = vector.extract_strided_slice %992 {offsets = [0, 64], sizes = [2, 32], strides = [1, 1]} : vector<2x128xf32> to vector<2x32xf32>
    %1017 = math.tanh %1016 : vector<2x32xf32>
    %1018 = arith.mulf %1014, %980 : vector<2x32xf32>
    %1019 = arith.mulf %1013, %1017 : vector<2x32xf32>
    %1020 = arith.addf %1018, %1019 : vector<2x32xf32>
    %1021 = math.tanh %1020 : vector<2x32xf32>
    %1022 = arith.mulf %1015, %1021 : vector<2x32xf32>
    %c16_282 = arith.constant 16 : index
    %c0_283 = arith.constant 0 : index
    %1023 = vector.load %arg15[%c16_282, %c0_283] : memref<32x64xf32, #tpu.memory_space<vmem>>, vector<2x32xf32>
    tpu.vector_store %arg15[%c16_282, %c0_283], %1007 {strides = array<i32>} : memref<32x64xf32, #tpu.memory_space<vmem>>, vector<2x32xf32>,
    %c14_284 = arith.constant 14 : index
    %c32_285 = arith.constant 32 : index
    %1024 = vector.load %arg15[%c14_284, %c32_285] : memref<32x64xf32, #tpu.memory_space<vmem>>, vector<2x32xf32>
    tpu.vector_store %arg15[%c14_284, %c32_285], %1022 {strides = array<i32>} : memref<32x64xf32, #tpu.memory_space<vmem>>, vector<2x32xf32>,
    %1025 = tpu.concatenate %1007, %1022 in 1 : vector<2x32xf32>, vector<2x32xf32> -> vector<2x64xf32>
    %cst_286 = arith.constant dense<0.000000e+00> : vector<2x256xf32>
    %1026 = tpu.matmul %1025, %663, %cst_286 {dimension_numbers = #tpu.dot_dimension_numbers<[1], [0], [0], [1], [0, 0, 1, 1], [], []>} : vector<2x64xf32>, vector<64x256xf32>, vector<2x256xf32> -> vector<2x256xf32>
    %c18_287 = arith.constant 18 : index
    %c0_288 = arith.constant 0 : index
    %1027 = vector.load %arg13[%c18_287, %c0_288] : memref<32x256xf32, #tpu.memory_space<vmem>>, vector<2x128xf32>
    %1028 = vector.extract_strided_slice %1026 {offsets = [0, 0], sizes = [2, 128], strides = [1, 1]} : vector<2x256xf32> to vector<2x128xf32>
    %1029 = arith.addf %1027, %1028 : vector<2x128xf32>
    %c12_289 = arith.constant 12 : index
    %c128_290 = arith.constant 128 : index
    %1030 = vector.load %arg13[%c12_289, %c128_290] : memref<32x256xf32, #tpu.memory_space<vmem>>, vector<2x128xf32>
    %1031 = vector.extract_strided_slice %1026 {offsets = [0, 128], sizes = [2, 128], strides = [1, 1]} : vector<2x256xf32> to vector<2x128xf32>
    %1032 = arith.addf %1030, %1031 : vector<2x128xf32>
    %1033 = arith.negf %1029 : vector<2x128xf32>
    %1034 = math.exp %1033 : vector<2x128xf32>
    %cst_291 = arith.constant 1.000000e+00 : f32
    %1035 = vector.broadcast %cst_291 : f32 to vector<2x128xf32>
    %1036 = arith.addf %1035, %1034 : vector<2x128xf32>
    %1037 = arith.divf %1035, %1036 : vector<2x128xf32>
    %1038 = vector.extract_strided_slice %1037 {offsets = [0, 0], sizes = [2, 32], strides = [1, 1]} : vector<2x128xf32> to vector<2x32xf32>
    %1039 = vector.extract_strided_slice %1037 {offsets = [0, 32], sizes = [2, 32], strides = [1, 1]} : vector<2x128xf32> to vector<2x32xf32>
    %1040 = vector.extract_strided_slice %1037 {offsets = [0, 96], sizes = [2, 32], strides = [1, 1]} : vector<2x128xf32> to vector<2x32xf32>
    %1041 = vector.extract_strided_slice %1029 {offsets = [0, 64], sizes = [2, 32], strides = [1, 1]} : vector<2x128xf32> to vector<2x32xf32>
    %1042 = math.tanh %1041 : vector<2x32xf32>
    %1043 = arith.mulf %1039, %1005 : vector<2x32xf32>
    %1044 = arith.mulf %1038, %1042 : vector<2x32xf32>
    %1045 = arith.addf %1043, %1044 : vector<2x32xf32>
    %1046 = math.tanh %1045 : vector<2x32xf32>
    %1047 = arith.mulf %1040, %1046 : vector<2x32xf32>
    %1048 = arith.negf %1032 : vector<2x128xf32>
    %1049 = math.exp %1048 : vector<2x128xf32>
    %cst_292 = arith.constant 1.000000e+00 : f32
    %1050 = vector.broadcast %cst_292 : f32 to vector<2x128xf32>
    %1051 = arith.addf %1050, %1049 : vector<2x128xf32>
    %1052 = arith.divf %1050, %1051 : vector<2x128xf32>
    %1053 = vector.extract_strided_slice %1052 {offsets = [0, 0], sizes = [2, 32], strides = [1, 1]} : vector<2x128xf32> to vector<2x32xf32>
    %1054 = vector.extract_strided_slice %1052 {offsets = [0, 32], sizes = [2, 32], strides = [1, 1]} : vector<2x128xf32> to vector<2x32xf32>
    %1055 = vector.extract_strided_slice %1052 {offsets = [0, 96], sizes = [2, 32], strides = [1, 1]} : vector<2x128xf32> to vector<2x32xf32>
    %1056 = vector.extract_strided_slice %1032 {offsets = [0, 64], sizes = [2, 32], strides = [1, 1]} : vector<2x128xf32> to vector<2x32xf32>
    %1057 = math.tanh %1056 : vector<2x32xf32>
    %1058 = arith.mulf %1054, %1020 : vector<2x32xf32>
    %1059 = arith.mulf %1053, %1057 : vector<2x32xf32>
    %1060 = arith.addf %1058, %1059 : vector<2x32xf32>
    %1061 = math.tanh %1060 : vector<2x32xf32>
    %1062 = arith.mulf %1055, %1061 : vector<2x32xf32>
    %c18_293 = arith.constant 18 : index
    %c0_294 = arith.constant 0 : index
    %1063 = vector.load %arg15[%c18_293, %c0_294] : memref<32x64xf32, #tpu.memory_space<vmem>>, vector<2x32xf32>
    tpu.vector_store %arg15[%c18_293, %c0_294], %1047 {strides = array<i32>} : memref<32x64xf32, #tpu.memory_space<vmem>>, vector<2x32xf32>,
    %c12_295 = arith.constant 12 : index
    %c32_296 = arith.constant 32 : index
    %1064 = vector.load %arg15[%c12_295, %c32_296] : memref<32x64xf32, #tpu.memory_space<vmem>>, vector<2x32xf32>
    tpu.vector_store %arg15[%c12_295, %c32_296], %1062 {strides = array<i32>} : memref<32x64xf32, #tpu.memory_space<vmem>>, vector<2x32xf32>,
    %1065 = tpu.concatenate %1047, %1062 in 1 : vector<2x32xf32>, vector<2x32xf32> -> vector<2x64xf32>
    %cst_297 = arith.constant dense<0.000000e+00> : vector<2x256xf32>
    %1066 = tpu.matmul %1065, %663, %cst_297 {dimension_numbers = #tpu.dot_dimension_numbers<[1], [0], [0], [1], [0, 0, 1, 1], [], []>} : vector<2x64xf32>, vector<64x256xf32>, vector<2x256xf32> -> vector<2x256xf32>
    %c20_298 = arith.constant 20 : index
    %c0_299 = arith.constant 0 : index
    %1067 = vector.load %arg13[%c20_298, %c0_299] : memref<32x256xf32, #tpu.memory_space<vmem>>, vector<2x128xf32>
    %1068 = vector.extract_strided_slice %1066 {offsets = [0, 0], sizes = [2, 128], strides = [1, 1]} : vector<2x256xf32> to vector<2x128xf32>
    %1069 = arith.addf %1067, %1068 : vector<2x128xf32>
    %c10_300 = arith.constant 10 : index
    %c128_301 = arith.constant 128 : index
    %1070 = vector.load %arg13[%c10_300, %c128_301] : memref<32x256xf32, #tpu.memory_space<vmem>>, vector<2x128xf32>
    %1071 = vector.extract_strided_slice %1066 {offsets = [0, 128], sizes = [2, 128], strides = [1, 1]} : vector<2x256xf32> to vector<2x128xf32>
    %1072 = arith.addf %1070, %1071 : vector<2x128xf32>
    %1073 = arith.negf %1069 : vector<2x128xf32>
    %1074 = math.exp %1073 : vector<2x128xf32>
    %cst_302 = arith.constant 1.000000e+00 : f32
    %1075 = vector.broadcast %cst_302 : f32 to vector<2x128xf32>
    %1076 = arith.addf %1075, %1074 : vector<2x128xf32>
    %1077 = arith.divf %1075, %1076 : vector<2x128xf32>
    %1078 = vector.extract_strided_slice %1077 {offsets = [0, 0], sizes = [2, 32], strides = [1, 1]} : vector<2x128xf32> to vector<2x32xf32>
    %1079 = vector.extract_strided_slice %1077 {offsets = [0, 32], sizes = [2, 32], strides = [1, 1]} : vector<2x128xf32> to vector<2x32xf32>
    %1080 = vector.extract_strided_slice %1077 {offsets = [0, 96], sizes = [2, 32], strides = [1, 1]} : vector<2x128xf32> to vector<2x32xf32>
    %1081 = vector.extract_strided_slice %1069 {offsets = [0, 64], sizes = [2, 32], strides = [1, 1]} : vector<2x128xf32> to vector<2x32xf32>
    %1082 = math.tanh %1081 : vector<2x32xf32>
    %1083 = arith.mulf %1079, %1045 : vector<2x32xf32>
    %1084 = arith.mulf %1078, %1082 : vector<2x32xf32>
    %1085 = arith.addf %1083, %1084 : vector<2x32xf32>
    %1086 = math.tanh %1085 : vector<2x32xf32>
    %1087 = arith.mulf %1080, %1086 : vector<2x32xf32>
    %1088 = arith.negf %1072 : vector<2x128xf32>
    %1089 = math.exp %1088 : vector<2x128xf32>
    %cst_303 = arith.constant 1.000000e+00 : f32
    %1090 = vector.broadcast %cst_303 : f32 to vector<2x128xf32>
    %1091 = arith.addf %1090, %1089 : vector<2x128xf32>
    %1092 = arith.divf %1090, %1091 : vector<2x128xf32>
    %1093 = vector.extract_strided_slice %1092 {offsets = [0, 0], sizes = [2, 32], strides = [1, 1]} : vector<2x128xf32> to vector<2x32xf32>
    %1094 = vector.extract_strided_slice %1092 {offsets = [0, 32], sizes = [2, 32], strides = [1, 1]} : vector<2x128xf32> to vector<2x32xf32>
    %1095 = vector.extract_strided_slice %1092 {offsets = [0, 96], sizes = [2, 32], strides = [1, 1]} : vector<2x128xf32> to vector<2x32xf32>
    %1096 = vector.extract_strided_slice %1072 {offsets = [0, 64], sizes = [2, 32], strides = [1, 1]} : vector<2x128xf32> to vector<2x32xf32>
    %1097 = math.tanh %1096 : vector<2x32xf32>
    %1098 = arith.mulf %1094, %1060 : vector<2x32xf32>
    %1099 = arith.mulf %1093, %1097 : vector<2x32xf32>
    %1100 = arith.addf %1098, %1099 : vector<2x32xf32>
    %1101 = math.tanh %1100 : vector<2x32xf32>
    %1102 = arith.mulf %1095, %1101 : vector<2x32xf32>
    %c20_304 = arith.constant 20 : index
    %c0_305 = arith.constant 0 : index
    %1103 = vector.load %arg15[%c20_304, %c0_305] : memref<32x64xf32, #tpu.memory_space<vmem>>, vector<2x32xf32>
    tpu.vector_store %arg15[%c20_304, %c0_305], %1087 {strides = array<i32>} : memref<32x64xf32, #tpu.memory_space<vmem>>, vector<2x32xf32>,
    %c10_306 = arith.constant 10 : index
    %c32_307 = arith.constant 32 : index
    %1104 = vector.load %arg15[%c10_306, %c32_307] : memref<32x64xf32, #tpu.memory_space<vmem>>, vector<2x32xf32>
    tpu.vector_store %arg15[%c10_306, %c32_307], %1102 {strides = array<i32>} : memref<32x64xf32, #tpu.memory_space<vmem>>, vector<2x32xf32>,
    %1105 = tpu.concatenate %1087, %1102 in 1 : vector<2x32xf32>, vector<2x32xf32> -> vector<2x64xf32>
    %cst_308 = arith.constant dense<0.000000e+00> : vector<2x256xf32>
    %1106 = tpu.matmul %1105, %663, %cst_308 {dimension_numbers = #tpu.dot_dimension_numbers<[1], [0], [0], [1], [0, 0, 1, 1], [], []>} : vector<2x64xf32>, vector<64x256xf32>, vector<2x256xf32> -> vector<2x256xf32>
    %c22_309 = arith.constant 22 : index
    %c0_310 = arith.constant 0 : index
    %1107 = vector.load %arg13[%c22_309, %c0_310] : memref<32x256xf32, #tpu.memory_space<vmem>>, vector<2x128xf32>
    %1108 = vector.extract_strided_slice %1106 {offsets = [0, 0], sizes = [2, 128], strides = [1, 1]} : vector<2x256xf32> to vector<2x128xf32>
    %1109 = arith.addf %1107, %1108 : vector<2x128xf32>
    %c8_311 = arith.constant 8 : index
    %c128_312 = arith.constant 128 : index
    %1110 = vector.load %arg13[%c8_311, %c128_312] : memref<32x256xf32, #tpu.memory_space<vmem>>, vector<2x128xf32>
    %1111 = vector.extract_strided_slice %1106 {offsets = [0, 128], sizes = [2, 128], strides = [1, 1]} : vector<2x256xf32> to vector<2x128xf32>
    %1112 = arith.addf %1110, %1111 : vector<2x128xf32>
    %1113 = arith.negf %1109 : vector<2x128xf32>
    %1114 = math.exp %1113 : vector<2x128xf32>
    %cst_313 = arith.constant 1.000000e+00 : f32
    %1115 = vector.broadcast %cst_313 : f32 to vector<2x128xf32>
    %1116 = arith.addf %1115, %1114 : vector<2x128xf32>
    %1117 = arith.divf %1115, %1116 : vector<2x128xf32>
    %1118 = vector.extract_strided_slice %1117 {offsets = [0, 0], sizes = [2, 32], strides = [1, 1]} : vector<2x128xf32> to vector<2x32xf32>
    %1119 = vector.extract_strided_slice %1117 {offsets = [0, 32], sizes = [2, 32], strides = [1, 1]} : vector<2x128xf32> to vector<2x32xf32>
    %1120 = vector.extract_strided_slice %1117 {offsets = [0, 96], sizes = [2, 32], strides = [1, 1]} : vector<2x128xf32> to vector<2x32xf32>
    %1121 = vector.extract_strided_slice %1109 {offsets = [0, 64], sizes = [2, 32], strides = [1, 1]} : vector<2x128xf32> to vector<2x32xf32>
    %1122 = math.tanh %1121 : vector<2x32xf32>
    %1123 = arith.mulf %1119, %1085 : vector<2x32xf32>
    %1124 = arith.mulf %1118, %1122 : vector<2x32xf32>
    %1125 = arith.addf %1123, %1124 : vector<2x32xf32>
    %1126 = math.tanh %1125 : vector<2x32xf32>
    %1127 = arith.mulf %1120, %1126 : vector<2x32xf32>
    %1128 = arith.negf %1112 : vector<2x128xf32>
    %1129 = math.exp %1128 : vector<2x128xf32>
    %cst_314 = arith.constant 1.000000e+00 : f32
    %1130 = vector.broadcast %cst_314 : f32 to vector<2x128xf32>
    %1131 = arith.addf %1130, %1129 : vector<2x128xf32>
    %1132 = arith.divf %1130, %1131 : vector<2x128xf32>
    %1133 = vector.extract_strided_slice %1132 {offsets = [0, 0], sizes = [2, 32], strides = [1, 1]} : vector<2x128xf32> to vector<2x32xf32>
    %1134 = vector.extract_strided_slice %1132 {offsets = [0, 32], sizes = [2, 32], strides = [1, 1]} : vector<2x128xf32> to vector<2x32xf32>
    %1135 = vector.extract_strided_slice %1132 {offsets = [0, 96], sizes = [2, 32], strides = [1, 1]} : vector<2x128xf32> to vector<2x32xf32>
    %1136 = vector.extract_strided_slice %1112 {offsets = [0, 64], sizes = [2, 32], strides = [1, 1]} : vector<2x128xf32> to vector<2x32xf32>
    %1137 = math.tanh %1136 : vector<2x32xf32>
    %1138 = arith.mulf %1134, %1100 : vector<2x32xf32>
    %1139 = arith.mulf %1133, %1137 : vector<2x32xf32>
    %1140 = arith.addf %1138, %1139 : vector<2x32xf32>
    %1141 = math.tanh %1140 : vector<2x32xf32>
    %1142 = arith.mulf %1135, %1141 : vector<2x32xf32>
    %c22_315 = arith.constant 22 : index
    %c0_316 = arith.constant 0 : index
    %1143 = vector.load %arg15[%c22_315, %c0_316] : memref<32x64xf32, #tpu.memory_space<vmem>>, vector<2x32xf32>
    tpu.vector_store %arg15[%c22_315, %c0_316], %1127 {strides = array<i32>} : memref<32x64xf32, #tpu.memory_space<vmem>>, vector<2x32xf32>,
    %c8_317 = arith.constant 8 : index
    %c32_318 = arith.constant 32 : index
    %1144 = vector.load %arg15[%c8_317, %c32_318] : memref<32x64xf32, #tpu.memory_space<vmem>>, vector<2x32xf32>
    tpu.vector_store %arg15[%c8_317, %c32_318], %1142 {strides = array<i32>} : memref<32x64xf32, #tpu.memory_space<vmem>>, vector<2x32xf32>,
    %1145 = tpu.concatenate %1127, %1142 in 1 : vector<2x32xf32>, vector<2x32xf32> -> vector<2x64xf32>
    %cst_319 = arith.constant dense<0.000000e+00> : vector<2x256xf32>
    %1146 = tpu.matmul %1145, %663, %cst_319 {dimension_numbers = #tpu.dot_dimension_numbers<[1], [0], [0], [1], [0, 0, 1, 1], [], []>} : vector<2x64xf32>, vector<64x256xf32>, vector<2x256xf32> -> vector<2x256xf32>
    %c24_320 = arith.constant 24 : index
    %c0_321 = arith.constant 0 : index
    %1147 = vector.load %arg13[%c24_320, %c0_321] : memref<32x256xf32, #tpu.memory_space<vmem>>, vector<2x128xf32>
    %1148 = vector.extract_strided_slice %1146 {offsets = [0, 0], sizes = [2, 128], strides = [1, 1]} : vector<2x256xf32> to vector<2x128xf32>
    %1149 = arith.addf %1147, %1148 : vector<2x128xf32>
    %c6_322 = arith.constant 6 : index
    %c128_323 = arith.constant 128 : index
    %1150 = vector.load %arg13[%c6_322, %c128_323] : memref<32x256xf32, #tpu.memory_space<vmem>>, vector<2x128xf32>
    %1151 = vector.extract_strided_slice %1146 {offsets = [0, 128], sizes = [2, 128], strides = [1, 1]} : vector<2x256xf32> to vector<2x128xf32>
    %1152 = arith.addf %1150, %1151 : vector<2x128xf32>
    %1153 = arith.negf %1149 : vector<2x128xf32>
    %1154 = math.exp %1153 : vector<2x128xf32>
    %cst_324 = arith.constant 1.000000e+00 : f32
    %1155 = vector.broadcast %cst_324 : f32 to vector<2x128xf32>
    %1156 = arith.addf %1155, %1154 : vector<2x128xf32>
    %1157 = arith.divf %1155, %1156 : vector<2x128xf32>
    %1158 = vector.extract_strided_slice %1157 {offsets = [0, 0], sizes = [2, 32], strides = [1, 1]} : vector<2x128xf32> to vector<2x32xf32>
    %1159 = vector.extract_strided_slice %1157 {offsets = [0, 32], sizes = [2, 32], strides = [1, 1]} : vector<2x128xf32> to vector<2x32xf32>
    %1160 = vector.extract_strided_slice %1157 {offsets = [0, 96], sizes = [2, 32], strides = [1, 1]} : vector<2x128xf32> to vector<2x32xf32>
    %1161 = vector.extract_strided_slice %1149 {offsets = [0, 64], sizes = [2, 32], strides = [1, 1]} : vector<2x128xf32> to vector<2x32xf32>
    %1162 = math.tanh %1161 : vector<2x32xf32>
    %1163 = arith.mulf %1159, %1125 : vector<2x32xf32>
    %1164 = arith.mulf %1158, %1162 : vector<2x32xf32>
    %1165 = arith.addf %1163, %1164 : vector<2x32xf32>
    %1166 = math.tanh %1165 : vector<2x32xf32>
    %1167 = arith.mulf %1160, %1166 : vector<2x32xf32>
    %1168 = arith.negf %1152 : vector<2x128xf32>
    %1169 = math.exp %1168 : vector<2x128xf32>
    %cst_325 = arith.constant 1.000000e+00 : f32
    %1170 = vector.broadcast %cst_325 : f32 to vector<2x128xf32>
    %1171 = arith.addf %1170, %1169 : vector<2x128xf32>
    %1172 = arith.divf %1170, %1171 : vector<2x128xf32>
    %1173 = vector.extract_strided_slice %1172 {offsets = [0, 0], sizes = [2, 32], strides = [1, 1]} : vector<2x128xf32> to vector<2x32xf32>
    %1174 = vector.extract_strided_slice %1172 {offsets = [0, 32], sizes = [2, 32], strides = [1, 1]} : vector<2x128xf32> to vector<2x32xf32>
    %1175 = vector.extract_strided_slice %1172 {offsets = [0, 96], sizes = [2, 32], strides = [1, 1]} : vector<2x128xf32> to vector<2x32xf32>
    %1176 = vector.extract_strided_slice %1152 {offsets = [0, 64], sizes = [2, 32], strides = [1, 1]} : vector<2x128xf32> to vector<2x32xf32>
    %1177 = math.tanh %1176 : vector<2x32xf32>
    %1178 = arith.mulf %1174, %1140 : vector<2x32xf32>
    %1179 = arith.mulf %1173, %1177 : vector<2x32xf32>
    %1180 = arith.addf %1178, %1179 : vector<2x32xf32>
    %1181 = math.tanh %1180 : vector<2x32xf32>
    %1182 = arith.mulf %1175, %1181 : vector<2x32xf32>
    %c24_326 = arith.constant 24 : index
    %c0_327 = arith.constant 0 : index
    %1183 = vector.load %arg15[%c24_326, %c0_327] : memref<32x64xf32, #tpu.memory_space<vmem>>, vector<2x32xf32>
    tpu.vector_store %arg15[%c24_326, %c0_327], %1167 {strides = array<i32>} : memref<32x64xf32, #tpu.memory_space<vmem>>, vector<2x32xf32>,
    %c6_328 = arith.constant 6 : index
    %c32_329 = arith.constant 32 : index
    %1184 = vector.load %arg15[%c6_328, %c32_329] : memref<32x64xf32, #tpu.memory_space<vmem>>, vector<2x32xf32>
    tpu.vector_store %arg15[%c6_328, %c32_329], %1182 {strides = array<i32>} : memref<32x64xf32, #tpu.memory_space<vmem>>, vector<2x32xf32>,
    %1185 = tpu.concatenate %1167, %1182 in 1 : vector<2x32xf32>, vector<2x32xf32> -> vector<2x64xf32>
    %cst_330 = arith.constant dense<0.000000e+00> : vector<2x256xf32>
    %1186 = tpu.matmul %1185, %663, %cst_330 {dimension_numbers = #tpu.dot_dimension_numbers<[1], [0], [0], [1], [0, 0, 1, 1], [], []>} : vector<2x64xf32>, vector<64x256xf32>, vector<2x256xf32> -> vector<2x256xf32>
    %c26_331 = arith.constant 26 : index
    %c0_332 = arith.constant 0 : index
    %1187 = vector.load %arg13[%c26_331, %c0_332] : memref<32x256xf32, #tpu.memory_space<vmem>>, vector<2x128xf32>
    %1188 = vector.extract_strided_slice %1186 {offsets = [0, 0], sizes = [2, 128], strides = [1, 1]} : vector<2x256xf32> to vector<2x128xf32>
    %1189 = arith.addf %1187, %1188 : vector<2x128xf32>
    %c4_333 = arith.constant 4 : index
    %c128_334 = arith.constant 128 : index
    %1190 = vector.load %arg13[%c4_333, %c128_334] : memref<32x256xf32, #tpu.memory_space<vmem>>, vector<2x128xf32>
    %1191 = vector.extract_strided_slice %1186 {offsets = [0, 128], sizes = [2, 128], strides = [1, 1]} : vector<2x256xf32> to vector<2x128xf32>
    %1192 = arith.addf %1190, %1191 : vector<2x128xf32>
    %1193 = arith.negf %1189 : vector<2x128xf32>
    %1194 = math.exp %1193 : vector<2x128xf32>
    %cst_335 = arith.constant 1.000000e+00 : f32
    %1195 = vector.broadcast %cst_335 : f32 to vector<2x128xf32>
    %1196 = arith.addf %1195, %1194 : vector<2x128xf32>
    %1197 = arith.divf %1195, %1196 : vector<2x128xf32>
    %1198 = vector.extract_strided_slice %1197 {offsets = [0, 0], sizes = [2, 32], strides = [1, 1]} : vector<2x128xf32> to vector<2x32xf32>
    %1199 = vector.extract_strided_slice %1197 {offsets = [0, 32], sizes = [2, 32], strides = [1, 1]} : vector<2x128xf32> to vector<2x32xf32>
    %1200 = vector.extract_strided_slice %1197 {offsets = [0, 96], sizes = [2, 32], strides = [1, 1]} : vector<2x128xf32> to vector<2x32xf32>
    %1201 = vector.extract_strided_slice %1189 {offsets = [0, 64], sizes = [2, 32], strides = [1, 1]} : vector<2x128xf32> to vector<2x32xf32>
    %1202 = math.tanh %1201 : vector<2x32xf32>
    %1203 = arith.mulf %1199, %1165 : vector<2x32xf32>
    %1204 = arith.mulf %1198, %1202 : vector<2x32xf32>
    %1205 = arith.addf %1203, %1204 : vector<2x32xf32>
    %1206 = math.tanh %1205 : vector<2x32xf32>
    %1207 = arith.mulf %1200, %1206 : vector<2x32xf32>
    %1208 = arith.negf %1192 : vector<2x128xf32>
    %1209 = math.exp %1208 : vector<2x128xf32>
    %cst_336 = arith.constant 1.000000e+00 : f32
    %1210 = vector.broadcast %cst_336 : f32 to vector<2x128xf32>
    %1211 = arith.addf %1210, %1209 : vector<2x128xf32>
    %1212 = arith.divf %1210, %1211 : vector<2x128xf32>
    %1213 = vector.extract_strided_slice %1212 {offsets = [0, 0], sizes = [2, 32], strides = [1, 1]} : vector<2x128xf32> to vector<2x32xf32>
    %1214 = vector.extract_strided_slice %1212 {offsets = [0, 32], sizes = [2, 32], strides = [1, 1]} : vector<2x128xf32> to vector<2x32xf32>
    %1215 = vector.extract_strided_slice %1212 {offsets = [0, 96], sizes = [2, 32], strides = [1, 1]} : vector<2x128xf32> to vector<2x32xf32>
    %1216 = vector.extract_strided_slice %1192 {offsets = [0, 64], sizes = [2, 32], strides = [1, 1]} : vector<2x128xf32> to vector<2x32xf32>
    %1217 = math.tanh %1216 : vector<2x32xf32>
    %1218 = arith.mulf %1214, %1180 : vector<2x32xf32>
    %1219 = arith.mulf %1213, %1217 : vector<2x32xf32>
    %1220 = arith.addf %1218, %1219 : vector<2x32xf32>
    %1221 = math.tanh %1220 : vector<2x32xf32>
    %1222 = arith.mulf %1215, %1221 : vector<2x32xf32>
    %c26_337 = arith.constant 26 : index
    %c0_338 = arith.constant 0 : index
    %1223 = vector.load %arg15[%c26_337, %c0_338] : memref<32x64xf32, #tpu.memory_space<vmem>>, vector<2x32xf32>
    tpu.vector_store %arg15[%c26_337, %c0_338], %1207 {strides = array<i32>} : memref<32x64xf32, #tpu.memory_space<vmem>>, vector<2x32xf32>,
    %c4_339 = arith.constant 4 : index
    %c32_340 = arith.constant 32 : index
    %1224 = vector.load %arg15[%c4_339, %c32_340] : memref<32x64xf32, #tpu.memory_space<vmem>>, vector<2x32xf32>
    tpu.vector_store %arg15[%c4_339, %c32_340], %1222 {strides = array<i32>} : memref<32x64xf32, #tpu.memory_space<vmem>>, vector<2x32xf32>,
    %1225 = tpu.concatenate %1207, %1222 in 1 : vector<2x32xf32>, vector<2x32xf32> -> vector<2x64xf32>
    %cst_341 = arith.constant dense<0.000000e+00> : vector<2x256xf32>
    %1226 = tpu.matmul %1225, %663, %cst_341 {dimension_numbers = #tpu.dot_dimension_numbers<[1], [0], [0], [1], [0, 0, 1, 1], [], []>} : vector<2x64xf32>, vector<64x256xf32>, vector<2x256xf32> -> vector<2x256xf32>
    %c28_342 = arith.constant 28 : index
    %c0_343 = arith.constant 0 : index
    %1227 = vector.load %arg13[%c28_342, %c0_343] : memref<32x256xf32, #tpu.memory_space<vmem>>, vector<2x128xf32>
    %1228 = vector.extract_strided_slice %1226 {offsets = [0, 0], sizes = [2, 128], strides = [1, 1]} : vector<2x256xf32> to vector<2x128xf32>
    %1229 = arith.addf %1227, %1228 : vector<2x128xf32>
    %c2_344 = arith.constant 2 : index
    %c128_345 = arith.constant 128 : index
    %1230 = vector.load %arg13[%c2_344, %c128_345] : memref<32x256xf32, #tpu.memory_space<vmem>>, vector<2x128xf32>
    %1231 = vector.extract_strided_slice %1226 {offsets = [0, 128], sizes = [2, 128], strides = [1, 1]} : vector<2x256xf32> to vector<2x128xf32>
    %1232 = arith.addf %1230, %1231 : vector<2x128xf32>
    %1233 = arith.negf %1229 : vector<2x128xf32>
    %1234 = math.exp %1233 : vector<2x128xf32>
    %cst_346 = arith.constant 1.000000e+00 : f32
    %1235 = vector.broadcast %cst_346 : f32 to vector<2x128xf32>
    %1236 = arith.addf %1235, %1234 : vector<2x128xf32>
    %1237 = arith.divf %1235, %1236 : vector<2x128xf32>
    %1238 = vector.extract_strided_slice %1237 {offsets = [0, 0], sizes = [2, 32], strides = [1, 1]} : vector<2x128xf32> to vector<2x32xf32>
    %1239 = vector.extract_strided_slice %1237 {offsets = [0, 32], sizes = [2, 32], strides = [1, 1]} : vector<2x128xf32> to vector<2x32xf32>
    %1240 = vector.extract_strided_slice %1237 {offsets = [0, 96], sizes = [2, 32], strides = [1, 1]} : vector<2x128xf32> to vector<2x32xf32>
    %1241 = vector.extract_strided_slice %1229 {offsets = [0, 64], sizes = [2, 32], strides = [1, 1]} : vector<2x128xf32> to vector<2x32xf32>
    %1242 = math.tanh %1241 : vector<2x32xf32>
    %1243 = arith.mulf %1239, %1205 : vector<2x32xf32>
    %1244 = arith.mulf %1238, %1242 : vector<2x32xf32>
    %1245 = arith.addf %1243, %1244 : vector<2x32xf32>
    %1246 = math.tanh %1245 : vector<2x32xf32>
    %1247 = arith.mulf %1240, %1246 : vector<2x32xf32>
    %1248 = arith.negf %1232 : vector<2x128xf32>
    %1249 = math.exp %1248 : vector<2x128xf32>
    %cst_347 = arith.constant 1.000000e+00 : f32
    %1250 = vector.broadcast %cst_347 : f32 to vector<2x128xf32>
    %1251 = arith.addf %1250, %1249 : vector<2x128xf32>
    %1252 = arith.divf %1250, %1251 : vector<2x128xf32>
    %1253 = vector.extract_strided_slice %1252 {offsets = [0, 0], sizes = [2, 32], strides = [1, 1]} : vector<2x128xf32> to vector<2x32xf32>
    %1254 = vector.extract_strided_slice %1252 {offsets = [0, 32], sizes = [2, 32], strides = [1, 1]} : vector<2x128xf32> to vector<2x32xf32>
    %1255 = vector.extract_strided_slice %1252 {offsets = [0, 96], sizes = [2, 32], strides = [1, 1]} : vector<2x128xf32> to vector<2x32xf32>
    %1256 = vector.extract_strided_slice %1232 {offsets = [0, 64], sizes = [2, 32], strides = [1, 1]} : vector<2x128xf32> to vector<2x32xf32>
    %1257 = math.tanh %1256 : vector<2x32xf32>
    %1258 = arith.mulf %1254, %1220 : vector<2x32xf32>
    %1259 = arith.mulf %1253, %1257 : vector<2x32xf32>
    %1260 = arith.addf %1258, %1259 : vector<2x32xf32>
    %1261 = math.tanh %1260 : vector<2x32xf32>
    %1262 = arith.mulf %1255, %1261 : vector<2x32xf32>
    %c28_348 = arith.constant 28 : index
    %c0_349 = arith.constant 0 : index
    %1263 = vector.load %arg15[%c28_348, %c0_349] : memref<32x64xf32, #tpu.memory_space<vmem>>, vector<2x32xf32>
    tpu.vector_store %arg15[%c28_348, %c0_349], %1247 {strides = array<i32>} : memref<32x64xf32, #tpu.memory_space<vmem>>, vector<2x32xf32>,
    %c2_350 = arith.constant 2 : index
    %c32_351 = arith.constant 32 : index
    %1264 = vector.load %arg15[%c2_350, %c32_351] : memref<32x64xf32, #tpu.memory_space<vmem>>, vector<2x32xf32>
    tpu.vector_store %arg15[%c2_350, %c32_351], %1262 {strides = array<i32>} : memref<32x64xf32, #tpu.memory_space<vmem>>, vector<2x32xf32>,
    %1265 = tpu.concatenate %1247, %1262 in 1 : vector<2x32xf32>, vector<2x32xf32> -> vector<2x64xf32>
    %cst_352 = arith.constant dense<0.000000e+00> : vector<2x256xf32>
    %1266 = tpu.matmul %1265, %663, %cst_352 {dimension_numbers = #tpu.dot_dimension_numbers<[1], [0], [0], [1], [0, 0, 1, 1], [], []>} : vector<2x64xf32>, vector<64x256xf32>, vector<2x256xf32> -> vector<2x256xf32>
    %c30_353 = arith.constant 30 : index
    %c0_354 = arith.constant 0 : index
    %1267 = vector.load %arg13[%c30_353, %c0_354] : memref<32x256xf32, #tpu.memory_space<vmem>>, vector<2x128xf32>
    %1268 = vector.extract_strided_slice %1266 {offsets = [0, 0], sizes = [2, 128], strides = [1, 1]} : vector<2x256xf32> to vector<2x128xf32>
    %1269 = arith.addf %1267, %1268 : vector<2x128xf32>
    %c0_355 = arith.constant 0 : index
    %c128_356 = arith.constant 128 : index
    %1270 = vector.load %arg13[%c0_355, %c128_356] : memref<32x256xf32, #tpu.memory_space<vmem>>, vector<2x128xf32>
    %1271 = vector.extract_strided_slice %1266 {offsets = [0, 128], sizes = [2, 128], strides = [1, 1]} : vector<2x256xf32> to vector<2x128xf32>
    %1272 = arith.addf %1270, %1271 : vector<2x128xf32>
    %1273 = arith.negf %1269 : vector<2x128xf32>
    %1274 = math.exp %1273 : vector<2x128xf32>
    %cst_357 = arith.constant 1.000000e+00 : f32
    %1275 = vector.broadcast %cst_357 : f32 to vector<2x128xf32>
    %1276 = arith.addf %1275, %1274 : vector<2x128xf32>
    %1277 = arith.divf %1275, %1276 : vector<2x128xf32>
    %1278 = vector.extract_strided_slice %1277 {offsets = [0, 0], sizes = [2, 32], strides = [1, 1]} : vector<2x128xf32> to vector<2x32xf32>
    %1279 = vector.extract_strided_slice %1277 {offsets = [0, 32], sizes = [2, 32], strides = [1, 1]} : vector<2x128xf32> to vector<2x32xf32>
    %1280 = vector.extract_strided_slice %1277 {offsets = [0, 96], sizes = [2, 32], strides = [1, 1]} : vector<2x128xf32> to vector<2x32xf32>
    %1281 = vector.extract_strided_slice %1269 {offsets = [0, 64], sizes = [2, 32], strides = [1, 1]} : vector<2x128xf32> to vector<2x32xf32>
    %1282 = math.tanh %1281 : vector<2x32xf32>
    %1283 = arith.mulf %1279, %1245 : vector<2x32xf32>
    %1284 = arith.mulf %1278, %1282 : vector<2x32xf32>
    %1285 = arith.addf %1283, %1284 : vector<2x32xf32>
    %1286 = math.tanh %1285 : vector<2x32xf32>
    %1287 = arith.mulf %1280, %1286 : vector<2x32xf32>
    %1288 = arith.negf %1272 : vector<2x128xf32>
    %1289 = math.exp %1288 : vector<2x128xf32>
    %cst_358 = arith.constant 1.000000e+00 : f32
    %1290 = vector.broadcast %cst_358 : f32 to vector<2x128xf32>
    %1291 = arith.addf %1290, %1289 : vector<2x128xf32>
    %1292 = arith.divf %1290, %1291 : vector<2x128xf32>
    %1293 = vector.extract_strided_slice %1292 {offsets = [0, 0], sizes = [2, 32], strides = [1, 1]} : vector<2x128xf32> to vector<2x32xf32>
    %1294 = vector.extract_strided_slice %1292 {offsets = [0, 32], sizes = [2, 32], strides = [1, 1]} : vector<2x128xf32> to vector<2x32xf32>
    %1295 = vector.extract_strided_slice %1292 {offsets = [0, 96], sizes = [2, 32], strides = [1, 1]} : vector<2x128xf32> to vector<2x32xf32>
    %1296 = vector.extract_strided_slice %1272 {offsets = [0, 64], sizes = [2, 32], strides = [1, 1]} : vector<2x128xf32> to vector<2x32xf32>
    %1297 = math.tanh %1296 : vector<2x32xf32>
    %1298 = arith.mulf %1294, %1260 : vector<2x32xf32>
    %1299 = arith.mulf %1293, %1297 : vector<2x32xf32>
    %1300 = arith.addf %1298, %1299 : vector<2x32xf32>
    %1301 = math.tanh %1300 : vector<2x32xf32>
    %1302 = arith.mulf %1295, %1301 : vector<2x32xf32>
    %c30_359 = arith.constant 30 : index
    %c0_360 = arith.constant 0 : index
    %1303 = vector.load %arg15[%c30_359, %c0_360] : memref<32x64xf32, #tpu.memory_space<vmem>>, vector<2x32xf32>
    tpu.vector_store %arg15[%c30_359, %c0_360], %1287 {strides = array<i32>} : memref<32x64xf32, #tpu.memory_space<vmem>>, vector<2x32xf32>,
    %c0_361 = arith.constant 0 : index
    %c32_362 = arith.constant 32 : index
    %1304 = vector.load %arg15[%c0_361, %c32_362] : memref<32x64xf32, #tpu.memory_space<vmem>>, vector<2x32xf32>
    tpu.vector_store %arg15[%c0_361, %c32_362], %1302 {strides = array<i32>} : memref<32x64xf32, #tpu.memory_space<vmem>>, vector<2x32xf32>,
    %c30_363 = arith.constant 30 : index
    %c0_364 = arith.constant 0 : index
    %1305 = vector.load %arg15[%c30_363, %c0_364] : memref<32x64xf32, #tpu.memory_space<vmem>>, vector<2x64xf32>
    %c0_365 = arith.constant 0 : index
    %c0_366 = arith.constant 0 : index
    %1306 = vector.load %arg10[%c0_365, %c0_366] : memref<64x1xf32, #tpu.memory_space<vmem>>, vector<64x1xf32>
    %cst_367 = arith.constant dense<0.000000e+00> : vector<2x1xf32>
    %1307 = tpu.matmul %1305, %1306, %cst_367 {dimension_numbers = #tpu.dot_dimension_numbers<[1], [0], [0], [1], [0, 0, 1, 1], [], []>} : vector<2x64xf32>, vector<64x1xf32>, vector<2x1xf32> -> vector<2x1xf32>
    %c0_368 = arith.constant 0 : index
    %c0_369 = arith.constant 0 : index
    %1308 = vector.load %arg11[%c0_368, %c0_369] : memref<1x1xf32, #tpu.memory_space<vmem>>, vector<1x1xf32>
    %1309 = vector.broadcast %1308 : vector<1x1xf32> to vector<2x1xf32>
    %1310 = arith.addf %1307, %1309 : vector<2x1xf32>
    %c0_370 = arith.constant 0 : index
    %c0_371 = arith.constant 0 : index
    %1311 = vector.load %arg12[%c0_370, %c0_371] : memref<2x1xf32, #tpu.memory_space<vmem>>, vector<2x1xf32>
    tpu.vector_store %arg12[%c0_370, %c0_371], %1310 {strides = array<i32>} : memref<2x1xf32, #tpu.memory_space<vmem>>, vector<2x1xf32>,
    return
  }
  func.func @transform_0(%arg0: i32) -> (i32, i32) {
    %c0_i32 = arith.constant 0 : i32
    %c0_i32_0 = arith.constant 0 : i32
    %c0_i32_1 = arith.constant 0 : i32
    return %c0_i32, %c0_i32_0 : i32, i32
  }
  func.func @transform_1(%arg0: i32) -> (i32, i32) {
    %c0_i32 = arith.constant 0 : i32
    %c0_i32_0 = arith.constant 0 : i32
    %c0_i32_1 = arith.constant 0 : i32
    return %c0_i32, %c0_i32_0 : i32, i32
  }
  func.func @transform_2(%arg0: i32) -> (i32, i32) {
    %c0_i32 = arith.constant 0 : i32
    %c0_i32_0 = arith.constant 0 : i32
    %c0_i32_1 = arith.constant 0 : i32
    return %c0_i32, %c0_i32_0 : i32, i32
  }
  func.func @transform_3(%arg0: i32) -> (i32, i32) {
    %c0_i32 = arith.constant 0 : i32
    %c0_i32_0 = arith.constant 0 : i32
    %c0_i32_1 = arith.constant 0 : i32
    return %c0_i32, %c0_i32_0 : i32, i32
  }
  func.func @transform_4(%arg0: i32) -> (i32, i32) {
    %c0_i32 = arith.constant 0 : i32
    %c0_i32_0 = arith.constant 0 : i32
    %c0_i32_1 = arith.constant 0 : i32
    return %c0_i32, %c0_i32_0 : i32, i32
  }
  func.func @transform_5(%arg0: i32) -> (i32, i32) {
    %c0_i32 = arith.constant 0 : i32
    %c0_i32_0 = arith.constant 0 : i32
    %c0_i32_1 = arith.constant 0 : i32
    return %c0_i32, %c0_i32_0 : i32, i32
  }
  func.func @transform_6(%arg0: i32) -> (i32, i32) {
    %c0_i32 = arith.constant 0 : i32
    %c0_i32_0 = arith.constant 0 : i32
    %c0_i32_1 = arith.constant 0 : i32
    return %c0_i32, %c0_i32_0 : i32, i32
  }
  func.func @transform_7(%arg0: i32) -> (i32, i32) {
    %c0_i32 = arith.constant 0 : i32
    %c0_i32_0 = arith.constant 0 : i32
    %c0_i32_1 = arith.constant 0 : i32
    return %c0_i32, %c0_i32_0 : i32, i32
  }
  func.func @transform_8(%arg0: i32) -> (i32, i32) {
    %c0_i32 = arith.constant 0 : i32
    %c0_i32_0 = arith.constant 0 : i32
    %c0_i32_1 = arith.constant 0 : i32
    return %c0_i32, %c0_i32_0 : i32, i32
  }
  func.func @transform_9(%arg0: i32) -> (i32, i32) {
    %c0_i32 = arith.constant 0 : i32
    %c0_i32_0 = arith.constant 0 : i32
    %c0_i32_1 = arith.constant 0 : i32
    return %c0_i32, %c0_i32_0 : i32, i32
  }
  func.func @transform_10(%arg0: i32) -> (i32, i32) {
    %c0_i32 = arith.constant 0 : i32
    %c0_i32_0 = arith.constant 0 : i32
    %c0_i32_1 = arith.constant 0 : i32
    return %c0_i32, %c0_i32_0 : i32, i32
  }
  func.func @transform_11(%arg0: i32) -> (i32, i32) {
    %c0_i32 = arith.constant 0 : i32
    %c0_i32_0 = arith.constant 0 : i32
    %c0_i32_1 = arith.constant 0 : i32
    return %c0_i32, %c0_i32_0 : i32, i32
  }
}

</mosaic_0001>

<bundles_post_ra>
// kernel: cnn_bilstm_forward.1
= control target key start
LH: loop header
LB: loop body
LE: loop exit
PB: predicated region body
PF: predicated region fallthrough
CT: control target
= control target key end

     0   :  { %vm62_vm0 = vcmask 1042432   ;;  %vm49_vm1 = vcmask 23552   ;;  %v5791_v21 = vmov 0.0   ;;  %vm113_vm2 = vcmask 261120   ;;  %s5793_s15 = smov 32   ;;  %s7746_s1 = inlined_call_operand.vmem [shape: f32[3,32], index: 1, kind: input, shape index: {}]   ;;  %s7747_s0 = inlined_call_operand.vmem [shape: f32[32,3], index: 0, kind: input, shape index: {}]   ;;  %s7748_s5 = inlined_call_operand.vmem [shape: f32[64,256], index: 5, kind: input, shape index: {}]   ;;  %s7749_s3 = inlined_call_operand.vmem [shape: f32[32,256], index: 3, kind: input, shape index: {}]   ;;  %s7750_s2 = inlined_call_operand.vmem [shape: f32[1,32], index: 2, kind: input, shape index: {}]   ;;  %s7751_s4 = inlined_call_operand.vmem [shape: f32[1,256], index: 4, kind: input, shape index: {}]   ;;  %s7752_s6 = inlined_call_operand.vmem [shape: f32[64,256], index: 6, kind: input, shape index: {}]   ;;  %s7753_s8 = inlined_call_operand.vmem [shape: f32[64,256], index: 8, kind: input, shape index: {}]   ;;  %s7754_s7 = inlined_call_operand.vmem [shape: f32[1,256], index: 7, kind: input, shape index: {}]   ;;  %s7755_s9 = inlined_call_operand.vmem [shape: f32[64,1], index: 9, kind: input, shape index: {}]   ;;  %s7756_s10 = inlined_call_operand.<no memory space> [shape: f32[1,1], index: 10, kind: input, shape index: {}]   ;;  %s7757_s11 = inlined_call_operand.vmem [shape: f32[2,1], index: 11, kind: output, shape index: {}]  }
   0x1   :  { %v44_v0 = vld [vmem:[%s7746_s1] sm:$0x7]  ;;  %v5863_v2 = vld [vmem:[%s7748_s5 + $0x70] sm:$0xff]  ;;  %v106_v5 = vld [vmem:[%s7749_s3 + $0x38] sm:$0xff]  ;;  %vm337_vm11 = vcmask 254976   ;;  %vm208_vm12 = vcmask 523264  }
   0x2   :  { %v40_v1 = vld [vmem:[%s7747_s0] sm:$0xff]  ;;  %5064 = vmatpush.msk.msra.mxu0 %vm62_vm0, %v44_v0  ;;  %220 = vmatpush.msra.mxu3 %v5863_v2  ;;  %v105_v4 = vld [vmem:[%s7749_s3 + $0x30] sm:$0xff]  ;;  %v41_v7 = vld [vmem:[%s7747_s0 + $0x8] sm:$0xff] }
   0x3   :  { %5065 = vmatmul.msk.f32.vlgmr.msra.gmra.mxu0 %vm49_vm1, %v40_v1  ;;  %v5870_v3 = vld [vmem:[%s7748_s5 + $0x60] sm:$0xff]  ;;  %138 = vmatpush.msra.mxu1 %v105_v4  ;;  %v5881_v6 = vld [vmem:[%s7748_s5 + $0x50] sm:$0xff]  ;;  %v43_v9 = vld [vmem:[%s7747_s0 + $0x18] sm:$0xff] }
   0x4   :  { %167 = vmatpush.msra.mxu2 %v106_v5  ;;  %221 = vmatpush.msra.mxu3 %v5870_v3  ;;  %v42_v8 = vld [vmem:[%s7747_s0 + $0x10] sm:$0xff]  ;;  %v103_v10 = vld [vmem:[%s7749_s3 + $0x20] sm:$0xff]  ;;  %v104_v11 = vld [vmem:[%s7749_s3 + $0x28] sm:$0xff] }
   0x5   :  { %361 = vmatpush.msrb.mxu0 %v5863_v2  ;;  %v5909_v12 = vld [vmem:[%s7748_s5 + $0x40] sm:$0xff]  ;;  %139 = vmatpush.msra.mxu1 %v103_v10  ;;  %v101_v13 = vld [vmem:[%s7749_s3 + $0x10] sm:$0xff]  ;;  %v102_v14 = vld [vmem:[%s7749_s3 + $0x18] sm:$0xff] }
   0x6   :  { %222 = vmatpush.msra.mxu3 %v5881_v6  ;;  %168 = vmatpush.msra.mxu2 %v104_v11  ;;  %v5921_v15 = vld [vmem:[%s7748_s5 + $0x30] sm:$0xff]  ;;  %v99_v16 = vld [vmem:[%s7749_s3] sm:$0xff]  ;;  %v100_v17 = vld [vmem:[%s7749_s3 + $0x8] sm:$0xff] }
   0x7   :  { %362 = vmatpush.msrb.mxu0 %v5870_v3  ;;  %140 = vmatpush.msra.mxu1 %v101_v13  ;;  %v5934_v18 = vld [vmem:[%s7748_s5 + $0x20] sm:$0xff]  ;;  %v5941_v19 = vld [vmem:[%s7748_s5 + $0x10] sm:$0xff]  ;;  %v5970_v22 = vld [vmem:[%s7748_s5 + $0x78] sm:$0xff] }
   0x8   :  { %223 = vmatpush.msra.mxu3 %v5909_v12  ;;  %169 = vmatpush.msra.mxu2 %v102_v14  ;;  %v5949_v20 = vld [vmem:[%s7748_s5] sm:$0xff]  ;;  %v5978_v23 = vld [vmem:[%s7748_s5 + $0x68] sm:$0xff]  ;;  %v5986_v24 = vld [vmem:[%s7748_s5 + $0x58] sm:$0xff] }
   0x9   :  { %363 = vmatpush.msrb.mxu0 %v5881_v6  ;;  %141 = vmatpush.msra.mxu1 %v99_v16  ;;  %v5994_v25 = vld [vmem:[%s7748_s5 + $0x48] sm:$0xff]  ;;  %v5213_v26 = vld [vmem:[%s7750_s2] ss:$0 sm:$0xff]  ;;  %v6004_v27 = vld [vmem:[%s7748_s5 + $0x38] sm:$0xff] }
   0xa   :  { %224 = vmatpush.msra.mxu3 %v5921_v15  ;;  %170 = vmatpush.msra.mxu2 %v100_v17  ;;  %v6009_v28 = vld [vmem:[%s7748_s5 + $0x28] sm:$0xff]  ;;  %v6016_v29 = vld [vmem:[%s7748_s5 + $0x18] sm:$0xff]  ;;  %v107_v43 = vld [vmem:[%s7751_s4] sm:$0x3]  ;;  %s5792_s4 = smov 64  }
   0xb   :  { %5066 = vmatmul.msk.f32.gmra.mxu0 %vm49_vm1, %v41_v7  ;;  %381 = vmatpush.msrb.mxu1 %v5970_v22  ;;  %v6023_v32 = vld [vmem:[%s7748_s5 + $0x8] sm:$0xff]  ;;  %v109_v44 = vperm.slane %v107_v43, 0  ;;  %v110_v47 = vperm.slane %v107_v43, 1 }
   0xc   :  { %364 = vmatpush.msrb.mxu0 %v5909_v12  ;;  %225 = vmatpush.msra.mxu3 %v5934_v18 }
   0xd   :  { %512 = vmatpush.msrb.mxu2 %v5863_v2  ;;  %382 = vmatpush.msrb.mxu1 %v5978_v23 }
   0xe   :  { %365 = vmatpush.msrb.mxu0 %v5921_v15  ;;  %226 = vmatpush.msra.mxu3 %v5941_v19 }
   0xf   :  { %513 = vmatpush.msrb.mxu2 %v5870_v3  ;;  %383 = vmatpush.msrb.mxu1 %v5986_v24 }
  0x10   :  { %366 = vmatpush.msrb.mxu0 %v5934_v18  ;;  %227 = vmatpush.msra.mxu3 %v5949_v20 }
  0x11   :  { %228 = vmatmul.f32.vlgmr.msra.gmra.mxu3 %v5791_v21  ;;  %514 = vmatpush.msrb.mxu2 %v5881_v6 }
  0x12   :  { %367 = vmatpush.msrb.mxu0 %v5941_v19  ;;  %240 = vmatpush.msrb.mxu3 %v5970_v22 }
  0x13   :  { %5067 = vmatmul.msk.f32.gmra.mxu0 %vm49_vm1, %v42_v8  ;;  %515 = vmatpush.msrb.mxu2 %v5909_v12 }
  0x14   :  { %368 = vmatpush.msrb.mxu0 %v5949_v20  ;;  %241 = vmatpush.msrb.mxu3 %v5978_v23 }
  0x15   :  { %516 = vmatpush.msrb.mxu2 %v5921_v15  ;;  %384 = vmatpush.msrb.mxu1 %v5994_v25 }
  0x16   :  { %663 = vmatpush.msra.mxu0 %v5863_v2  ;;  %242 = vmatpush.msrb.mxu3 %v5986_v24 }
  0x17   :  { %517 = vmatpush.msrb.mxu2 %v5934_v18  ;;  %385 = vmatpush.msrb.mxu1 %v6004_v27 }
  0x18   :  { %664 = vmatpush.msra.mxu0 %v5870_v3  ;;  %243 = vmatpush.msrb.mxu3 %v5994_v25 }
  0x19   :  { %518 = vmatpush.msrb.mxu2 %v5941_v19  ;;  %386 = vmatpush.msrb.mxu1 %v6009_v28 }
  0x1a   :  { %665 = vmatpush.msra.mxu0 %v5881_v6  ;;  %244 = vmatpush.msrb.mxu3 %v6004_v27 }
  0x1b   :  { %5068 = vmatmul.msk.f32.gmra.mxu0 %vm49_vm1, %v43_v9  ;;  %519 = vmatpush.msrb.mxu2 %v5949_v20 }
  0x1c   :  { %666 = vmatpush.msra.mxu0 %v5909_v12  ;;  %245 = vmatpush.msrb.mxu3 %v6009_v28 }
  0x1d   :  { %387 = vmatpush.msrb.mxu1 %v6016_v29 }
  0x1e   :  { %667 = vmatpush.msra.mxu0 %v5921_v15  ;;  %246 = vmatpush.msrb.mxu3 %v6016_v29 }
  0x1f   :  { %388 = vmatpush.msrb.mxu1 %v6023_v32 }
  0x20   :  { %668 = vmatpush.msra.mxu0 %v5934_v18  ;;  %247 = vmatpush.msrb.mxu3 %v6023_v32 }
  0x21   :  { %248 = vmatmul.f32.vlgmr.msrb.gmra.mxu3 %v5791_v21 }
  0x22   :  { %669 = vmatpush.msra.mxu0 %v5941_v19  ;;  %532 = vmatpush.msra.mxu3 %v5970_v22 }
  0x24   :  { %670 = vmatpush.msra.mxu0 %v5949_v20  ;;  %533 = vmatpush.msra.mxu3 %v5978_v23 }
  0x26   :  { %534 = vmatpush.msra.mxu3 %v5986_v24 }
  0x28   :  { %535 = vmatpush.msra.mxu3 %v5994_v25 }
  0x2a   :  { %536 = vmatpush.msra.mxu3 %v6004_v27 }
  0x2c   :  { %537 = vmatpush.msra.mxu3 %v6009_v28 }
  0x2e   :  { %538 = vmatpush.msra.mxu3 %v6016_v29 }
  0x30   :  { %539 = vmatpush.msra.mxu3 %v6023_v32 }
  0x32   :  { %831 = vmatpush.msrb.mxu3 %v5970_v22 }
  0x34   :  { %832 = vmatpush.msrb.mxu3 %v5978_v23 }
  0x36   :  { %833 = vmatpush.msrb.mxu3 %v5986_v24 }
  0x38   :  { %834 = vmatpush.msrb.mxu3 %v5994_v25 }
  0x3a   :  { %835 = vmatpush.msrb.mxu3 %v6004_v27 }
  0x3c   :  { %836 = vmatpush.msrb.mxu3 %v6009_v28 }
  0x3e   :  { %837 = vmatpush.msrb.mxu3 %v6016_v29 }
  0x40   :  { %838 = vmatpush.msrb.mxu3 %v6023_v32 }
  0x80   :  { %v83_v30 = vpop.f32.mrf.mxu0 }
  0x81   :  { %v84_v31 = vadd.f32 %v5213_v26, %v83_v30 }
  0x83   :  { %v95_v33 = vmax.f32 %v84_v31, 0.0 }
  0x85   :  { %5069 = vmatmul.msk.f32.vlgmr.msra.gmra.mxu1 %vm113_vm2, %v95_v33  ;;  %5073 = vmatmul.msk.f32.vlgmr.msra.gmra.mxu2 %vm113_vm2, %v95_v33 }
  0x86   :  { %683 = vmatpush.msra.mxu1 %v5970_v22  ;;  %811 = vmatpush.msra.mxu2 %v5863_v2 }
  0x88   :  { %v86_v34 = vpop.f32.mrf.mxu0  ;;  %684 = vmatpush.msra.mxu1 %v5978_v23  ;;  %812 = vmatpush.msra.mxu2 %v5870_v3 }
  0x89   :  { %v87_v35 = vadd.f32 %v5213_v26, %v86_v34 }
  0x8a   :  { %685 = vmatpush.msra.mxu1 %v5986_v24  ;;  %813 = vmatpush.msra.mxu2 %v5881_v6 }
  0x8b   :  { %v96_v36 = vmax.f32 %v87_v35, 0.0 }
  0x8c   :  { %686 = vmatpush.msra.mxu1 %v5994_v25  ;;  %814 = vmatpush.msra.mxu2 %v5909_v12 }
  0x8d   :  { %5070 = vmatmul.msk.f32.gmra.mxu1 %vm113_vm2, %v96_v36  ;;  %5074 = vmatmul.msk.f32.gmra.mxu2 %vm113_vm2, %v96_v36 }
  0x8e   :  { %687 = vmatpush.msra.mxu1 %v6004_v27  ;;  %815 = vmatpush.msra.mxu2 %v5921_v15 }
  0x90   :  { %v89_v37 = vpop.f32.mrf.mxu0  ;;  %688 = vmatpush.msra.mxu1 %v6009_v28  ;;  %816 = vmatpush.msra.mxu2 %v5934_v18 }
  0x91   :  { %v90_v38 = vadd.f32 %v5213_v26, %v89_v37 }
  0x92   :  { %689 = vmatpush.msra.mxu1 %v6016_v29  ;;  %817 = vmatpush.msra.mxu2 %v5941_v19 }
  0x93   :  { %v97_v39 = vmax.f32 %v90_v38, 0.0 }
  0x94   :  { %690 = vmatpush.msra.mxu1 %v6023_v32  ;;  %818 = vmatpush.msra.mxu2 %v5949_v20  ;;  %v229_v60 = vpop.f32.mrf.mxu3 }
  0x95   :  { %5071 = vmatmul.msk.f32.gmra.mxu1 %vm113_vm2, %v97_v39  ;;  %5075 = vmatmul.msk.f32.gmra.mxu2 %vm113_vm2, %v97_v39 }
  0x98   :  { %v92_v40 = vpop.f32.mrf.mxu0 }
  0x99   :  { %v93_v41 = vadd.f32 %v5213_v26, %v92_v40 }
  0x9b   :  { %v98_v42 = vmax.f32 %v93_v41, 0.0 }
  0x9d   :  { %5072 = vmatmul.msk.f32.gmra.mxu1 %vm113_vm2, %v98_v42  ;;  %5076 = vmatmul.msk.f32.gmra.mxu2 %vm113_vm2, %v98_v42 }
  0xa4   :  { %v249_v63 = vpop.f32.mrf.mxu3 }
  0xa5   :  { %v256_v0 = vrot.slane %v249_v63, 2 }
 0x102   :  { %v143_v45 = vpop.f32.mrf.mxu1 }
 0x103   :  { %v144_v46 = vadd.f32 %v143_v45, %v109_v44 }
 0x105   :  { %184 = vst [vmem:[#allocation2 + $0x30] sm:$0xff] %v144_v46 }
 0x108   :  { %v172_v48 = vpop.f32.mrf.mxu2 }
 0x109   :  { %v173_v49 = vadd.f32 %v172_v48, %v110_v47 }
 0x10a   :  { %v146_v50 = vpop.f32.mrf.mxu1 }
 0x10b   :  { %185 = vst [vmem:[#allocation2] sm:$0xff] %v173_v49  ;;  %v147_v51 = vadd.f32 %v146_v50, %v109_v44 }
 0x10c   :  { %v252_v5 = vld [vmem:[#allocation2 + $0x30] sm:$0x3] }
 0x10d   :  { %186 = vst [vmem:[#allocation2 + $0x18] sm:$0xff] %v147_v51  ;;  %v253_v7 = vadd.f32 %v252_v5, %v229_v60 }
 0x10f   :  { %v5077_v11 = vmul.f32 -1.442695, %v253_v7 }
 0x110   :  { %v175_v52 = vpop.f32.mrf.mxu2 }
 0x111   :  { %v176_v53 = vadd.f32 %v175_v52, %v110_v47 }
 0x112   :  { %v149_v54 = vpop.f32.mrf.mxu1 }
 0x113   :  { %187 = vst [vmem:[#allocation2 + $0x10] sm:$0xff] %v176_v53  ;;  %v150_v55 = vadd.f32 %v149_v54, %v109_v44 }
 0x115   :  { %188 = vst [vmem:[#allocation2 + $0x8] sm:$0xff] %v150_v55 }
 0x118   :  { %v178_v56 = vpop.f32.mrf.mxu2 }
 0x119   :  { %v179_v57 = vadd.f32 %v178_v56, %v110_v47 }
 0x11a   :  { %v152_v58 = vpop.f32.mrf.mxu1 }
 0x11b   :  { %189 = vst [vmem:[#allocation2 + $0x20] sm:$0xff] %v179_v57  ;;  %v153_v59 = vadd.f32 %v152_v58, %v109_v44 }
 0x11d   :  { %190 = vst [vmem:[#allocation2 + $0x28] sm:$0xff] %v153_v59 }
 0x120   :  { %v181_v61 = vpop.f32.mrf.mxu2 }
 0x121   :  { %v182_v62 = vadd.f32 %v181_v61, %v110_v47 }
 0x123   :  { %191 = vst [vmem:[#allocation2 + $0x38] sm:$0xff] %v182_v62 }
 0x12a   :  { %v254_v1 = vld [vmem:[#allocation2 + $0x38] sm:$0xc0] }
 0x12b   :  { %v258_v4 = vadd.f32 %v256_v0, %v254_v1 }
 0x12d   :  { %5215 = vtanh.f32 %v258_v4  ;;  %v5078_v10 = vmul.f32 -1.442695, %v258_v4 }
 0x12e   :  { %5217 = vtanh.f32 %v253_v7 }
 0x12f   :  { %5219 = vpow2.f32 %v5078_v10 }
 0x130   :  { %5221 = vpow2.f32 %v5077_v11 }
 0x133   :  { %v5216_v8 = vpop.eup %5215 }
 0x134   :  { %318 = vrot.lane.b32.xlu0 %v5216_v8, %s5792_s4  ;;  %v5218_v9 = vpop.eup %5217 }
 0x135   :  { %v5220_v13 = vpop.eup %5219 }
 0x136   :  { %v299_v14 = vadd.f32 1.0, %v5220_v13  ;;  %v5222_v16 = vpop.eup %5221 }
 0x137   :  { %v262_v17 = vadd.f32 1.0, %v5222_v16  ;;  %v398_v16 = vld [vmem:[#allocation2 + $0x38] sm:$0x30] }
 0x138   :  { %5223 = vrcp.f32 %v299_v14  ;;  %v311_v38 = vand.u32 2147483648, %v299_v14  ;;  %vm305_vm4 = vweird.f32 %v299_v14  ;;  %v309_v39 = vand.u32 2147483647, %v299_v14 }
 0x139   :  { %5225 = vrcp.f32 %v262_v17  ;;  %v274_v47 = vand.u32 2147483648, %v262_v17  ;;  %vm268_vm8 = vweird.f32 %v262_v17  ;;  %v272_v48 = vand.u32 2147483647, %v262_v17 }
 0x13a   :  { %v312_v42 = vor.u32 1.1754944e-38, %v311_v38  ;;  %vm310_vm6 = vcmp.eq.f32.partialorder %v309_v39, 8.507059e+37 }
 0x13b   :  { %v275_v50 = vor.u32 1.1754944e-38, %v274_v47  ;;  %vm273_vm10 = vcmp.eq.f32.partialorder %v272_v48, 8.507059e+37 }
 0x13c   :  { %281 = vrot.lane.b32.xlu0 %v5218_v9, %s5792_s4 }
 0x13e   :  { %v5224_v26 = vpop.eup %5223 }
 0x13f   :  { %v301_v30 = vmul.f32 %v5224_v26, %v299_v14  ;;  %v5226_v33 = vpop.eup %5225  ;;  %vm306_vm3 = vweird.f32 %v5224_v26  ;;  %v393_v14 = vld [vmem:[#allocation2 + $0x30] sm:$0xc] }
 0x140   :  { %v264_v35 = vmul.f32 %v5226_v33, %v262_v17  ;;  %vm307_vm5 = vmor %vm305_vm4, %vm306_vm3  ;;  %vm269_vm7 = vweird.f32 %v5226_v33 }
 0x141   :  { %v302_v31 = vsub.f32 1.0, %v301_v30  ;;  %vm270_vm9 = vmor %vm268_vm8, %vm269_vm7 }
 0x142   :  { %v265_v37 = vsub.f32 1.0, %v264_v35 }
 0x143   :  { %v303_v34 = vmul.f32 %v5224_v26, %v302_v31 }
 0x144   :  { %v266_v41 = vmul.f32 %v5226_v33, %v265_v37 }
 0x145   :  { %v304_v36 = vadd.f32 %v5224_v26, %v303_v34 }
 0x146   :  { %v267_v46 = vadd.f32 %v5226_v33, %v266_v41 }
 0x147   :  { %v308_v40 = vsel %vm307_vm5, %v5224_v26, %v304_v36 }
 0x148   :  { %v313_v44 = vsel %vm310_vm6, %v312_v42, %v308_v40  ;;  %v271_v49 = vsel %vm270_vm9, %v5226_v33, %v267_v46  ;;  %vm487_vm6 = vcmask 257026  }
 0x149   :  { %v276_v52 = vsel %vm273_vm10, %v275_v50, %v271_v49  ;;  %v316_v54 = vmul.f32 0.0, %v313_v44 }
 0x14a   :  { %v279_v57 = vmul.f32 0.0, %v276_v52 }
 0x1a6   :  { %v319_v43 = vpop.permute.xlu0 %318 }
 0x1a7   :  { %v321_v45 = vmul.f32 %v319_v43, %v313_v44 }
 0x1a9   :  { %323 = vrot.lane.b32.xlu1 %v321_v45, %s5793_s15 }
 0x1ae   :  { %v282_v51 = vpop.permute.xlu0 %281 }
 0x1af   :  { %v284_v53 = vmul.f32 %v282_v51, %v276_v52 }
 0x1b1   :  { %286 = vrot.lane.b32.xlu1 %v284_v53, %s5793_s15 }
 0x21b   :  { %v324_v55 = vpop.permute.xlu1 %323 }
 0x21c   :  { %v6077_v56 = vadd.f32 %v324_v55, %v316_v54 }
 0x21e   :  { %5227 = vtanh.f32 %v6077_v56 }
 0x223   :  { %v287_v58 = vpop.permute.xlu1 %286 }
 0x224   :  { %v5228_v59 = vpop.eup %5227  ;;  %v6080_v60 = vadd.f32 %v287_v58, %v279_v57 }
 0x225   :  { %329 = vrot.lane.b32.xlu2 %v5228_v59, %s5792_s4 }
 0x226   :  { %5229 = vtanh.f32 %v6080_v60 }
 0x22c   :  { %v5230_v61 = vpop.eup %5229 }
 0x22d   :  { %292 = vrot.lane.b32.xlu2 %v5230_v61, %s5792_s4 }
 0x27f   :  { %v330_v62 = vpop.permute.xlu2 %329 }
 0x280   :  { %v6085_v63 = vmul.f32 %v330_v62, %v313_v44 }
 0x282   :  { %v345_v0 = vrot.slane %v6085_v63, 6 }
 0x284   :  { %346 = vrot.lane.b32.xlu1 %v345_v0, %s5792_s4 }
 0x287   :  { %v293_v1 = vpop.permute.xlu2 %292 }
 0x288   :  { %v295_v4 = vmul.f32 %v293_v1, %v276_v52 }
 0x28a   :  { %334 = vrot.lane.b32.xlu0 %v295_v4, %s5793_s15  ;;  %v424_v4 = vrot.slane %v6080_v60, 6 }
 0x2f6   :  { %v347_v5 = vpop.permute.xlu1 %346 }
 0x2fc   :  { %v335_v7 = vpop.permute.xlu0 %334 }
 0x2fd   :  { %338 = vst.msk [vmem:[#allocation3] sm:$0x3] %vm337_vm11, %v335_v7  ;;  %v349_v8 = vsel %vm113_vm2, %v335_v7, %v347_v5  ;;  %v464_v5 = vrot.slane %v6077_v56, 2 }
 0x2fe   :  { %5079 = vmatmul.msk.f32.vlgmr.msrb.gmra.mxu0 %vm208_vm12, %v349_v8  ;;  %5080 = vmatmul.msk.f32.vlgmr.msrb.gmra.mxu1 %vm208_vm12, %v349_v8 }
 0x2ff   :  { %956 = vmatpush.msrb.mxu0 %v5863_v2  ;;  %976 = vmatpush.msrb.mxu1 %v5970_v22 }
 0x301   :  { %957 = vmatpush.msrb.mxu0 %v5870_v3  ;;  %977 = vmatpush.msrb.mxu1 %v5978_v23 }
 0x303   :  { %958 = vmatpush.msrb.mxu0 %v5881_v6  ;;  %978 = vmatpush.msrb.mxu1 %v5986_v24 }
 0x305   :  { %959 = vmatpush.msrb.mxu0 %v5909_v12  ;;  %979 = vmatpush.msrb.mxu1 %v5994_v25 }
 0x307   :  { %960 = vmatpush.msrb.mxu0 %v5921_v15  ;;  %980 = vmatpush.msrb.mxu1 %v6004_v27 }
 0x309   :  { %961 = vmatpush.msrb.mxu0 %v5934_v18  ;;  %981 = vmatpush.msrb.mxu1 %v6009_v28 }
 0x30b   :  { %962 = vmatpush.msrb.mxu0 %v5941_v19  ;;  %982 = vmatpush.msrb.mxu1 %v6016_v29 }
 0x30d   :  { %963 = vmatpush.msrb.mxu0 %v5949_v20  ;;  %983 = vmatpush.msrb.mxu1 %v6023_v32 }
 0x37b   :  { %v370_v9 = vpop.f32.mrf.mxu0  ;;  %v390_v10 = vpop.f32.mrf.mxu1 }
 0x37c   :  { %v395_v11 = vrot.slane %v370_v9, 6  ;;  %v400_v13 = vrot.slane %v390_v10, 4 }
 0x37e   :  { %v397_v17 = vadd.f32 %v395_v11, %v393_v14  ;;  %v402_v26 = vadd.f32 %v400_v13, %v398_v16 }
 0x380   :  { %5231 = vtanh.f32 %v397_v17  ;;  %v5082_v33 = vmul.f32 -1.442695, %v402_v26  ;;  %v5081_v37 = vmul.f32 -1.442695, %v397_v17 }
 0x381   :  { %5233 = vtanh.f32 %v402_v26 }
 0x382   :  { %5235 = vpow2.f32 %v5082_v33 }
 0x386   :  { %v5232_v30 = vpop.eup %5231 }
 0x387   :  { %v5234_v31 = vpop.eup %5233  ;;  %428 = vrot.lane.b32.xlu0 %v5232_v30, %s5792_s4 }
 0x388   :  { %468 = vrot.lane.b32.xlu2 %v5234_v31, %s5792_s4  ;;  %v5236_v34 = vpop.eup %5235 }
 0x389   :  { %v446_v35 = vadd.f32 1.0, %v5236_v34 }
 0x38b   :  { %5237 = vrcp.f32 %v446_v35  ;;  %v458_v44 = vand.u32 2147483648, %v446_v35  ;;  %vm452_vm14 = vweird.f32 %v446_v35  ;;  %v456_v45 = vand.u32 2147483647, %v446_v35 }
 0x38c   :  { %5239 = vpow2.f32 %v5081_v37 }
 0x38d   :  { %v459_v47 = vor.u32 1.1754944e-38, %v458_v44  ;;  %vm457_vm0 = vcmp.eq.f32.partialorder %v456_v45, 8.507059e+37 }
 0x391   :  { %v5238_v36 = vpop.eup %5237 }
 0x392   :  { %v448_v38 = vmul.f32 %v5238_v36, %v446_v35  ;;  %v5240_v40 = vpop.eup %5239  ;;  %vm453_vm13 = vweird.f32 %v5238_v36 }
 0x393   :  { %v406_v42 = vadd.f32 1.0, %v5240_v40  ;;  %vm454_vm15 = vmor %vm452_vm14, %vm453_vm13  ;;  %v544_v40 = vld [vmem:[#allocation2 + $0x30] sm:$0x30] }
 0x394   :  { %v449_v39 = vsub.f32 1.0, %v448_v38 }
 0x395   :  { %5241 = vrcp.f32 %v406_v42  ;;  %v418_v57 = vand.u32 2147483648, %v406_v42  ;;  %vm412_vm3 = vweird.f32 %v406_v42  ;;  %v416_v58 = vand.u32 2147483647, %v406_v42 }
 0x396   :  { %v450_v41 = vmul.f32 %v5238_v36, %v449_v39 }
 0x397   :  { %v419_v61 = vor.u32 1.1754944e-38, %v418_v57  ;;  %vm417_vm5 = vcmp.eq.f32.partialorder %v416_v58, 8.507059e+37 }
 0x398   :  { %v451_v43 = vadd.f32 %v5238_v36, %v450_v41  ;;  %v549_v41 = vld [vmem:[#allocation2 + $0x38] sm:$0xc] }
 0x39a   :  { %v455_v46 = vsel %vm454_vm15, %v5238_v36, %v451_v43 }
 0x39b   :  { %v460_v49 = vsel %vm457_vm0, %v459_v47, %v455_v46  ;;  %v5242_v50 = vpop.eup %5241 }
 0x39c   :  { %v408_v52 = vmul.f32 %v5242_v50, %v406_v42  ;;  %vm413_vm1 = vweird.f32 %v5242_v50  ;;  %v466_v8 = vmul.f32 %v464_v5, %v460_v49 }
 0x39d   :  { %vm414_vm4 = vmor %vm412_vm3, %vm413_vm1  ;;  %vm638_vm1 = vcmask 259076  }
 0x39e   :  { %v409_v53 = vsub.f32 1.0, %v408_v52 }
 0x3a0   :  { %v410_v54 = vmul.f32 %v5242_v50, %v409_v53 }
 0x3a2   :  { %v411_v55 = vadd.f32 %v5242_v50, %v410_v54 }
 0x3a4   :  { %v415_v59 = vsel %vm414_vm4, %v5242_v50, %v411_v55 }
 0x3a5   :  { %v420_v0 = vsel %vm417_vm5, %v419_v61, %v415_v59 }
 0x3a6   :  { %v426_v7 = vmul.f32 %v424_v4, %v420_v0 }
 0x3e2   :  { %v469_v48 = vpop.permute.xlu2 %468 }
 0x3e3   :  { %v471_v51 = vmul.f32 %v469_v48, %v460_v49 }
 0x3e5   :  { %473 = vrot.lane.b32.xlu1 %v471_v51, %s5793_s15 }
 0x3f9   :  { %v429_v62 = vpop.permute.xlu0 %428 }
 0x3fa   :  { %v431_v1 = vmul.f32 %v429_v62, %v420_v0 }
 0x3fc   :  { %433 = vrot.lane.b32.xlu2 %v431_v1, %s5793_s15 }
 0x456   :  { %v434_v9 = vpop.permute.xlu2 %433 }
 0x457   :  { %v474_v10 = vpop.permute.xlu1 %473  ;;  %v6116_v11 = vadd.f32 %v434_v9, %v426_v7 }
 0x458   :  { %v6118_v13 = vadd.f32 %v474_v10, %v466_v8 }
 0x459   :  { %5243 = vtanh.f32 %v6116_v11 }
 0x45a   :  { %5245 = vtanh.f32 %v6118_v13 }
 0x45f   :  { %v5244_v14 = vpop.eup %5243 }
 0x460   :  { %v5246_v16 = vpop.eup %5245  ;;  %439 = vrot.lane.b32.xlu1 %v5244_v14, %s5792_s4 }
 0x461   :  { %479 = vrot.lane.b32.xlu0 %v5246_v16, %s5792_s4 }
 0x4d2   :  { %v440_v60 = vpop.permute.xlu1 %439 }
 0x4d3   :  { %v480_v56 = vpop.permute.xlu0 %479  ;;  %v442_v17 = vmul.f32 %v440_v60, %v420_v0 }
 0x4d4   :  { %v6124_v26 = vmul.f32 %v480_v56, %v460_v49 }
 0x4d5   :  { %484 = vrot.lane.b32.xlu2 %v442_v17, %s5793_s15 }
 0x4d6   :  { %v495_v30 = vrot.slane %v6124_v26, 2 }
 0x4d8   :  { %496 = vrot.lane.b32.xlu0 %v495_v30, %s5792_s4 }
 0x52f   :  { %v485_v31 = vpop.permute.xlu2 %484 }
 0x530   :  { %488 = vst.msk [vmem:[#allocation3] sm:$0xc] %vm487_vm6, %v485_v31 }
 0x54a   :  { %v497_v33 = vpop.permute.xlu0 %496 }
 0x54b   :  { %v499_v34 = vsel %vm113_vm2, %v485_v31, %v497_v33  ;;  %v575_v33 = vrot.slane %v6116_v11, 6 }
 0x54c   :  { %v501_v35 = vrot.slane %v499_v34, 2 }
 0x54e   :  { %5083 = vmatmul.msk.f32.vlgmr.msrb.gmra.mxu2 %vm208_vm12, %v501_v35  ;;  %5084 = vmatmul.msk.f32.vlgmr.msra.gmra.mxu3 %vm208_vm12, %v501_v35 }
 0x54f   :  { %1105 = vmatpush.msrb.mxu2 %v5863_v2  ;;  %1125 = vmatpush.msra.mxu3 %v5970_v22 }
 0x551   :  { %1106 = vmatpush.msrb.mxu2 %v5870_v3  ;;  %1126 = vmatpush.msra.mxu3 %v5978_v23 }
 0x553   :  { %1107 = vmatpush.msrb.mxu2 %v5881_v6  ;;  %1127 = vmatpush.msra.mxu3 %v5986_v24 }
 0x555   :  { %1108 = vmatpush.msrb.mxu2 %v5909_v12  ;;  %1128 = vmatpush.msra.mxu3 %v5994_v25 }
 0x557   :  { %1109 = vmatpush.msrb.mxu2 %v5921_v15  ;;  %1129 = vmatpush.msra.mxu3 %v6004_v27 }
 0x559   :  { %1110 = vmatpush.msrb.mxu2 %v5934_v18  ;;  %1130 = vmatpush.msra.mxu3 %v6009_v28 }
 0x55b   :  { %1111 = vmatpush.msrb.mxu2 %v5941_v19  ;;  %1131 = vmatpush.msra.mxu3 %v6016_v29 }
 0x55d   :  { %1112 = vmatpush.msrb.mxu2 %v5949_v20  ;;  %1132 = vmatpush.msra.mxu3 %v6023_v32 }
 0x5d1   :  { %v521_v36 = vpop.f32.mrf.mxu2  ;;  %v541_v37 = vpop.f32.mrf.mxu3 }
 0x5d2   :  { %v546_v38 = vrot.slane %v521_v36, 4  ;;  %v551_v39 = vrot.slane %v541_v37, 6 }
 0x5d4   :  { %v548_v42 = vadd.f32 %v546_v38, %v544_v40  ;;  %v553_v43 = vadd.f32 %v551_v39, %v549_v41  ;;  %v615_v38 = vrot.slane %v6118_v13, 2 }
 0x5d6   :  { %5247 = vtanh.f32 %v548_v42  ;;  %v5085_v46 = vmul.f32 -1.442695, %v548_v42  ;;  %v5086_v50 = vmul.f32 -1.442695, %v553_v43 }
 0x5d7   :  { %5249 = vtanh.f32 %v553_v43 }
 0x5d8   :  { %5251 = vpow2.f32 %v5085_v46 }
 0x5dc   :  { %v5248_v44 = vpop.eup %5247 }
 0x5dd   :  { %v5250_v45 = vpop.eup %5249  ;;  %579 = vrot.lane.b32.xlu2 %v5248_v44, %s5792_s4 }
 0x5de   :  { %619 = vrot.lane.b32.xlu1 %v5250_v45, %s5792_s4  ;;  %v5252_v47 = vpop.eup %5251 }
 0x5df   :  { %v557_v48 = vadd.f32 1.0, %v5252_v47 }
 0x5e1   :  { %5253 = vrcp.f32 %v557_v48  ;;  %v569_v58 = vand.u32 2147483648, %v557_v48  ;;  %vm563_vm8 = vweird.f32 %v557_v48  ;;  %v567_v59 = vand.u32 2147483647, %v557_v48 }
 0x5e2   :  { %5255 = vpow2.f32 %v5086_v50 }
 0x5e3   :  { %v570_v62 = vor.u32 1.1754944e-38, %v569_v58  ;;  %vm568_vm10 = vcmp.eq.f32.partialorder %v567_v59, 8.507059e+37 }
 0x5e7   :  { %v5254_v49 = vpop.eup %5253 }
 0x5e8   :  { %v559_v51 = vmul.f32 %v5254_v49, %v557_v48  ;;  %v5256_v54 = vpop.eup %5255  ;;  %vm564_vm7 = vweird.f32 %v5254_v49 }
 0x5e9   :  { %v597_v55 = vadd.f32 1.0, %v5256_v54  ;;  %vm565_vm9 = vmor %vm563_vm8, %vm564_vm7 }
 0x5ea   :  { %v560_v52 = vsub.f32 1.0, %v559_v51 }
 0x5eb   :  { %5257 = vrcp.f32 %v597_v55  ;;  %v609_v14 = vand.u32 2147483648, %v597_v55  ;;  %vm603_vm14 = vweird.f32 %v597_v55  ;;  %v607_v16 = vand.u32 2147483647, %v597_v55 }
 0x5ec   :  { %v561_v53 = vmul.f32 %v5254_v49, %v560_v52 }
 0x5ed   :  { %v610_v56 = vor.u32 1.1754944e-38, %v609_v14  ;;  %vm608_vm0 = vcmp.eq.f32.partialorder %v607_v16, 8.507059e+37 }
 0x5ee   :  { %v562_v57 = vadd.f32 %v5254_v49, %v561_v53 }
 0x5f0   :  { %v566_v61 = vsel %vm565_vm9, %v5254_v49, %v562_v57 }
 0x5f1   :  { %v571_v1 = vsel %vm568_vm10, %v570_v62, %v566_v61  ;;  %v5258_v5 = vpop.eup %5257 }
 0x5f2   :  { %v599_v7 = vmul.f32 %v5258_v5, %v597_v55  ;;  %vm604_vm13 = vweird.f32 %v5258_v5  ;;  %v577_v34 = vmul.f32 %v575_v33, %v571_v1 }
 0x5f3   :  { %vm605_vm15 = vmor %vm603_vm14, %vm604_vm13  ;;  %vm786_vm14 = vcmask 261126  }
 0x5f4   :  { %v600_v8 = vsub.f32 1.0, %v599_v7 }
 0x5f6   :  { %v601_v9 = vmul.f32 %v5258_v5, %v600_v8 }
 0x5f8   :  { %v602_v10 = vadd.f32 %v5258_v5, %v601_v9 }
 0x5fa   :  { %v606_v60 = vsel %vm605_vm15, %v5258_v5, %v602_v10 }
 0x5fb   :  { %v611_v30 = vsel %vm608_vm0, %v610_v56, %v606_v60 }
 0x5fc   :  { %v617_v39 = vmul.f32 %v615_v38, %v611_v30 }
 0x637   :  { %v580_v0 = vpop.permute.xlu2 %579 }
 0x638   :  { %v582_v4 = vmul.f32 %v580_v0, %v571_v1 }
 0x63a   :  { %584 = vrot.lane.b32.xlu1 %v582_v4, %s5793_s15 }
 0x650   :  { %v620_v17 = vpop.permute.xlu1 %619 }
 0x651   :  { %v622_v31 = vmul.f32 %v620_v17, %v611_v30 }
 0x653   :  { %624 = vrot.lane.b32.xlu0 %v622_v31, %s5793_s15 }
 0x6ac   :  { %v585_v35 = vpop.permute.xlu1 %584 }
 0x6ad   :  { %v6154_v36 = vadd.f32 %v585_v35, %v577_v34 }
 0x6af   :  { %5259 = vtanh.f32 %v6154_v36 }
 0x6b5   :  { %v5260_v37 = vpop.eup %5259 }
 0x6b6   :  { %590 = vrot.lane.b32.xlu0 %v5260_v37, %s5792_s4 }
 0x6c5   :  { %v625_v40 = vpop.permute.xlu0 %624 }
 0x6c6   :  { %v6159_v41 = vadd.f32 %v625_v40, %v617_v39 }
 0x6c8   :  { %5261 = vtanh.f32 %v6159_v41  ;;  %v763_v39 = vrot.slane %v6159_v41, 2 }
 0x6ce   :  { %v5262_v42 = vpop.eup %5261 }
 0x6cf   :  { %630 = vrot.lane.b32.xlu2 %v5262_v42, %s5792_s4 }
 0x728   :  { %v591_v11 = vpop.permute.xlu0 %590 }
 0x729   :  { %v631_v43 = vpop.permute.xlu2 %630  ;;  %v593_v44 = vmul.f32 %v591_v11, %v571_v1 }
 0x72a   :  { %v6163_v45 = vmul.f32 %v631_v43, %v611_v30 }
 0x72b   :  { %635 = vrot.lane.b32.xlu1 %v593_v44, %s5793_s15  ;;  %v723_v44 = vrot.slane %v6154_v36, 6 }
 0x72c   :  { %v646_v46 = vrot.slane %v6163_v45, 6 }
 0x72e   :  { %647 = vrot.lane.b32.xlu2 %v646_v46, %s5792_s4 }
 0x788   :  { %v648_v13 = vpop.permute.xlu2 %647 }
 0x79d   :  { %v636_v47 = vpop.permute.xlu1 %635 }
 0x79e   :  { %639 = vst.msk [vmem:[#allocation3] sm:$0x30] %vm638_vm1, %v636_v47  ;;  %v650_v48 = vsel %vm113_vm2, %v636_v47, %v648_v13 }
 0x79f   :  { %v652_v49 = vrot.slane %v650_v48, 4 }
 0x7a1   :  { %5087 = vmatmul.msk.f32.vlgmr.msra.gmra.mxu0 %vm208_vm12, %v652_v49  ;;  %5088 = vmatmul.msk.f32.vlgmr.msra.gmra.mxu1 %vm208_vm12, %v652_v49 }
 0x7a2   :  { %1254 = vmatpush.msra.mxu0 %v5863_v2  ;;  %1274 = vmatpush.msra.mxu1 %v5970_v22 }
 0x7a4   :  { %1255 = vmatpush.msra.mxu0 %v5870_v3  ;;  %1275 = vmatpush.msra.mxu1 %v5978_v23 }
 0x7a6   :  { %1256 = vmatpush.msra.mxu0 %v5881_v6  ;;  %1276 = vmatpush.msra.mxu1 %v5986_v24  ;;  %v700_v6 = vld [vmem:[#allocation2 + $0x38] sm:$0x3] }
 0x7a8   :  { %1257 = vmatpush.msra.mxu0 %v5909_v12  ;;  %1277 = vmatpush.msra.mxu1 %v5994_v25 }
 0x7aa   :  { %1258 = vmatpush.msra.mxu0 %v5921_v15  ;;  %1278 = vmatpush.msra.mxu1 %v6004_v27  ;;  %v695_v15 = vld [vmem:[#allocation2 + $0x30] sm:$0xc0] }
 0x7ac   :  { %1259 = vmatpush.msra.mxu0 %v5934_v18  ;;  %1279 = vmatpush.msra.mxu1 %v6009_v28 }
 0x7ae   :  { %1260 = vmatpush.msra.mxu0 %v5941_v19  ;;  %1280 = vmatpush.msra.mxu1 %v6016_v29 }
 0x7b0   :  { %1261 = vmatpush.msra.mxu0 %v5949_v20  ;;  %1281 = vmatpush.msra.mxu1 %v6023_v32 }
 0x81e   :  { %v672_v2 = vpop.f32.mrf.mxu0  ;;  %v692_v3 = vpop.f32.mrf.mxu1 }
 0x81f   :  { %v697_v12 = vrot.slane %v672_v2, 2  ;;  %v701_v50 = vadd.f32 %v700_v6, %v692_v3 }
 0x821   :  { %v699_v51 = vadd.f32 %v697_v12, %v695_v15  ;;  %5263 = vtanh.f32 %v701_v50  ;;  %v5090_v19 = vmul.f32 -1.442695, %v701_v50 }
 0x823   :  { %5265 = vtanh.f32 %v699_v51  ;;  %v5089_v53 = vmul.f32 -1.442695, %v699_v51  ;;  %v6214_v51 = vld [vmem:[%s7748_s5 + $0x70] sm:$0xff] }
 0x824   :  { %5267 = vpow2.f32 %v5090_v19 }
 0x825   :  { %5269 = vpow2.f32 %v5089_v53 }
 0x827   :  { %v5264_v18 = vpop.eup %5263 }
 0x828   :  { %767 = vrot.lane.b32.xlu0 %v5264_v18, %s5792_s4  ;;  %v6221_v18 = vld [vmem:[%s7748_s5 + $0x60] sm:$0xff] }
 0x829   :  { %v5266_v52 = vpop.eup %5265 }
 0x82a   :  { %727 = vrot.lane.b32.xlu1 %v5266_v52, %s5792_s4  ;;  %v5268_v20 = vpop.eup %5267  ;;  %v6228_v52 = vld [vmem:[%s7748_s5 + $0x50] sm:$0xff] }
 0x82b   :  { %v5270_v54 = vpop.eup %5269  ;;  %v745_v55 = vadd.f32 1.0, %v5268_v20 }
 0x82c   :  { %v705_v57 = vadd.f32 1.0, %v5270_v54 }
 0x82d   :  { %5271 = vrcp.f32 %v745_v55  ;;  %v757_v8 = vand.u32 2147483648, %v745_v55  ;;  %vm751_vm4 = vweird.f32 %v745_v55  ;;  %v755_v9 = vand.u32 2147483647, %v745_v55 }
 0x82e   :  { %5273 = vrcp.f32 %v705_v57  ;;  %v717_v14 = vand.u32 2147483648, %v705_v57  ;;  %vm711_vm8 = vweird.f32 %v705_v57  ;;  %v715_v60 = vand.u32 2147483647, %v705_v57 }
 0x82f   :  { %v758_v56 = vor.u32 1.1754944e-38, %v757_v8  ;;  %vm756_vm10 = vcmp.eq.f32.partialorder %v755_v9, 8.507059e+37 }
 0x830   :  { %v718_v33 = vor.u32 1.1754944e-38, %v717_v14  ;;  %vm716_vm13 = vcmp.eq.f32.partialorder %v715_v60, 8.507059e+37 }
 0x833   :  { %v5272_v58 = vpop.eup %5271 }
 0x834   :  { %v5274_v59 = vpop.eup %5273  ;;  %v747_v61 = vmul.f32 %v5272_v58, %v745_v55  ;;  %vm752_vm3 = vweird.f32 %v5272_v58  ;;  %v845_v55 = vld [vmem:[#allocation2 + $0x20] sm:$0xc0] }
 0x835   :  { %v707_v62 = vmul.f32 %v5274_v59, %v705_v57  ;;  %vm712_vm5 = vweird.f32 %v5274_v59  ;;  %vm753_vm7 = vmor %vm751_vm4, %vm752_vm3 }
 0x836   :  { %v748_v0 = vsub.f32 1.0, %v747_v61  ;;  %vm713_vm9 = vmor %vm711_vm8, %vm712_vm5 }
 0x837   :  { %v708_v1 = vsub.f32 1.0, %v707_v62 }
 0x838   :  { %v749_v4 = vmul.f32 %v5272_v58, %v748_v0 }
 0x839   :  { %v709_v5 = vmul.f32 %v5274_v59, %v708_v1 }
 0x83a   :  { %v750_v7 = vadd.f32 %v5272_v58, %v749_v4 }
 0x83b   :  { %v710_v10 = vadd.f32 %v5274_v59, %v709_v5 }
 0x83c   :  { %v754_v16 = vsel %vm753_vm7, %v5272_v58, %v750_v7 }
 0x83d   :  { %v714_v17 = vsel %vm713_vm9, %v5274_v59, %v710_v10  ;;  %v759_v31 = vsel %vm756_vm10, %v758_v56, %v754_v16 }
 0x83e   :  { %v719_v37 = vsel %vm716_vm13, %v718_v33, %v714_v17  ;;  %v765_v40 = vmul.f32 %v763_v39, %v759_v31 }
 0x83f   :  { %v725_v46 = vmul.f32 %v723_v44, %v719_v37 }
 0x89a   :  { %v768_v30 = vpop.permute.xlu0 %767 }
 0x89b   :  { %v770_v34 = vmul.f32 %v768_v30, %v759_v31 }
 0x89c   :  { %v728_v35 = vpop.permute.xlu1 %727 }
 0x89d   :  { %v730_v38 = vmul.f32 %v728_v35, %v719_v37  ;;  %772 = vrot.lane.b32.xlu2 %v770_v34, %s5793_s15 }
 0x89f   :  { %732 = vrot.lane.b32.xlu0 %v730_v38, %s5793_s15 }
 0x8f7   :  { %v773_v42 = vpop.permute.xlu2 %772 }
 0x8f8   :  { %v6193_v11 = vadd.f32 %v773_v42, %v765_v40 }
 0x8fa   :  { %5275 = vtanh.f32 %v6193_v11 }
 0x900   :  { %v5276_v43 = vpop.eup %5275 }
 0x901   :  { %778 = vrot.lane.b32.xlu1 %v5276_v43, %s5792_s4 }
 0x911   :  { %v733_v13 = vpop.permute.xlu0 %732 }
 0x912   :  { %v6198_v47 = vadd.f32 %v733_v13, %v725_v46 }
 0x914   :  { %5277 = vtanh.f32 %v6198_v47  ;;  %v871_v13 = vrot.slane %v6198_v47, 6 }
 0x91a   :  { %v5278_v48 = vpop.eup %5277 }
 0x91b   :  { %738 = vrot.lane.b32.xlu2 %v5278_v48, %s5792_s4 }
 0x973   :  { %v779_v41 = vpop.permute.xlu1 %778 }
 0x974   :  { %v6202_v49 = vmul.f32 %v779_v41, %v759_v31  ;;  %v911_v41 = vrot.slane %v6193_v11, 2 }
 0x975   :  { %v739_v2 = vpop.permute.xlu2 %738 }
 0x976   :  { %v794_v3 = vrot.slane %v6202_v49, 2  ;;  %v741_v6 = vmul.f32 %v739_v2, %v719_v37 }
 0x978   :  { %795 = vrot.lane.b32.xlu1 %v794_v3, %s5792_s4  ;;  %783 = vrot.lane.b32.xlu0 %v741_v6, %s5793_s15 }
 0x9ea   :  { %v796_v36 = vpop.permute.xlu1 %795  ;;  %v784_v12 = vpop.permute.xlu0 %783 }
 0x9eb   :  { %787 = vst.msk [vmem:[#allocation3] sm:$0xc0] %vm786_vm14, %v784_v12  ;;  %v798_v50 = vsel %vm113_vm2, %v784_v12, %v796_v36 }
 0x9ec   :  { %v800_v15 = vrot.slane %v798_v50, 6 }
 0x9ee   :  { %5091 = vmatmul.msk.f32.vlgmr.msra.gmra.mxu2 %vm208_vm12, %v800_v15  ;;  %5092 = vmatmul.msk.f32.vlgmr.msrb.gmra.mxu3 %vm208_vm12, %v800_v15 }
 0x9ef   :  { %1400 = vmatpush.msra.mxu2 %v6214_v51  ;;  %1420 = vmatpush.msrb.mxu3 %v5970_v22  ;;  %v6235_v22 = vld [vmem:[%s7748_s5 + $0x40] sm:$0xff] }
 0x9f1   :  { %1401 = vmatpush.msra.mxu2 %v6221_v18  ;;  %1421 = vmatpush.msrb.mxu3 %v5978_v23  ;;  %v6242_v23 = vld [vmem:[%s7748_s5 + $0x30] sm:$0xff] }
 0x9f3   :  { %1402 = vmatpush.msra.mxu2 %v6228_v52  ;;  %1422 = vmatpush.msrb.mxu3 %v5986_v24  ;;  %v6249_v24 = vld [vmem:[%s7748_s5 + $0x20] sm:$0xff] }
 0x9f5   :  { %1403 = vmatpush.msra.mxu2 %v6235_v22  ;;  %1423 = vmatpush.msrb.mxu3 %v5994_v25  ;;  %v6256_v25 = vld [vmem:[%s7748_s5 + $0x10] sm:$0xff] }
 0x9f7   :  { %1404 = vmatpush.msra.mxu2 %v6242_v23  ;;  %1424 = vmatpush.msrb.mxu3 %v6004_v27  ;;  %v6263_v27 = vld [vmem:[%s7748_s5] sm:$0xff] }
 0x9f9   :  { %1405 = vmatpush.msra.mxu2 %v6249_v24  ;;  %1425 = vmatpush.msrb.mxu3 %v6009_v28  ;;  %v843_v28 = vld [vmem:[#allocation2 + $0x18] sm:$0x3] }
 0x9fb   :  { %1406 = vmatpush.msra.mxu2 %v6256_v25  ;;  %1426 = vmatpush.msrb.mxu3 %v6016_v29 }
 0x9fd   :  { %1407 = vmatpush.msra.mxu2 %v6263_v27  ;;  %1427 = vmatpush.msrb.mxu3 %v6023_v32 }
 0xa71   :  { %v820_v19 = vpop.f32.mrf.mxu2  ;;  %v840_v53 = vpop.f32.mrf.mxu3 }
 0xa72   :  { %v844_v20 = vadd.f32 %v843_v28, %v820_v19  ;;  %v847_v54 = vrot.slane %v840_v53, 2 }
 0xa74   :  { %5279 = vtanh.f32 %v844_v20  ;;  %v849_v57 = vadd.f32 %v847_v54, %v845_v55  ;;  %v5093_v32 = vmul.f32 -1.442695, %v844_v20 }
 0xa76   :  { %5281 = vtanh.f32 %v849_v57  ;;  %v5094_v59 = vmul.f32 -1.442695, %v849_v57  ;;  %v6294_v57 = vld [vmem:[%s7748_s5 + $0x78] sm:$0xff] }
 0xa78   :  { %5283 = vpow2.f32 %v5094_v59  ;;  %v6315_v59 = vld [vmem:[%s7748_s5 + $0x48] sm:$0xff] }
 0xa7a   :  { %v5280_v58 = vpop.eup %5279 }
 0xa7b   :  { %875 = vrot.lane.b32.xlu0 %v5280_v58, %s5792_s4  ;;  %v6301_v58 = vld [vmem:[%s7748_s5 + $0x68] sm:$0xff] }
 0xa7c   :  { %v5282_v29 = vpop.eup %5281 }
 0xa7d   :  { %915 = vrot.lane.b32.xlu2 %v5282_v29, %s5792_s4  ;;  %v6308_v29 = vld [vmem:[%s7748_s5 + $0x58] sm:$0xff] }
 0xa7e   :  { %v5284_v61 = vpop.eup %5283 }
 0xa7f   :  { %v893_v62 = vadd.f32 1.0, %v5284_v61  ;;  %v6322_v61 = vld [vmem:[%s7748_s5 + $0x38] sm:$0xff] }
 0xa81   :  { %5285 = vrcp.f32 %v893_v62  ;;  %v905_v10 = vand.u32 2147483648, %v893_v62  ;;  %vm899_vm0 = vweird.f32 %v893_v62  ;;  %v903_v14 = vand.u32 2147483647, %v893_v62 }
 0xa82   :  { %5287 = vpow2.f32 %v5093_v32  ;;  %v6336_v32 = vld [vmem:[%s7748_s5 + $0x18] sm:$0xff] }
 0xa83   :  { %v906_v60 = vor.u32 1.1754944e-38, %v905_v10  ;;  %vm904_vm4 = vcmp.eq.f32.partialorder %v903_v14, 8.507059e+37 }
 0xa87   :  { %v5286_v0 = vpop.eup %5285 }
 0xa88   :  { %v895_v1 = vmul.f32 %v5286_v0, %v893_v62  ;;  %v5288_v5 = vpop.eup %5287  ;;  %vm900_vm15 = vweird.f32 %v5286_v0  ;;  %v6329_v62 = vld [vmem:[%s7748_s5 + $0x28] sm:$0xff] }
 0xa89   :  { %v853_v7 = vadd.f32 1.0, %v5288_v5  ;;  %vm901_vm3 = vmor %vm899_vm0, %vm900_vm15 }
 0xa8a   :  { %v896_v4 = vsub.f32 1.0, %v895_v1 }
 0xa8b   :  { %5289 = vrcp.f32 %v853_v7  ;;  %v865_v38 = vand.u32 2147483648, %v853_v7  ;;  %vm859_vm7 = vweird.f32 %v853_v7  ;;  %v863_v39 = vand.u32 2147483647, %v853_v7 }
 0xa8c   :  { %v897_v8 = vmul.f32 %v5286_v0, %v896_v4 }
 0xa8d   :  { %v866_v42 = vor.u32 1.1754944e-38, %v865_v38  ;;  %vm864_vm9 = vcmp.eq.f32.partialorder %v863_v39, 8.507059e+37 }
 0xa8e   :  { %v898_v9 = vadd.f32 %v5286_v0, %v897_v8  ;;  %v988_v8 = vld [vmem:[#allocation2 + $0x18] sm:$0xc] }
 0xa90   :  { %v902_v16 = vsel %vm901_vm3, %v5286_v0, %v898_v9  ;;  %v6343_v0 = vld [vmem:[%s7748_s5 + $0x8] sm:$0xff]  ;;  %v993_v9 = vld [vmem:[#allocation2 + $0x20] sm:$0x30] }
 0xa91   :  { %v5290_v56 = vpop.eup %5289  ;;  %v907_v30 = vsel %vm904_vm4, %v906_v60, %v902_v16 }
 0xa92   :  { %v855_v33 = vmul.f32 %v5290_v56, %v853_v7  ;;  %vm860_vm5 = vweird.f32 %v5290_v56  ;;  %v913_v6 = vmul.f32 %v911_v41, %v907_v30 }
 0xa93   :  { %vm861_vm8 = vmor %vm859_vm7, %vm860_vm5 }
 0xa94   :  { %v856_v34 = vsub.f32 1.0, %v855_v33 }
 0xa96   :  { %v857_v35 = vmul.f32 %v5290_v56, %v856_v34 }
 0xa98   :  { %v858_v37 = vadd.f32 %v5290_v56, %v857_v35 }
 0xa9a   :  { %v862_v40 = vsel %vm861_vm8, %v5290_v56, %v858_v37 }
 0xa9b   :  { %v867_v44 = vsel %vm864_vm9, %v866_v42, %v862_v40 }
 0xa9c   :  { %v873_v48 = vmul.f32 %v871_v13, %v867_v44 }
 0xad7   :  { %v916_v17 = vpop.permute.xlu2 %915 }
 0xad8   :  { %v918_v31 = vmul.f32 %v916_v17, %v907_v30 }
 0xada   :  { %920 = vrot.lane.b32.xlu1 %v918_v31, %s5793_s15 }
 0xaed   :  { %v876_v43 = vpop.permute.xlu0 %875 }
 0xaee   :  { %v878_v46 = vmul.f32 %v876_v43, %v867_v44 }
 0xaf0   :  { %880 = vrot.lane.b32.xlu2 %v878_v46, %s5793_s15 }
 0xb4a   :  { %v881_v2 = vpop.permute.xlu2 %880 }
 0xb4b   :  { %v6273_v3 = vadd.f32 %v881_v2, %v873_v48 }
 0xb4c   :  { %v921_v36 = vpop.permute.xlu1 %920 }
 0xb4d   :  { %5291 = vtanh.f32 %v6273_v3  ;;  %v6276_v12 = vadd.f32 %v921_v36, %v913_v6 }
 0xb4f   :  { %5293 = vtanh.f32 %v6276_v12 }
 0xb53   :  { %v5292_v50 = vpop.eup %5291 }
 0xb54   :  { %886 = vrot.lane.b32.xlu1 %v5292_v50, %s5792_s4 }
 0xb55   :  { %v5294_v15 = vpop.eup %5293 }
 0xb56   :  { %926 = vrot.lane.b32.xlu0 %v5294_v15, %s5792_s4 }
 0xbc6   :  { %v887_v47 = vpop.permute.xlu1 %886 }
 0xbc7   :  { %v889_v19 = vmul.f32 %v887_v47, %v867_v44 }
 0xbc8   :  { %v927_v11 = vpop.permute.xlu0 %926 }
 0xbc9   :  { %931 = vrot.lane.b32.xlu2 %v889_v19, %s5793_s15  ;;  %v6282_v28 = vmul.f32 %v927_v11, %v907_v30 }
 0xbcb   :  { %v940_v53 = vrot.slane %v6282_v28, 6 }
 0xbcd   :  { %941 = vrot.lane.b32.xlu0 %v940_v53, %s5792_s4 }
 0xc23   :  { %v932_v20 = vpop.permute.xlu2 %931 }
 0xc24   :  { %934 = vst.msk [vmem:[#allocation3 + $0x8] sm:$0x3] %vm337_vm11, %v932_v20 }
 0xc3f   :  { %v942_v54 = vpop.permute.xlu0 %941 }
 0xc40   :  { %v944_v55 = vsel %vm113_vm2, %v932_v20, %v942_v54 }
 0xc41   :  { %5095 = vmatmul.msk.f32.vlgmr.msrb.gmra.mxu0 %vm208_vm12, %v944_v55  ;;  %5096 = vmatmul.msk.f32.vlgmr.msrb.gmra.mxu1 %vm208_vm12, %v944_v55 }
 0xc42   :  { %1545 = vmatpush.msrb.mxu0 %v6214_v51  ;;  %1565 = vmatpush.msrb.mxu1 %v6294_v57 }
 0xc44   :  { %1546 = vmatpush.msrb.mxu0 %v6221_v18  ;;  %1566 = vmatpush.msrb.mxu1 %v6301_v58 }
 0xc46   :  { %1547 = vmatpush.msrb.mxu0 %v6228_v52  ;;  %1567 = vmatpush.msrb.mxu1 %v6308_v29 }
 0xc48   :  { %1548 = vmatpush.msrb.mxu0 %v6235_v22  ;;  %1568 = vmatpush.msrb.mxu1 %v6315_v59 }
 0xc4a   :  { %1549 = vmatpush.msrb.mxu0 %v6242_v23  ;;  %1569 = vmatpush.msrb.mxu1 %v6322_v61 }
 0xc4c   :  { %1550 = vmatpush.msrb.mxu0 %v6249_v24  ;;  %1570 = vmatpush.msrb.mxu1 %v6329_v62 }
 0xc4e   :  { %1551 = vmatpush.msrb.mxu0 %v6256_v25  ;;  %1571 = vmatpush.msrb.mxu1 %v6336_v32 }
 0xc50   :  { %1552 = vmatpush.msrb.mxu0 %v6263_v27  ;;  %1572 = vmatpush.msrb.mxu1 %v6343_v0 }
 0xcbe   :  { %v965_v1 = vpop.f32.mrf.mxu0  ;;  %v985_v4 = vpop.f32.mrf.mxu1 }
 0xcbf   :  { %v990_v5 = vrot.slane %v965_v1, 6  ;;  %v995_v7 = vrot.slane %v985_v4, 4  ;;  %v1019_v1 = vrot.slane %v6273_v3, 6 }
 0xcc1   :  { %v992_v10 = vadd.f32 %v990_v5, %v988_v8  ;;  %v997_v14 = vadd.f32 %v995_v7, %v993_v9  ;;  %v1059_v9 = vrot.slane %v6276_v12, 2 }
 0xcc3   :  { %5295 = vtanh.f32 %v992_v10  ;;  %v5097_v56 = vmul.f32 -1.442695, %v992_v10  ;;  %v5098_v33 = vmul.f32 -1.442695, %v997_v14 }
 0xcc4   :  { %5297 = vtanh.f32 %v997_v14 }
 0xcc5   :  { %5299 = vpow2.f32 %v5097_v56 }
 0xcc9   :  { %v5296_v16 = vpop.eup %5295 }
 0xcca   :  { %v5298_v60 = vpop.eup %5297  ;;  %1023 = vrot.lane.b32.xlu2 %v5296_v16, %s5792_s4 }
 0xccb   :  { %1063 = vrot.lane.b32.xlu1 %v5298_v60, %s5792_s4  ;;  %v5300_v17 = vpop.eup %5299 }
 0xccc   :  { %v1001_v30 = vadd.f32 1.0, %v5300_v17 }
 0xcce   :  { %5301 = vrcp.f32 %v1001_v30  ;;  %v1013_v42 = vand.u32 2147483648, %v1001_v30  ;;  %vm1007_vm13 = vweird.f32 %v1001_v30  ;;  %v1011_v43 = vand.u32 2147483647, %v1001_v30 }
 0xccf   :  { %5303 = vpow2.f32 %v5098_v33 }
 0xcd0   :  { %v1014_v46 = vor.u32 1.1754944e-38, %v1013_v42  ;;  %vm1012_vm0 = vcmp.eq.f32.partialorder %v1011_v43, 8.507059e+37  ;;  %v1137_v42 = vld [vmem:[#allocation2 + $0x18] sm:$0x30]  ;;  %v1142_v43 = vld [vmem:[#allocation2 + $0x20] sm:$0xc] }
 0xcd4   :  { %v5302_v31 = vpop.eup %5301 }
 0xcd5   :  { %v1003_v34 = vmul.f32 %v5302_v31, %v1001_v30  ;;  %v5304_v38 = vpop.eup %5303  ;;  %vm1008_vm10 = vweird.f32 %v5302_v31 }
 0xcd6   :  { %v1041_v39 = vadd.f32 1.0, %v5304_v38  ;;  %vm1009_vm15 = vmor %vm1007_vm13, %vm1008_vm10 }
 0xcd7   :  { %v1004_v35 = vsub.f32 1.0, %v1003_v34 }
 0xcd8   :  { %5305 = vrcp.f32 %v1041_v39  ;;  %v1053_v47 = vand.u32 2147483648, %v1041_v39  ;;  %vm1047_vm4 = vweird.f32 %v1041_v39  ;;  %v1051_v19 = vand.u32 2147483647, %v1041_v39 }
 0xcd9   :  { %v1005_v37 = vmul.f32 %v5302_v31, %v1004_v35 }
 0xcda   :  { %v1054_v53 = vor.u32 1.1754944e-38, %v1053_v47  ;;  %vm1052_vm7 = vcmp.eq.f32.partialorder %v1051_v19, 8.507059e+37 }
 0xcdb   :  { %v1006_v40 = vadd.f32 %v5302_v31, %v1005_v37 }
 0xcdd   :  { %v1010_v44 = vsel %vm1009_vm15, %v5302_v31, %v1006_v40 }
 0xcde   :  { %v1015_v48 = vsel %vm1012_vm0, %v1014_v46, %v1010_v44  ;;  %v5306_v2 = vpop.eup %5305 }
 0xcdf   :  { %v1043_v6 = vmul.f32 %v5306_v2, %v1041_v39  ;;  %vm1048_vm3 = vweird.f32 %v5306_v2  ;;  %v1021_v4 = vmul.f32 %v1019_v1, %v1015_v48 }
 0xce0   :  { %vm1049_vm5 = vmor %vm1047_vm4, %vm1048_vm3 }
 0xce1   :  { %v1044_v36 = vsub.f32 1.0, %v1043_v6 }
 0xce3   :  { %v1045_v50 = vmul.f32 %v5306_v2, %v1044_v36 }
 0xce5   :  { %v1046_v15 = vadd.f32 %v5306_v2, %v1045_v50 }
 0xce7   :  { %v1050_v11 = vsel %vm1049_vm5, %v5306_v2, %v1046_v15 }
 0xce8   :  { %v1055_v54 = vsel %vm1052_vm7, %v1054_v53, %v1050_v11 }
 0xce9   :  { %v1061_v10 = vmul.f32 %v1059_v9, %v1055_v54 }
 0xd24   :  { %v1024_v13 = vpop.permute.xlu2 %1023 }
 0xd25   :  { %v1026_v41 = vmul.f32 %v1024_v13, %v1015_v48 }
 0xd27   :  { %1028 = vrot.lane.b32.xlu1 %v1026_v41, %s5793_s15 }
 0xd3d   :  { %v1064_v20 = vpop.permute.xlu1 %1063 }
 0xd3e   :  { %v1066_v55 = vmul.f32 %v1064_v20, %v1055_v54 }
 0xd40   :  { %1068 = vrot.lane.b32.xlu0 %v1066_v55, %s5793_s15 }
 0xd99   :  { %v1029_v5 = vpop.permute.xlu1 %1028 }
 0xd9a   :  { %v6351_v7 = vadd.f32 %v1029_v5, %v1021_v4 }
 0xd9c   :  { %5307 = vtanh.f32 %v6351_v7 }
 0xda2   :  { %v5308_v8 = vpop.eup %5307 }
 0xda3   :  { %1034 = vrot.lane.b32.xlu0 %v5308_v8, %s5792_s4 }
 0xdb2   :  { %v1069_v14 = vpop.permute.xlu0 %1068 }
 0xdb3   :  { %v6356_v16 = vadd.f32 %v1069_v14, %v1061_v10 }
 0xdb5   :  { %5309 = vtanh.f32 %v6356_v16 }
 0xdbb   :  { %v5310_v60 = vpop.eup %5309 }
 0xdbc   :  { %1074 = vrot.lane.b32.xlu2 %v5310_v60, %s5792_s4 }
 0xe15   :  { %v1035_v3 = vpop.permute.xlu0 %1034 }
 0xe16   :  { %v1075_v56 = vpop.permute.xlu2 %1074  ;;  %v1037_v17 = vmul.f32 %v1035_v3, %v1015_v48 }
 0xe17   :  { %v6360_v30 = vmul.f32 %v1075_v56, %v1055_v54 }
 0xe18   :  { %1079 = vrot.lane.b32.xlu1 %v1037_v17, %s5793_s15 }
 0xe19   :  { %v1088_v31 = vrot.slane %v6360_v30, 2 }
 0xe1b   :  { %1089 = vrot.lane.b32.xlu2 %v1088_v31, %s5792_s4 }
 0xe75   :  { %v1090_v12 = vpop.permute.xlu2 %1089 }
 0xe8a   :  { %v1080_v33 = vpop.permute.xlu1 %1079 }
 0xe8b   :  { %1082 = vst.msk [vmem:[#allocation3 + $0x8] sm:$0xc] %vm487_vm6, %v1080_v33  ;;  %v1092_v34 = vsel %vm113_vm2, %v1080_v33, %v1090_v12 }
 0xe8c   :  { %v1094_v35 = vrot.slane %v1092_v34, 2 }
 0xe8e   :  { %5099 = vmatmul.msk.f32.vlgmr.msrb.gmra.mxu2 %vm208_vm12, %v1094_v35  ;;  %5100 = vmatmul.msk.f32.vlgmr.msra.gmra.mxu3 %vm208_vm12, %v1094_v35 }
 0xe8f   :  { %1694 = vmatpush.msrb.mxu2 %v6214_v51  ;;  %1714 = vmatpush.msra.mxu3 %v6294_v57 }
 0xe91   :  { %1695 = vmatpush.msrb.mxu2 %v6221_v18  ;;  %1715 = vmatpush.msra.mxu3 %v6301_v58 }
 0xe93   :  { %1696 = vmatpush.msrb.mxu2 %v6228_v52  ;;  %1716 = vmatpush.msra.mxu3 %v6308_v29 }
 0xe95   :  { %1697 = vmatpush.msrb.mxu2 %v6235_v22  ;;  %1717 = vmatpush.msra.mxu3 %v6315_v59 }
 0xe97   :  { %1698 = vmatpush.msrb.mxu2 %v6242_v23  ;;  %1718 = vmatpush.msra.mxu3 %v6322_v61 }
 0xe99   :  { %1699 = vmatpush.msrb.mxu2 %v6249_v24  ;;  %1719 = vmatpush.msra.mxu3 %v6329_v62 }
 0xe9b   :  { %1700 = vmatpush.msrb.mxu2 %v6256_v25  ;;  %1720 = vmatpush.msra.mxu3 %v6336_v32 }
 0xe9d   :  { %1701 = vmatpush.msrb.mxu2 %v6263_v27  ;;  %1721 = vmatpush.msra.mxu3 %v6343_v0 }
 0xf11   :  { %v1114_v37 = vpop.f32.mrf.mxu2  ;;  %v1134_v38 = vpop.f32.mrf.mxu3 }
 0xf12   :  { %v1139_v39 = vrot.slane %v1114_v37, 4  ;;  %v1144_v40 = vrot.slane %v1134_v38, 6  ;;  %v1208_v38 = vrot.slane %v6356_v16, 2 }
 0xf14   :  { %v1141_v44 = vadd.f32 %v1139_v39, %v1137_v42  ;;  %v1146_v46 = vadd.f32 %v1144_v40, %v1142_v43 }
 0xf16   :  { %5311 = vtanh.f32 %v1141_v44  ;;  %v5101_v41 = vmul.f32 -1.442695, %v1141_v44  ;;  %v5102_v2 = vmul.f32 -1.442695, %v1146_v46  ;;  %v1168_v44 = vrot.slane %v6351_v7, 6 }
 0xf17   :  { %5313 = vtanh.f32 %v1146_v46 }
 0xf18   :  { %5315 = vpow2.f32 %v5101_v41 }
 0xf19   :  { %5317 = vpow2.f32 %v5102_v2 }
 0xf1c   :  { %v5312_v13 = vpop.eup %5311 }
 0xf1d   :  { %v5314_v48 = vpop.eup %5313  ;;  %1172 = vrot.lane.b32.xlu1 %v5312_v13, %s5792_s4 }
 0xf1e   :  { %1212 = vrot.lane.b32.xlu0 %v5314_v48, %s5792_s4  ;;  %v5316_v6 = vpop.eup %5315 }
 0xf1f   :  { %v5318_v36 = vpop.eup %5317  ;;  %v1150_v50 = vadd.f32 1.0, %v5316_v6 }
 0xf20   :  { %v1190_v15 = vadd.f32 1.0, %v5318_v36 }
 0xf21   :  { %5319 = vrcp.f32 %v1150_v50  ;;  %v1162_v8 = vand.u32 2147483648, %v1150_v50  ;;  %vm1156_vm10 = vweird.f32 %v1150_v50  ;;  %v1160_v10 = vand.u32 2147483647, %v1150_v50 }
 0xf22   :  { %5321 = vrcp.f32 %v1190_v15  ;;  %v1202_v9 = vand.u32 2147483648, %v1190_v15  ;;  %vm1196_vm13 = vweird.f32 %v1190_v15  ;;  %v1200_v14 = vand.u32 2147483647, %v1190_v15 }
 0xf23   :  { %v1163_v56 = vor.u32 1.1754944e-38, %v1162_v8  ;;  %vm1161_vm3 = vcmp.eq.f32.partialorder %v1160_v10, 8.507059e+37 }
 0xf24   :  { %v1203_v17 = vor.u32 1.1754944e-38, %v1202_v9  ;;  %vm1201_vm4 = vcmp.eq.f32.partialorder %v1200_v14, 8.507059e+37 }
 0xf27   :  { %v5320_v47 = vpop.eup %5319 }
 0xf28   :  { %v5322_v19 = vpop.eup %5321  ;;  %v1152_v11 = vmul.f32 %v5320_v47, %v1150_v50  ;;  %vm1157_vm8 = vweird.f32 %v5320_v47 }
 0xf29   :  { %v1192_v53 = vmul.f32 %v5322_v19, %v1190_v15  ;;  %vm1197_vm9 = vweird.f32 %v5322_v19  ;;  %vm1158_vm15 = vmor %vm1156_vm10, %vm1157_vm8 }
 0xf2a   :  { %v1153_v20 = vsub.f32 1.0, %v1152_v11  ;;  %vm1198_vm0 = vmor %vm1196_vm13, %vm1197_vm9 }
 0xf2b   :  { %v1193_v54 = vsub.f32 1.0, %v1192_v53 }
 0xf2c   :  { %v1154_v55 = vmul.f32 %v5320_v47, %v1153_v20  ;;  %v1291_v20 = vld [vmem:[#allocation2 + $0x20] sm:$0x3] }
 0xf2d   :  { %v1194_v1 = vmul.f32 %v5322_v19, %v1193_v54 }
 0xf2e   :  { %v1155_v4 = vadd.f32 %v5320_v47, %v1154_v55 }
 0xf2f   :  { %v1195_v5 = vadd.f32 %v5322_v19, %v1194_v1  ;;  %v1286_v1 = vld [vmem:[#allocation2 + $0x18] sm:$0xc0] }
 0xf30   :  { %v1159_v60 = vsel %vm1158_vm15, %v5320_v47, %v1155_v4 }
 0xf31   :  { %v1199_v3 = vsel %vm1198_vm0, %v5322_v19, %v1195_v5  ;;  %v1164_v12 = vsel %vm1161_vm3, %v1163_v56, %v1159_v60 }
 0xf32   :  { %v1204_v34 = vsel %vm1201_vm4, %v1203_v17, %v1199_v3  ;;  %v1170_v46 = vmul.f32 %v1168_v44, %v1164_v12 }
 0xf33   :  { %v1210_v39 = vmul.f32 %v1208_v38, %v1204_v34 }
 0xf8f   :  { %v1173_v31 = vpop.permute.xlu1 %1172 }
 0xf90   :  { %v1213_v33 = vpop.permute.xlu0 %1212  ;;  %v1175_v35 = vmul.f32 %v1173_v31, %v1164_v12 }
 0xf91   :  { %v1215_v37 = vmul.f32 %v1213_v33, %v1204_v34 }
 0xf92   :  { %1177 = vrot.lane.b32.xlu0 %v1175_v35, %s5793_s15 }
 0xf93   :  { %1217 = vrot.lane.b32.xlu2 %v1215_v37, %s5793_s15 }
 0xfed   :  { %v1218_v40 = vpop.permute.xlu2 %1217 }
 0xfee   :  { %v6390_v42 = vadd.f32 %v1218_v40, %v1210_v39 }
 0xff0   :  { %5323 = vtanh.f32 %v6390_v42 }
 0xff6   :  { %v5324_v43 = vpop.eup %5323 }
 0xff7   :  { %1223 = vrot.lane.b32.xlu1 %v5324_v43, %s5792_s4 }
0x1004   :  { %v1178_v13 = vpop.permute.xlu0 %1177 }
0x1005   :  { %v6395_v48 = vadd.f32 %v1178_v13, %v1170_v46 }
0x1007   :  { %5325 = vtanh.f32 %v6395_v48 }
0x100d   :  { %v5326_v41 = vpop.eup %5325 }
0x100e   :  { %1183 = vrot.lane.b32.xlu2 %v5326_v41, %s5792_s4 }
0x1068   :  { %v1184_v16 = vpop.permute.xlu2 %1183 }
0x1069   :  { %v1224_v2 = vpop.permute.xlu1 %1223  ;;  %v1186_v6 = vmul.f32 %v1184_v16, %v1164_v12 }
0x106a   :  { %v6399_v36 = vmul.f32 %v1224_v2, %v1204_v34 }
0x106b   :  { %1228 = vrot.lane.b32.xlu0 %v1186_v6, %s5793_s15 }
0x106c   :  { %v1237_v50 = vrot.slane %v6399_v36, 6 }
0x106e   :  { %1238 = vrot.lane.b32.xlu1 %v1237_v50, %s5792_s4 }
0x10dd   :  { %v1229_v7 = vpop.permute.xlu0 %1228 }
0x10de   :  { %1231 = vst.msk [vmem:[#allocation3 + $0x8] sm:$0x30] %vm638_vm1, %v1229_v7 }
0x10e0   :  { %v1239_v15 = vpop.permute.xlu1 %1238 }
0x10e1   :  { %v1241_v47 = vsel %vm113_vm2, %v1229_v7, %v1239_v15 }
0x10e2   :  { %v1243_v19 = vrot.slane %v1241_v47, 4 }
0x10e4   :  { %5103 = vmatmul.msk.f32.vlgmr.msra.gmra.mxu0 %vm208_vm12, %v1243_v19  ;;  %5104 = vmatmul.msk.f32.vlgmr.msra.gmra.mxu1 %vm208_vm12, %v1243_v19 }
0x10e5   :  { %1843 = vmatpush.msra.mxu0 %v6214_v51  ;;  %1863 = vmatpush.msra.mxu1 %v6294_v57 }
0x10e7   :  { %1844 = vmatpush.msra.mxu0 %v6221_v18  ;;  %1864 = vmatpush.msra.mxu1 %v6301_v58 }
0x10e9   :  { %1845 = vmatpush.msra.mxu0 %v6228_v52  ;;  %1865 = vmatpush.msra.mxu1 %v6308_v29 }
0x10eb   :  { %1846 = vmatpush.msra.mxu0 %v6235_v22  ;;  %1866 = vmatpush.msra.mxu1 %v6315_v59 }
0x10ed   :  { %1847 = vmatpush.msra.mxu0 %v6242_v23  ;;  %1867 = vmatpush.msra.mxu1 %v6322_v61 }
0x10ef   :  { %1848 = vmatpush.msra.mxu0 %v6249_v24  ;;  %1868 = vmatpush.msra.mxu1 %v6329_v62 }
0x10f1   :  { %1849 = vmatpush.msra.mxu0 %v6256_v25  ;;  %1869 = vmatpush.msra.mxu1 %v6336_v32 }
0x10f3   :  { %1850 = vmatpush.msra.mxu0 %v6263_v27  ;;  %1870 = vmatpush.msra.mxu1 %v6343_v0 }
0x1161   :  { %v1263_v11 = vpop.f32.mrf.mxu0  ;;  %v1283_v53 = vpop.f32.mrf.mxu1 }
0x1162   :  { %v1288_v54 = vrot.slane %v1263_v11, 2  ;;  %v1292_v55 = vadd.f32 %v1291_v20, %v1283_v53  ;;  %v1354_v53 = vrot.slane %v6390_v42, 2  ;;  %v1314_v20 = vrot.slane %v6395_v48, 6 }
0x1164   :  { %v1290_v4 = vadd.f32 %v1288_v54, %v1286_v1  ;;  %5327 = vtanh.f32 %v1292_v55  ;;  %v5106_v9 = vmul.f32 -1.442695, %v1292_v55 }
0x1166   :  { %5329 = vtanh.f32 %v1290_v4  ;;  %v5105_v3 = vmul.f32 -1.442695, %v1290_v4 }
0x1167   :  { %5331 = vpow2.f32 %v5106_v9 }
0x116a   :  { %v5328_v5 = vpop.eup %5327 }
0x116b   :  { %1358 = vrot.lane.b32.xlu2 %v5328_v5, %s5792_s4 }
0x116c   :  { %v5330_v8 = vpop.eup %5329 }
0x116d   :  { %1318 = vrot.lane.b32.xlu0 %v5330_v8, %s5792_s4  ;;  %v5332_v10 = vpop.eup %5331 }
0x116e   :  { %v1336_v14 = vadd.f32 1.0, %v5332_v10 }
0x1170   :  { %5333 = vrcp.f32 %v1336_v14  ;;  %v1348_v35 = vand.u32 2147483648, %v1336_v14  ;;  %vm1342_vm7 = vweird.f32 %v1336_v14  ;;  %v1346_v37 = vand.u32 2147483647, %v1336_v14 }
0x1171   :  { %5335 = vpow2.f32 %v5105_v3 }
0x1172   :  { %v1349_v39 = vor.u32 1.1754944e-38, %v1348_v35  ;;  %vm1347_vm9 = vcmp.eq.f32.partialorder %v1346_v37, 8.507059e+37 }
0x1176   :  { %v5334_v60 = vpop.eup %5333 }
0x1177   :  { %v1338_v56 = vmul.f32 %v5334_v60, %v1336_v14  ;;  %v5336_v12 = vpop.eup %5335  ;;  %vm1343_vm5 = vweird.f32 %v5334_v60 }
0x1178   :  { %v1296_v34 = vadd.f32 1.0, %v5336_v12  ;;  %vm1344_vm8 = vmor %vm1342_vm7, %vm1343_vm5 }
0x1179   :  { %v1339_v17 = vsub.f32 1.0, %v1338_v56 }
0x117a   :  { %5337 = vrcp.f32 %v1296_v34  ;;  %v1308_v6 = vand.u32 2147483648, %v1296_v34  ;;  %vm1302_vm13 = vweird.f32 %v1296_v34  ;;  %v1306_v50 = vand.u32 2147483647, %v1296_v34 }
0x117b   :  { %v1340_v31 = vmul.f32 %v5334_v60, %v1339_v17 }
0x117c   :  { %v1309_v15 = vor.u32 1.1754944e-38, %v1308_v6  ;;  %vm1307_vm0 = vcmp.eq.f32.partialorder %v1306_v50, 8.507059e+37 }
0x117d   :  { %v1341_v33 = vadd.f32 %v5334_v60, %v1340_v31 }
0x117f   :  { %v1345_v38 = vsel %vm1344_vm8, %v5334_v60, %v1341_v33 }
0x1180   :  { %v1350_v43 = vsel %vm1347_vm9, %v1349_v39, %v1345_v38  ;;  %v5338_v46 = vpop.eup %5337  ;;  %v1434_v39 = vld [vmem:[#allocation2 + $0x10] sm:$0xc0] }
0x1181   :  { %v1298_v13 = vmul.f32 %v5338_v46, %v1296_v34  ;;  %vm1303_vm10 = vweird.f32 %v5338_v46  ;;  %v1356_v54 = vmul.f32 %v1354_v53, %v1350_v43  ;;  %v1432_v34 = vld [vmem:[#allocation2 + $0x8] sm:$0x3] }
0x1182   :  { %vm1304_vm15 = vmor %vm1302_vm13, %vm1303_vm10 }
0x1183   :  { %v1299_v41 = vsub.f32 1.0, %v1298_v13 }
0x1185   :  { %v1300_v16 = vmul.f32 %v5338_v46, %v1299_v41 }
0x1187   :  { %v1301_v2 = vadd.f32 %v5338_v46, %v1300_v16 }
0x1189   :  { %v1305_v7 = vsel %vm1304_vm15, %v5338_v46, %v1301_v2 }
0x118a   :  { %v1310_v19 = vsel %vm1307_vm0, %v1309_v15, %v1305_v7 }
0x118b   :  { %v1316_v4 = vmul.f32 %v1314_v20, %v1310_v19 }
0x11c5   :  { %v1359_v40 = vpop.permute.xlu2 %1358 }
0x11c6   :  { %v1361_v44 = vmul.f32 %v1359_v40, %v1350_v43 }
0x11c8   :  { %1363 = vrot.lane.b32.xlu1 %v1361_v44, %s5793_s15 }
0x11df   :  { %v1319_v47 = vpop.permute.xlu0 %1318 }
0x11e0   :  { %v1321_v11 = vmul.f32 %v1319_v47, %v1310_v19 }
0x11e2   :  { %1323 = vrot.lane.b32.xlu2 %v1321_v11, %s5793_s15 }
0x123a   :  { %v1364_v55 = vpop.permute.xlu1 %1363 }
0x123b   :  { %v6430_v1 = vadd.f32 %v1364_v55, %v1356_v54 }
0x123c   :  { %v1324_v5 = vpop.permute.xlu2 %1323 }
0x123d   :  { %5339 = vtanh.f32 %v6430_v1  ;;  %v6433_v8 = vadd.f32 %v1324_v5, %v1316_v4 }
0x123f   :  { %5341 = vtanh.f32 %v6433_v8 }
0x1243   :  { %v5340_v9 = vpop.eup %5339 }
0x1244   :  { %1369 = vrot.lane.b32.xlu0 %v5340_v9, %s5792_s4 }
0x1245   :  { %v5342_v10 = vpop.eup %5341 }
0x1246   :  { %1329 = vrot.lane.b32.xlu1 %v5342_v10, %s5792_s4 }
0x12b6   :  { %v1370_v42 = vpop.permute.xlu0 %1369 }
0x12b7   :  { %v6438_v48 = vmul.f32 %v1370_v42, %v1350_v43 }
0x12b8   :  { %v1330_v14 = vpop.permute.xlu1 %1329 }
0x12b9   :  { %v1383_v60 = vrot.slane %v6438_v48, 2  ;;  %v1332_v3 = vmul.f32 %v1330_v14, %v1310_v19 }
0x12bb   :  { %1384 = vrot.lane.b32.xlu0 %v1383_v60, %s5792_s4  ;;  %1374 = vrot.lane.b32.xlu2 %v1332_v3, %s5793_s15 }
0x1315   :  { %v1375_v56 = vpop.permute.xlu2 %1374 }
0x1316   :  { %1377 = vst.msk [vmem:[#allocation3 + $0x8] sm:$0xc0] %vm786_vm14, %v1375_v56 }
0x132d   :  { %v1385_v17 = vpop.permute.xlu0 %1384 }
0x132e   :  { %v1387_v31 = vsel %vm113_vm2, %v1375_v56, %v1385_v17 }
0x132f   :  { %v1389_v12 = vrot.slane %v1387_v31, 6 }
0x1331   :  { %5107 = vmatmul.msk.f32.vlgmr.msra.gmra.mxu2 %vm208_vm12, %v1389_v12  ;;  %5108 = vmatmul.msk.f32.vlgmr.msrb.gmra.mxu3 %vm208_vm12, %v1389_v12 }
0x1332   :  { %1989 = vmatpush.msra.mxu2 %v6214_v51  ;;  %2009 = vmatpush.msrb.mxu3 %v6294_v57 }
0x1334   :  { %1990 = vmatpush.msra.mxu2 %v6221_v18  ;;  %2010 = vmatpush.msrb.mxu3 %v6301_v58 }
0x1336   :  { %1991 = vmatpush.msra.mxu2 %v6228_v52  ;;  %2011 = vmatpush.msrb.mxu3 %v6308_v29 }
0x1338   :  { %1992 = vmatpush.msra.mxu2 %v6235_v22  ;;  %2012 = vmatpush.msrb.mxu3 %v6315_v59 }
0x133a   :  { %1993 = vmatpush.msra.mxu2 %v6242_v23  ;;  %2013 = vmatpush.msrb.mxu3 %v6322_v61 }
0x133c   :  { %1994 = vmatpush.msra.mxu2 %v6249_v24  ;;  %2014 = vmatpush.msrb.mxu3 %v6329_v62 }
0x133e   :  { %1995 = vmatpush.msra.mxu2 %v6256_v25  ;;  %2015 = vmatpush.msrb.mxu3 %v6336_v32 }
0x1340   :  { %1996 = vmatpush.msra.mxu2 %v6263_v27  ;;  %2016 = vmatpush.msrb.mxu3 %v6343_v0 }
0x13b4   :  { %v1409_v33 = vpop.f32.mrf.mxu2  ;;  %v1429_v35 = vpop.f32.mrf.mxu3 }
0x13b5   :  { %v1433_v37 = vadd.f32 %v1432_v34, %v1409_v33  ;;  %v1436_v38 = vrot.slane %v1429_v35, 2  ;;  %v1460_v35 = vrot.slane %v6433_v8, 6 }
0x13b7   :  { %5343 = vtanh.f32 %v1433_v37  ;;  %v1438_v40 = vadd.f32 %v1436_v38, %v1434_v39  ;;  %v5109_v46 = vmul.f32 -1.442695, %v1433_v37 }
0x13b9   :  { %5345 = vtanh.f32 %v1438_v40  ;;  %v5110_v6 = vmul.f32 -1.442695, %v1438_v40 }
0x13ba   :  { %5347 = vpow2.f32 %v5109_v46 }
0x13bd   :  { %v5344_v43 = vpop.eup %5343 }
0x13be   :  { %1464 = vrot.lane.b32.xlu2 %v5344_v43, %s5792_s4  ;;  %v1500_v43 = vrot.slane %v6430_v1, 2 }
0x13bf   :  { %v5346_v44 = vpop.eup %5345 }
0x13c0   :  { %1504 = vrot.lane.b32.xlu1 %v5346_v44, %s5792_s4  ;;  %v5348_v13 = vpop.eup %5347 }
0x13c1   :  { %v1442_v41 = vadd.f32 1.0, %v5348_v13 }
0x13c3   :  { %5349 = vrcp.f32 %v1442_v41  ;;  %v1454_v19 = vand.u32 2147483648, %v1442_v41  ;;  %vm1448_vm4 = vweird.f32 %v1442_v41  ;;  %v1452_v53 = vand.u32 2147483647, %v1442_v41 }
0x13c4   :  { %5351 = vpow2.f32 %v5110_v6 }
0x13c5   :  { %v1455_v54 = vor.u32 1.1754944e-38, %v1454_v19  ;;  %vm1453_vm7 = vcmp.eq.f32.partialorder %v1452_v53, 8.507059e+37 }
0x13c9   :  { %v5350_v16 = vpop.eup %5349 }
0x13ca   :  { %v1444_v2 = vmul.f32 %v5350_v16, %v1442_v41  ;;  %v5352_v15 = vpop.eup %5351  ;;  %vm1449_vm3 = vweird.f32 %v5350_v16 }
0x13cb   :  { %v1482_v11 = vadd.f32 1.0, %v5352_v15  ;;  %vm1450_vm5 = vmor %vm1448_vm4, %vm1449_vm3 }
0x13cc   :  { %v1445_v50 = vsub.f32 1.0, %v1444_v2 }
0x13cd   :  { %5353 = vrcp.f32 %v1482_v11  ;;  %v1494_v3 = vand.u32 2147483648, %v1482_v11  ;;  %vm1488_vm9 = vweird.f32 %v1482_v11  ;;  %v1492_v56 = vand.u32 2147483647, %v1482_v11 }
0x13ce   :  { %v1446_v7 = vmul.f32 %v5350_v16, %v1445_v50 }
0x13cf   :  { %v1495_v31 = vor.u32 1.1754944e-38, %v1494_v3  ;;  %vm1493_vm13 = vcmp.eq.f32.partialorder %v1492_v56, 8.507059e+37 }
0x13d0   :  { %v1447_v47 = vadd.f32 %v5350_v16, %v1446_v7 }
0x13d2   :  { %v1451_v20 = vsel %vm1450_vm5, %v5350_v16, %v1447_v47  ;;  %v1577_v47 = vld [vmem:[#allocation2 + $0x8] sm:$0xc] }
0x13d3   :  { %v1456_v4 = vsel %vm1453_vm7, %v1455_v54, %v1451_v20  ;;  %v5354_v9 = vpop.eup %5353 }
0x13d4   :  { %v1484_v10 = vmul.f32 %v5354_v9, %v1482_v11  ;;  %vm1489_vm8 = vweird.f32 %v5354_v9  ;;  %v1462_v37 = vmul.f32 %v1460_v35, %v1456_v4 }
0x13d5   :  { %vm1490_vm10 = vmor %vm1488_vm9, %vm1489_vm8 }
0x13d6   :  { %v1485_v42 = vsub.f32 1.0, %v1484_v10 }
0x13d8   :  { %v1486_v14 = vmul.f32 %v5354_v9, %v1485_v42 }
0x13da   :  { %v1487_v60 = vadd.f32 %v5354_v9, %v1486_v14 }
0x13dc   :  { %v1491_v17 = vsel %vm1490_vm10, %v5354_v9, %v1487_v60 }
0x13dd   :  { %v1496_v33 = vsel %vm1493_vm13, %v1495_v31, %v1491_v17 }
0x13de   :  { %v1502_v44 = vmul.f32 %v1500_v43, %v1496_v33 }
0x1418   :  { %v1465_v55 = vpop.permute.xlu2 %1464 }
0x1419   :  { %v1467_v5 = vmul.f32 %v1465_v55, %v1456_v4 }
0x141b   :  { %1469 = vrot.lane.b32.xlu1 %v1467_v5, %s5793_s15 }
0x1432   :  { %v1505_v12 = vpop.permute.xlu1 %1504 }
0x1433   :  { %v1507_v34 = vmul.f32 %v1505_v12, %v1496_v33 }
0x1435   :  { %1509 = vrot.lane.b32.xlu0 %v1507_v34, %s5793_s15 }
0x148d   :  { %v1470_v38 = vpop.permute.xlu1 %1469 }
0x148e   :  { %v6468_v39 = vadd.f32 %v1470_v38, %v1462_v37 }
0x1490   :  { %5355 = vtanh.f32 %v6468_v39 }
0x1496   :  { %v5356_v40 = vpop.eup %5355 }
0x1497   :  { %1475 = vrot.lane.b32.xlu0 %v5356_v40, %s5792_s4 }
0x14a7   :  { %v1510_v46 = vpop.permute.xlu0 %1509 }
0x14a8   :  { %v6473_v13 = vadd.f32 %v1510_v46, %v1502_v44 }
0x14aa   :  { %5357 = vtanh.f32 %v6473_v13 }
0x14b0   :  { %v5358_v41 = vpop.eup %5357 }
0x14b1   :  { %1515 = vrot.lane.b32.xlu2 %v5358_v41, %s5792_s4 }
0x1509   :  { %v1476_v8 = vpop.permute.xlu0 %1475 }
0x150a   :  { %v1478_v16 = vmul.f32 %v1476_v8, %v1456_v4 }
0x150b   :  { %v1516_v2 = vpop.permute.xlu2 %1515 }
0x150c   :  { %1520 = vrot.lane.b32.xlu1 %v1478_v16, %s5793_s15  ;;  %v6478_v6 = vmul.f32 %v1516_v2, %v1496_v33 }
0x150e   :  { %v1529_v50 = vrot.slane %v6478_v6, 6 }
0x1510   :  { %1530 = vrot.lane.b32.xlu2 %v1529_v50, %s5792_s4  ;;  %v1648_v50 = vrot.slane %v6473_v13, 2 }
0x156a   :  { %v1531_v1 = vpop.permute.xlu2 %1530 }
0x157e   :  { %v6482_v7 = vpop.permute.xlu1 %1520 }
0x157f   :  { %v1533_v15 = vsel %vm113_vm2, %v6482_v7, %v1531_v1 }
0x1580   :  { %5111 = vmatmul.msk.f32.vlgmr.msrb.gmra.mxu0 %vm208_vm12, %v1533_v15  ;;  %5112 = vmatmul.msk.f32.vlgmr.msrb.gmra.mxu1 %vm208_vm12, %v1533_v15 }
0x1581   :  { %2134 = vmatpush.msrb.mxu0 %v6214_v51  ;;  %2154 = vmatpush.msrb.mxu1 %v6294_v57 }
0x1583   :  { %2135 = vmatpush.msrb.mxu0 %v6221_v18  ;;  %2155 = vmatpush.msrb.mxu1 %v6301_v58 }
0x1585   :  { %2136 = vmatpush.msrb.mxu0 %v6228_v52  ;;  %2156 = vmatpush.msrb.mxu1 %v6308_v29 }
0x1587   :  { %2137 = vmatpush.msrb.mxu0 %v6235_v22  ;;  %2157 = vmatpush.msrb.mxu1 %v6315_v59 }
0x1589   :  { %2138 = vmatpush.msrb.mxu0 %v6242_v23  ;;  %2158 = vmatpush.msrb.mxu1 %v6322_v61  ;;  %v1582_v23 = vld [vmem:[#allocation2 + $0x10] sm:$0x30] }
0x158b   :  { %2139 = vmatpush.msrb.mxu0 %v6249_v24  ;;  %2159 = vmatpush.msrb.mxu1 %v6329_v62 }
0x158d   :  { %2140 = vmatpush.msrb.mxu0 %v6256_v25  ;;  %2160 = vmatpush.msrb.mxu1 %v6336_v32 }
0x158f   :  { %2141 = vmatpush.msrb.mxu0 %v6263_v27  ;;  %2161 = vmatpush.msrb.mxu1 %v6343_v0 }
0x15fd   :  { %v1554_v51 = vpop.f32.mrf.mxu0  ;;  %v1574_v18 = vpop.f32.mrf.mxu1 }
0x15fe   :  { %v1579_v52 = vrot.slane %v1554_v51, 6  ;;  %v1584_v22 = vrot.slane %v1574_v18, 4 }
0x1600   :  { %v1581_v19 = vadd.f32 %v1579_v52, %v1577_v47  ;;  %v1586_v11 = vadd.f32 %v1584_v22, %v1582_v23  ;;  %v1608_v52 = vrot.slane %v6468_v39, 6 }
0x1602   :  { %5359 = vtanh.f32 %v1581_v19  ;;  %v5113_v25 = vmul.f32 -1.442695, %v1581_v19  ;;  %v5114_v27 = vmul.f32 -1.442695, %v1586_v11 }
0x1603   :  { %5361 = vtanh.f32 %v1586_v11 }
0x1604   :  { %5363 = vpow2.f32 %v5113_v25 }
0x1605   :  { %5365 = vpow2.f32 %v5114_v27 }
0x1608   :  { %v5360_v24 = vpop.eup %5359 }
0x1609   :  { %v5362_v53 = vpop.eup %5361  ;;  %1612 = vrot.lane.b32.xlu1 %v5360_v24, %s5792_s4 }
0x160a   :  { %1652 = vrot.lane.b32.xlu0 %v5362_v53, %s5792_s4  ;;  %v5364_v20 = vpop.eup %5363 }
0x160b   :  { %v5366_v54 = vpop.eup %5365  ;;  %v1590_v55 = vadd.f32 1.0, %v5364_v20 }
0x160c   :  { %v1630_v4 = vadd.f32 1.0, %v5366_v54 }
0x160d   :  { %5367 = vrcp.f32 %v1590_v55  ;;  %v1602_v12 = vand.u32 2147483648, %v1590_v55  ;;  %vm1596_vm3 = vweird.f32 %v1590_v55  ;;  %v1600_v34 = vand.u32 2147483647, %v1590_v55 }
0x160e   :  { %5369 = vrcp.f32 %v1630_v4  ;;  %v1642_v33 = vand.u32 2147483648, %v1630_v4  ;;  %vm1636_vm4 = vweird.f32 %v1630_v4  ;;  %v1640_v35 = vand.u32 2147483647, %v1630_v4 }
0x160f   :  { %v1603_v40 = vor.u32 1.1754944e-38, %v1602_v12  ;;  %vm1601_vm8 = vcmp.eq.f32.partialorder %v1600_v34, 8.507059e+37 }
0x1610   :  { %v1643_v43 = vor.u32 1.1754944e-38, %v1642_v33  ;;  %vm1641_vm9 = vcmp.eq.f32.partialorder %v1640_v35, 8.507059e+37 }
0x1613   :  { %v5368_v5 = vpop.eup %5367 }
0x1614   :  { %v5370_v9 = vpop.eup %5369  ;;  %v1592_v10 = vmul.f32 %v5368_v5, %v1590_v55  ;;  %vm1597_vm15 = vweird.f32 %v5368_v5  ;;  %v6532_v55 = vld [vmem:[%s7748_s5 + $0x70] sm:$0xff] }
0x1615   :  { %v1632_v42 = vmul.f32 %v5370_v9, %v1630_v4  ;;  %vm1637_vm0 = vweird.f32 %v5370_v9  ;;  %vm1598_vm5 = vmor %vm1596_vm3, %vm1597_vm15  ;;  %v6539_v4 = vld [vmem:[%s7748_s5 + $0x60] sm:$0xff] }
0x1616   :  { %v1593_v14 = vsub.f32 1.0, %v1592_v10  ;;  %vm1638_vm7 = vmor %vm1636_vm4, %vm1637_vm0 }
0x1617   :  { %v1633_v60 = vsub.f32 1.0, %v1632_v42 }
0x1618   :  { %v1594_v3 = vmul.f32 %v5368_v5, %v1593_v14  ;;  %v1726_v14 = vld [vmem:[#allocation2 + $0x8] sm:$0x30] }
0x1619   :  { %v1634_v56 = vmul.f32 %v5370_v9, %v1633_v60  ;;  %v1731_v60 = vld [vmem:[#allocation2 + $0x10] sm:$0xc] }
0x161a   :  { %v1595_v17 = vadd.f32 %v5368_v5, %v1594_v3 }
0x161b   :  { %v1635_v31 = vadd.f32 %v5370_v9, %v1634_v56 }
0x161c   :  { %v1599_v37 = vsel %vm1598_vm5, %v5368_v5, %v1595_v17  ;;  %v6546_v5 = vld [vmem:[%s7748_s5 + $0x50] sm:$0xff] }
0x161d   :  { %v1639_v38 = vsel %vm1638_vm7, %v5370_v9, %v1635_v31  ;;  %v1604_v46 = vsel %vm1601_vm8, %v1603_v40, %v1599_v37 }
0x161e   :  { %v1644_v8 = vsel %vm1641_vm9, %v1643_v43, %v1639_v38  ;;  %v1610_v22 = vmul.f32 %v1608_v52, %v1604_v46 }
0x161f   :  { %v1650_v1 = vmul.f32 %v1648_v50, %v1644_v8 }
0x167b   :  { %v1613_v44 = vpop.permute.xlu1 %1612 }
0x167c   :  { %v1653_v41 = vpop.permute.xlu0 %1652  ;;  %v1615_v16 = vmul.f32 %v1613_v44, %v1604_v46 }
0x167d   :  { %v1655_v2 = vmul.f32 %v1653_v41, %v1644_v8 }
0x167e   :  { %1617 = vrot.lane.b32.xlu0 %v1615_v16, %s5793_s15 }
0x167f   :  { %1657 = vrot.lane.b32.xlu2 %v1655_v2, %s5793_s15 }
0x16d9   :  { %v1658_v15 = vpop.permute.xlu2 %1657 }
0x16da   :  { %v6509_v51 = vadd.f32 %v1658_v15, %v1650_v1 }
0x16dc   :  { %5371 = vtanh.f32 %v6509_v51 }
0x16e2   :  { %v5372_v18 = vpop.eup %5371 }
0x16e3   :  { %1663 = vrot.lane.b32.xlu1 %v5372_v18, %s5792_s4 }
0x16f0   :  { %v1618_v47 = vpop.permute.xlu0 %1617 }
0x16f1   :  { %v6514_v23 = vadd.f32 %v1618_v47, %v1610_v22 }
0x16f3   :  { %5373 = vtanh.f32 %v6514_v23 }
0x16f9   :  { %v5374_v19 = vpop.eup %5373 }
0x16fa   :  { %1623 = vrot.lane.b32.xlu2 %v5374_v19, %s5792_s4 }
0x1754   :  { %v1624_v13 = vpop.permute.xlu2 %1623 }
0x1755   :  { %v1664_v11 = vpop.permute.xlu1 %1663  ;;  %v1626_v24 = vmul.f32 %v1624_v13, %v1604_v46 }
0x1756   :  { %v6518_v53 = vmul.f32 %v1664_v11, %v1644_v8 }
0x1757   :  { %1668 = vrot.lane.b32.xlu0 %v1626_v24, %s5793_s15 }
0x1758   :  { %v1677_v25 = vrot.slane %v6518_v53, 2 }
0x175a   :  { %1678 = vrot.lane.b32.xlu1 %v1677_v25, %s5792_s4 }
0x17c9   :  { %v6523_v39 = vpop.permute.xlu0 %1668 }
0x17cc   :  { %v1679_v27 = vpop.permute.xlu1 %1678 }
0x17cd   :  { %v1681_v20 = vsel %vm113_vm2, %v6523_v39, %v1679_v27 }
0x17ce   :  { %v1683_v54 = vrot.slane %v1681_v20, 2 }
0x17d0   :  { %5115 = vmatmul.msk.f32.vlgmr.msrb.gmra.mxu2 %vm208_vm12, %v1683_v54  ;;  %5116 = vmatmul.msk.f32.vlgmr.msra.gmra.mxu3 %vm208_vm12, %v1683_v54  ;;  %v1757_v54 = vrot.slane %v6514_v23, 6 }
0x17d1   :  { %2283 = vmatpush.msrb.mxu2 %v6532_v55  ;;  %2303 = vmatpush.msra.mxu3 %v6294_v57  ;;  %v6553_v57 = vld [vmem:[%s7748_s5 + $0x40] sm:$0xff] }
0x17d3   :  { %2284 = vmatpush.msrb.mxu2 %v6539_v4  ;;  %2304 = vmatpush.msra.mxu3 %v6301_v58  ;;  %v6560_v58 = vld [vmem:[%s7748_s5 + $0x30] sm:$0xff] }
0x17d5   :  { %2285 = vmatpush.msrb.mxu2 %v6546_v5  ;;  %2305 = vmatpush.msra.mxu3 %v6308_v29  ;;  %v6567_v29 = vld [vmem:[%s7748_s5 + $0x20] sm:$0xff] }
0x17d7   :  { %2286 = vmatpush.msrb.mxu2 %v6553_v57  ;;  %2306 = vmatpush.msra.mxu3 %v6315_v59  ;;  %v6574_v59 = vld [vmem:[%s7748_s5 + $0x10] sm:$0xff] }
0x17d9   :  { %2287 = vmatpush.msrb.mxu2 %v6560_v58  ;;  %2307 = vmatpush.msra.mxu3 %v6322_v61  ;;  %v6581_v61 = vld [vmem:[%s7748_s5] sm:$0xff] }
0x17db   :  { %2288 = vmatpush.msrb.mxu2 %v6567_v29  ;;  %2308 = vmatpush.msra.mxu3 %v6329_v62 }
0x17dd   :  { %2289 = vmatpush.msrb.mxu2 %v6574_v59  ;;  %2309 = vmatpush.msra.mxu3 %v6336_v32 }
0x17df   :  { %2290 = vmatpush.msrb.mxu2 %v6581_v61  ;;  %2310 = vmatpush.msra.mxu3 %v6343_v0 }
0x1853   :  { %v1703_v9 = vpop.f32.mrf.mxu2  ;;  %v1723_v62 = vpop.f32.mrf.mxu3 }
0x1854   :  { %v1728_v10 = vrot.slane %v1703_v9, 4  ;;  %v1733_v42 = vrot.slane %v1723_v62, 6  ;;  %v1797_v9 = vrot.slane %v6509_v51, 2 }
0x1856   :  { %v1730_v3 = vadd.f32 %v1728_v10, %v1726_v14  ;;  %v1735_v56 = vadd.f32 %v1733_v42, %v1731_v60 }
0x1858   :  { %5375 = vtanh.f32 %v1730_v3  ;;  %v5118_v31 = vmul.f32 -1.442695, %v1735_v56  ;;  %v5117_v34 = vmul.f32 -1.442695, %v1730_v3 }
0x1859   :  { %5377 = vtanh.f32 %v1735_v56 }
0x185a   :  { %5379 = vpow2.f32 %v5118_v31 }
0x185e   :  { %v5376_v32 = vpop.eup %5375 }
0x185f   :  { %v5378_v17 = vpop.eup %5377  ;;  %1761 = vrot.lane.b32.xlu0 %v5376_v32, %s5792_s4 }
0x1860   :  { %1801 = vrot.lane.b32.xlu2 %v5378_v17, %s5792_s4  ;;  %v5380_v12 = vpop.eup %5379 }
0x1861   :  { %v1779_v0 = vadd.f32 1.0, %v5380_v12 }
0x1863   :  { %5381 = vrcp.f32 %v1779_v0  ;;  %v1791_v46 = vand.u32 2147483648, %v1779_v0  ;;  %vm1785_vm13 = vweird.f32 %v1779_v0  ;;  %v1789_v41 = vand.u32 2147483647, %v1779_v0 }
0x1864   :  { %5383 = vpow2.f32 %v5117_v34 }
0x1865   :  { %v1792_v16 = vor.u32 1.1754944e-38, %v1791_v46  ;;  %vm1790_vm0 = vcmp.eq.f32.partialorder %v1789_v41, 8.507059e+37 }
0x1869   :  { %v5382_v33 = vpop.eup %5381 }
0x186a   :  { %v1781_v35 = vmul.f32 %v5382_v33, %v1779_v0  ;;  %v5384_v38 = vpop.eup %5383  ;;  %vm1786_vm10 = vweird.f32 %v5382_v33 }
0x186b   :  { %v1739_v43 = vadd.f32 1.0, %v5384_v38  ;;  %vm1787_vm15 = vmor %vm1785_vm13, %vm1786_vm10  ;;  %v5752_v38 = vld [vmem:[%s7748_s5 + $0x68] sm:$0xff] }
0x186c   :  { %v1782_v37 = vsub.f32 1.0, %v1781_v35 }
0x186d   :  { %5385 = vrcp.f32 %v1739_v43  ;;  %v1751_v19 = vand.u32 2147483648, %v1739_v43  ;;  %vm1745_vm4 = vweird.f32 %v1739_v43  ;;  %v1749_v13 = vand.u32 2147483647, %v1739_v43 }
0x186e   :  { %v1783_v40 = vmul.f32 %v5382_v33, %v1782_v37  ;;  %v5751_v37 = vld [vmem:[%s7748_s5 + $0x78] sm:$0xff] }
0x186f   :  { %v1752_v24 = vor.u32 1.1754944e-38, %v1751_v19  ;;  %vm1750_vm7 = vcmp.eq.f32.partialorder %v1749_v13, 8.507059e+37 }
0x1870   :  { %v1784_v44 = vadd.f32 %v5382_v33, %v1783_v40  ;;  %v5753_v40 = vld [vmem:[%s7748_s5 + $0x58] sm:$0xff] }
0x1872   :  { %v1788_v8 = vsel %vm1787_vm15, %v5382_v33, %v1784_v44  ;;  %v1880_v44 = vld [vmem:[#allocation2 + $0x10] sm:$0x3] }
0x1873   :  { %v1793_v50 = vsel %vm1790_vm0, %v1792_v16, %v1788_v8  ;;  %v5386_v1 = vpop.eup %5385  ;;  %v1875_v8 = vld [vmem:[#allocation2 + $0x8] sm:$0xc0] }
0x1874   :  { %v1741_v18 = vmul.f32 %v5386_v1, %v1739_v43  ;;  %vm1746_vm3 = vweird.f32 %v5386_v1  ;;  %v1799_v10 = vmul.f32 %v1797_v9, %v1793_v50 }
0x1875   :  { %vm1747_vm5 = vmor %vm1745_vm4, %vm1746_vm3 }
0x1876   :  { %v1742_v52 = vsub.f32 1.0, %v1741_v18 }
0x1878   :  { %v1743_v22 = vmul.f32 %v5386_v1, %v1742_v52 }
0x187a   :  { %v1744_v47 = vadd.f32 %v5386_v1, %v1743_v22 }
0x187c   :  { %v1748_v11 = vsel %vm1747_vm5, %v5386_v1, %v1744_v47 }
0x187d   :  { %v1753_v27 = vsel %vm1750_vm7, %v1752_v24, %v1748_v11 }
0x187e   :  { %v1759_v62 = vmul.f32 %v1757_v54, %v1753_v27 }
0x18ba   :  { %v1802_v2 = vpop.permute.xlu2 %1801 }
0x18bb   :  { %v1804_v15 = vmul.f32 %v1802_v2, %v1793_v50 }
0x18bd   :  { %1806 = vrot.lane.b32.xlu1 %v1804_v15, %s5793_s15 }
0x18d1   :  { %v1762_v25 = vpop.permute.xlu0 %1761 }
0x18d2   :  { %v1764_v20 = vmul.f32 %v1762_v25, %v1753_v27 }
0x18d4   :  { %1766 = vrot.lane.b32.xlu2 %v1764_v20, %s5793_s15 }
0x192e   :  { %v1767_v42 = vpop.permute.xlu2 %1766 }
0x192f   :  { %v1807_v14 = vpop.permute.xlu1 %1806  ;;  %v6591_v60 = vadd.f32 %v1767_v42, %v1759_v62 }
0x1930   :  { %v6593_v3 = vadd.f32 %v1807_v14, %v1799_v10 }
0x1931   :  { %5387 = vtanh.f32 %v6591_v60 }
0x1932   :  { %5389 = vtanh.f32 %v6593_v3 }
0x1937   :  { %v5388_v56 = vpop.eup %5387 }
0x1938   :  { %v5390_v32 = vpop.eup %5389  ;;  %1772 = vrot.lane.b32.xlu1 %v5388_v56, %s5792_s4 }
0x1939   :  { %1812 = vrot.lane.b32.xlu0 %v5390_v32, %s5792_s4 }
0x19aa   :  { %v1773_v23 = vpop.permute.xlu1 %1772 }
0x19ab   :  { %v1813_v51 = vpop.permute.xlu0 %1812  ;;  %v1775_v17 = vmul.f32 %v1773_v23, %v1753_v27 }
0x19ac   :  { %v6599_v31 = vmul.f32 %v1813_v51, %v1793_v50 }
0x19ad   :  { %1817 = vrot.lane.b32.xlu2 %v1775_v17, %s5793_s15 }
0x19ae   :  { %v1826_v12 = vrot.slane %v6599_v31, 6 }
0x19b0   :  { %1827 = vrot.lane.b32.xlu0 %v1826_v12, %s5792_s4 }
0x1a07   :  { %v6604_v0 = vpop.permute.xlu2 %1817 }
0x1a22   :  { %v1828_v33 = vpop.permute.xlu0 %1827 }
0x1a23   :  { %v1830_v34 = vsel %vm113_vm2, %v6604_v0, %v1828_v33 }
0x1a24   :  { %v1832_v35 = vrot.slane %v1830_v34, 4 }
0x1a26   :  { %5119 = vmatmul.msk.f32.vlgmr.msra.gmra.mxu0 %vm208_vm12, %v1832_v35  ;;  %5120 = vmatmul.msk.f32.vlgmr.msra.gmra.mxu1 %vm208_vm12, %v1832_v35 }
0x1a27   :  { %2432 = vmatpush.msra.mxu0 %v6532_v55  ;;  %2452 = vmatpush.msra.mxu1 %v5751_v37  ;;  %v5754_v55 = vld [vmem:[%s7748_s5 + $0x48] sm:$0xff]  ;;  %v1903_v37 = vrot.slane %v6591_v60, 6 }
0x1a29   :  { %2433 = vmatpush.msra.mxu0 %v6539_v4  ;;  %2453 = vmatpush.msra.mxu1 %v5752_v38  ;;  %v5755_v4 = vld [vmem:[%s7748_s5 + $0x38] sm:$0xff] }
0x1a2b   :  { %2434 = vmatpush.msra.mxu0 %v6546_v5  ;;  %2454 = vmatpush.msra.mxu1 %v5753_v40  ;;  %v5756_v5 = vld [vmem:[%s7748_s5 + $0x28] sm:$0xff] }
0x1a2d   :  { %2435 = vmatpush.msra.mxu0 %v6553_v57  ;;  %2455 = vmatpush.msra.mxu1 %v5754_v55  ;;  %v5757_v57 = vld [vmem:[%s7748_s5 + $0x18] sm:$0xff] }
0x1a2f   :  { %2436 = vmatpush.msra.mxu0 %v6560_v58  ;;  %2456 = vmatpush.msra.mxu1 %v5755_v4  ;;  %v5758_v58 = vld [vmem:[%s7748_s5 + $0x8] sm:$0xff] }
0x1a31   :  { %2437 = vmatpush.msra.mxu0 %v6567_v29  ;;  %2457 = vmatpush.msra.mxu1 %v5756_v5  ;;  %v1943_v5 = vrot.slane %v6593_v3, 2 }
0x1a33   :  { %2438 = vmatpush.msra.mxu0 %v6574_v59  ;;  %2458 = vmatpush.msra.mxu1 %v5757_v57 }
0x1a35   :  { %2439 = vmatpush.msra.mxu0 %v6581_v61  ;;  %2459 = vmatpush.msra.mxu1 %v5758_v58 }
0x1aa3   :  { %v1852_v29 = vpop.f32.mrf.mxu0  ;;  %v1872_v43 = vpop.f32.mrf.mxu1 }
0x1aa4   :  { %v1877_v46 = vrot.slane %v1852_v29, 2  ;;  %v1881_v41 = vadd.f32 %v1880_v44, %v1872_v43 }
0x1aa6   :  { %v1879_v16 = vadd.f32 %v1877_v46, %v1875_v8  ;;  %5391 = vtanh.f32 %v1881_v41  ;;  %v5122_v15 = vmul.f32 -1.442695, %v1881_v41 }
0x1aa8   :  { %5393 = vtanh.f32 %v1879_v16  ;;  %v5121_v61 = vmul.f32 -1.442695, %v1879_v16 }
0x1aaa   :  { %5395 = vpow2.f32 %v5121_v61 }
0x1aac   :  { %v5392_v59 = vpop.eup %5391 }
0x1aad   :  { %1947 = vrot.lane.b32.xlu1 %v5392_v59, %s5792_s4 }
0x1aae   :  { %v5394_v2 = vpop.eup %5393 }
0x1aaf   :  { %1907 = vrot.lane.b32.xlu2 %v5394_v2, %s5792_s4 }
0x1ab0   :  { %v5396_v50 = vpop.eup %5395 }
0x1ab1   :  { %v1885_v1 = vadd.f32 1.0, %v5396_v50  ;;  %v2021_v50 = vld [vmem:[#allocation2 + $0x28] sm:$0x3] }
0x1ab3   :  { %5397 = vrcp.f32 %v1885_v1  ;;  %v1897_v24 = vand.u32 2147483648, %v1885_v1  ;;  %vm1891_vm9 = vweird.f32 %v1885_v1  ;;  %v1895_v25 = vand.u32 2147483647, %v1885_v1 }
0x1ab4   :  { %5399 = vpow2.f32 %v5122_v15 }
0x1ab5   :  { %v1898_v20 = vor.u32 1.1754944e-38, %v1897_v24  ;;  %vm1896_vm13 = vcmp.eq.f32.partialorder %v1895_v25, 8.507059e+37 }
0x1ab9   :  { %v5398_v18 = vpop.eup %5397 }
0x1aba   :  { %v1887_v52 = vmul.f32 %v5398_v18, %v1885_v1  ;;  %v5400_v47 = vpop.eup %5399  ;;  %vm1892_vm8 = vweird.f32 %v5398_v18 }
0x1abb   :  { %v1925_v13 = vadd.f32 1.0, %v5400_v47  ;;  %vm1893_vm10 = vmor %vm1891_vm9, %vm1892_vm8 }
0x1abc   :  { %v1888_v22 = vsub.f32 1.0, %v1887_v52  ;;  %v2023_v52 = vld [vmem:[#allocation2] sm:$0xc0] }
0x1abd   :  { %5401 = vrcp.f32 %v1925_v13  ;;  %v1937_v23 = vand.u32 2147483648, %v1925_v13  ;;  %vm1931_vm0 = vweird.f32 %v1925_v13  ;;  %v1935_v51 = vand.u32 2147483647, %v1925_v13 }
0x1abe   :  { %v1889_v19 = vmul.f32 %v5398_v18, %v1888_v22 }
0x1abf   :  { %v1938_v12 = vor.u32 1.1754944e-38, %v1937_v23  ;;  %vm1936_vm4 = vcmp.eq.f32.partialorder %v1935_v51, 8.507059e+37 }
0x1ac0   :  { %v1890_v11 = vadd.f32 %v5398_v18, %v1889_v19 }
0x1ac2   :  { %v1894_v27 = vsel %vm1893_vm10, %v5398_v18, %v1890_v11 }
0x1ac3   :  { %v5402_v54 = vpop.eup %5401  ;;  %v1899_v62 = vsel %vm1896_vm13, %v1898_v20, %v1894_v27 }
0x1ac4   :  { %v1927_v42 = vmul.f32 %v5402_v54, %v1925_v13  ;;  %vm1932_vm15 = vweird.f32 %v5402_v54  ;;  %v1905_v38 = vmul.f32 %v1903_v37, %v1899_v62 }
0x1ac5   :  { %vm1933_vm3 = vmor %vm1931_vm0, %vm1932_vm15 }
0x1ac6   :  { %v1928_v14 = vsub.f32 1.0, %v1927_v42 }
0x1ac8   :  { %v1929_v56 = vmul.f32 %v5402_v54, %v1928_v14 }
0x1aca   :  { %v1930_v32 = vadd.f32 %v5402_v54, %v1929_v56 }
0x1acc   :  { %v1934_v17 = vsel %vm1933_vm3, %v5402_v54, %v1930_v32 }
0x1acd   :  { %v1939_v34 = vsel %vm1936_vm4, %v1938_v12, %v1934_v17 }
0x1ace   :  { %v1945_v57 = vmul.f32 %v1943_v5, %v1939_v34 }
0x1b09   :  { %v1908_v9 = vpop.permute.xlu2 %1907 }
0x1b0a   :  { %v1910_v10 = vmul.f32 %v1908_v9, %v1899_v62 }
0x1b0c   :  { %1912 = vrot.lane.b32.xlu1 %v1910_v10, %s5793_s15 }
0x1b1f   :  { %v1948_v33 = vpop.permute.xlu1 %1947 }
0x1b20   :  { %v1950_v35 = vmul.f32 %v1948_v33, %v1939_v34 }
0x1b22   :  { %1952 = vrot.lane.b32.xlu0 %v1950_v35, %s5793_s15 }
0x1b7e   :  { %v1913_v40 = vpop.permute.xlu1 %1912 }
0x1b7f   :  { %v6647_v55 = vadd.f32 %v1913_v40, %v1905_v38 }
0x1b81   :  { %5403 = vtanh.f32 %v6647_v55 }
0x1b87   :  { %v5404_v4 = vpop.eup %5403 }
0x1b88   :  { %1918 = vrot.lane.b32.xlu0 %v5404_v4, %s5792_s4 }
0x1b94   :  { %v1953_v58 = vpop.permute.xlu0 %1952 }
0x1b95   :  { %v6652_v29 = vadd.f32 %v1953_v58, %v1945_v57 }
0x1b97   :  { %5405 = vtanh.f32 %v6652_v29 }
0x1b9d   :  { %v5406_v43 = vpop.eup %5405 }
0x1b9e   :  { %1958 = vrot.lane.b32.xlu2 %v5406_v43, %s5792_s4 }
0x1bf8   :  { %v1959_v60 = vpop.permute.xlu2 %1958 }
0x1bf9   :  { %v6656_v44 = vmul.f32 %v1959_v60, %v1939_v34 }
0x1bfa   :  { %v1919_v46 = vpop.permute.xlu0 %1918 }
0x1bfb   :  { %v1972_v41 = vrot.slane %v6656_v44, 2  ;;  %v1921_v8 = vmul.f32 %v1919_v46, %v1899_v62  ;;  %v2089_v46 = vrot.slane %v6652_v29, 2 }
0x1bfd   :  { %1973 = vrot.lane.b32.xlu2 %v1972_v41, %s5792_s4  ;;  %1963 = vrot.lane.b32.xlu1 %v1921_v8, %s5793_s15 }
0x1c57   :  { %v1974_v3 = vpop.permute.xlu2 %1973 }
0x1c6f   :  { %v6661_v16 = vpop.permute.xlu1 %1963 }
0x1c70   :  { %v1976_v59 = vsel %vm113_vm2, %v6661_v16, %v1974_v3 }
0x1c71   :  { %v1978_v2 = vrot.slane %v1976_v59, 6 }
0x1c73   :  { %5123 = vmatmul.msk.f32.vlgmr.msra.gmra.mxu2 %vm208_vm12, %v1978_v2  ;;  %5124 = vmatmul.msk.f32.vlgmr.msrb.gmra.mxu3 %vm208_vm12, %v1978_v2  ;;  %v2049_v2 = vrot.slane %v6647_v55, 6 }
0x1cf6   :  { %v1998_v61 = vpop.f32.mrf.mxu2  ;;  %v2018_v1 = vpop.f32.mrf.mxu3 }
0x1cf7   :  { %v2022_v15 = vadd.f32 %v2021_v50, %v1998_v61  ;;  %v2025_v18 = vrot.slane %v2018_v1, 2 }
0x1cf9   :  { %5407 = vtanh.f32 %v2022_v15  ;;  %v2027_v22 = vadd.f32 %v2025_v18, %v2023_v52  ;;  %v5125_v13 = vmul.f32 -1.442695, %v2022_v15 }
0x1cfb   :  { %5409 = vtanh.f32 %v2027_v22  ;;  %v5126_v11 = vmul.f32 -1.442695, %v2027_v22 }
0x1cfc   :  { %5411 = vpow2.f32 %v5125_v13 }
0x1cfd   :  { %5413 = vpow2.f32 %v5126_v11 }
0x1cff   :  { %v5408_v47 = vpop.eup %5407 }
0x1d00   :  { %2053 = vrot.lane.b32.xlu1 %v5408_v47, %s5792_s4 }
0x1d01   :  { %v5410_v19 = vpop.eup %5409 }
0x1d02   :  { %2093 = vrot.lane.b32.xlu0 %v5410_v19, %s5792_s4  ;;  %v5412_v24 = vpop.eup %5411 }
0x1d03   :  { %v5414_v25 = vpop.eup %5413  ;;  %v2031_v27 = vadd.f32 1.0, %v5412_v24 }
0x1d04   :  { %v2071_v20 = vadd.f32 1.0, %v5414_v25 }
0x1d05   :  { %5415 = vrcp.f32 %v2031_v27  ;;  %v2043_v51 = vand.u32 2147483648, %v2031_v27  ;;  %vm2037_vm7 = vweird.f32 %v2031_v27  ;;  %v2041_v17 = vand.u32 2147483647, %v2031_v27 }
0x1d06   :  { %5417 = vrcp.f32 %v2071_v20  ;;  %v2083_v34 = vand.u32 2147483648, %v2071_v20  ;;  %vm2077_vm10 = vweird.f32 %v2071_v20  ;;  %v2081_v37 = vand.u32 2147483647, %v2071_v20 }
0x1d07   :  { %v2044_v35 = vor.u32 1.1754944e-38, %v2043_v51  ;;  %vm2042_vm13 = vcmp.eq.f32.partialorder %v2041_v17, 8.507059e+37 }
0x1d08   :  { %v2084_v57 = vor.u32 1.1754944e-38, %v2083_v34  ;;  %vm2082_vm0 = vcmp.eq.f32.partialorder %v2081_v37, 8.507059e+37 }
0x1d0b   :  { %v5416_v54 = vpop.eup %5415 }
0x1d0c   :  { %v5418_v9 = vpop.eup %5417  ;;  %v2033_v62 = vmul.f32 %v5416_v54, %v2031_v27  ;;  %vm2038_vm5 = vweird.f32 %v5416_v54 }
0x1d0d   :  { %v2073_v10 = vmul.f32 %v5418_v9, %v2071_v20  ;;  %vm2039_vm8 = vmor %vm2037_vm7, %vm2038_vm5  ;;  %vm2078_vm9 = vweird.f32 %v5418_v9  ;;  %v2166_v20 = vld [vmem:[#allocation2 + $0x28] sm:$0xc] }
0x1d0e   :  { %v2034_v42 = vsub.f32 1.0, %v2033_v62  ;;  %vm2079_vm15 = vmor %vm2077_vm10, %vm2078_vm9 }
0x1d0f   :  { %v2074_v14 = vsub.f32 1.0, %v2073_v10 }
0x1d10   :  { %v2035_v56 = vmul.f32 %v5416_v54, %v2034_v42 }
0x1d11   :  { %v2075_v32 = vmul.f32 %v5418_v9, %v2074_v14 }
0x1d12   :  { %v2036_v23 = vadd.f32 %v5416_v54, %v2035_v56 }
0x1d13   :  { %v2076_v12 = vadd.f32 %v5418_v9, %v2075_v32 }
0x1d14   :  { %v2040_v33 = vsel %vm2039_vm8, %v5416_v54, %v2036_v23  ;;  %v2171_v54 = vld [vmem:[#allocation2] sm:$0x30] }
0x1d15   :  { %v2045_v40 = vsel %vm2042_vm13, %v2044_v35, %v2040_v33  ;;  %v2080_v4 = vsel %vm2079_vm15, %v5418_v9, %v2076_v12 }
0x1d16   :  { %v2085_v43 = vsel %vm2082_vm0, %v2084_v57, %v2080_v4  ;;  %v2051_v61 = vmul.f32 %v2049_v2, %v2045_v40 }
0x1d17   :  { %v2091_v41 = vmul.f32 %v2089_v46, %v2085_v43 }
0x1d72   :  { %v2054_v38 = vpop.permute.xlu1 %2053 }
0x1d73   :  { %v2056_v5 = vmul.f32 %v2054_v38, %v2045_v40 }
0x1d74   :  { %v2094_v58 = vpop.permute.xlu0 %2093 }
0x1d75   :  { %2058 = vrot.lane.b32.xlu0 %v2056_v5, %s5793_s15  ;;  %v2096_v60 = vmul.f32 %v2094_v58, %v2085_v43 }
0x1d77   :  { %2098 = vrot.lane.b32.xlu2 %v2096_v60, %s5793_s15 }
0x1dd1   :  { %v2099_v8 = vpop.permute.xlu2 %2098 }
0x1dd2   :  { %v6672_v3 = vadd.f32 %v2099_v8, %v2091_v41 }
0x1dd4   :  { %5419 = vtanh.f32 %v6672_v3 }
0x1dda   :  { %v5420_v59 = vpop.eup %5419 }
0x1ddb   :  { %2104 = vrot.lane.b32.xlu1 %v5420_v59, %s5792_s4 }
0x1de7   :  { %v2059_v50 = vpop.permute.xlu0 %2058 }
0x1de8   :  { %v6677_v1 = vadd.f32 %v2059_v50, %v2051_v61 }
0x1dea   :  { %5421 = vtanh.f32 %v6677_v1 }
0x1df0   :  { %v5422_v15 = vpop.eup %5421 }
0x1df1   :  { %2064 = vrot.lane.b32.xlu2 %v5422_v15, %s5792_s4 }
0x1e4b   :  { %v2065_v29 = vpop.permute.xlu2 %2064 }
0x1e4c   :  { %v2067_v18 = vmul.f32 %v2065_v29, %v2045_v40 }
0x1e4d   :  { %v2105_v52 = vpop.permute.xlu1 %2104 }
0x1e4e   :  { %2109 = vrot.lane.b32.xlu0 %v2067_v18, %s5793_s15  ;;  %v6682_v22 = vmul.f32 %v2105_v52, %v2085_v43 }
0x1e50   :  { %v2118_v47 = vrot.slane %v6682_v22, 6 }
0x1e52   :  { %2119 = vrot.lane.b32.xlu1 %v2118_v47, %s5792_s4  ;;  %v2197_v47 = vrot.slane %v6677_v1, 6 }
0x1ec0   :  { %v6686_v55 = vpop.permute.xlu0 %2109 }
0x1ec4   :  { %v2120_v19 = vpop.permute.xlu1 %2119 }
0x1ec5   :  { %v2122_v13 = vsel %vm113_vm2, %v6686_v55, %v2120_v19  ;;  %v2237_v19 = vrot.slane %v6672_v3, 2 }
0x1ec6   :  { %5127 = vmatmul.msk.f32.vlgmr.msrb.gmra.mxu0 %vm208_vm12, %v2122_v13  ;;  %5128 = vmatmul.msk.f32.vlgmr.msrb.gmra.mxu1 %vm208_vm12, %v2122_v13 }
0x1f43   :  { %v2143_v11 = vpop.f32.mrf.mxu0  ;;  %v2163_v24 = vpop.f32.mrf.mxu1 }
0x1f44   :  { %v2168_v25 = vrot.slane %v2143_v11, 6  ;;  %v2173_v27 = vrot.slane %v2163_v24, 4 }
0x1f46   :  { %v2170_v9 = vadd.f32 %v2168_v25, %v2166_v20  ;;  %v2175_v62 = vadd.f32 %v2173_v27, %v2171_v54 }
0x1f48   :  { %5423 = vtanh.f32 %v2170_v9  ;;  %v5130_v14 = vmul.f32 -1.442695, %v2175_v62  ;;  %v5129_v51 = vmul.f32 -1.442695, %v2170_v9 }
0x1f49   :  { %5425 = vtanh.f32 %v2175_v62 }
0x1f4a   :  { %5427 = vpow2.f32 %v5130_v14 }
0x1f4e   :  { %v5424_v10 = vpop.eup %5423 }
0x1f4f   :  { %v5426_v42 = vpop.eup %5425  ;;  %2201 = vrot.lane.b32.xlu0 %v5424_v10, %s5792_s4 }
0x1f50   :  { %2241 = vrot.lane.b32.xlu2 %v5426_v42, %s5792_s4  ;;  %v5428_v56 = vpop.eup %5427 }
0x1f51   :  { %v2219_v32 = vadd.f32 1.0, %v5428_v56 }
0x1f53   :  { %5429 = vrcp.f32 %v2219_v32  ;;  %v2231_v38 = vand.u32 2147483648, %v2219_v32  ;;  %vm2225_vm4 = vweird.f32 %v2219_v32  ;;  %v2229_v40 = vand.u32 2147483647, %v2219_v32 }
0x1f54   :  { %5431 = vpow2.f32 %v5129_v51 }
0x1f55   :  { %v2232_v5 = vor.u32 1.1754944e-38, %v2231_v38  ;;  %vm2230_vm7 = vcmp.eq.f32.partialorder %v2229_v40, 8.507059e+37 }
0x1f59   :  { %v5430_v23 = vpop.eup %5429 }
0x1f5a   :  { %v2221_v17 = vmul.f32 %v5430_v23, %v2219_v32  ;;  %v5432_v33 = vpop.eup %5431  ;;  %vm2226_vm3 = vweird.f32 %v5430_v23 }
0x1f5b   :  { %v2179_v35 = vadd.f32 1.0, %v5432_v33  ;;  %vm2227_vm5 = vmor %vm2225_vm4, %vm2226_vm3 }
0x1f5c   :  { %v2222_v12 = vsub.f32 1.0, %v2221_v17 }
0x1f5d   :  { %5433 = vrcp.f32 %v2179_v35  ;;  %v2191_v2 = vand.u32 2147483648, %v2179_v35  ;;  %vm2185_vm9 = vweird.f32 %v2179_v35  ;;  %v2189_v61 = vand.u32 2147483647, %v2179_v35 }
0x1f5e   :  { %v2223_v34 = vmul.f32 %v5430_v23, %v2222_v12 }
0x1f5f   :  { %v2192_v15 = vor.u32 1.1754944e-38, %v2191_v2  ;;  %vm2190_vm13 = vcmp.eq.f32.partialorder %v2189_v61, 8.507059e+37 }
0x1f60   :  { %v2224_v37 = vadd.f32 %v5430_v23, %v2223_v34  ;;  %v2315_v34 = vld [vmem:[#allocation2 + $0x28] sm:$0x30] }
0x1f62   :  { %v2228_v4 = vsel %vm2227_vm5, %v5430_v23, %v2224_v37 }
0x1f63   :  { %v2233_v58 = vsel %vm2230_vm7, %v2232_v5, %v2228_v4  ;;  %v5434_v43 = vpop.eup %5433 }
0x1f64   :  { %v2181_v46 = vmul.f32 %v5434_v43, %v2179_v35  ;;  %vm2186_vm8 = vweird.f32 %v5434_v43  ;;  %v2239_v11 = vmul.f32 %v2237_v19, %v2233_v58  ;;  %v2320_v35 = vld [vmem:[#allocation2] sm:$0xc] }
0x1f65   :  { %vm2187_vm10 = vmor %vm2185_vm9, %vm2186_vm8 }
0x1f66   :  { %v2182_v41 = vsub.f32 1.0, %v2181_v46 }
0x1f68   :  { %v2183_v8 = vmul.f32 %v5434_v43, %v2182_v41 }
0x1f6a   :  { %v2184_v59 = vadd.f32 %v5434_v43, %v2183_v8 }
0x1f6c   :  { %v2188_v50 = vsel %vm2187_vm10, %v5434_v43, %v2184_v59 }
0x1f6d   :  { %v2193_v18 = vsel %vm2190_vm13, %v2192_v15, %v2188_v50 }
0x1f6e   :  { %v2199_v13 = vmul.f32 %v2197_v47, %v2193_v18 }
0x1faa   :  { %v2242_v57 = vpop.permute.xlu2 %2241 }
0x1fab   :  { %v2244_v60 = vmul.f32 %v2242_v57, %v2233_v58 }
0x1fad   :  { %2246 = vrot.lane.b32.xlu1 %v2244_v60, %s5793_s15 }
0x1fc1   :  { %v2202_v29 = vpop.permute.xlu0 %2201 }
0x1fc2   :  { %v2204_v52 = vmul.f32 %v2202_v29, %v2193_v18 }
0x1fc4   :  { %2206 = vrot.lane.b32.xlu2 %v2204_v52, %s5793_s15 }
0x201e   :  { %v2207_v24 = vpop.permute.xlu2 %2206 }
0x201f   :  { %v2247_v25 = vpop.permute.xlu1 %2246  ;;  %v6698_v27 = vadd.f32 %v2207_v24, %v2199_v13 }
0x2020   :  { %v6700_v20 = vadd.f32 %v2247_v25, %v2239_v11 }
0x2021   :  { %5435 = vtanh.f32 %v6698_v27 }
0x2022   :  { %5437 = vtanh.f32 %v6700_v20 }
0x2027   :  { %v5436_v54 = vpop.eup %5435 }
0x2028   :  { %v5438_v9 = vpop.eup %5437  ;;  %2212 = vrot.lane.b32.xlu1 %v5436_v54, %s5792_s4 }
0x2029   :  { %2252 = vrot.lane.b32.xlu0 %v5438_v9, %s5792_s4 }
0x209a   :  { %v2213_v1 = vpop.permute.xlu1 %2212 }
0x209b   :  { %v2253_v3 = vpop.permute.xlu0 %2252  ;;  %v2215_v62 = vmul.f32 %v2213_v1, %v2193_v18 }
0x209c   :  { %v6706_v10 = vmul.f32 %v2253_v3, %v2233_v58 }
0x209d   :  { %2257 = vrot.lane.b32.xlu2 %v2215_v62, %s5793_s15 }
0x209e   :  { %v2266_v42 = vrot.slane %v6706_v10, 2 }
0x20a0   :  { %2267 = vrot.lane.b32.xlu0 %v2266_v42, %s5792_s4 }
0x20f7   :  { %v6711_v14 = vpop.permute.xlu2 %2257 }
0x2112   :  { %v2268_v56 = vpop.permute.xlu0 %2267 }
0x2113   :  { %v2270_v32 = vsel %vm113_vm2, %v6711_v14, %v2268_v56 }
0x2114   :  { %v2272_v23 = vrot.slane %v2270_v32, 2 }
0x2116   :  { %5131 = vmatmul.msk.f32.vlgmr.msrb.gmra.mxu2 %vm208_vm12, %v2272_v23  ;;  %5132 = vmatmul.msk.f32.vlgmr.msra.gmra.mxu3 %vm208_vm12, %v2272_v23  ;;  %v2346_v23 = vrot.slane %v6698_v27, 6 }
0x2199   :  { %v2292_v51 = vpop.f32.mrf.mxu2  ;;  %v2312_v17 = vpop.f32.mrf.mxu3 }
0x219a   :  { %v2317_v12 = vrot.slane %v2292_v51, 4  ;;  %v2322_v33 = vrot.slane %v2312_v17, 6 }
0x219c   :  { %v2319_v37 = vadd.f32 %v2317_v12, %v2315_v34  ;;  %v2324_v38 = vadd.f32 %v2322_v33, %v2320_v35  ;;  %v2386_v34 = vrot.slane %v6700_v20, 2 }
0x219e   :  { %5439 = vtanh.f32 %v2319_v37  ;;  %v5133_v5 = vmul.f32 -1.442695, %v2319_v37  ;;  %v5134_v60 = vmul.f32 -1.442695, %v2324_v38 }
0x219f   :  { %5441 = vtanh.f32 %v2324_v38 }
0x21a0   :  { %5443 = vpow2.f32 %v5133_v5 }
0x21a4   :  { %v5440_v40 = vpop.eup %5439 }
0x21a5   :  { %v5442_v4 = vpop.eup %5441  ;;  %2350 = vrot.lane.b32.xlu2 %v5440_v40, %s5792_s4 }
0x21a6   :  { %2390 = vrot.lane.b32.xlu1 %v5442_v4, %s5792_s4  ;;  %v5444_v57 = vpop.eup %5443 }
0x21a7   :  { %v2328_v58 = vadd.f32 1.0, %v5444_v57 }
0x21a9   :  { %5445 = vrcp.f32 %v2328_v58  ;;  %v2340_v50 = vand.u32 2147483648, %v2328_v58  ;;  %vm2334_vm0 = vweird.f32 %v2328_v58  ;;  %v2338_v15 = vand.u32 2147483647, %v2328_v58 }
0x21aa   :  { %5447 = vpow2.f32 %v5134_v60 }
0x21ab   :  { %v2341_v18 = vor.u32 1.1754944e-38, %v2340_v50  ;;  %vm2339_vm4 = vcmp.eq.f32.partialorder %v2338_v15, 8.507059e+37  ;;  %v2464_v50 = vld [vmem:[#allocation2 + $0x28] sm:$0xc0] }
0x21af   :  { %v5446_v43 = vpop.eup %5445 }
0x21b0   :  { %v2330_v46 = vmul.f32 %v5446_v43, %v2328_v58  ;;  %v5448_v59 = vpop.eup %5447  ;;  %vm2335_vm15 = vweird.f32 %v5446_v43 }
0x21b1   :  { %v2368_v2 = vadd.f32 1.0, %v5448_v59  ;;  %vm2336_vm3 = vmor %vm2334_vm0, %vm2335_vm15  ;;  %v2469_v59 = vld [vmem:[#allocation2] sm:$0x3] }
0x21b2   :  { %v2331_v41 = vsub.f32 1.0, %v2330_v46 }
0x21b3   :  { %5449 = vrcp.f32 %v2368_v2  ;;  %v2380_v9 = vand.u32 2147483648, %v2368_v2  ;;  %vm2374_vm7 = vweird.f32 %v2368_v2  ;;  %v2378_v1 = vand.u32 2147483647, %v2368_v2 }
0x21b4   :  { %v2332_v8 = vmul.f32 %v5446_v43, %v2331_v41 }
0x21b5   :  { %v2381_v62 = vor.u32 1.1754944e-38, %v2380_v9  ;;  %vm2379_vm9 = vcmp.eq.f32.partialorder %v2378_v1, 8.507059e+37 }
0x21b6   :  { %v2333_v61 = vadd.f32 %v5446_v43, %v2332_v8 }
0x21b8   :  { %v2337_v29 = vsel %vm2336_vm3, %v5446_v43, %v2333_v61 }
0x21b9   :  { %v2342_v47 = vsel %vm2339_vm4, %v2341_v18, %v2337_v29  ;;  %v5450_v13 = vpop.eup %5449 }
0x21ba   :  { %v2370_v11 = vmul.f32 %v5450_v13, %v2368_v2  ;;  %vm2375_vm5 = vweird.f32 %v5450_v13  ;;  %v2348_v51 = vmul.f32 %v2346_v23, %v2342_v47 }
0x21bb   :  { %vm2376_vm8 = vmor %vm2374_vm7, %vm2375_vm5 }
0x21bc   :  { %v2371_v24 = vsub.f32 1.0, %v2370_v11 }
0x21be   :  { %v2372_v25 = vmul.f32 %v5450_v13, %v2371_v24 }
0x21c0   :  { %v2373_v54 = vadd.f32 %v5450_v13, %v2372_v25 }
0x21c2   :  { %v2377_v3 = vsel %vm2376_vm8, %v5450_v13, %v2373_v54  ;;  %vm343_vm8 = vcmask 523526  }
0x21c3   :  { %v2382_v56 = vsel %vm2379_vm9, %v2381_v62, %v2377_v3  ;;  %vm644_vm9 = vcmask 519426  }
0x21c4   :  { %v2388_v35 = vmul.f32 %v2386_v34, %v2382_v56 }
0x21ff   :  { %v2351_v52 = vpop.permute.xlu2 %2350 }
0x2200   :  { %v2353_v19 = vmul.f32 %v2351_v52, %v2342_v47 }
0x2202   :  { %2355 = vrot.lane.b32.xlu1 %v2353_v19, %s5793_s15 }
0x2218   :  { %v2391_v42 = vpop.permute.xlu1 %2390 }
0x2219   :  { %v2393_v32 = vmul.f32 %v2391_v42, %v2382_v56 }
0x221b   :  { %2395 = vrot.lane.b32.xlu0 %v2393_v32, %s5793_s15 }
0x2274   :  { %v2356_v17 = vpop.permute.xlu1 %2355 }
0x2275   :  { %v6722_v12 = vadd.f32 %v2356_v17, %v2348_v51 }
0x2277   :  { %5451 = vtanh.f32 %v6722_v12 }
0x227d   :  { %v5452_v33 = vpop.eup %5451 }
0x227e   :  { %2361 = vrot.lane.b32.xlu0 %v5452_v33, %s5792_s4 }
0x228d   :  { %v2396_v37 = vpop.permute.xlu0 %2395 }
0x228e   :  { %v6727_v38 = vadd.f32 %v2396_v37, %v2388_v35 }
0x2290   :  { %5453 = vtanh.f32 %v6727_v38 }
0x2296   :  { %v5454_v40 = vpop.eup %5453 }
0x2297   :  { %2401 = vrot.lane.b32.xlu2 %v5454_v40, %s5792_s4 }
0x22f0   :  { %v2362_v27 = vpop.permute.xlu0 %2361 }
0x22f1   :  { %v2402_v4 = vpop.permute.xlu2 %2401  ;;  %v2364_v5 = vmul.f32 %v2362_v27, %v2342_v47 }
0x22f2   :  { %v6731_v57 = vmul.f32 %v2402_v4, %v2382_v56 }
0x22f3   :  { %2406 = vrot.lane.b32.xlu1 %v2364_v5, %s5793_s15 }
0x22f4   :  { %v2415_v58 = vrot.slane %v6731_v57, 6 }
0x22f6   :  { %2416 = vrot.lane.b32.xlu2 %v2415_v58, %s5792_s4 }
0x2350   :  { %v2417_v20 = vpop.permute.xlu2 %2416 }
0x2365   :  { %v6736_v43 = vpop.permute.xlu1 %2406 }
0x2366   :  { %v2419_v60 = vsel %vm113_vm2, %v6736_v43, %v2417_v20 }
0x2367   :  { %v2421_v46 = vrot.slane %v2419_v60, 4 }
0x2369   :  { %5135 = vmatmul.msk.f32.vlgmr.msra.gmra.mxu0 %vm208_vm12, %v2421_v46  ;;  %5136 = vmatmul.msk.f32.vlgmr.msra.gmra.mxu1 %vm208_vm12, %v2421_v46 }
0x23e6   :  { %v2441_v41 = vpop.f32.mrf.mxu0  ;;  %v2461_v8 = vpop.f32.mrf.mxu1 }
0x23e7   :  { %v2466_v2 = vrot.slane %v2441_v41, 2  ;;  %v2470_v61 = vadd.f32 %v2469_v59, %v2461_v8  ;;  %v2532_v41 = vrot.slane %v6727_v38, 2 }
0x23e9   :  { %v2468_v15 = vadd.f32 %v2466_v2, %v2464_v50  ;;  %5455 = vtanh.f32 %v2470_v61  ;;  %v5138_v52 = vmul.f32 -1.442695, %v2470_v61  ;;  %v2492_v50 = vrot.slane %v6722_v12, 6 }
0x23eb   :  { %5457 = vtanh.f32 %v2468_v15  ;;  %v5137_v47 = vmul.f32 -1.442695, %v2468_v15 }
0x23ec   :  { %5459 = vpow2.f32 %v5138_v52 }
0x23ed   :  { %5461 = vpow2.f32 %v5137_v47  ;;  %v2573_v47 = vld [vmem:[%s7752_s6 + $0x40] sm:$0xff] }
0x23ef   :  { %v5456_v29 = vpop.eup %5455 }
0x23f0   :  { %2536 = vrot.lane.b32.xlu0 %v5456_v29, %s5792_s4 }
0x23f1   :  { %v5458_v18 = vpop.eup %5457 }
0x23f2   :  { %2496 = vrot.lane.b32.xlu1 %v5458_v18, %s5792_s4  ;;  %v5460_v19 = vpop.eup %5459  ;;  %v2576_v18 = vld [vmem:[%s7752_s6 + $0x58] sm:$0xff] }
0x23f3   :  { %v5462_v13 = vpop.eup %5461  ;;  %v2514_v11 = vadd.f32 1.0, %v5460_v19  ;;  %v2574_v19 = vld [vmem:[%s7752_s6 + $0x48] sm:$0xff] }
0x23f4   :  { %v2474_v24 = vadd.f32 1.0, %v5462_v13 }
0x23f5   :  { %5463 = vrcp.f32 %v2514_v11  ;;  %v2526_v23 = vand.u32 2147483648, %v2514_v11  ;;  %vm2520_vm13 = vweird.f32 %v2514_v11  ;;  %v2524_v51 = vand.u32 2147483647, %v2514_v11 }
0x23f6   :  { %5465 = vrcp.f32 %v2474_v24  ;;  %v2486_v33 = vand.u32 2147483648, %v2474_v24  ;;  %vm2480_vm3 = vweird.f32 %v2474_v24  ;;  %v2484_v35 = vand.u32 2147483647, %v2474_v24 }
0x23f7   :  { %v2527_v37 = vor.u32 1.1754944e-38, %v2526_v23  ;;  %vm2525_vm5 = vcmp.eq.f32.partialorder %v2524_v51, 8.507059e+37  ;;  %v6883_v23 = vld [vmem:[%s7753_s8 + $0x30] sm:$0xff]  ;;  %v6888_v51 = vld [vmem:[%s7753_s8 + $0x20] sm:$0xff] }
0x23f8   :  { %v2487_v5 = vor.u32 1.1754944e-38, %v2486_v33  ;;  %vm2485_vm7 = vcmp.eq.f32.partialorder %v2484_v35, 8.507059e+37  ;;  %v6902_v33 = vld [vmem:[%s7753_s8] sm:$0xff] }
0x23fb   :  { %v5464_v25 = vpop.eup %5463 }
0x23fc   :  { %v5466_v54 = vpop.eup %5465  ;;  %v2516_v9 = vmul.f32 %v5464_v25, %v2514_v11  ;;  %vm2521_vm10 = vweird.f32 %v5464_v25 }
0x23fd   :  { %v2476_v1 = vmul.f32 %v5466_v54, %v2474_v24  ;;  %vm2481_vm15 = vweird.f32 %v5466_v54  ;;  %vm2522_vm0 = vmor %vm2520_vm13, %vm2521_vm10  ;;  %vm493_vm10 = vcmask 521476   ;;  %vm792_vm13 = vcmask 517376  }
0x23fe   :  { %v2517_v3 = vsub.f32 1.0, %v2516_v9  ;;  %vm2482_vm4 = vmor %vm2480_vm3, %vm2481_vm15  ;;  %v2568_v9 = vld [vmem:[%s7752_s6 + $0x18] sm:$0xff] }
0x23ff   :  { %v2477_v62 = vsub.f32 1.0, %v2476_v1  ;;  %v2565_v1 = vld [vmem:[%s7752_s6] sm:$0xff] }
0x2400   :  { %v2518_v42 = vmul.f32 %v5464_v25, %v2517_v3  ;;  %v2566_v3 = vld [vmem:[%s7752_s6 + $0x8] sm:$0xff] }
0x2401   :  { %v2478_v56 = vmul.f32 %v5466_v54, %v2477_v62  ;;  %v6855_v62 = vld [vmem:[%s7753_s8 + $0x70] sm:$0xff] }
0x2402   :  { %v2519_v32 = vadd.f32 %v5464_v25, %v2518_v42  ;;  %v6860_v42 = vld [vmem:[%s7753_s8 + $0x60] sm:$0xff]  ;;  %2689 = vmatpush.msrb.mxu0 %v6855_v62 }
0x2403   :  { %v2479_v17 = vadd.f32 %v5466_v54, %v2478_v56  ;;  %v6867_v56 = vld [vmem:[%s7753_s8 + $0x50] sm:$0xff] }
0x2404   :  { %v2523_v34 = vsel %vm2522_vm0, %v5464_v25, %v2519_v32  ;;  %2690 = vmatpush.msrb.mxu0 %v6860_v42  ;;  %v6874_v32 = vld [vmem:[%s7753_s8 + $0x40] sm:$0xff] }
0x2405   :  { %v2483_v40 = vsel %vm2482_vm4, %v5466_v54, %v2479_v17  ;;  %v2528_v4 = vsel %vm2525_vm5, %v2527_v37, %v2523_v34  ;;  %v6895_v17 = vld [vmem:[%s7753_s8 + $0x10] sm:$0xff]  ;;  %v6912_v34 = vld [vmem:[%s7753_s8 + $0x78] sm:$0xff]  ;;  %v6924_v37 = vld [vmem:[%s7753_s8 + $0x68] sm:$0xff] }
0x2406   :  { %v2488_v60 = vsel %vm2485_vm7, %v2487_v5, %v2483_v40  ;;  %v2534_v8 = vmul.f32 %v2532_v41, %v2528_v4  ;;  %2691 = vmatpush.msrb.mxu0 %v6867_v56  ;;  %2709 = vmatpush.msrb.mxu1 %v6912_v34  ;;  %v6929_v40 = vld [vmem:[%s7753_s8 + $0x58] sm:$0xff] }
0x2407   :  { %v2494_v15 = vmul.f32 %v2492_v50, %v2488_v60 }
0x2408   :  { %2692 = vmatpush.msrb.mxu0 %v6874_v32  ;;  %2710 = vmatpush.msrb.mxu1 %v6924_v37 }
0x240a   :  { %2693 = vmatpush.msrb.mxu0 %v6883_v23  ;;  %2711 = vmatpush.msrb.mxu1 %v6929_v40 }
0x240c   :  { %2694 = vmatpush.msrb.mxu0 %v6888_v51 }
0x240e   :  { %2695 = vmatpush.msrb.mxu0 %v6895_v17 }
0x2410   :  { %2696 = vmatpush.msrb.mxu0 %v6902_v33 }
0x2411   :  { %2697 = vmatmul.f32.vlgmr.msrb.gmra.mxu0 %v5791_v21 }
0x2412   :  { %2828 = vmatpush.msra.mxu0 %v6855_v62 }
0x2414   :  { %2829 = vmatpush.msra.mxu0 %v6860_v42 }
0x2416   :  { %2830 = vmatpush.msra.mxu0 %v6867_v56 }
0x2418   :  { %2831 = vmatpush.msra.mxu0 %v6874_v32 }
0x241a   :  { %2832 = vmatpush.msra.mxu0 %v6883_v23 }
0x241c   :  { %2833 = vmatpush.msra.mxu0 %v6888_v51 }
0x241e   :  { %2834 = vmatpush.msra.mxu0 %v6895_v17 }
0x2420   :  { %2835 = vmatpush.msra.mxu0 %v6902_v33 }
0x2422   :  { %3126 = vmatpush.msrb.mxu0 %v6855_v62 }
0x2424   :  { %3127 = vmatpush.msrb.mxu0 %v6860_v42 }
0x2426   :  { %3128 = vmatpush.msrb.mxu0 %v6867_v56 }
0x2428   :  { %3129 = vmatpush.msrb.mxu0 %v6874_v32 }
0x242a   :  { %3130 = vmatpush.msrb.mxu0 %v6883_v23 }
0x242c   :  { %3131 = vmatpush.msrb.mxu0 %v6888_v51 }
0x242e   :  { %3132 = vmatpush.msrb.mxu0 %v6895_v17 }
0x2430   :  { %3133 = vmatpush.msrb.mxu0 %v6902_v33 }
0x2462   :  { %v2537_v27 = vpop.permute.xlu0 %2536 }
0x2463   :  { %v2539_v58 = vmul.f32 %v2537_v27, %v2528_v4  ;;  %v6936_v27 = vld [vmem:[%s7753_s8 + $0x48] sm:$0xff] }
0x2464   :  { %v2497_v20 = vpop.permute.xlu1 %2496  ;;  %2712 = vmatpush.msrb.mxu1 %v6936_v27 }
0x2465   :  { %v2499_v46 = vmul.f32 %v2497_v20, %v2488_v60  ;;  %2541 = vrot.lane.b32.xlu2 %v2539_v58, %s5793_s15  ;;  %v6956_v20 = vld [vmem:[%s7753_s8 + $0x28] sm:$0xff] }
0x2467   :  { %2501 = vrot.lane.b32.xlu0 %v2499_v46, %s5793_s15 }
0x246f   :  { %2114 = vrot.lane.b32.xlu0 %v6682_v22, %s5792_s4 }
0x2477   :  { %1822 = vrot.lane.b32.xlu0 %v6599_v31, %s5792_s4 }
0x24bf   :  { %v2542_v59 = vpop.permute.xlu2 %2541 }
0x24c0   :  { %v2544_v2 = vadd.f32 %v2542_v59, %v2534_v8 }
0x24c2   :  { %5467 = vtanh.f32 %v2544_v2  ;;  %v2581_v2 = vld [vmem:[%s7754_s7] sm:$0x3] }
0x24c3   :  { %v2584_v50 = vperm.slane %v2581_v2, 1 }
0x24c8   :  { %v5468_v61 = vpop.eup %5467 }
0x24c9   :  { %2547 = vrot.lane.b32.xlu1 %v5468_v61, %s5792_s4  ;;  %v2583_v61 = vperm.slane %v2581_v2, 0 }
0x24d1   :  { %2262 = vrot.lane.b32.xlu1 %v6706_v10, %s5792_s4 }
0x24d9   :  { %1525 = vrot.lane.b32.xlu1 %v6478_v6, %s5792_s4  ;;  %v2502_v22 = vpop.permute.xlu0 %2501 }
0x24da   :  { %v2504_v31 = vadd.f32 %v2502_v22, %v2494_v15 }
0x24dc   :  { %5469 = vtanh.f32 %v2504_v31 }
0x24e1   :  { %1968 = vrot.lane.b32.xlu1 %v6656_v44, %s5792_s4  ;;  %v2115_v38 = vpop.permute.xlu0 %2114 }
0x24e2   :  { %v5470_v29 = vpop.eup %5469  ;;  %2117 = vst.msk [vmem:[#allocation3] sm:$0xc0] %vm343_vm8, %v2115_v38 }
0x24e3   :  { %2507 = vrot.lane.b32.xlu2 %v5470_v29, %s5792_s4  ;;  %v2698_v29 = vpop.f32.mrf.mxu0 }
0x24e9   :  { %1233 = vrot.lane.b32.xlu1 %v6399_v36, %s5792_s4  ;;  %v1823_v10 = vpop.permute.xlu0 %1822 }
0x24ea   :  { %1825 = vst.msk [vmem:[#allocation3 + $0x8] sm:$0xc] %vm644_vm9, %v1823_v10 }
0x24eb   :  { %2411 = vrot.lane.b32.xlu2 %v6731_v57, %s5792_s4  ;;  %v2578_v57 = vld [vmem:[%s7752_s6 + $0x68] sm:$0xff] }
0x24f1   :  { %490 = vrot.lane.b32.xlu1 %v6124_v26, %s5792_s4 }
0x24f3   :  { %1673 = vrot.lane.b32.xlu2 %v6518_v53, %s5792_s4 }
0x24fb   :  { %936 = vrot.lane.b32.xlu2 %v6282_v28, %s5792_s4  ;;  %v2580_v28 = vld [vmem:[%s7752_s6 + $0x78] sm:$0xff] }
0x24fc   :  { %2636 = vmatpush.msrb.mxu3 %v2580_v28 }
0x24fe   :  { %2637 = vmatpush.msrb.mxu3 %v2578_v57 }
0x2500   :  { %2638 = vmatpush.msrb.mxu3 %v2576_v18 }
0x2502   :  { %2639 = vmatpush.msrb.mxu3 %v2574_v19 }
0x2503   :  { %1379 = vrot.lane.b32.xlu2 %v6438_v48, %s5792_s4  ;;  %v2577_v48 = vld [vmem:[%s7752_s6 + $0x60] sm:$0xff] }
0x250b   :  { %641 = vrot.lane.b32.xlu2 %v6163_v45, %s5792_s4  ;;  %v2579_v45 = vld [vmem:[%s7752_s6 + $0x70] sm:$0xff] }
0x250c   :  { %2607 = vmatpush.msra.mxu2 %v2579_v45 }
0x250e   :  { %2608 = vmatpush.msra.mxu2 %v2577_v48 }
0x253b   :  { %v2548_v36 = vpop.permute.xlu1 %2547 }
0x253c   :  { %v2550_v6 = vmul.f32 %v2548_v36, %v2528_v4  ;;  %v6946_v4 = vld [vmem:[%s7753_s8 + $0x38] sm:$0xff] }
0x253d   :  { %v2508_v44 = vpop.permute.xlu2 %2507  ;;  %2713 = vmatpush.msrb.mxu1 %v6946_v4 }
0x253e   :  { %v2510_v12 = vmul.f32 %v2508_v44, %v2488_v60  ;;  %2557 = vrot.lane.b32.xlu0 %v2550_v6, %s5792_s4  ;;  %v6965_v60 = vld [vmem:[%s7753_s8 + $0x18] sm:$0xff] }
0x253f   :  { %2714 = vmatpush.msrb.mxu1 %v6956_v20 }
0x2540   :  { %2552 = vrot.lane.b32.xlu1 %v2510_v12, %s5793_s15 }
0x2541   :  { %2715 = vmatpush.msrb.mxu1 %v6965_v60 }
0x2543   :  { %v2263_v26 = vpop.permute.xlu1 %2262 }
0x2544   :  { %2265 = vst.msk [vmem:[#allocation3] sm:$0x30] %vm493_vm10, %v2263_v26 }
0x2545   :  { %v2412_v53 = vpop.permute.xlu2 %2411 }
0x2546   :  { %2414 = vst.msk [vmem:[#allocation3] sm:$0xc] %vm644_vm9, %v2412_v53  ;;  %1084 = vrot.lane.b32.xlu0 %v6360_v30, %s5792_s4  ;;  %v2575_v30 = vld [vmem:[%s7752_s6 + $0x50] sm:$0xff] }
0x2547   :  { %2609 = vmatpush.msra.mxu2 %v2575_v30 }
0x2549   :  { %2610 = vmatpush.msra.mxu2 %v2573_v47 }
0x254b   :  { %v1526_v52 = vpop.permute.xlu1 %1525 }
0x254c   :  { %1528 = vst.msk [vmem:[#allocation3 + $0x8] sm:$0xc0] %vm343_vm8, %v1526_v52 }
0x254d   :  { %v1674_v13 = vpop.permute.xlu2 %1673 }
0x254e   :  { %1676 = vst.msk [vmem:[#allocation3 + $0x8] sm:$0x30] %vm493_vm10, %v1674_v13  ;;  %340 = vrot.lane.b32.xlu0 %v6085_v63, %s5792_s4 }
0x2553   :  { %v1969_v11 = vpop.permute.xlu1 %1968 }
0x2554   :  { %1971 = vst.msk [vmem:[#allocation3 + $0x8] sm:$0x3] %vm792_vm13, %v1969_v11 }
0x2555   :  { %v937_v24 = vpop.permute.xlu2 %936 }
0x2556   :  { %939 = vst.msk [vmem:[#allocation3 + $0x10] sm:$0xc0] %vm343_vm8, %v937_v24  ;;  %789 = vrot.lane.b32.xlu0 %v6202_v49, %s5792_s4 }
0x2557   :  { %1966 = vst.msk [vmem:[#allocation3 + $0x10] sm:$0xc0] %vm786_vm14, %v6661_v16  ;;  %v2569_v16 = vld [vmem:[%s7752_s6 + $0x20] sm:$0xff] }
0x255b   :  { %v1234_v25 = vpop.permute.xlu1 %1233  ;;  %v2562_v41 = vld [vmem:[#allocation3 + $0x8] sm:$0xff] }
0x255c   :  { %1236 = vst.msk [vmem:[#allocation3 + $0x10] sm:$0xc] %vm644_vm9, %v1234_v25 }
0x255d   :  { %1671 = vst.msk [vmem:[#allocation3 + $0x10] sm:$0xc] %vm487_vm6, %v6523_v39  ;;  %v1380_v63 = vpop.permute.xlu2 %1379  ;;  %v2571_v39 = vld [vmem:[%s7752_s6 + $0x30] sm:$0xff] }
0x255e   :  { %1382 = vst.msk [vmem:[#allocation3 + $0x10] sm:$0x3] %vm792_vm13, %v1380_v63  ;;  %2611 = vmatpush.msra.mxu2 %v2571_v39 }
0x255f   :  { %1523 = vst.msk [vmem:[#allocation3 + $0x10] sm:$0x3] %vm337_vm11, %v6482_v7  ;;  %v2572_v7 = vld [vmem:[%s7752_s6 + $0x38] sm:$0xff] }
0x2560   :  { %2640 = vmatpush.msrb.mxu3 %v2572_v7  ;;  %2612 = vmatpush.msra.mxu2 %v2569_v16 }
0x2563   :  { %v491_v54 = vpop.permute.xlu1 %490 }
0x2564   :  { %494 = vst.msk [vmem:[#allocation3 + $0x18] sm:$0x30] %vm493_vm10, %v491_v54 }
0x2565   :  { %2409 = vst.msk [vmem:[#allocation3 + $0x18] sm:$0x30] %vm638_vm1, %v6736_v43  ;;  %v642_v49 = vpop.permute.xlu2 %641  ;;  %v2570_v43 = vld [vmem:[%s7752_s6 + $0x28] sm:$0xff] }
0x2566   :  { %645 = vst.msk [vmem:[#allocation3 + $0x18] sm:$0xc] %vm644_vm9, %v642_v49  ;;  %2641 = vmatpush.msrb.mxu3 %v2570_v43 }
0x2567   :  { %2260 = vst.msk [vmem:[#allocation3 + $0x18] sm:$0xc] %vm487_vm6, %v6711_v14  ;;  %v2567_v14 = vld [vmem:[%s7752_s6 + $0x10] sm:$0xff] }
0x2568   :  { %2613 = vmatpush.msra.mxu2 %v2567_v14  ;;  %2642 = vmatpush.msrb.mxu3 %v2568_v9 }
0x256a   :  { %2614 = vmatpush.msra.mxu2 %v2565_v1  ;;  %2643 = vmatpush.msrb.mxu3 %v2566_v3 }
0x256c   :  { %2977 = vmatpush.msrb.mxu2 %v6855_v62  ;;  %2997 = vmatpush.msra.mxu3 %v6912_v34 }
0x256e   :  { %2978 = vmatpush.msrb.mxu2 %v6860_v42  ;;  %2998 = vmatpush.msra.mxu3 %v6924_v37 }
0x2570   :  { %2979 = vmatpush.msrb.mxu2 %v6867_v56  ;;  %2999 = vmatpush.msra.mxu3 %v6929_v40 }
0x2572   :  { %2980 = vmatpush.msrb.mxu2 %v6874_v32  ;;  %3000 = vmatpush.msra.mxu3 %v6936_v27 }
0x2574   :  { %2981 = vmatpush.msrb.mxu2 %v6883_v23  ;;  %3001 = vmatpush.msra.mxu3 %v6946_v4 }
0x2576   :  { %2982 = vmatpush.msrb.mxu2 %v6888_v51  ;;  %3002 = vmatpush.msra.mxu3 %v6956_v20 }
0x2578   :  { %2983 = vmatpush.msrb.mxu2 %v6895_v17  ;;  %3003 = vmatpush.msra.mxu3 %v6965_v60 }
0x257a   :  { %2984 = vmatpush.msrb.mxu2 %v6902_v33 }
0x25b0   :  { %v2558_v35 = vpop.permute.xlu0 %2557 }
0x25b1   :  { %2560 = vst.msk [vmem:[#allocation3] sm:$0x3] %vm792_vm13, %v2558_v35 }
0x25b2   :  { %v2553_v8 = vpop.permute.xlu1 %2552 }
0x25b8   :  { %v1085_v5 = vpop.permute.xlu0 %1084  ;;  %v2561_v58 = vld [vmem:[#allocation3] sm:$0xff] }
0x25b9   :  { %1087 = vst.msk [vmem:[#allocation3 + $0x10] sm:$0x30] %vm493_vm10, %v1085_v5  ;;  %5139 = vmatmul.msk.f32.vlgmr.msra.gmra.mxu2 %vm208_vm12, %v2561_v58  ;;  %5143 = vmatmul.msk.f32.vlgmr.msrb.gmra.mxu3 %vm208_vm12, %v2561_v58 }
0x25ba   :  { %1820 = vst.msk [vmem:[#allocation3 + $0x10] sm:$0x30] %vm638_vm1, %v6604_v0  ;;  %3272 = vmatpush.msra.mxu2 %v6855_v62  ;;  %v6974_v0 = vld [vmem:[%s7753_s8 + $0x8] sm:$0xff] }
0x25bb   :  { %2716 = vmatpush.msrb.mxu1 %v6974_v0  ;;  %3004 = vmatpush.msra.mxu3 %v6974_v0 }
0x25bc   :  { %3273 = vmatpush.msra.mxu2 %v6860_v42  ;;  %2717 = vmatmul.f32.vlgmr.msrb.gmra.mxu1 %v5791_v21 }
0x25bd   :  { %2848 = vmatpush.msra.mxu1 %v6912_v34  ;;  %3292 = vmatpush.msrb.mxu3 %v6912_v34 }
0x25be   :  { %3274 = vmatpush.msra.mxu2 %v6867_v56 }
0x25bf   :  { %2849 = vmatpush.msra.mxu1 %v6924_v37  ;;  %3293 = vmatpush.msrb.mxu3 %v6924_v37 }
0x25c0   :  { %v341_v46 = vpop.permute.xlu0 %340  ;;  %3275 = vmatpush.msra.mxu2 %v6874_v32 }
0x25c1   :  { %344 = vst.msk [vmem:[#allocation3 + $0x18] sm:$0xc0] %vm343_vm8, %v341_v46  ;;  %5140 = vmatmul.msk.f32.gmra.mxu2 %vm208_vm12, %v2562_v41  ;;  %5144 = vmatmul.msk.f32.gmra.mxu3 %vm208_vm12, %v2562_v41  ;;  %v2563_v59 = vld [vmem:[#allocation3 + $0x10] sm:$0xff] }
0x25c2   :  { %2555 = vst.msk [vmem:[#allocation3 + $0x18] sm:$0xc0] %vm786_vm14, %v2553_v8  ;;  %3276 = vmatpush.msra.mxu2 %v6883_v23  ;;  %2850 = vmatpush.msra.mxu1 %v6929_v40 }
0x25c3   :  { %3294 = vmatpush.msrb.mxu3 %v6929_v40 }
0x25c4   :  { %3277 = vmatpush.msra.mxu2 %v6888_v51  ;;  %2851 = vmatpush.msra.mxu1 %v6936_v27 }
0x25c5   :  { %3295 = vmatpush.msrb.mxu3 %v6936_v27 }
0x25c6   :  { %3278 = vmatpush.msra.mxu2 %v6895_v17  ;;  %2852 = vmatpush.msra.mxu1 %v6946_v4 }
0x25c7   :  { %3296 = vmatpush.msrb.mxu3 %v6946_v4 }
0x25c8   :  { %v790_v21 = vpop.permute.xlu0 %789  ;;  %3279 = vmatpush.msra.mxu2 %v6902_v33  ;;  %2853 = vmatpush.msra.mxu1 %v6956_v20 }
0x25c9   :  { %793 = vst.msk [vmem:[#allocation3 + $0x18] sm:$0x3] %vm792_vm13, %v790_v21  ;;  %5141 = vmatmul.msk.f32.gmra.mxu2 %vm208_vm12, %v2563_v59  ;;  %5145 = vmatmul.msk.f32.gmra.mxu3 %vm208_vm12, %v2563_v59 }
0x25ca   :  { %2112 = vst.msk [vmem:[#allocation3 + $0x18] sm:$0x3] %vm337_vm11, %v6686_v55  ;;  %3297 = vmatpush.msrb.mxu3 %v6956_v20  ;;  %2854 = vmatpush.msra.mxu1 %v6965_v60 }
0x25cc   :  { %3298 = vmatpush.msrb.mxu3 %v6965_v60  ;;  %2855 = vmatpush.msra.mxu1 %v6974_v0 }
0x25ce   :  { %3299 = vmatpush.msrb.mxu3 %v6974_v0  ;;  %3146 = vmatpush.msrb.mxu1 %v6912_v34 }
0x25d0   :  { %3147 = vmatpush.msrb.mxu1 %v6924_v37 }
0x25d1   :  { %v2564_v55 = vld [vmem:[#allocation3 + $0x18] sm:$0xff] }
0x25d2   :  { %5142 = vmatmul.msk.f32.gmra.mxu2 %vm208_vm12, %v2564_v55  ;;  %5146 = vmatmul.msk.f32.gmra.mxu3 %vm208_vm12, %v2564_v55 }
0x25d3   :  { %3148 = vmatpush.msrb.mxu1 %v6929_v40 }
0x25d5   :  { %3149 = vmatpush.msrb.mxu1 %v6936_v27 }
0x25d7   :  { %3150 = vmatpush.msrb.mxu1 %v6946_v4 }
0x25d9   :  { %3151 = vmatpush.msrb.mxu1 %v6956_v20 }
0x25db   :  { %3152 = vmatpush.msrb.mxu1 %v6965_v60 }
0x25dd   :  { %3153 = vmatpush.msrb.mxu1 %v6974_v0 }
0x2639   :  { %v2718_v19 = vpop.f32.mrf.mxu1 }
0x263a   :  { %v2725_v13 = vrot.slane %v2718_v19, 2 }
0x263c   :  { %v2616_v15 = vpop.f32.mrf.mxu2  ;;  %v2645_v22 = vpop.f32.mrf.mxu3 }
0x263d   :  { %v2617_v31 = vadd.f32 %v2616_v15, %v2583_v61  ;;  %v2646_v38 = vadd.f32 %v2645_v22, %v2584_v50 }
0x263f   :  { %2657 = vst [vmem:[#allocation2 + $0x30] sm:$0xff] %v2617_v31 }
0x2640   :  { %2658 = vst [vmem:[#allocation2] sm:$0xff] %v2646_v38 }
0x2644   :  { %v2619_v10 = vpop.f32.mrf.mxu2  ;;  %v2648_v36 = vpop.f32.mrf.mxu3 }
0x2645   :  { %v2620_v6 = vadd.f32 %v2619_v10, %v2583_v61  ;;  %v2649_v44 = vadd.f32 %v2648_v36, %v2584_v50 }
0x2646   :  { %v2721_v12 = vld [vmem:[#allocation2 + $0x30] sm:$0x3] }
0x2647   :  { %2659 = vst [vmem:[#allocation2 + $0x18] sm:$0xff] %v2620_v6  ;;  %v2722_v26 = vadd.f32 %v2721_v12, %v2698_v29 }
0x2648   :  { %2660 = vst [vmem:[#allocation2 + $0x10] sm:$0xff] %v2649_v44 }
0x2649   :  { %5471 = vtanh.f32 %v2722_v26  ;;  %v5147_v63 = vmul.f32 -1.442695, %v2722_v26 }
0x264c   :  { %v2622_v53 = vpop.f32.mrf.mxu2  ;;  %v2651_v45 = vpop.f32.mrf.mxu3 }
0x264d   :  { %v2623_v28 = vadd.f32 %v2622_v53, %v2583_v61  ;;  %v2652_v48 = vadd.f32 %v2651_v45, %v2584_v50 }
0x264f   :  { %v5472_v57 = vpop.eup %5471  ;;  %2661 = vst [vmem:[#allocation2 + $0x8] sm:$0xff] %v2623_v28 }
0x2650   :  { %2662 = vst [vmem:[#allocation2 + $0x20] sm:$0xff] %v2652_v48  ;;  %2750 = vrot.lane.b32.xlu0 %v5472_v57, %s5792_s4 }
0x2655   :  { %v2625_v30 = vpop.f32.mrf.mxu2  ;;  %v2654_v18 = vpop.f32.mrf.mxu3 }
0x2656   :  { %v2626_v52 = vadd.f32 %v2625_v30, %v2583_v61  ;;  %v2655_v47 = vadd.f32 %v2654_v18, %v2584_v50 }
0x2658   :  { %2663 = vst [vmem:[#allocation2 + $0x28] sm:$0xff] %v2626_v52 }
0x2659   :  { %2664 = vst [vmem:[#allocation2 + $0x38] sm:$0xff] %v2655_v47 }
0x2660   :  { %v2723_v11 = vld [vmem:[#allocation2 + $0x38] sm:$0xc0] }
0x2661   :  { %v2727_v24 = vadd.f32 %v2725_v13, %v2723_v11 }
0x2663   :  { %5473 = vtanh.f32 %v2727_v24  ;;  %v5148_v54 = vmul.f32 -1.442695, %v2727_v24 }
0x2664   :  { %5475 = vpow2.f32 %v5147_v63 }
0x2665   :  { %5477 = vpow2.f32 %v5148_v54 }
0x2669   :  { %v5474_v25 = vpop.eup %5473 }
0x266a   :  { %2787 = vrot.lane.b32.xlu2 %v5474_v25, %s5792_s4  ;;  %v5476_v49 = vpop.eup %5475 }
0x266b   :  { %v5478_v39 = vpop.eup %5477  ;;  %v2731_v7 = vadd.f32 1.0, %v5476_v49  ;;  %v2860_v49 = vld [vmem:[#allocation2 + $0x30] sm:$0xc] }
0x266c   :  { %v2768_v16 = vadd.f32 1.0, %v5478_v39  ;;  %v2865_v39 = vld [vmem:[#allocation2 + $0x38] sm:$0x30] }
0x266d   :  { %5479 = vrcp.f32 %v2731_v7  ;;  %v2743_v41 = vand.u32 2147483648, %v2731_v7  ;;  %vm2737_vm6 = vweird.f32 %v2731_v7  ;;  %v2741_v8 = vand.u32 2147483647, %v2731_v7 }
0x266e   :  { %5481 = vrcp.f32 %v2768_v16  ;;  %v2780_v59 = vand.u32 2147483648, %v2768_v16  ;;  %vm2774_vm0 = vweird.f32 %v2768_v16  ;;  %v2778_v2 = vand.u32 2147483647, %v2768_v16 }
0x266f   :  { %v2744_v61 = vor.u32 1.1754944e-38, %v2743_v41  ;;  %vm2742_vm4 = vcmp.eq.f32.partialorder %v2741_v8, 8.507059e+37 }
0x2670   :  { %v2781_v31 = vor.u32 1.1754944e-38, %v2780_v59  ;;  %vm2779_vm5 = vcmp.eq.f32.partialorder %v2778_v2, 8.507059e+37 }
0x2673   :  { %v5480_v43 = vpop.eup %5479 }
0x2674   :  { %v5482_v14 = vpop.eup %5481  ;;  %v2733_v9 = vmul.f32 %v5480_v43, %v2731_v7  ;;  %vm2738_vm11 = vweird.f32 %v5480_v43 }
0x2675   :  { %v2770_v1 = vmul.f32 %v5482_v14, %v2768_v16  ;;  %vm2775_vm1 = vweird.f32 %v5482_v14  ;;  %vm2739_vm15 = vmor %vm2737_vm6, %vm2738_vm11 }
0x2676   :  { %v2734_v3 = vsub.f32 1.0, %v2733_v9  ;;  %vm2776_vm3 = vmor %vm2774_vm0, %vm2775_vm1 }
0x2677   :  { %v2771_v35 = vsub.f32 1.0, %v2770_v1 }
0x2678   :  { %v2735_v5 = vmul.f32 %v5480_v43, %v2734_v3 }
0x2679   :  { %v2772_v58 = vmul.f32 %v5482_v14, %v2771_v35 }
0x267a   :  { %v2736_v46 = vadd.f32 %v5480_v43, %v2735_v5 }
0x267b   :  { %v2773_v21 = vadd.f32 %v5482_v14, %v2772_v58 }
0x267c   :  { %v2740_v55 = vsel %vm2739_vm15, %v5480_v43, %v2736_v46 }
0x267d   :  { %v2777_v50 = vsel %vm2776_vm3, %v5482_v14, %v2773_v21  ;;  %v2745_v22 = vsel %vm2742_vm4, %v2744_v61, %v2740_v55 }
0x267e   :  { %v2782_v10 = vsel %vm2779_vm5, %v2781_v31, %v2777_v50  ;;  %v2748_v6 = vmul.f32 0.0, %v2745_v22 }
0x267f   :  { %v2785_v53 = vmul.f32 0.0, %v2782_v10 }
0x26c2   :  { %v2751_v15 = vpop.permute.xlu0 %2750 }
0x26c3   :  { %v2753_v38 = vmul.f32 %v2751_v15, %v2745_v22 }
0x26c4   :  { %v2788_v29 = vpop.permute.xlu2 %2787 }
0x26c5   :  { %v2790_v36 = vmul.f32 %v2788_v29, %v2782_v10  ;;  %2755 = vrot.lane.b32.xlu2 %v2753_v38, %s5793_s15 }
0x26c7   :  { %2792 = vrot.lane.b32.xlu1 %v2790_v36, %s5793_s15 }
0x271f   :  { %v2756_v44 = vpop.permute.xlu2 %2755 }
0x2720   :  { %v7038_v12 = vadd.f32 %v2756_v44, %v2748_v6 }
0x2722   :  { %5483 = vtanh.f32 %v7038_v12 }
0x2728   :  { %v5484_v26 = vpop.eup %5483 }
0x2729   :  { %2761 = vrot.lane.b32.xlu1 %v5484_v26, %s5792_s4 }
0x2739   :  { %v2793_v45 = vpop.permute.xlu1 %2792 }
0x273a   :  { %v7042_v28 = vadd.f32 %v2793_v45, %v2785_v53 }
0x273c   :  { %5485 = vtanh.f32 %v7042_v28 }
0x2742   :  { %v5486_v48 = vpop.eup %5485 }
0x2743   :  { %2798 = vrot.lane.b32.xlu0 %v5486_v48, %s5792_s4 }
0x279b   :  { %v2762_v57 = vpop.permute.xlu1 %2761 }
0x279c   :  { %v2764_v30 = vmul.f32 %v2762_v57, %v2745_v22 }
0x279e   :  { %2803 = vrot.lane.b32.xlu2 %v2764_v30, %s5793_s15 }
0x27b5   :  { %v2799_v18 = vpop.permute.xlu0 %2798 }
0x27b6   :  { %v7047_v52 = vmul.f32 %v2799_v18, %v2782_v10  ;;  %v2891_v18 = vrot.slane %v7038_v12, 6 }
0x27b8   :  { %v2812_v47 = vrot.slane %v7047_v52, 6 }
0x27ba   :  { %2813 = vrot.lane.b32.xlu0 %v2812_v47, %s5792_s4 }
0x27f8   :  { %v2804_v19 = vpop.permute.xlu2 %2803 }
0x282c   :  { %v2814_v13 = vpop.permute.xlu0 %2813 }
0x282d   :  { %v2816_v11 = vsel %vm113_vm2, %v2804_v19, %v2814_v13 }
0x282e   :  { %5149 = vmatmul.msk.f32.vlgmr.msra.gmra.mxu0 %vm208_vm12, %v2816_v11  ;;  %5150 = vmatmul.msk.f32.vlgmr.msra.gmra.mxu1 %vm208_vm12, %v2816_v11 }
0x282f   :  { %3417 = vmatpush.msra.mxu0 %v6855_v62  ;;  %3437 = vmatpush.msra.mxu1 %v6912_v34 }
0x2831   :  { %3418 = vmatpush.msra.mxu0 %v6860_v42  ;;  %3438 = vmatpush.msra.mxu1 %v6924_v37 }
0x2833   :  { %3419 = vmatpush.msra.mxu0 %v6867_v56  ;;  %3439 = vmatpush.msra.mxu1 %v6929_v40 }
0x2835   :  { %3420 = vmatpush.msra.mxu0 %v6874_v32  ;;  %3440 = vmatpush.msra.mxu1 %v6936_v27 }
0x2837   :  { %3421 = vmatpush.msra.mxu0 %v6883_v23  ;;  %3441 = vmatpush.msra.mxu1 %v6946_v4 }
0x2839   :  { %3422 = vmatpush.msra.mxu0 %v6888_v51  ;;  %3442 = vmatpush.msra.mxu1 %v6956_v20 }
0x283b   :  { %3423 = vmatpush.msra.mxu0 %v6895_v17  ;;  %3443 = vmatpush.msra.mxu1 %v6965_v60 }
0x283d   :  { %3424 = vmatpush.msra.mxu0 %v6902_v33  ;;  %3444 = vmatpush.msra.mxu1 %v6974_v0 }
0x28ab   :  { %v2837_v24 = vpop.f32.mrf.mxu0  ;;  %v2857_v25 = vpop.f32.mrf.mxu1 }
0x28ac   :  { %v2862_v63 = vrot.slane %v2837_v24, 6  ;;  %v2867_v54 = vrot.slane %v2857_v25, 4  ;;  %v2931_v24 = vrot.slane %v7042_v28, 2 }
0x28ae   :  { %v2864_v7 = vadd.f32 %v2862_v63, %v2860_v49  ;;  %v2869_v16 = vadd.f32 %v2867_v54, %v2865_v39 }
0x28b0   :  { %5487 = vtanh.f32 %v2864_v7  ;;  %v5151_v9 = vmul.f32 -1.442695, %v2864_v7  ;;  %v5152_v5 = vmul.f32 -1.442695, %v2869_v16 }
0x28b1   :  { %5489 = vtanh.f32 %v2869_v16 }
0x28b2   :  { %5491 = vpow2.f32 %v5151_v9 }
0x28b6   :  { %v5488_v43 = vpop.eup %5487 }
0x28b7   :  { %v5490_v14 = vpop.eup %5489  ;;  %2895 = vrot.lane.b32.xlu2 %v5488_v43, %s5792_s4 }
0x28b8   :  { %2935 = vrot.lane.b32.xlu1 %v5490_v14, %s5792_s4  ;;  %v5492_v1 = vpop.eup %5491 }
0x28b9   :  { %v2873_v3 = vadd.f32 1.0, %v5492_v1 }
0x28bb   :  { %5493 = vrcp.f32 %v2873_v3  ;;  %v2885_v55 = vand.u32 2147483648, %v2873_v3  ;;  %vm2879_vm9 = vweird.f32 %v2873_v3  ;;  %v2883_v2 = vand.u32 2147483647, %v2873_v3 }
0x28bc   :  { %5495 = vpow2.f32 %v5152_v5 }
0x28bd   :  { %v2886_v50 = vor.u32 1.1754944e-38, %v2885_v55  ;;  %vm2884_vm13 = vcmp.eq.f32.partialorder %v2883_v2, 8.507059e+37 }
0x28c1   :  { %v5494_v35 = vpop.eup %5493 }
0x28c2   :  { %v2875_v58 = vmul.f32 %v5494_v35, %v2873_v3  ;;  %v5496_v8 = vpop.eup %5495  ;;  %vm2880_vm7 = vweird.f32 %v5494_v35 }
0x28c3   :  { %v2913_v21 = vadd.f32 1.0, %v5496_v8  ;;  %vm2881_vm10 = vmor %vm2879_vm9, %vm2880_vm7 }
0x28c4   :  { %v2876_v46 = vsub.f32 1.0, %v2875_v58 }
0x28c5   :  { %5497 = vrcp.f32 %v2913_v21  ;;  %v2925_v44 = vand.u32 2147483648, %v2913_v21  ;;  %vm2919_vm6 = vweird.f32 %v2913_v21  ;;  %v2923_v26 = vand.u32 2147483647, %v2913_v21 }
0x28c6   :  { %v2877_v41 = vmul.f32 %v5494_v35, %v2876_v46  ;;  %v3009_v46 = vld [vmem:[#allocation2 + $0x30] sm:$0x30] }
0x28c7   :  { %v2926_v45 = vor.u32 1.1754944e-38, %v2925_v44  ;;  %vm2924_vm15 = vcmp.eq.f32.partialorder %v2923_v26, 8.507059e+37 }
0x28c8   :  { %v2878_v59 = vadd.f32 %v5494_v35, %v2877_v41  ;;  %v3014_v41 = vld [vmem:[#allocation2 + $0x38] sm:$0xc] }
0x28ca   :  { %v2882_v61 = vsel %vm2881_vm10, %v5494_v35, %v2878_v59 }
0x28cb   :  { %v2887_v22 = vsel %vm2884_vm13, %v2886_v50, %v2882_v61  ;;  %v5498_v38 = vpop.eup %5497 }
0x28cc   :  { %v2915_v29 = vmul.f32 %v5498_v38, %v2913_v21  ;;  %vm2920_vm11 = vweird.f32 %v5498_v38  ;;  %v2893_v47 = vmul.f32 %v2891_v18, %v2887_v22 }
0x28cd   :  { %vm2921_vm1 = vmor %vm2919_vm6, %vm2920_vm11 }
0x28ce   :  { %v2916_v10 = vsub.f32 1.0, %v2915_v29 }
0x28d0   :  { %v2917_v36 = vmul.f32 %v5498_v38, %v2916_v10 }
0x28d2   :  { %v2918_v6 = vadd.f32 %v5498_v38, %v2917_v36 }
0x28d4   :  { %v2922_v53 = vsel %vm2921_vm1, %v5498_v38, %v2918_v6 }
0x28d5   :  { %v2927_v57 = vsel %vm2924_vm15, %v2926_v45, %v2922_v53 }
0x28d6   :  { %v2933_v25 = vmul.f32 %v2931_v24, %v2927_v57 }
0x2911   :  { %v2896_v15 = vpop.permute.xlu2 %2895 }
0x2912   :  { %v2898_v31 = vmul.f32 %v2896_v15, %v2887_v22 }
0x2914   :  { %2900 = vrot.lane.b32.xlu1 %v2898_v31, %s5793_s15 }
0x292a   :  { %v2936_v48 = vpop.permute.xlu1 %2935 }
0x292b   :  { %v2938_v30 = vmul.f32 %v2936_v48, %v2927_v57 }
0x292d   :  { %2940 = vrot.lane.b32.xlu0 %v2938_v30, %s5793_s15 }
0x2986   :  { %v2901_v19 = vpop.permute.xlu1 %2900 }
0x2987   :  { %v7075_v13 = vadd.f32 %v2901_v19, %v2893_v47 }
0x2989   :  { %5499 = vtanh.f32 %v7075_v13 }
0x298f   :  { %v5500_v11 = vpop.eup %5499 }
0x2990   :  { %2906 = vrot.lane.b32.xlu0 %v5500_v11, %s5792_s4 }
0x299f   :  { %v2941_v63 = vpop.permute.xlu0 %2940 }
0x29a0   :  { %v7080_v54 = vadd.f32 %v2941_v63, %v2933_v25 }
0x29a2   :  { %5501 = vtanh.f32 %v7080_v54 }
0x29a8   :  { %v5502_v49 = vpop.eup %5501 }
0x29a9   :  { %2946 = vrot.lane.b32.xlu2 %v5502_v49, %s5792_s4 }
0x2a02   :  { %v2907_v12 = vpop.permute.xlu0 %2906 }
0x2a03   :  { %v2947_v39 = vpop.permute.xlu2 %2946  ;;  %v2909_v7 = vmul.f32 %v2907_v12, %v2887_v22 }
0x2a04   :  { %v7084_v16 = vmul.f32 %v2947_v39, %v2927_v57 }
0x2a05   :  { %2951 = vrot.lane.b32.xlu1 %v2909_v7, %s5793_s15 }
0x2a06   :  { %v2960_v43 = vrot.slane %v7084_v16, 2 }
0x2a08   :  { %2961 = vrot.lane.b32.xlu2 %v2960_v43, %s5792_s4 }
0x2a62   :  { %v2962_v28 = vpop.permute.xlu2 %2961 }
0x2a77   :  { %v2952_v14 = vpop.permute.xlu1 %2951 }
0x2a78   :  { %v2964_v9 = vsel %vm113_vm2, %v2952_v14, %v2962_v28  ;;  %v3080_v28 = vrot.slane %v7080_v54, 2 }
0x2a79   :  { %v2966_v1 = vrot.slane %v2964_v9, 2 }
0x2a7b   :  { %5153 = vmatmul.msk.f32.vlgmr.msrb.gmra.mxu2 %vm208_vm12, %v2966_v1  ;;  %5154 = vmatmul.msk.f32.vlgmr.msra.gmra.mxu3 %vm208_vm12, %v2966_v1 }
0x2a7c   :  { %3566 = vmatpush.msrb.mxu2 %v6855_v62  ;;  %3586 = vmatpush.msra.mxu3 %v6912_v34 }
0x2a7e   :  { %3567 = vmatpush.msrb.mxu2 %v6860_v42  ;;  %3587 = vmatpush.msra.mxu3 %v6924_v37 }
0x2a80   :  { %3568 = vmatpush.msrb.mxu2 %v6867_v56  ;;  %3588 = vmatpush.msra.mxu3 %v6929_v40 }
0x2a82   :  { %3569 = vmatpush.msrb.mxu2 %v6874_v32  ;;  %3589 = vmatpush.msra.mxu3 %v6936_v27 }
0x2a84   :  { %3570 = vmatpush.msrb.mxu2 %v6883_v23  ;;  %3590 = vmatpush.msra.mxu3 %v6946_v4 }
0x2a86   :  { %3571 = vmatpush.msrb.mxu2 %v6888_v51  ;;  %3591 = vmatpush.msra.mxu3 %v6956_v20 }
0x2a88   :  { %3572 = vmatpush.msrb.mxu2 %v6895_v17  ;;  %3592 = vmatpush.msra.mxu3 %v6965_v60 }
0x2a8a   :  { %3573 = vmatpush.msrb.mxu2 %v6902_v33  ;;  %3593 = vmatpush.msra.mxu3 %v6974_v0 }
0x2afe   :  { %v2986_v3 = vpop.f32.mrf.mxu2  ;;  %v3006_v35 = vpop.f32.mrf.mxu3 }
0x2aff   :  { %v3011_v5 = vrot.slane %v2986_v3, 4  ;;  %v3016_v58 = vrot.slane %v3006_v35, 6  ;;  %v3040_v35 = vrot.slane %v7075_v13, 6 }
0x2b01   :  { %v3013_v8 = vadd.f32 %v3011_v5, %v3009_v46  ;;  %v3018_v21 = vadd.f32 %v3016_v58, %v3014_v41 }
0x2b03   :  { %5503 = vtanh.f32 %v3013_v8  ;;  %v5155_v2 = vmul.f32 -1.442695, %v3013_v8  ;;  %v5156_v61 = vmul.f32 -1.442695, %v3018_v21 }
0x2b04   :  { %5505 = vtanh.f32 %v3018_v21 }
0x2b05   :  { %5507 = vpow2.f32 %v5155_v2 }
0x2b06   :  { %5509 = vpow2.f32 %v5156_v61 }
0x2b09   :  { %v5504_v59 = vpop.eup %5503 }
0x2b0a   :  { %v5506_v55 = vpop.eup %5505  ;;  %3044 = vrot.lane.b32.xlu1 %v5504_v59, %s5792_s4 }
0x2b0b   :  { %3084 = vrot.lane.b32.xlu0 %v5506_v55, %s5792_s4  ;;  %v5508_v50 = vpop.eup %5507 }
0x2b0c   :  { %v5510_v15 = vpop.eup %5509  ;;  %v3022_v22 = vadd.f32 1.0, %v5508_v50 }
0x2b0d   :  { %v3062_v31 = vadd.f32 1.0, %v5510_v15 }
0x2b0e   :  { %5511 = vrcp.f32 %v3022_v22  ;;  %v3034_v57 = vand.u32 2147483648, %v3022_v22  ;;  %vm3028_vm4 = vweird.f32 %v3022_v22  ;;  %v3032_v18 = vand.u32 2147483647, %v3022_v22 }
0x2b0f   :  { %5513 = vrcp.f32 %v3062_v31  ;;  %v3074_v30 = vand.u32 2147483648, %v3062_v31  ;;  %vm3068_vm5 = vweird.f32 %v3062_v31  ;;  %v3072_v47 = vand.u32 2147483647, %v3062_v31 }
0x2b10   :  { %v3035_v24 = vor.u32 1.1754944e-38, %v3034_v57  ;;  %vm3033_vm10 = vcmp.eq.f32.partialorder %v3032_v18, 8.507059e+37 }
0x2b11   :  { %v3075_v25 = vor.u32 1.1754944e-38, %v3074_v30  ;;  %vm3073_vm13 = vcmp.eq.f32.partialorder %v3072_v47, 8.507059e+37 }
0x2b14   :  { %v5512_v38 = vpop.eup %5511 }
0x2b15   :  { %v5514_v29 = vpop.eup %5513  ;;  %v3024_v10 = vmul.f32 %v5512_v38, %v3022_v22  ;;  %vm3029_vm0 = vweird.f32 %v5512_v38 }
0x2b16   :  { %v3064_v36 = vmul.f32 %v5514_v29, %v3062_v31  ;;  %vm3069_vm3 = vweird.f32 %v5514_v29  ;;  %vm3030_vm7 = vmor %vm3028_vm4, %vm3029_vm0 }
0x2b17   :  { %v3025_v6 = vsub.f32 1.0, %v3024_v10  ;;  %vm3070_vm9 = vmor %vm3068_vm5, %vm3069_vm3 }
0x2b18   :  { %v3065_v44 = vsub.f32 1.0, %v3064_v36 }
0x2b19   :  { %v3026_v26 = vmul.f32 %v5512_v38, %v3025_v6 }
0x2b1a   :  { %v3066_v53 = vmul.f32 %v5514_v29, %v3065_v44 }
0x2b1b   :  { %v3027_v45 = vadd.f32 %v5512_v38, %v3026_v26 }
0x2b1c   :  { %v3067_v48 = vadd.f32 %v5514_v29, %v3066_v53 }
0x2b1d   :  { %v3031_v19 = vsel %vm3030_vm7, %v5512_v38, %v3027_v45 }
0x2b1e   :  { %v3071_v11 = vsel %vm3070_vm9, %v5514_v29, %v3067_v48  ;;  %v3036_v49 = vsel %vm3033_vm10, %v3035_v24, %v3031_v19 }
0x2b1f   :  { %v3076_v39 = vsel %vm3073_vm13, %v3075_v25, %v3071_v11  ;;  %v3042_v5 = vmul.f32 %v3040_v35, %v3036_v49 }
0x2b20   :  { %v3082_v14 = vmul.f32 %v3080_v28, %v3076_v39 }
0x2b7c   :  { %v3045_v63 = vpop.permute.xlu1 %3044 }
0x2b7d   :  { %v3085_v12 = vpop.permute.xlu0 %3084  ;;  %v3047_v7 = vmul.f32 %v3045_v63, %v3036_v49 }
0x2b7e   :  { %v3087_v43 = vmul.f32 %v3085_v12, %v3076_v39 }
0x2b7f   :  { %3049 = vrot.lane.b32.xlu0 %v3047_v7, %s5793_s15 }
0x2b80   :  { %3089 = vrot.lane.b32.xlu2 %v3087_v43, %s5793_s15 }
0x2bda   :  { %v3090_v9 = vpop.permute.xlu2 %3089 }
0x2bdb   :  { %v7113_v1 = vadd.f32 %v3090_v9, %v3082_v14 }
0x2bdd   :  { %5515 = vtanh.f32 %v7113_v1 }
0x2be3   :  { %v5516_v3 = vpop.eup %5515 }
0x2be4   :  { %3095 = vrot.lane.b32.xlu1 %v5516_v3, %s5792_s4  ;;  %v3226_v3 = vrot.slane %v7113_v1, 2 }
0x2bf1   :  { %v3050_v58 = vpop.permute.xlu0 %3049 }
0x2bf2   :  { %v7118_v46 = vadd.f32 %v3050_v58, %v3042_v5 }
0x2bf4   :  { %5517 = vtanh.f32 %v7118_v46  ;;  %v3186_v35 = vrot.slane %v7118_v46, 6 }
0x2bfa   :  { %v5518_v41 = vpop.eup %5517 }
0x2bfb   :  { %3055 = vrot.lane.b32.xlu2 %v5518_v41, %s5792_s4 }
0x2c55   :  { %v3056_v54 = vpop.permute.xlu2 %3055 }
0x2c56   :  { %v3096_v8 = vpop.permute.xlu1 %3095  ;;  %v3058_v21 = vmul.f32 %v3056_v54, %v3036_v49 }
0x2c57   :  { %v7122_v59 = vmul.f32 %v3096_v8, %v3076_v39 }
0x2c58   :  { %3100 = vrot.lane.b32.xlu0 %v3058_v21, %s5793_s15 }
0x2c59   :  { %v3109_v55 = vrot.slane %v7122_v59, 6 }
0x2c5b   :  { %3110 = vrot.lane.b32.xlu1 %v3109_v55, %s5792_s4 }
0x2cca   :  { %v3101_v13 = vpop.permute.xlu0 %3100 }
0x2ccd   :  { %v3111_v2 = vpop.permute.xlu1 %3110 }
0x2cce   :  { %v3113_v61 = vsel %vm113_vm2, %v3101_v13, %v3111_v2 }
0x2ccf   :  { %v3115_v50 = vrot.slane %v3113_v61, 4 }
0x2cd1   :  { %5157 = vmatmul.msk.f32.vlgmr.msrb.gmra.mxu0 %vm208_vm12, %v3115_v50  ;;  %5158 = vmatmul.msk.f32.vlgmr.msrb.gmra.mxu1 %vm208_vm12, %v3115_v50 }
0x2cd2   :  { %3715 = vmatpush.msrb.mxu0 %v6855_v62  ;;  %3735 = vmatpush.msrb.mxu1 %v6912_v34 }
0x2cd4   :  { %3716 = vmatpush.msrb.mxu0 %v6860_v42  ;;  %3736 = vmatpush.msrb.mxu1 %v6924_v37 }
0x2cd6   :  { %3717 = vmatpush.msrb.mxu0 %v6867_v56  ;;  %3737 = vmatpush.msrb.mxu1 %v6929_v40  ;;  %v3163_v56 = vld [vmem:[#allocation2 + $0x38] sm:$0x3] }
0x2cd8   :  { %3718 = vmatpush.msrb.mxu0 %v6874_v32  ;;  %3738 = vmatpush.msrb.mxu1 %v6936_v27 }
0x2cda   :  { %3719 = vmatpush.msrb.mxu0 %v6883_v23  ;;  %3739 = vmatpush.msrb.mxu1 %v6946_v4  ;;  %v3158_v23 = vld [vmem:[#allocation2 + $0x30] sm:$0xc0] }
0x2cdc   :  { %3720 = vmatpush.msrb.mxu0 %v6888_v51  ;;  %3740 = vmatpush.msrb.mxu1 %v6956_v20 }
0x2cde   :  { %3721 = vmatpush.msrb.mxu0 %v6895_v17  ;;  %3741 = vmatpush.msrb.mxu1 %v6965_v60 }
0x2ce0   :  { %3722 = vmatpush.msrb.mxu0 %v6902_v33  ;;  %3742 = vmatpush.msrb.mxu1 %v6974_v0 }
0x2d4e   :  { %v3135_v62 = vpop.f32.mrf.mxu0  ;;  %v3155_v42 = vpop.f32.mrf.mxu1 }
0x2d4f   :  { %v3160_v32 = vrot.slane %v3135_v62, 2  ;;  %v3164_v34 = vadd.f32 %v3163_v56, %v3155_v42 }
0x2d51   :  { %v3162_v15 = vadd.f32 %v3160_v32, %v3158_v23  ;;  %5519 = vtanh.f32 %v3164_v34  ;;  %v5160_v17 = vmul.f32 -1.442695, %v3164_v34  ;;  %v7171_v34 = vld [vmem:[%s7753_s8 + $0x70] sm:$0xff]  ;;  %v7177_v23 = vld [vmem:[%s7753_s8 + $0x78] sm:$0xff] }
0x2d53   :  { %5521 = vtanh.f32 %v3162_v15  ;;  %v5159_v29 = vmul.f32 -1.442695, %v3162_v15  ;;  %v7183_v15 = vld [vmem:[%s7753_s8 + $0x60] sm:$0xff] }
0x2d54   :  { %5523 = vpow2.f32 %v5160_v17 }
0x2d57   :  { %v5520_v51 = vpop.eup %5519 }
0x2d58   :  { %3230 = vrot.lane.b32.xlu2 %v5520_v51, %s5792_s4  ;;  %v7190_v51 = vld [vmem:[%s7753_s8 + $0x50] sm:$0xff] }
0x2d59   :  { %v5522_v22 = vpop.eup %5521 }
0x2d5a   :  { %3190 = vrot.lane.b32.xlu0 %v5522_v22, %s5792_s4  ;;  %v5524_v33 = vpop.eup %5523  ;;  %v7197_v22 = vld [vmem:[%s7753_s8 + $0x40] sm:$0xff] }
0x2d5b   :  { %v3208_v31 = vadd.f32 1.0, %v5524_v33 }
0x2d5d   :  { %5525 = vrcp.f32 %v3208_v31  ;;  %v3220_v45 = vand.u32 2147483648, %v3208_v31  ;;  %vm3214_vm6 = vweird.f32 %v3208_v31  ;;  %v3218_v48 = vand.u32 2147483647, %v3208_v31 }
0x2d5e   :  { %5527 = vpow2.f32 %v5159_v29  ;;  %v3306_v29 = vld [vmem:[#allocation2 + $0x20] sm:$0xc0] }
0x2d5f   :  { %v3221_v30 = vor.u32 1.1754944e-38, %v3220_v45  ;;  %vm3219_vm15 = vcmp.eq.f32.partialorder %v3218_v48, 8.507059e+37 }
0x2d63   :  { %v5526_v38 = vpop.eup %5525 }
0x2d64   :  { %v3210_v10 = vmul.f32 %v5526_v38, %v3208_v31  ;;  %v5528_v44 = vpop.eup %5527  ;;  %vm3215_vm11 = vweird.f32 %v5526_v38 }
0x2d65   :  { %v3168_v53 = vadd.f32 1.0, %v5528_v44  ;;  %vm3216_vm1 = vmor %vm3214_vm6, %vm3215_vm11 }
0x2d66   :  { %v3211_v36 = vsub.f32 1.0, %v3210_v10 }
0x2d67   :  { %5529 = vrcp.f32 %v3168_v53  ;;  %v3180_v12 = vand.u32 2147483648, %v3168_v53  ;;  %vm3174_vm3 = vweird.f32 %v3168_v53  ;;  %v3178_v39 = vand.u32 2147483647, %v3168_v53 }
0x2d68   :  { %v3212_v6 = vmul.f32 %v5526_v38, %v3211_v36 }
0x2d69   :  { %v3181_v43 = vor.u32 1.1754944e-38, %v3180_v12  ;;  %vm3179_vm5 = vcmp.eq.f32.partialorder %v3178_v39, 8.507059e+37 }
0x2d6a   :  { %v3213_v26 = vadd.f32 %v5526_v38, %v3212_v6 }
0x2d6c   :  { %v3217_v57 = vsel %vm3216_vm1, %v5526_v38, %v3213_v26 }
0x2d6d   :  { %v3222_v47 = vsel %vm3219_vm15, %v3221_v30, %v3217_v57  ;;  %v5530_v11 = vpop.eup %5529 }
0x2d6e   :  { %v3170_v24 = vmul.f32 %v5530_v11, %v3168_v53  ;;  %vm3175_vm0 = vweird.f32 %v5530_v11  ;;  %v3228_v5 = vmul.f32 %v3226_v3, %v3222_v47 }
0x2d6f   :  { %vm3176_vm4 = vmor %vm3174_vm3, %vm3175_vm0 }
0x2d70   :  { %v3171_v25 = vsub.f32 1.0, %v3170_v24 }
0x2d72   :  { %v3172_v63 = vmul.f32 %v5530_v11, %v3171_v25 }
0x2d74   :  { %v3173_v49 = vadd.f32 %v5530_v11, %v3172_v63 }
0x2d76   :  { %v3177_v7 = vsel %vm3176_vm4, %v5530_v11, %v3173_v49 }
0x2d77   :  { %v3182_v14 = vsel %vm3179_vm5, %v3181_v43, %v3177_v7 }
0x2d78   :  { %v3188_v54 = vmul.f32 %v3186_v35, %v3182_v14 }
0x2db2   :  { %v3231_v18 = vpop.permute.xlu2 %3230 }
0x2db3   :  { %v3233_v19 = vmul.f32 %v3231_v18, %v3222_v47 }
0x2db5   :  { %3235 = vrot.lane.b32.xlu1 %v3233_v19, %s5793_s15 }
0x2dcc   :  { %v3191_v28 = vpop.permute.xlu0 %3190 }
0x2dcd   :  { %v3193_v9 = vmul.f32 %v3191_v28, %v3182_v14 }
0x2dcf   :  { %3195 = vrot.lane.b32.xlu2 %v3193_v9, %s5793_s15 }
0x2e27   :  { %v3236_v58 = vpop.permute.xlu1 %3235 }
0x2e28   :  { %v7152_v41 = vadd.f32 %v3236_v58, %v3228_v5 }
0x2e29   :  { %v3196_v8 = vpop.permute.xlu2 %3195 }
0x2e2a   :  { %5531 = vtanh.f32 %v7152_v41  ;;  %v7155_v21 = vadd.f32 %v3196_v8, %v3188_v54 }
0x2e2c   :  { %5533 = vtanh.f32 %v7155_v21 }
0x2e30   :  { %v5532_v55 = vpop.eup %5531 }
0x2e31   :  { %3241 = vrot.lane.b32.xlu0 %v5532_v55, %s5792_s4  ;;  %v3332_v55 = vrot.slane %v7155_v21, 6 }
0x2e32   :  { %v5534_v13 = vpop.eup %5533 }
0x2e33   :  { %3201 = vrot.lane.b32.xlu1 %v5534_v13, %s5792_s4 }
0x2ea3   :  { %v3242_v1 = vpop.permute.xlu0 %3241 }
0x2ea4   :  { %v7160_v46 = vmul.f32 %v3242_v1, %v3222_v47 }
0x2ea5   :  { %v3202_v2 = vpop.permute.xlu1 %3201 }
0x2ea6   :  { %v3255_v61 = vrot.slane %v7160_v46, 2  ;;  %v3204_v50 = vmul.f32 %v3202_v2, %v3182_v14 }
0x2ea8   :  { %3256 = vrot.lane.b32.xlu0 %v3255_v61, %s5792_s4  ;;  %3246 = vrot.lane.b32.xlu2 %v3204_v50, %s5793_s15  ;;  %v3372_v50 = vrot.slane %v7152_v41, 2 }
0x2f02   :  { %v3247_v62 = vpop.permute.xlu2 %3246 }
0x2f1a   :  { %v3257_v42 = vpop.permute.xlu0 %3256 }
0x2f1b   :  { %v3259_v56 = vsel %vm113_vm2, %v3247_v62, %v3257_v42 }
0x2f1c   :  { %v3261_v32 = vrot.slane %v3259_v56, 6 }
0x2f1e   :  { %5161 = vmatmul.msk.f32.vlgmr.msra.gmra.mxu2 %vm208_vm12, %v3261_v32  ;;  %5162 = vmatmul.msk.f32.vlgmr.msrb.gmra.mxu3 %vm208_vm12, %v3261_v32 }
0x2f1f   :  { %3861 = vmatpush.msra.mxu2 %v7171_v34  ;;  %3881 = vmatpush.msrb.mxu3 %v7177_v23 }
0x2f21   :  { %3862 = vmatpush.msra.mxu2 %v7183_v15  ;;  %3882 = vmatpush.msrb.mxu3 %v6924_v37  ;;  %v7204_v37 = vld [vmem:[%s7753_s8 + $0x30] sm:$0xff] }
0x2f23   :  { %3863 = vmatpush.msra.mxu2 %v7190_v51  ;;  %3883 = vmatpush.msrb.mxu3 %v6929_v40  ;;  %v7211_v40 = vld [vmem:[%s7753_s8 + $0x20] sm:$0xff] }
0x2f25   :  { %3864 = vmatpush.msra.mxu2 %v7197_v22  ;;  %3884 = vmatpush.msrb.mxu3 %v6936_v27  ;;  %v7218_v27 = vld [vmem:[%s7753_s8 + $0x10] sm:$0xff] }
0x2f27   :  { %3865 = vmatpush.msra.mxu2 %v7204_v37  ;;  %3885 = vmatpush.msrb.mxu3 %v6946_v4  ;;  %v7225_v4 = vld [vmem:[%s7753_s8] sm:$0xff] }
0x2f29   :  { %3866 = vmatpush.msra.mxu2 %v7211_v40  ;;  %3886 = vmatpush.msrb.mxu3 %v6956_v20  ;;  %v3304_v20 = vld [vmem:[#allocation2 + $0x18] sm:$0x3] }
0x2f2b   :  { %3867 = vmatpush.msra.mxu2 %v7218_v27  ;;  %3887 = vmatpush.msrb.mxu3 %v6965_v60 }
0x2f2d   :  { %3868 = vmatpush.msra.mxu2 %v7225_v4  ;;  %3888 = vmatpush.msrb.mxu3 %v6974_v0 }
0x2fa1   :  { %v3281_v17 = vpop.f32.mrf.mxu2  ;;  %v3301_v33 = vpop.f32.mrf.mxu3 }
0x2fa2   :  { %v3305_v31 = vadd.f32 %v3304_v20, %v3281_v17  ;;  %v3308_v38 = vrot.slane %v3301_v33, 2 }
0x2fa4   :  { %5535 = vtanh.f32 %v3305_v31  ;;  %v3310_v10 = vadd.f32 %v3308_v38, %v3306_v29  ;;  %v5163_v6 = vmul.f32 -1.442695, %v3305_v31 }
0x2fa6   :  { %5537 = vtanh.f32 %v3310_v10  ;;  %v5164_v45 = vmul.f32 -1.442695, %v3310_v10  ;;  %v7257_v10 = vld [vmem:[%s7753_s8 + $0x68] sm:$0xff] }
0x2fa7   :  { %5539 = vpow2.f32 %v5163_v6  ;;  %v7278_v6 = vld [vmem:[%s7753_s8 + $0x38] sm:$0xff] }
0x2faa   :  { %v5536_v36 = vpop.eup %5535 }
0x2fab   :  { %3336 = vrot.lane.b32.xlu2 %v5536_v36, %s5792_s4  ;;  %v7264_v36 = vld [vmem:[%s7753_s8 + $0x58] sm:$0xff] }
0x2fac   :  { %v5538_v60 = vpop.eup %5537 }
0x2fad   :  { %3376 = vrot.lane.b32.xlu1 %v5538_v60, %s5792_s4  ;;  %v5540_v44 = vpop.eup %5539  ;;  %v7271_v60 = vld [vmem:[%s7753_s8 + $0x48] sm:$0xff] }
0x2fae   :  { %v3314_v26 = vadd.f32 1.0, %v5540_v44  ;;  %v7285_v44 = vld [vmem:[%s7753_s8 + $0x28] sm:$0xff] }
0x2fb0   :  { %5541 = vrcp.f32 %v3314_v26  ;;  %v3326_v47 = vand.u32 2147483648, %v3314_v26  ;;  %vm3320_vm9 = vweird.f32 %v3314_v26  ;;  %v3324_v11 = vand.u32 2147483647, %v3314_v26 }
0x2fb1   :  { %5543 = vpow2.f32 %v5164_v45 }
0x2fb2   :  { %v3327_v25 = vor.u32 1.1754944e-38, %v3326_v47  ;;  %vm3325_vm13 = vcmp.eq.f32.partialorder %v3324_v11, 8.507059e+37 }
0x2fb6   :  { %v5542_v0 = vpop.eup %5541 }
0x2fb7   :  { %v3316_v53 = vmul.f32 %v5542_v0, %v3314_v26  ;;  %v5544_v30 = vpop.eup %5543  ;;  %vm3321_vm7 = vweird.f32 %v5542_v0  ;;  %v7292_v26 = vld [vmem:[%s7753_s8 + $0x18] sm:$0xff] }
0x2fb8   :  { %v3354_v19 = vadd.f32 1.0, %v5544_v30  ;;  %vm3322_vm10 = vmor %vm3320_vm9, %vm3321_vm7  ;;  %v3449_v30 = vld [vmem:[#allocation2 + $0x18] sm:$0xc] }
0x2fb9   :  { %v3317_v48 = vsub.f32 1.0, %v3316_v53 }
0x2fba   :  { %5545 = vrcp.f32 %v3354_v19  ;;  %v3366_v9 = vand.u32 2147483648, %v3354_v19  ;;  %vm3360_vm6 = vweird.f32 %v3354_v19  ;;  %v3364_v3 = vand.u32 2147483647, %v3354_v19 }
0x2fbb   :  { %v3318_v57 = vmul.f32 %v5542_v0, %v3317_v48 }
0x2fbc   :  { %v3367_v5 = vor.u32 1.1754944e-38, %v3366_v9  ;;  %vm3365_vm15 = vcmp.eq.f32.partialorder %v3364_v3, 8.507059e+37 }
0x2fbd   :  { %v3319_v18 = vadd.f32 %v5542_v0, %v3318_v57 }
0x2fbf   :  { %v3323_v24 = vsel %vm3322_vm10, %v5542_v0, %v3319_v18  ;;  %v7299_v0 = vld [vmem:[%s7753_s8 + $0x8] sm:$0xff]  ;;  %v3454_v18 = vld [vmem:[#allocation2 + $0x20] sm:$0x30] }
0x2fc0   :  { %v3328_v49 = vsel %vm3325_vm13, %v3327_v25, %v3323_v24  ;;  %v5546_v39 = vpop.eup %5545 }
0x2fc1   :  { %v3356_v7 = vmul.f32 %v5546_v39, %v3354_v19  ;;  %vm3361_vm11 = vweird.f32 %v5546_v39  ;;  %v3334_v13 = vmul.f32 %v3332_v55, %v3328_v49 }
0x2fc2   :  { %vm3362_vm1 = vmor %vm3360_vm6, %vm3361_vm11 }
0x2fc3   :  { %v3357_v43 = vsub.f32 1.0, %v3356_v7 }
0x2fc5   :  { %v3358_v28 = vmul.f32 %v5546_v39, %v3357_v43 }
0x2fc7   :  { %v3359_v14 = vadd.f32 %v5546_v39, %v3358_v28 }
0x2fc9   :  { %v3363_v35 = vsel %vm3362_vm1, %v5546_v39, %v3359_v14 }
0x2fca   :  { %v3368_v54 = vsel %vm3365_vm15, %v3367_v5, %v3363_v35 }
0x2fcb   :  { %v3374_v62 = vmul.f32 %v3372_v50, %v3368_v54 }
0x3005   :  { %v3337_v63 = vpop.permute.xlu2 %3336 }
0x3006   :  { %v3339_v12 = vmul.f32 %v3337_v63, %v3328_v49 }
0x3008   :  { %3341 = vrot.lane.b32.xlu1 %v3339_v12, %s5793_s15 }
0x301f   :  { %v3377_v58 = vpop.permute.xlu1 %3376 }
0x3020   :  { %v3379_v8 = vmul.f32 %v3377_v58, %v3368_v54 }
0x3022   :  { %3381 = vrot.lane.b32.xlu0 %v3379_v8, %s5793_s15 }
0x307a   :  { %v3342_v1 = vpop.permute.xlu1 %3341 }
0x307b   :  { %v7234_v2 = vadd.f32 %v3342_v1, %v3334_v13 }
0x307d   :  { %5547 = vtanh.f32 %v7234_v2 }
0x3083   :  { %v5548_v61 = vpop.eup %5547 }
0x3084   :  { %3347 = vrot.lane.b32.xlu0 %v5548_v61, %s5792_s4 }
0x3094   :  { %v3382_v42 = vpop.permute.xlu0 %3381 }
0x3095   :  { %v7239_v56 = vadd.f32 %v3382_v42, %v3374_v62 }
0x3097   :  { %5549 = vtanh.f32 %v7239_v56 }
0x309d   :  { %v5550_v32 = vpop.eup %5549 }
0x309e   :  { %3387 = vrot.lane.b32.xlu2 %v5550_v32, %s5792_s4 }
0x30f6   :  { %v3348_v21 = vpop.permute.xlu0 %3347 }
0x30f7   :  { %v3350_v17 = vmul.f32 %v3348_v21, %v3328_v49 }
0x30f8   :  { %v3388_v20 = vpop.permute.xlu2 %3387 }
0x30f9   :  { %3392 = vrot.lane.b32.xlu1 %v3350_v17, %s5793_s15  ;;  %v7244_v33 = vmul.f32 %v3388_v20, %v3368_v54 }
0x30fb   :  { %v3401_v31 = vrot.slane %v7244_v33, 6 }
0x30fd   :  { %3402 = vrot.lane.b32.xlu2 %v3401_v31, %s5792_s4 }
0x3157   :  { %v3403_v41 = vpop.permute.xlu2 %3402 }
0x316b   :  { %v3393_v38 = vpop.permute.xlu1 %3392 }
0x316c   :  { %v3405_v29 = vsel %vm113_vm2, %v3393_v38, %v3403_v41 }
0x316d   :  { %5165 = vmatmul.msk.f32.vlgmr.msra.gmra.mxu0 %vm208_vm12, %v3405_v29  ;;  %5166 = vmatmul.msk.f32.vlgmr.msra.gmra.mxu1 %vm208_vm12, %v3405_v29  ;;  %v3520_v29 = vrot.slane %v7239_v56, 2 }
0x316e   :  { %4006 = vmatpush.msra.mxu0 %v7171_v34  ;;  %4026 = vmatpush.msra.mxu1 %v7177_v23 }
0x3170   :  { %4007 = vmatpush.msra.mxu0 %v7183_v15  ;;  %4027 = vmatpush.msra.mxu1 %v7257_v10 }
0x3172   :  { %4008 = vmatpush.msra.mxu0 %v7190_v51  ;;  %4028 = vmatpush.msra.mxu1 %v7264_v36 }
0x3174   :  { %4009 = vmatpush.msra.mxu0 %v7197_v22  ;;  %4029 = vmatpush.msra.mxu1 %v7271_v60 }
0x3176   :  { %4010 = vmatpush.msra.mxu0 %v7204_v37  ;;  %4030 = vmatpush.msra.mxu1 %v7278_v6 }
0x3178   :  { %4011 = vmatpush.msra.mxu0 %v7211_v40  ;;  %4031 = vmatpush.msra.mxu1 %v7285_v44 }
0x317a   :  { %4012 = vmatpush.msra.mxu0 %v7218_v27  ;;  %4032 = vmatpush.msra.mxu1 %v7292_v26 }
0x317c   :  { %4013 = vmatpush.msra.mxu0 %v7225_v4  ;;  %4033 = vmatpush.msra.mxu1 %v7299_v0 }
0x31ea   :  { %v3426_v53 = vpop.f32.mrf.mxu0  ;;  %v3446_v45 = vpop.f32.mrf.mxu1 }
0x31eb   :  { %v3451_v48 = vrot.slane %v3426_v53, 6  ;;  %v3456_v57 = vrot.slane %v3446_v45, 4 }
0x31ed   :  { %v3453_v47 = vadd.f32 %v3451_v48, %v3449_v30  ;;  %v3458_v19 = vadd.f32 %v3456_v57, %v3454_v18  ;;  %v3480_v30 = vrot.slane %v7234_v2, 6 }
0x31ef   :  { %5551 = vtanh.f32 %v3453_v47  ;;  %v5167_v25 = vmul.f32 -1.442695, %v3453_v47  ;;  %v5168_v63 = vmul.f32 -1.442695, %v3458_v19 }
0x31f0   :  { %5553 = vtanh.f32 %v3458_v19 }
0x31f1   :  { %5555 = vpow2.f32 %v5167_v25 }
0x31f2   :  { %5557 = vpow2.f32 %v5168_v63 }
0x31f5   :  { %v5552_v11 = vpop.eup %5551 }
0x31f6   :  { %v5554_v24 = vpop.eup %5553  ;;  %3484 = vrot.lane.b32.xlu1 %v5552_v11, %s5792_s4 }
0x31f7   :  { %3524 = vrot.lane.b32.xlu0 %v5554_v24, %s5792_s4  ;;  %v5556_v49 = vpop.eup %5555 }
0x31f8   :  { %v5558_v12 = vpop.eup %5557  ;;  %v3462_v39 = vadd.f32 1.0, %v5556_v49 }
0x31f9   :  { %v3502_v7 = vadd.f32 1.0, %v5558_v12 }
0x31fa   :  { %5559 = vrcp.f32 %v3462_v39  ;;  %v3474_v55 = vand.u32 2147483648, %v3462_v39  ;;  %vm3468_vm4 = vweird.f32 %v3462_v39  ;;  %v3472_v1 = vand.u32 2147483647, %v3462_v39 }
0x31fb   :  { %5561 = vrcp.f32 %v3502_v7  ;;  %v3514_v13 = vand.u32 2147483648, %v3502_v7  ;;  %vm3508_vm5 = vweird.f32 %v3502_v7  ;;  %v3512_v61 = vand.u32 2147483647, %v3502_v7 }
0x31fc   :  { %v3475_v42 = vor.u32 1.1754944e-38, %v3474_v55  ;;  %vm3473_vm10 = vcmp.eq.f32.partialorder %v3472_v1, 8.507059e+37 }
0x31fd   :  { %v3515_v32 = vor.u32 1.1754944e-38, %v3514_v13  ;;  %vm3513_vm13 = vcmp.eq.f32.partialorder %v3512_v61, 8.507059e+37 }
0x3200   :  { %v5560_v43 = vpop.eup %5559 }
0x3201   :  { %v5562_v28 = vpop.eup %5561  ;;  %v3464_v14 = vmul.f32 %v5560_v43, %v3462_v39  ;;  %vm3469_vm0 = vweird.f32 %v5560_v43 }
0x3202   :  { %v3504_v9 = vmul.f32 %v5562_v28, %v3502_v7  ;;  %vm3509_vm3 = vweird.f32 %v5562_v28  ;;  %vm3470_vm7 = vmor %vm3468_vm4, %vm3469_vm0 }
0x3203   :  { %v3465_v3 = vsub.f32 1.0, %v3464_v14  ;;  %vm3510_vm9 = vmor %vm3508_vm5, %vm3509_vm3 }
0x3204   :  { %v3505_v35 = vsub.f32 1.0, %v3504_v9 }
0x3205   :  { %v3466_v5 = vmul.f32 %v5560_v43, %v3465_v3  ;;  %v3598_v3 = vld [vmem:[#allocation2 + $0x18] sm:$0x30] }
0x3206   :  { %v3506_v58 = vmul.f32 %v5562_v28, %v3505_v35  ;;  %v3603_v35 = vld [vmem:[#allocation2 + $0x20] sm:$0xc] }
0x3207   :  { %v3467_v54 = vadd.f32 %v5560_v43, %v3466_v5 }
0x3208   :  { %v3507_v8 = vadd.f32 %v5562_v28, %v3506_v58 }
0x3209   :  { %v3471_v50 = vsel %vm3470_vm7, %v5560_v43, %v3467_v54 }
0x320a   :  { %v3511_v62 = vsel %vm3510_vm9, %v5562_v28, %v3507_v8  ;;  %v3476_v17 = vsel %vm3473_vm10, %v3475_v42, %v3471_v50 }
0x320b   :  { %v3516_v31 = vsel %vm3513_vm13, %v3515_v32, %v3511_v62  ;;  %v3482_v18 = vmul.f32 %v3480_v30, %v3476_v17 }
0x320c   :  { %v3522_v53 = vmul.f32 %v3520_v29, %v3516_v31 }
0x3268   :  { %v3485_v21 = vpop.permute.xlu1 %3484 }
0x3269   :  { %v3525_v20 = vpop.permute.xlu0 %3524  ;;  %v3487_v41 = vmul.f32 %v3485_v21, %v3476_v17 }
0x326a   :  { %v3527_v38 = vmul.f32 %v3525_v20, %v3516_v31 }
0x326b   :  { %3489 = vrot.lane.b32.xlu0 %v3487_v41, %s5793_s15 }
0x326c   :  { %3529 = vrot.lane.b32.xlu2 %v3527_v38, %s5793_s15 }
0x32c6   :  { %v3530_v45 = vpop.permute.xlu2 %3529 }
0x32c7   :  { %v7307_v48 = vadd.f32 %v3530_v45, %v3522_v53 }
0x32c9   :  { %5563 = vtanh.f32 %v7307_v48 }
0x32cf   :  { %v5564_v57 = vpop.eup %5563 }
0x32d0   :  { %3535 = vrot.lane.b32.xlu1 %v5564_v57, %s5792_s4 }
0x32dd   :  { %v3490_v47 = vpop.permute.xlu0 %3489 }
0x32de   :  { %v7312_v19 = vadd.f32 %v3490_v47, %v3482_v18 }
0x32e0   :  { %5565 = vtanh.f32 %v7312_v19 }
0x32e6   :  { %v5566_v11 = vpop.eup %5565 }
0x32e7   :  { %3495 = vrot.lane.b32.xlu2 %v5566_v11, %s5792_s4 }
0x3341   :  { %v3496_v56 = vpop.permute.xlu2 %3495 }
0x3342   :  { %v3536_v24 = vpop.permute.xlu1 %3535  ;;  %v3498_v25 = vmul.f32 %v3496_v56, %v3476_v17 }
0x3343   :  { %v7316_v63 = vmul.f32 %v3536_v24, %v3516_v31 }
0x3344   :  { %3540 = vrot.lane.b32.xlu0 %v3498_v25, %s5793_s15 }
0x3345   :  { %v3549_v49 = vrot.slane %v7316_v63, 2 }
0x3347   :  { %3550 = vrot.lane.b32.xlu1 %v3549_v49, %s5792_s4 }
0x33b6   :  { %v3541_v2 = vpop.permute.xlu0 %3540 }
0x33b9   :  { %v3551_v12 = vpop.permute.xlu1 %3550 }
0x33ba   :  { %v3553_v39 = vsel %vm113_vm2, %v3541_v2, %v3551_v12 }
0x33bb   :  { %v3555_v7 = vrot.slane %v3553_v39, 2 }
0x33bd   :  { %5169 = vmatmul.msk.f32.vlgmr.msrb.gmra.mxu2 %vm208_vm12, %v3555_v7  ;;  %5170 = vmatmul.msk.f32.vlgmr.msra.gmra.mxu3 %vm208_vm12, %v3555_v7 }
0x33be   :  { %4155 = vmatpush.msrb.mxu2 %v7171_v34  ;;  %4175 = vmatpush.msra.mxu3 %v7177_v23 }
0x33c0   :  { %4156 = vmatpush.msrb.mxu2 %v7183_v15  ;;  %4176 = vmatpush.msra.mxu3 %v7257_v10 }
0x33c2   :  { %4157 = vmatpush.msrb.mxu2 %v7190_v51  ;;  %4177 = vmatpush.msra.mxu3 %v7264_v36 }
0x33c4   :  { %4158 = vmatpush.msrb.mxu2 %v7197_v22  ;;  %4178 = vmatpush.msra.mxu3 %v7271_v60 }
0x33c6   :  { %4159 = vmatpush.msrb.mxu2 %v7204_v37  ;;  %4179 = vmatpush.msra.mxu3 %v7278_v6 }
0x33c8   :  { %4160 = vmatpush.msrb.mxu2 %v7211_v40  ;;  %4180 = vmatpush.msra.mxu3 %v7285_v44 }
0x33ca   :  { %4161 = vmatpush.msrb.mxu2 %v7218_v27  ;;  %4181 = vmatpush.msra.mxu3 %v7292_v26 }
0x33cc   :  { %4162 = vmatpush.msrb.mxu2 %v7225_v4  ;;  %4182 = vmatpush.msra.mxu3 %v7299_v0 }
0x3440   :  { %v3575_v43 = vpop.f32.mrf.mxu2  ;;  %v3595_v28 = vpop.f32.mrf.mxu3 }
0x3441   :  { %v3600_v14 = vrot.slane %v3575_v43, 4  ;;  %v3605_v9 = vrot.slane %v3595_v28, 6  ;;  %v3629_v43 = vrot.slane %v7312_v19, 6  ;;  %v3669_v28 = vrot.slane %v7307_v48, 2 }
0x3443   :  { %v3602_v5 = vadd.f32 %v3600_v14, %v3598_v3  ;;  %v3607_v58 = vadd.f32 %v3605_v9, %v3603_v35 }
0x3445   :  { %5567 = vtanh.f32 %v3602_v5  ;;  %v5172_v55 = vmul.f32 -1.442695, %v3607_v58  ;;  %v5171_v50 = vmul.f32 -1.442695, %v3602_v5 }
0x3446   :  { %5569 = vtanh.f32 %v3607_v58 }
0x3447   :  { %5571 = vpow2.f32 %v5172_v55 }
0x344b   :  { %v5568_v54 = vpop.eup %5567 }
0x344c   :  { %v5570_v8 = vpop.eup %5569  ;;  %3633 = vrot.lane.b32.xlu0 %v5568_v54, %s5792_s4 }
0x344d   :  { %3673 = vrot.lane.b32.xlu2 %v5570_v8, %s5792_s4  ;;  %v5572_v13 = vpop.eup %5571 }
0x344e   :  { %v3651_v1 = vadd.f32 1.0, %v5572_v13 }
0x3450   :  { %5573 = vrcp.f32 %v3651_v1  ;;  %v3663_v31 = vand.u32 2147483648, %v3651_v1  ;;  %vm3657_vm6 = vweird.f32 %v3651_v1  ;;  %v3661_v41 = vand.u32 2147483647, %v3651_v1 }
0x3451   :  { %5575 = vpow2.f32 %v5171_v50 }
0x3452   :  { %v3664_v29 = vor.u32 1.1754944e-38, %v3663_v31  ;;  %vm3662_vm15 = vcmp.eq.f32.partialorder %v3661_v41, 8.507059e+37  ;;  %v3747_v41 = vld [vmem:[#allocation2 + $0x18] sm:$0xc0] }
0x3456   :  { %v5574_v61 = vpop.eup %5573 }
0x3457   :  { %v3653_v62 = vmul.f32 %v5574_v61, %v3651_v1  ;;  %v5576_v32 = vpop.eup %5575  ;;  %vm3658_vm11 = vweird.f32 %v5574_v61 }
0x3458   :  { %v3611_v17 = vadd.f32 1.0, %v5576_v32  ;;  %vm3659_vm1 = vmor %vm3657_vm6, %vm3658_vm11 }
0x3459   :  { %v3654_v42 = vsub.f32 1.0, %v3653_v62 }
0x345a   :  { %5577 = vrcp.f32 %v3611_v17  ;;  %v3623_v24 = vand.u32 2147483648, %v3611_v17  ;;  %vm3617_vm3 = vweird.f32 %v3611_v17  ;;  %v3621_v25 = vand.u32 2147483647, %v3611_v17 }
0x345b   :  { %v3655_v21 = vmul.f32 %v5574_v61, %v3654_v42 }
0x345c   :  { %v3624_v2 = vor.u32 1.1754944e-38, %v3623_v24  ;;  %vm3622_vm5 = vcmp.eq.f32.partialorder %v3621_v25, 8.507059e+37 }
0x345d   :  { %v3656_v20 = vadd.f32 %v5574_v61, %v3655_v21 }
0x345f   :  { %v3660_v38 = vsel %vm3659_vm1, %v5574_v61, %v3656_v20 }
0x3460   :  { %v3665_v45 = vsel %vm3662_vm15, %v3664_v29, %v3660_v38  ;;  %v5578_v57 = vpop.eup %5577 }
0x3461   :  { %v3613_v18 = vmul.f32 %v5578_v57, %v3611_v17  ;;  %vm3618_vm0 = vweird.f32 %v5578_v57  ;;  %v3671_v9 = vmul.f32 %v3669_v28, %v3665_v45  ;;  %v3752_v17 = vld [vmem:[#allocation2 + $0x20] sm:$0x3] }
0x3462   :  { %vm3619_vm4 = vmor %vm3617_vm3, %vm3618_vm0 }
0x3463   :  { %v3614_v47 = vsub.f32 1.0, %v3613_v18 }
0x3465   :  { %v3615_v11 = vmul.f32 %v5578_v57, %v3614_v47 }
0x3467   :  { %v3616_v56 = vadd.f32 %v5578_v57, %v3615_v11 }
0x3469   :  { %v3620_v49 = vsel %vm3619_vm4, %v5578_v57, %v3616_v56 }
0x346a   :  { %v3625_v39 = vsel %vm3622_vm5, %v3624_v2, %v3620_v49 }
0x346b   :  { %v3631_v14 = vmul.f32 %v3629_v43, %v3625_v39 }
0x34a7   :  { %v3674_v53 = vpop.permute.xlu2 %3673 }
0x34a8   :  { %v3676_v30 = vmul.f32 %v3674_v53, %v3665_v45 }
0x34aa   :  { %3678 = vrot.lane.b32.xlu1 %v3676_v30, %s5793_s15 }
0x34be   :  { %v3634_v12 = vpop.permute.xlu0 %3633 }
0x34bf   :  { %v3636_v7 = vmul.f32 %v3634_v12, %v3625_v39 }
0x34c1   :  { %3638 = vrot.lane.b32.xlu2 %v3636_v7, %s5793_s15 }
0x351b   :  { %v3639_v3 = vpop.permute.xlu2 %3638 }
0x351c   :  { %v3679_v35 = vpop.permute.xlu1 %3678  ;;  %v7346_v5 = vadd.f32 %v3639_v3, %v3631_v14 }
0x351d   :  { %v7348_v58 = vadd.f32 %v3679_v35, %v3671_v9 }
0x351e   :  { %5579 = vtanh.f32 %v7346_v5 }
0x351f   :  { %5581 = vtanh.f32 %v7348_v58 }
0x3524   :  { %v5580_v54 = vpop.eup %5579 }
0x3525   :  { %v5582_v8 = vpop.eup %5581  ;;  %3644 = vrot.lane.b32.xlu1 %v5580_v54, %s5792_s4 }
0x3526   :  { %3684 = vrot.lane.b32.xlu0 %v5582_v8, %s5792_s4 }
0x3597   :  { %v3645_v19 = vpop.permute.xlu1 %3644 }
0x3598   :  { %v3685_v48 = vpop.permute.xlu0 %3684  ;;  %v3647_v55 = vmul.f32 %v3645_v19, %v3625_v39 }
0x3599   :  { %v7354_v13 = vmul.f32 %v3685_v48, %v3665_v45 }
0x359a   :  { %3689 = vrot.lane.b32.xlu2 %v3647_v55, %s5793_s15 }
0x359b   :  { %v3698_v1 = vrot.slane %v7354_v13, 6 }
0x359d   :  { %3699 = vrot.lane.b32.xlu0 %v3698_v1, %s5792_s4 }
0x35f4   :  { %v3690_v61 = vpop.permute.xlu2 %3689 }
0x360f   :  { %v3700_v50 = vpop.permute.xlu0 %3699 }
0x3610   :  { %v3702_v62 = vsel %vm113_vm2, %v3690_v61, %v3700_v50 }
0x3611   :  { %v3704_v42 = vrot.slane %v3702_v62, 4 }
0x3613   :  { %5173 = vmatmul.msk.f32.vlgmr.msrb.gmra.mxu0 %vm208_vm12, %v3704_v42  ;;  %5174 = vmatmul.msk.f32.vlgmr.msrb.gmra.mxu1 %vm208_vm12, %v3704_v42 }
0x3614   :  { %4304 = vmatpush.msrb.mxu0 %v7171_v34  ;;  %4324 = vmatpush.msrb.mxu1 %v7177_v23 }
0x3616   :  { %4305 = vmatpush.msrb.mxu0 %v7183_v15  ;;  %4325 = vmatpush.msrb.mxu1 %v7257_v10 }
0x3618   :  { %4306 = vmatpush.msrb.mxu0 %v7190_v51  ;;  %4326 = vmatpush.msrb.mxu1 %v7264_v36 }
0x361a   :  { %4307 = vmatpush.msrb.mxu0 %v7197_v22  ;;  %4327 = vmatpush.msrb.mxu1 %v7271_v60 }
0x361c   :  { %4308 = vmatpush.msrb.mxu0 %v7204_v37  ;;  %4328 = vmatpush.msrb.mxu1 %v7278_v6 }
0x361e   :  { %4309 = vmatpush.msrb.mxu0 %v7211_v40  ;;  %4329 = vmatpush.msrb.mxu1 %v7285_v44 }
0x3620   :  { %4310 = vmatpush.msrb.mxu0 %v7218_v27  ;;  %4330 = vmatpush.msrb.mxu1 %v7292_v26 }
0x3622   :  { %4311 = vmatpush.msrb.mxu0 %v7225_v4  ;;  %4331 = vmatpush.msrb.mxu1 %v7299_v0 }
0x3690   :  { %v3724_v32 = vpop.f32.mrf.mxu0  ;;  %v3744_v21 = vpop.f32.mrf.mxu1 }
0x3691   :  { %v3749_v20 = vrot.slane %v3724_v32, 2  ;;  %v3753_v31 = vadd.f32 %v3752_v17, %v3744_v21  ;;  %v3775_v32 = vrot.slane %v7346_v5, 6 }
0x3693   :  { %v3751_v38 = vadd.f32 %v3749_v20, %v3747_v41  ;;  %5583 = vtanh.f32 %v3753_v31  ;;  %v5176_v18 = vmul.f32 -1.442695, %v3753_v31  ;;  %v3815_v41 = vrot.slane %v7348_v58, 2 }
0x3695   :  { %5585 = vtanh.f32 %v3751_v38  ;;  %v5175_v45 = vmul.f32 -1.442695, %v3751_v38 }
0x3697   :  { %5587 = vpow2.f32 %v5175_v45 }
0x3699   :  { %v5584_v29 = vpop.eup %5583 }
0x369a   :  { %3819 = vrot.lane.b32.xlu1 %v5584_v29, %s5792_s4 }
0x369b   :  { %v5586_v53 = vpop.eup %5585 }
0x369c   :  { %3779 = vrot.lane.b32.xlu2 %v5586_v53, %s5792_s4 }
0x369d   :  { %v5588_v57 = vpop.eup %5587 }
0x369e   :  { %v3757_v30 = vadd.f32 1.0, %v5588_v57 }
0x36a0   :  { %5589 = vrcp.f32 %v3757_v30  ;;  %v3769_v12 = vand.u32 2147483648, %v3757_v30  ;;  %vm3763_vm9 = vweird.f32 %v3757_v30  ;;  %v3767_v39 = vand.u32 2147483647, %v3757_v30 }
0x36a1   :  { %5591 = vpow2.f32 %v5176_v18 }
0x36a2   :  { %v3770_v43 = vor.u32 1.1754944e-38, %v3769_v12  ;;  %vm3768_vm13 = vcmp.eq.f32.partialorder %v3767_v39, 8.507059e+37 }
0x36a6   :  { %v5590_v47 = vpop.eup %5589 }
0x36a7   :  { %v3759_v11 = vmul.f32 %v5590_v47, %v3757_v30  ;;  %v5592_v24 = vpop.eup %5591  ;;  %vm3764_vm7 = vweird.f32 %v5590_v47 }
0x36a8   :  { %v3797_v49 = vadd.f32 1.0, %v5592_v24  ;;  %vm3765_vm10 = vmor %vm3763_vm9, %vm3764_vm7 }
0x36a9   :  { %v3760_v56 = vsub.f32 1.0, %v3759_v11 }
0x36aa   :  { %5593 = vrcp.f32 %v3797_v49  ;;  %v3809_v48 = vand.u32 2147483648, %v3797_v49  ;;  %vm3803_vm6 = vweird.f32 %v3797_v49  ;;  %v3807_v55 = vand.u32 2147483647, %v3797_v49 }
0x36ab   :  { %v3761_v25 = vmul.f32 %v5590_v47, %v3760_v56 }
0x36ac   :  { %v3810_v61 = vor.u32 1.1754944e-38, %v3809_v48  ;;  %vm3808_vm15 = vcmp.eq.f32.partialorder %v3807_v55, 8.507059e+37 }
0x36ad   :  { %v3762_v2 = vadd.f32 %v5590_v47, %v3761_v25 }
0x36af   :  { %v3766_v7 = vsel %vm3765_vm10, %v5590_v47, %v3762_v2 }
0x36b0   :  { %v5594_v28 = vpop.eup %5593  ;;  %v3771_v9 = vsel %vm3768_vm13, %v3770_v43, %v3766_v7  ;;  %v3895_v7 = vld [vmem:[#allocation2 + $0x10] sm:$0xc0] }
0x36b1   :  { %v3799_v35 = vmul.f32 %v5594_v28, %v3797_v49  ;;  %vm3804_vm11 = vweird.f32 %v5594_v28  ;;  %v3777_v21 = vmul.f32 %v3775_v32, %v3771_v9  ;;  %v3893_v49 = vld [vmem:[#allocation2 + $0x8] sm:$0x3] }
0x36b2   :  { %vm3805_vm1 = vmor %vm3803_vm6, %vm3804_vm11 }
0x36b3   :  { %v3800_v54 = vsub.f32 1.0, %v3799_v35 }
0x36b5   :  { %v3801_v8 = vmul.f32 %v5594_v28, %v3800_v54 }
0x36b7   :  { %v3802_v19 = vadd.f32 %v5594_v28, %v3801_v8 }
0x36b9   :  { %v3806_v1 = vsel %vm3805_vm1, %v5594_v28, %v3802_v19 }
0x36ba   :  { %v3811_v62 = vsel %vm3808_vm15, %v3810_v61, %v3806_v1 }
0x36bb   :  { %v3817_v38 = vmul.f32 %v3815_v41, %v3811_v62 }
0x36f6   :  { %v3780_v14 = vpop.permute.xlu2 %3779 }
0x36f7   :  { %v3782_v3 = vmul.f32 %v3780_v14, %v3771_v9 }
0x36f9   :  { %3784 = vrot.lane.b32.xlu1 %v3782_v3, %s5793_s15 }
0x370c   :  { %v3820_v50 = vpop.permute.xlu1 %3819 }
0x370d   :  { %v3822_v42 = vmul.f32 %v3820_v50, %v3811_v62 }
0x370f   :  { %3824 = vrot.lane.b32.xlu0 %v3822_v42, %s5793_s15 }
0x376b   :  { %v3785_v17 = vpop.permute.xlu1 %3784 }
0x376c   :  { %v7383_v20 = vadd.f32 %v3785_v17, %v3777_v21 }
0x376e   :  { %5595 = vtanh.f32 %v7383_v20 }
0x3774   :  { %v5596_v31 = vpop.eup %5595 }
0x3775   :  { %3790 = vrot.lane.b32.xlu0 %v5596_v31, %s5792_s4 }
0x3781   :  { %v3825_v29 = vpop.permute.xlu0 %3824 }
0x3782   :  { %v7388_v53 = vadd.f32 %v3825_v29, %v3817_v38 }
0x3784   :  { %5597 = vtanh.f32 %v7388_v53 }
0x378a   :  { %v5598_v45 = vpop.eup %5597 }
0x378b   :  { %3830 = vrot.lane.b32.xlu2 %v5598_v45, %s5792_s4 }
0x37e5   :  { %v3831_v5 = vpop.permute.xlu2 %3830 }
0x37e6   :  { %v7392_v57 = vmul.f32 %v3831_v5, %v3811_v62 }
0x37e7   :  { %v3791_v30 = vpop.permute.xlu0 %3790 }
0x37e8   :  { %v3844_v18 = vrot.slane %v7392_v57, 2  ;;  %v3793_v47 = vmul.f32 %v3791_v30, %v3771_v9 }
0x37ea   :  { %3845 = vrot.lane.b32.xlu2 %v3844_v18, %s5792_s4  ;;  %3835 = vrot.lane.b32.xlu1 %v3793_v47, %s5793_s15 }
0x3844   :  { %v3846_v58 = vpop.permute.xlu2 %3845 }
0x385c   :  { %v3836_v11 = vpop.permute.xlu1 %3835 }
0x385d   :  { %v3848_v56 = vsel %vm113_vm2, %v3836_v11, %v3846_v58 }
0x385e   :  { %v3850_v24 = vrot.slane %v3848_v56, 6 }
0x3860   :  { %5177 = vmatmul.msk.f32.vlgmr.msra.gmra.mxu2 %vm208_vm12, %v3850_v24  ;;  %5178 = vmatmul.msk.f32.vlgmr.msrb.gmra.mxu3 %vm208_vm12, %v3850_v24 }
0x3861   :  { %4450 = vmatpush.msra.mxu2 %v7171_v34  ;;  %4470 = vmatpush.msrb.mxu3 %v7177_v23 }
0x3863   :  { %4451 = vmatpush.msra.mxu2 %v7183_v15  ;;  %4471 = vmatpush.msrb.mxu3 %v7257_v10 }
0x3865   :  { %4452 = vmatpush.msra.mxu2 %v7190_v51  ;;  %4472 = vmatpush.msrb.mxu3 %v7264_v36 }
0x3867   :  { %4453 = vmatpush.msra.mxu2 %v7197_v22  ;;  %4473 = vmatpush.msrb.mxu3 %v7271_v60 }
0x3869   :  { %4454 = vmatpush.msra.mxu2 %v7204_v37  ;;  %4474 = vmatpush.msrb.mxu3 %v7278_v6 }
0x386b   :  { %4455 = vmatpush.msra.mxu2 %v7211_v40  ;;  %4475 = vmatpush.msrb.mxu3 %v7285_v44 }
0x386d   :  { %4456 = vmatpush.msra.mxu2 %v7218_v27  ;;  %4476 = vmatpush.msrb.mxu3 %v7292_v26 }
0x386f   :  { %4457 = vmatpush.msra.mxu2 %v7225_v4  ;;  %4477 = vmatpush.msrb.mxu3 %v7299_v0 }
0x38e3   :  { %v3870_v25 = vpop.f32.mrf.mxu2  ;;  %v3890_v2 = vpop.f32.mrf.mxu3 }
0x38e4   :  { %v3894_v12 = vadd.f32 %v3893_v49, %v3870_v25  ;;  %v3897_v39 = vrot.slane %v3890_v2, 2  ;;  %v3961_v49 = vrot.slane %v7388_v53, 2 }
0x38e6   :  { %5599 = vtanh.f32 %v3894_v12  ;;  %v3899_v43 = vadd.f32 %v3897_v39, %v3895_v7  ;;  %v5179_v9 = vmul.f32 -1.442695, %v3894_v12 }
0x38e8   :  { %5601 = vtanh.f32 %v3899_v43  ;;  %v5180_v3 = vmul.f32 -1.442695, %v3899_v43  ;;  %v3921_v43 = vrot.slane %v7383_v20, 6 }
0x38e9   :  { %5603 = vpow2.f32 %v5179_v9 }
0x38ea   :  { %5605 = vpow2.f32 %v5180_v3 }
0x38ec   :  { %v5600_v28 = vpop.eup %5599 }
0x38ed   :  { %3925 = vrot.lane.b32.xlu1 %v5600_v28, %s5792_s4 }
0x38ee   :  { %v5602_v14 = vpop.eup %5601 }
0x38ef   :  { %3965 = vrot.lane.b32.xlu0 %v5602_v14, %s5792_s4  ;;  %v5604_v35 = vpop.eup %5603 }
0x38f0   :  { %v5606_v54 = vpop.eup %5605  ;;  %v3903_v8 = vadd.f32 1.0, %v5604_v35 }
0x38f1   :  { %v3943_v19 = vadd.f32 1.0, %v5606_v54 }
0x38f2   :  { %5607 = vrcp.f32 %v3903_v8  ;;  %v3915_v17 = vand.u32 2147483648, %v3903_v8  ;;  %vm3909_vm3 = vweird.f32 %v3903_v8  ;;  %v3913_v31 = vand.u32 2147483647, %v3903_v8 }
0x38f3   :  { %5609 = vrcp.f32 %v3943_v19  ;;  %v3955_v29 = vand.u32 2147483648, %v3943_v19  ;;  %vm3949_vm7 = vweird.f32 %v3943_v19  ;;  %v3953_v5 = vand.u32 2147483647, %v3943_v19 }
0x38f4   :  { %v3916_v45 = vor.u32 1.1754944e-38, %v3915_v17  ;;  %vm3914_vm9 = vcmp.eq.f32.partialorder %v3913_v31, 8.507059e+37 }
0x38f5   :  { %v3956_v11 = vor.u32 1.1754944e-38, %v3955_v29  ;;  %vm3954_vm13 = vcmp.eq.f32.partialorder %v3953_v5, 8.507059e+37 }
0x38f8   :  { %v5608_v48 = vpop.eup %5607 }
0x38f9   :  { %v5610_v55 = vpop.eup %5609  ;;  %v3905_v1 = vmul.f32 %v5608_v48, %v3903_v8  ;;  %vm3910_vm0 = vweird.f32 %v5608_v48 }
0x38fa   :  { %v3945_v61 = vmul.f32 %v5610_v55, %v3943_v19  ;;  %vm3911_vm4 = vmor %vm3909_vm3, %vm3910_vm0  ;;  %vm3950_vm5 = vweird.f32 %v5610_v55 }
0x38fb   :  { %v3906_v50 = vsub.f32 1.0, %v3905_v1  ;;  %vm3951_vm10 = vmor %vm3949_vm7, %vm3950_vm5 }
0x38fc   :  { %v3946_v62 = vsub.f32 1.0, %v3945_v61 }
0x38fd   :  { %v3907_v42 = vmul.f32 %v5608_v48, %v3906_v50 }
0x38fe   :  { %v3947_v32 = vmul.f32 %v5610_v55, %v3946_v62 }
0x38ff   :  { %v3908_v21 = vadd.f32 %v5608_v48, %v3907_v42 }
0x3900   :  { %v3948_v41 = vadd.f32 %v5610_v55, %v3947_v32 }
0x3901   :  { %v3912_v38 = vsel %vm3911_vm4, %v5608_v48, %v3908_v21 }
0x3902   :  { %v3917_v18 = vsel %vm3914_vm9, %v3916_v45, %v3912_v38  ;;  %v3952_v47 = vsel %vm3951_vm10, %v5610_v55, %v3948_v41 }
0x3903   :  { %v3957_v24 = vsel %vm3954_vm13, %v3956_v11, %v3952_v47  ;;  %v3923_v28 = vmul.f32 %v3921_v43, %v3917_v18 }
0x3904   :  { %v3963_v2 = vmul.f32 %v3961_v49, %v3957_v24 }
0x395f   :  { %v3926_v30 = vpop.permute.xlu1 %3925 }
0x3960   :  { %v3928_v58 = vmul.f32 %v3926_v30, %v3917_v18 }
0x3961   :  { %v3966_v56 = vpop.permute.xlu0 %3965 }
0x3962   :  { %3930 = vrot.lane.b32.xlu0 %v3928_v58, %s5793_s15  ;;  %v3968_v25 = vmul.f32 %v3966_v56, %v3957_v24 }
0x3964   :  { %3970 = vrot.lane.b32.xlu2 %v3968_v25, %s5793_s15 }
0x39be   :  { %v3971_v12 = vpop.permute.xlu2 %3970 }
0x39bf   :  { %v7421_v39 = vadd.f32 %v3971_v12, %v3963_v2 }
0x39c1   :  { %5611 = vtanh.f32 %v7421_v39 }
0x39c7   :  { %v5612_v7 = vpop.eup %5611 }
0x39c8   :  { %3976 = vrot.lane.b32.xlu1 %v5612_v7, %s5792_s4 }
0x39d4   :  { %v3931_v14 = vpop.permute.xlu0 %3930 }
0x39d5   :  { %v7426_v9 = vadd.f32 %v3931_v14, %v3923_v28 }
0x39d7   :  { %5613 = vtanh.f32 %v7426_v9 }
0x39dd   :  { %v5614_v3 = vpop.eup %5613 }
0x39de   :  { %3936 = vrot.lane.b32.xlu2 %v5614_v3, %s5792_s4 }
0x3a38   :  { %v3937_v53 = vpop.permute.xlu2 %3936 }
0x3a39   :  { %v3939_v35 = vmul.f32 %v3937_v53, %v3917_v18 }
0x3a3a   :  { %v3977_v54 = vpop.permute.xlu1 %3976 }
0x3a3b   :  { %3981 = vrot.lane.b32.xlu0 %v3939_v35, %s5793_s15  ;;  %v7431_v8 = vmul.f32 %v3977_v54, %v3957_v24  ;;  %v4069_v35 = vrot.slane %v7426_v9, 6  ;;  %v4109_v54 = vrot.slane %v7421_v39, 2 }
0x3a3d   :  { %v3990_v19 = vrot.slane %v7431_v8, 6 }
0x3a3f   :  { %3991 = vrot.lane.b32.xlu1 %v3990_v19, %s5792_s4 }
0x3aad   :  { %v3982_v20 = vpop.permute.xlu0 %3981 }
0x3ab1   :  { %v3992_v48 = vpop.permute.xlu1 %3991 }
0x3ab2   :  { %v3994_v55 = vsel %vm113_vm2, %v3982_v20, %v3992_v48 }
0x3ab3   :  { %5181 = vmatmul.msk.f32.vlgmr.msra.gmra.mxu0 %vm208_vm12, %v3994_v55  ;;  %5182 = vmatmul.msk.f32.vlgmr.msra.gmra.mxu1 %vm208_vm12, %v3994_v55 }
0x3ab4   :  { %4595 = vmatpush.msra.mxu0 %v7171_v34  ;;  %4615 = vmatpush.msra.mxu1 %v7177_v23 }
0x3ab6   :  { %4596 = vmatpush.msra.mxu0 %v7183_v15  ;;  %4616 = vmatpush.msra.mxu1 %v7257_v10 }
0x3ab8   :  { %4597 = vmatpush.msra.mxu0 %v7190_v51  ;;  %4617 = vmatpush.msra.mxu1 %v7264_v36 }
0x3aba   :  { %4598 = vmatpush.msra.mxu0 %v7197_v22  ;;  %4618 = vmatpush.msra.mxu1 %v7271_v60  ;;  %v4038_v22 = vld [vmem:[#allocation2 + $0x8] sm:$0xc] }
0x3abc   :  { %4599 = vmatpush.msra.mxu0 %v7204_v37  ;;  %4619 = vmatpush.msra.mxu1 %v7278_v6  ;;  %v4043_v37 = vld [vmem:[#allocation2 + $0x10] sm:$0x30] }
0x3abe   :  { %4600 = vmatpush.msra.mxu0 %v7211_v40  ;;  %4620 = vmatpush.msra.mxu1 %v7285_v44 }
0x3ac0   :  { %4601 = vmatpush.msra.mxu0 %v7218_v27  ;;  %4621 = vmatpush.msra.mxu1 %v7292_v26 }
0x3ac2   :  { %4602 = vmatpush.msra.mxu0 %v7225_v4  ;;  %4622 = vmatpush.msra.mxu1 %v7299_v0 }
0x3b30   :  { %v4015_v34 = vpop.f32.mrf.mxu0  ;;  %v4035_v23 = vpop.f32.mrf.mxu1 }
0x3b31   :  { %v4040_v15 = vrot.slane %v4015_v34, 6  ;;  %v4045_v51 = vrot.slane %v4035_v23, 4 }
0x3b33   :  { %v4042_v1 = vadd.f32 %v4040_v15, %v4038_v22  ;;  %v4047_v61 = vadd.f32 %v4045_v51, %v4043_v37 }
0x3b35   :  { %5615 = vtanh.f32 %v4042_v1  ;;  %v5184_v27 = vmul.f32 -1.442695, %v4047_v61  ;;  %v5183_v32 = vmul.f32 -1.442695, %v4042_v1 }
0x3b36   :  { %5617 = vtanh.f32 %v4047_v61 }
0x3b37   :  { %5619 = vpow2.f32 %v5184_v27 }
0x3b3b   :  { %v5616_v40 = vpop.eup %5615 }
0x3b3c   :  { %v5618_v50 = vpop.eup %5617  ;;  %4073 = vrot.lane.b32.xlu0 %v5616_v40, %s5792_s4 }
0x3b3d   :  { %4113 = vrot.lane.b32.xlu2 %v5618_v50, %s5792_s4  ;;  %v5620_v4 = vpop.eup %5619 }
0x3b3e   :  { %v4091_v62 = vadd.f32 1.0, %v5620_v4  ;;  %v7479_v4 = vld [vmem:[%s7753_s8 + $0x70] sm:$0xff] }
0x3b40   :  { %5621 = vrcp.f32 %v4091_v62  ;;  %v4103_v45 = vand.u32 2147483648, %v4091_v62  ;;  %vm4097_vm6 = vweird.f32 %v4091_v62  ;;  %v4101_v5 = vand.u32 2147483647, %v4091_v62 }
0x3b41   :  { %5623 = vpow2.f32 %v5183_v32  ;;  %v7498_v32 = vld [vmem:[%s7753_s8 + $0x50] sm:$0xff] }
0x3b42   :  { %v4104_v18 = vor.u32 1.1754944e-38, %v4103_v45  ;;  %vm4102_vm15 = vcmp.eq.f32.partialorder %v4101_v5, 8.507059e+37 }
0x3b46   :  { %v5622_v42 = vpop.eup %5621 }
0x3b47   :  { %v4093_v21 = vmul.f32 %v5622_v42, %v4091_v62  ;;  %v5624_v31 = vpop.eup %5623  ;;  %vm4098_vm11 = vweird.f32 %v5622_v42  ;;  %v7485_v62 = vld [vmem:[%s7753_s8 + $0x78] sm:$0xff] }
0x3b48   :  { %v4051_v38 = vadd.f32 1.0, %v5624_v31  ;;  %vm4099_vm1 = vmor %vm4097_vm6, %vm4098_vm11 }
0x3b49   :  { %v4094_v17 = vsub.f32 1.0, %v4093_v21  ;;  %v7505_v21 = vld [vmem:[%s7753_s8 + $0x40] sm:$0xff] }
0x3b4a   :  { %5625 = vrcp.f32 %v4051_v38  ;;  %v4063_v12 = vand.u32 2147483648, %v4051_v38  ;;  %vm4057_vm3 = vweird.f32 %v4051_v38  ;;  %v4061_v7 = vand.u32 2147483647, %v4051_v38 }
0x3b4b   :  { %v4095_v41 = vmul.f32 %v5622_v42, %v4094_v17 }
0x3b4c   :  { %v4064_v28 = vor.u32 1.1754944e-38, %v4063_v12  ;;  %vm4062_vm5 = vcmp.eq.f32.partialorder %v4061_v7, 8.507059e+37 }
0x3b4d   :  { %v4096_v29 = vadd.f32 %v5622_v42, %v4095_v41 }
0x3b4f   :  { %v4100_v30 = vsel %vm4099_vm1, %v5622_v42, %v4096_v29  ;;  %v7491_v42 = vld [vmem:[%s7753_s8 + $0x60] sm:$0xff]  ;;  %v4192_v29 = vld [vmem:[#allocation2 + $0x10] sm:$0xc] }
0x3b50   :  { %v4105_v58 = vsel %vm4102_vm15, %v4104_v18, %v4100_v30  ;;  %v5626_v11 = vpop.eup %5625 }
0x3b51   :  { %v4053_v24 = vmul.f32 %v5626_v11, %v4051_v38  ;;  %vm4058_vm0 = vweird.f32 %v5626_v11  ;;  %v4111_v20 = vmul.f32 %v4109_v54, %v4105_v58  ;;  %v4187_v38 = vld [vmem:[#allocation2 + $0x8] sm:$0x30] }
0x3b52   :  { %vm4059_vm4 = vmor %vm4057_vm3, %vm4058_vm0 }
0x3b53   :  { %v4054_v25 = vsub.f32 1.0, %v4053_v24 }
0x3b55   :  { %v4055_v49 = vmul.f32 %v5626_v11, %v4054_v25 }
0x3b57   :  { %v4056_v2 = vadd.f32 %v5626_v11, %v4055_v49 }
0x3b59   :  { %v4060_v43 = vsel %vm4059_vm4, %v5626_v11, %v4056_v2 }
0x3b5a   :  { %v4065_v3 = vsel %vm4062_vm5, %v4064_v28, %v4060_v43 }
0x3b5b   :  { %v4071_v19 = vmul.f32 %v4069_v35, %v4065_v3 }
0x3b97   :  { %v4114_v47 = vpop.permute.xlu2 %4113 }
0x3b98   :  { %v4116_v56 = vmul.f32 %v4114_v47, %v4105_v58 }
0x3b9a   :  { %4118 = vrot.lane.b32.xlu1 %v4116_v56, %s5793_s15 }
0x3bae   :  { %v4074_v14 = vpop.permute.xlu0 %4073 }
0x3baf   :  { %v4076_v53 = vmul.f32 %v4074_v14, %v4065_v3 }
0x3bb1   :  { %4078 = vrot.lane.b32.xlu2 %v4076_v53, %s5793_s15 }
0x3c0b   :  { %v4079_v48 = vpop.permute.xlu2 %4078 }
0x3c0c   :  { %v4119_v55 = vpop.permute.xlu1 %4118  ;;  %v7460_v34 = vadd.f32 %v4079_v48, %v4071_v19 }
0x3c0d   :  { %v7462_v23 = vadd.f32 %v4119_v55, %v4111_v20 }
0x3c0e   :  { %5627 = vtanh.f32 %v7460_v34 }
0x3c0f   :  { %5629 = vtanh.f32 %v7462_v23 }
0x3c14   :  { %v5628_v15 = vpop.eup %5627 }
0x3c15   :  { %v5630_v51 = vpop.eup %5629  ;;  %4084 = vrot.lane.b32.xlu1 %v5628_v15, %s5792_s4 }
0x3c16   :  { %4124 = vrot.lane.b32.xlu0 %v5630_v51, %s5792_s4 }
0x3c87   :  { %v4085_v9 = vpop.permute.xlu1 %4084 }
0x3c88   :  { %v4125_v39 = vpop.permute.xlu0 %4124  ;;  %v4087_v22 = vmul.f32 %v4085_v9, %v4065_v3 }
0x3c89   :  { %v7468_v37 = vmul.f32 %v4125_v39, %v4105_v58 }
0x3c8a   :  { %4129 = vrot.lane.b32.xlu2 %v4087_v22, %s5793_s15 }
0x3c8b   :  { %v4138_v1 = vrot.slane %v7468_v37, 2 }
0x3c8d   :  { %4139 = vrot.lane.b32.xlu0 %v4138_v1, %s5792_s4 }
0x3ce4   :  { %v4130_v61 = vpop.permute.xlu2 %4129 }
0x3cff   :  { %v4140_v40 = vpop.permute.xlu0 %4139 }
0x3d00   :  { %v4142_v50 = vsel %vm113_vm2, %v4130_v61, %v4140_v40  ;;  %v4218_v40 = vrot.slane %v7460_v34, 6 }
0x3d01   :  { %v4144_v27 = vrot.slane %v4142_v50, 2 }
0x3d03   :  { %5185 = vmatmul.msk.f32.vlgmr.msrb.gmra.mxu2 %vm208_vm12, %v4144_v27  ;;  %5186 = vmatmul.msk.f32.vlgmr.msra.gmra.mxu3 %vm208_vm12, %v4144_v27 }
0x3d04   :  { %4744 = vmatpush.msrb.mxu2 %v7479_v4  ;;  %4764 = vmatpush.msra.mxu3 %v7485_v62 }
0x3d06   :  { %4745 = vmatpush.msrb.mxu2 %v7491_v42  ;;  %4765 = vmatpush.msra.mxu3 %v7257_v10  ;;  %v7512_v10 = vld [vmem:[%s7753_s8 + $0x30] sm:$0xff] }
0x3d08   :  { %4746 = vmatpush.msrb.mxu2 %v7498_v32  ;;  %4766 = vmatpush.msra.mxu3 %v7264_v36  ;;  %v7519_v36 = vld [vmem:[%s7753_s8 + $0x20] sm:$0xff] }
0x3d0a   :  { %4747 = vmatpush.msrb.mxu2 %v7505_v21  ;;  %4767 = vmatpush.msra.mxu3 %v7271_v60  ;;  %v7526_v60 = vld [vmem:[%s7753_s8 + $0x10] sm:$0xff] }
0x3d0c   :  { %4748 = vmatpush.msrb.mxu2 %v7512_v10  ;;  %4768 = vmatpush.msra.mxu3 %v7278_v6  ;;  %v7533_v6 = vld [vmem:[%s7753_s8] sm:$0xff] }
0x3d0e   :  { %4749 = vmatpush.msrb.mxu2 %v7519_v36  ;;  %4769 = vmatpush.msra.mxu3 %v7285_v44 }
0x3d10   :  { %4750 = vmatpush.msrb.mxu2 %v7526_v60  ;;  %4770 = vmatpush.msra.mxu3 %v7292_v26 }
0x3d12   :  { %4751 = vmatpush.msrb.mxu2 %v7533_v6  ;;  %4771 = vmatpush.msra.mxu3 %v7299_v0 }
0x3d86   :  { %v4164_v17 = vpop.f32.mrf.mxu2  ;;  %v4184_v44 = vpop.f32.mrf.mxu3 }
0x3d87   :  { %v4189_v31 = vrot.slane %v4164_v17, 4  ;;  %v4194_v41 = vrot.slane %v4184_v44, 6 }
0x3d89   :  { %v4191_v45 = vadd.f32 %v4189_v31, %v4187_v38  ;;  %v4196_v5 = vadd.f32 %v4194_v41, %v4192_v29  ;;  %v4258_v31 = vrot.slane %v7462_v23, 2 }
0x3d8b   :  { %5631 = vtanh.f32 %v4191_v45  ;;  %v5187_v18 = vmul.f32 -1.442695, %v4191_v45  ;;  %v5188_v11 = vmul.f32 -1.442695, %v4196_v5 }
0x3d8c   :  { %5633 = vtanh.f32 %v4196_v5 }
0x3d8d   :  { %5635 = vpow2.f32 %v5187_v18 }
0x3d91   :  { %v5632_v26 = vpop.eup %5631 }
0x3d92   :  { %v5634_v30 = vpop.eup %5633  ;;  %4222 = vrot.lane.b32.xlu2 %v5632_v26, %s5792_s4 }
0x3d93   :  { %4262 = vrot.lane.b32.xlu1 %v5634_v30, %s5792_s4  ;;  %v5636_v47 = vpop.eup %5635 }
0x3d94   :  { %v4200_v0 = vadd.f32 1.0, %v5636_v47 }
0x3d96   :  { %5637 = vrcp.f32 %v4200_v0  ;;  %v4212_v7 = vand.u32 2147483648, %v4200_v0  ;;  %vm4206_vm9 = vweird.f32 %v4200_v0  ;;  %v4210_v43 = vand.u32 2147483647, %v4200_v0 }
0x3d97   :  { %5639 = vpow2.f32 %v5188_v11  ;;  %v5784_v11 = vld [vmem:[%s7753_s8 + $0x68] sm:$0xff] }
0x3d98   :  { %v4213_v14 = vor.u32 1.1754944e-38, %v4212_v7  ;;  %vm4211_vm13 = vcmp.eq.f32.partialorder %v4210_v43, 8.507059e+37 }
0x3d9c   :  { %v5638_v58 = vpop.eup %5637 }
0x3d9d   :  { %v4202_v56 = vmul.f32 %v5638_v58, %v4200_v0  ;;  %v5640_v49 = vpop.eup %5639  ;;  %vm4207_vm7 = vweird.f32 %v5638_v58 }
0x3d9e   :  { %v4240_v2 = vadd.f32 1.0, %v5640_v49  ;;  %vm4208_vm10 = vmor %vm4206_vm9, %vm4207_vm7 }
0x3d9f   :  { %v4203_v24 = vsub.f32 1.0, %v4202_v56  ;;  %v5785_v56 = vld [vmem:[%s7753_s8 + $0x58] sm:$0xff] }
0x3da0   :  { %5641 = vrcp.f32 %v4240_v2  ;;  %v4252_v15 = vand.u32 2147483648, %v4240_v2  ;;  %vm4246_vm6 = vweird.f32 %v4240_v2  ;;  %v4250_v51 = vand.u32 2147483647, %v4240_v2 }
0x3da1   :  { %v4204_v25 = vmul.f32 %v5638_v58, %v4203_v24  ;;  %v4341_v24 = vld [vmem:[#allocation2 + $0x10] sm:$0x3] }
0x3da2   :  { %v4253_v39 = vor.u32 1.1754944e-38, %v4252_v15  ;;  %vm4251_vm15 = vcmp.eq.f32.partialorder %v4250_v51, 8.507059e+37 }
0x3da3   :  { %v4205_v12 = vadd.f32 %v5638_v58, %v4204_v25 }
0x3da5   :  { %v4209_v28 = vsel %vm4208_vm10, %v5638_v58, %v4205_v12 }
0x3da6   :  { %v4214_v53 = vsel %vm4211_vm13, %v4213_v14, %v4209_v28  ;;  %v5642_v54 = vpop.eup %5641 }
0x3da7   :  { %v4242_v19 = vmul.f32 %v5642_v54, %v4240_v2  ;;  %vm4247_vm11 = vweird.f32 %v5642_v54  ;;  %v4220_v50 = vmul.f32 %v4218_v40, %v4214_v53  ;;  %v4336_v2 = vld [vmem:[#allocation2 + $0x8] sm:$0xc0] }
0x3da8   :  { %vm4248_vm1 = vmor %vm4246_vm6, %vm4247_vm11 }
0x3da9   :  { %v4243_v20 = vsub.f32 1.0, %v4242_v19 }
0x3dab   :  { %v4244_v48 = vmul.f32 %v5642_v54, %v4243_v20 }
0x3dad   :  { %v4245_v55 = vadd.f32 %v5642_v54, %v4244_v48 }
0x3daf   :  { %v4249_v9 = vsel %vm4248_vm1, %v5642_v54, %v4245_v55 }
0x3db0   :  { %v4254_v1 = vsel %vm4251_vm15, %v4253_v39, %v4249_v9 }
0x3db1   :  { %v4260_v41 = vmul.f32 %v4258_v31, %v4254_v1 }
0x3dec   :  { %v4223_v3 = vpop.permute.xlu2 %4222 }
0x3ded   :  { %v4225_v35 = vmul.f32 %v4223_v3, %v4214_v53 }
0x3def   :  { %4227 = vrot.lane.b32.xlu1 %v4225_v35, %s5793_s15 }
0x3e05   :  { %v4263_v22 = vpop.permute.xlu1 %4262 }
0x3e06   :  { %v4265_v61 = vmul.f32 %v4263_v22, %v4254_v1 }
0x3e08   :  { %4267 = vrot.lane.b32.xlu0 %v4265_v61, %s5793_s15 }
0x3e61   :  { %v4228_v27 = vpop.permute.xlu1 %4227 }
0x3e62   :  { %v7542_v17 = vadd.f32 %v4228_v27, %v4220_v50 }
0x3e64   :  { %5643 = vtanh.f32 %v7542_v17 }
0x3e6a   :  { %v5644_v44 = vpop.eup %5643 }
0x3e6b   :  { %4233 = vrot.lane.b32.xlu0 %v5644_v44, %s5792_s4 }
0x3e7a   :  { %v4268_v38 = vpop.permute.xlu0 %4267 }
0x3e7b   :  { %v7547_v29 = vadd.f32 %v4268_v38, %v4260_v41 }
0x3e7d   :  { %5645 = vtanh.f32 %v7547_v29 }
0x3e83   :  { %v5646_v45 = vpop.eup %5645 }
0x3e84   :  { %4273 = vrot.lane.b32.xlu2 %v5646_v45, %s5792_s4 }
0x3edd   :  { %v4234_v34 = vpop.permute.xlu0 %4233 }
0x3ede   :  { %v4274_v5 = vpop.permute.xlu2 %4273  ;;  %v4236_v26 = vmul.f32 %v4234_v34, %v4214_v53 }
0x3edf   :  { %v7551_v30 = vmul.f32 %v4274_v5, %v4254_v1 }
0x3ee0   :  { %4278 = vrot.lane.b32.xlu1 %v4236_v26, %s5793_s15 }
0x3ee1   :  { %v4287_v18 = vrot.slane %v7551_v30, 6 }
0x3ee3   :  { %4288 = vrot.lane.b32.xlu2 %v4287_v18, %s5792_s4  ;;  %v4404_v18 = vrot.slane %v7547_v29, 2 }
0x3f3d   :  { %v4289_v23 = vpop.permute.xlu2 %4288 }
0x3f52   :  { %v4279_v47 = vpop.permute.xlu1 %4278 }
0x3f53   :  { %v4291_v0 = vsel %vm113_vm2, %v4279_v47, %v4289_v23 }
0x3f54   :  { %v4293_v58 = vrot.slane %v4291_v0, 4 }
0x3f56   :  { %5189 = vmatmul.msk.f32.vlgmr.msrb.gmra.mxu0 %vm208_vm12, %v4293_v58  ;;  %5190 = vmatmul.msk.f32.vlgmr.msrb.gmra.mxu1 %vm208_vm12, %v4293_v58 }
0x3f57   :  { %4893 = vmatpush.msrb.mxu0 %v7479_v4  ;;  %4913 = vmatpush.msrb.mxu1 %v7485_v62  ;;  %v5786_v4 = vld [vmem:[%s7753_s8 + $0x48] sm:$0xff]  ;;  %v5787_v62 = vld [vmem:[%s7753_s8 + $0x38] sm:$0xff] }
0x3f59   :  { %4894 = vmatpush.msrb.mxu0 %v7491_v42  ;;  %4914 = vmatpush.msrb.mxu1 %v5784_v11  ;;  %v5788_v42 = vld [vmem:[%s7753_s8 + $0x28] sm:$0xff]  ;;  %v4364_v11 = vrot.slane %v7542_v17, 6 }
0x3f5b   :  { %4895 = vmatpush.msrb.mxu0 %v7498_v32  ;;  %4915 = vmatpush.msrb.mxu1 %v5785_v56  ;;  %v5789_v32 = vld [vmem:[%s7753_s8 + $0x18] sm:$0xff] }
0x3f5d   :  { %4896 = vmatpush.msrb.mxu0 %v7505_v21  ;;  %4916 = vmatpush.msrb.mxu1 %v5786_v4  ;;  %v5790_v21 = vld [vmem:[%s7753_s8 + $0x8] sm:$0xff] }
0x3f5f   :  { %4897 = vmatpush.msrb.mxu0 %v7512_v10  ;;  %4917 = vmatpush.msrb.mxu1 %v5787_v62 }
0x3f61   :  { %4898 = vmatpush.msrb.mxu0 %v7519_v36  ;;  %4918 = vmatpush.msrb.mxu1 %v5788_v42 }
0x3f63   :  { %4899 = vmatpush.msrb.mxu0 %v7526_v60  ;;  %4919 = vmatpush.msrb.mxu1 %v5789_v32 }
0x3f65   :  { %4900 = vmatpush.msrb.mxu0 %v7533_v6  ;;  %4920 = vmatpush.msrb.mxu1 %v5790_v21 }
0x3fd3   :  { %v4313_v10 = vpop.f32.mrf.mxu0  ;;  %v4333_v36 = vpop.f32.mrf.mxu1 }
0x3fd4   :  { %v4338_v25 = vrot.slane %v4313_v10, 2  ;;  %v4342_v49 = vadd.f32 %v4341_v24, %v4333_v36 }
0x3fd6   :  { %v4340_v12 = vadd.f32 %v4338_v25, %v4336_v2  ;;  %5647 = vtanh.f32 %v4342_v49  ;;  %v5192_v6 = vmul.f32 -1.442695, %v4342_v49 }
0x3fd8   :  { %5649 = vtanh.f32 %v4340_v12  ;;  %v5191_v43 = vmul.f32 -1.442695, %v4340_v12  ;;  %v4482_v12 = vld [vmem:[#allocation2 + $0x28] sm:$0x3] }
0x3fd9   :  { %5651 = vpow2.f32 %v5192_v6 }
0x3fda   :  { %5653 = vpow2.f32 %v5191_v43  ;;  %v4484_v43 = vld [vmem:[#allocation2] sm:$0xc0] }
0x3fdc   :  { %v5648_v60 = vpop.eup %5647 }
0x3fdd   :  { %4408 = vrot.lane.b32.xlu0 %v5648_v60, %s5792_s4 }
0x3fde   :  { %v5650_v7 = vpop.eup %5649 }
0x3fdf   :  { %4368 = vrot.lane.b32.xlu1 %v5650_v7, %s5792_s4  ;;  %v5652_v28 = vpop.eup %5651 }
0x3fe0   :  { %v5654_v14 = vpop.eup %5653  ;;  %v4386_v3 = vadd.f32 1.0, %v5652_v28 }
0x3fe1   :  { %v4346_v53 = vadd.f32 1.0, %v5654_v14 }
0x3fe2   :  { %5655 = vrcp.f32 %v4386_v3  ;;  %v4398_v39 = vand.u32 2147483648, %v4386_v3  ;;  %vm4392_vm3 = vweird.f32 %v4386_v3  ;;  %v4396_v22 = vand.u32 2147483647, %v4386_v3 }
0x3fe3   :  { %5657 = vrcp.f32 %v4346_v53  ;;  %v4358_v61 = vand.u32 2147483648, %v4346_v53  ;;  %vm4352_vm7 = vweird.f32 %v4346_v53  ;;  %v4356_v50 = vand.u32 2147483647, %v4346_v53 }
0x3fe4   :  { %v4399_v27 = vor.u32 1.1754944e-38, %v4398_v39  ;;  %vm4397_vm10 = vcmp.eq.f32.partialorder %v4396_v22, 8.507059e+37 }
0x3fe5   :  { %v4359_v38 = vor.u32 1.1754944e-38, %v4358_v61  ;;  %vm4357_vm13 = vcmp.eq.f32.partialorder %v4356_v50, 8.507059e+37 }
0x3fe8   :  { %v5656_v35 = vpop.eup %5655 }
0x3fe9   :  { %v5658_v54 = vpop.eup %5657  ;;  %v4388_v19 = vmul.f32 %v5656_v35, %v4386_v3  ;;  %vm4393_vm0 = vweird.f32 %v5656_v35 }
0x3fea   :  { %v4348_v20 = vmul.f32 %v5658_v54, %v4346_v53  ;;  %vm4353_vm4 = vweird.f32 %v5658_v54  ;;  %vm4394_vm5 = vmor %vm4392_vm3, %vm4393_vm0 }
0x3feb   :  { %v4389_v48 = vsub.f32 1.0, %v4388_v19  ;;  %vm4354_vm9 = vmor %vm4352_vm7, %vm4353_vm4 }
0x3fec   :  { %v4349_v55 = vsub.f32 1.0, %v4348_v20 }
0x3fed   :  { %v4390_v15 = vmul.f32 %v5656_v35, %v4389_v48 }
0x3fee   :  { %v4350_v51 = vmul.f32 %v5658_v54, %v4349_v55 }
0x3fef   :  { %v4391_v9 = vadd.f32 %v5656_v35, %v4390_v15 }
0x3ff0   :  { %v4351_v1 = vadd.f32 %v5658_v54, %v4350_v51 }
0x3ff1   :  { %v4395_v40 = vsel %vm4394_vm5, %v5656_v35, %v4391_v9 }
0x3ff2   :  { %v4355_v44 = vsel %vm4354_vm9, %v5658_v54, %v4351_v1  ;;  %v4400_v41 = vsel %vm4397_vm10, %v4399_v27, %v4395_v40 }
0x3ff3   :  { %v4360_v5 = vsel %vm4357_vm13, %v4359_v38, %v4355_v44  ;;  %v4406_v23 = vmul.f32 %v4404_v18, %v4400_v41 }
0x3ff4   :  { %v4366_v56 = vmul.f32 %v4364_v11, %v4360_v5 }
0x404f   :  { %v4409_v31 = vpop.permute.xlu0 %4408 }
0x4050   :  { %v4411_v45 = vmul.f32 %v4409_v31, %v4400_v41 }
0x4051   :  { %v4369_v34 = vpop.permute.xlu1 %4368 }
0x4052   :  { %v4371_v26 = vmul.f32 %v4369_v34, %v4360_v5  ;;  %4413 = vrot.lane.b32.xlu2 %v4411_v45, %s5793_s15 }
0x4054   :  { %4373 = vrot.lane.b32.xlu0 %v4371_v26, %s5793_s15 }
0x40ac   :  { %v4414_v47 = vpop.permute.xlu2 %4413 }
0x40ad   :  { %v7594_v0 = vadd.f32 %v4414_v47, %v4406_v23 }
0x40af   :  { %5659 = vtanh.f32 %v7594_v0 }
0x40b5   :  { %v5660_v58 = vpop.eup %5659 }
0x40b6   :  { %4419 = vrot.lane.b32.xlu1 %v5660_v58, %s5792_s4 }
0x40c6   :  { %v4374_v4 = vpop.permute.xlu0 %4373 }
0x40c7   :  { %v7599_v62 = vadd.f32 %v4374_v4, %v4366_v56 }
0x40c9   :  { %5661 = vtanh.f32 %v7599_v62  ;;  %v4510_v56 = vrot.slane %v7599_v62, 6 }
0x40cf   :  { %v5662_v42 = vpop.eup %5661 }
0x40d0   :  { %4379 = vrot.lane.b32.xlu2 %v5662_v42, %s5792_s4  ;;  %v4550_v42 = vrot.slane %v7594_v0, 2 }
0x4128   :  { %v4420_v29 = vpop.permute.xlu1 %4419 }
0x4129   :  { %v7603_v32 = vmul.f32 %v4420_v29, %v4400_v41 }
0x412a   :  { %v4380_v21 = vpop.permute.xlu2 %4379 }
0x412b   :  { %v4433_v10 = vrot.slane %v7603_v32, 2  ;;  %v4382_v36 = vmul.f32 %v4380_v21, %v4360_v5 }
0x412d   :  { %4434 = vrot.lane.b32.xlu1 %v4433_v10, %s5792_s4  ;;  %4424 = vrot.lane.b32.xlu0 %v4382_v36, %s5793_s15 }
0x419f   :  { %v4435_v17 = vpop.permute.xlu1 %4434  ;;  %v4425_v24 = vpop.permute.xlu0 %4424 }
0x41a0   :  { %v4437_v25 = vsel %vm113_vm2, %v4425_v24, %v4435_v17 }
0x41a1   :  { %v4439_v49 = vrot.slane %v4437_v25, 6 }
0x41a3   :  { %5193 = vmatmul.msk.f32.vlgmr.msra.gmra.mxu2 %vm208_vm12, %v4439_v49  ;;  %5194 = vmatmul.msk.f32.vlgmr.msrb.gmra.mxu3 %vm208_vm12, %v4439_v49 }
0x4226   :  { %v4459_v2 = vpop.f32.mrf.mxu2  ;;  %v4479_v60 = vpop.f32.mrf.mxu3 }
0x4227   :  { %v4483_v7 = vadd.f32 %v4482_v12, %v4459_v2  ;;  %v4486_v6 = vrot.slane %v4479_v60, 2 }
0x4229   :  { %5663 = vtanh.f32 %v4483_v7  ;;  %v4488_v28 = vadd.f32 %v4486_v6, %v4484_v43  ;;  %v5195_v19 = vmul.f32 -1.442695, %v4483_v7 }
0x422b   :  { %5665 = vtanh.f32 %v4488_v28  ;;  %v5196_v53 = vmul.f32 -1.442695, %v4488_v28 }
0x422d   :  { %5667 = vpow2.f32 %v5196_v53  ;;  %v4627_v53 = vld [vmem:[#allocation2 + $0x28] sm:$0xc] }
0x422f   :  { %v5664_v14 = vpop.eup %5663 }
0x4230   :  { %4514 = vrot.lane.b32.xlu0 %v5664_v14, %s5792_s4 }
0x4231   :  { %v5666_v3 = vpop.eup %5665 }
0x4232   :  { %4554 = vrot.lane.b32.xlu2 %v5666_v3, %s5792_s4 }
0x4233   :  { %v5668_v35 = vpop.eup %5667 }
0x4234   :  { %v4532_v54 = vadd.f32 1.0, %v5668_v35  ;;  %v4632_v35 = vld [vmem:[#allocation2] sm:$0x30] }
0x4236   :  { %5669 = vrcp.f32 %v4532_v54  ;;  %v4544_v22 = vand.u32 2147483648, %v4532_v54  ;;  %vm4538_vm6 = vweird.f32 %v4532_v54  ;;  %v4542_v1 = vand.u32 2147483647, %v4532_v54 }
0x4237   :  { %5671 = vpow2.f32 %v5195_v19 }
0x4238   :  { %v4545_v40 = vor.u32 1.1754944e-38, %v4544_v22  ;;  %vm4543_vm15 = vcmp.eq.f32.partialorder %v4542_v1, 8.507059e+37 }
0x423c   :  { %v5670_v20 = vpop.eup %5669 }
0x423d   :  { %v4534_v48 = vmul.f32 %v5670_v20, %v4532_v54  ;;  %v5672_v15 = vpop.eup %5671  ;;  %vm4539_vm11 = vweird.f32 %v5670_v20 }
0x423e   :  { %v4492_v51 = vadd.f32 1.0, %v5672_v15  ;;  %vm4540_vm1 = vmor %vm4538_vm6, %vm4539_vm11 }
0x423f   :  { %v4535_v55 = vsub.f32 1.0, %v4534_v48 }
0x4240   :  { %5673 = vrcp.f32 %v4492_v51  ;;  %v4504_v5 = vand.u32 2147483648, %v4492_v51  ;;  %vm4498_vm3 = vweird.f32 %v4492_v51  ;;  %v4502_v26 = vand.u32 2147483647, %v4492_v51 }
0x4241   :  { %v4536_v9 = vmul.f32 %v5670_v20, %v4535_v55 }
0x4242   :  { %v4505_v23 = vor.u32 1.1754944e-38, %v4504_v5  ;;  %vm4503_vm5 = vcmp.eq.f32.partialorder %v4502_v26, 8.507059e+37 }
0x4243   :  { %v4537_v39 = vadd.f32 %v5670_v20, %v4536_v9 }
0x4245   :  { %v4541_v61 = vsel %vm4540_vm1, %v5670_v20, %v4537_v39 }
0x4246   :  { %v5674_v50 = vpop.eup %5673  ;;  %v4546_v44 = vsel %vm4543_vm15, %v4545_v40, %v4541_v61 }
0x4247   :  { %v4494_v41 = vmul.f32 %v5674_v50, %v4492_v51  ;;  %vm4499_vm0 = vweird.f32 %v5674_v50  ;;  %v4552_v10 = vmul.f32 %v4550_v42, %v4546_v44 }
0x4248   :  { %vm4500_vm4 = vmor %vm4498_vm3, %vm4499_vm0 }
0x4249   :  { %v4495_v38 = vsub.f32 1.0, %v4494_v41 }
0x424b   :  { %v4496_v45 = vmul.f32 %v5674_v50, %v4495_v38 }
0x424d   :  { %v4497_v34 = vadd.f32 %v5674_v50, %v4496_v45 }
0x424f   :  { %v4501_v18 = vsel %vm4500_vm4, %v5674_v50, %v4497_v34 }
0x4250   :  { %v4506_v58 = vsel %vm4503_vm5, %v4505_v23, %v4501_v18 }
0x4251   :  { %v4512_v4 = vmul.f32 %v4510_v56, %v4506_v58 }
0x428c   :  { %v4555_v27 = vpop.permute.xlu2 %4554 }
0x428d   :  { %v4557_v31 = vmul.f32 %v4555_v27, %v4546_v44 }
0x428f   :  { %4559 = vrot.lane.b32.xlu1 %v4557_v31, %s5793_s15 }
0x42a2   :  { %v4515_v47 = vpop.permute.xlu0 %4514 }
0x42a3   :  { %v4517_v11 = vmul.f32 %v4515_v47, %v4506_v58 }
0x42a5   :  { %4519 = vrot.lane.b32.xlu2 %v4517_v11, %s5793_s15 }
0x42ff   :  { %v4520_v29 = vpop.permute.xlu2 %4519 }
0x4300   :  { %v7617_v21 = vadd.f32 %v4520_v29, %v4512_v4 }
0x4301   :  { %v4560_v36 = vpop.permute.xlu1 %4559 }
0x4302   :  { %5675 = vtanh.f32 %v7617_v21  ;;  %v7620_v17 = vadd.f32 %v4560_v36, %v4552_v10 }
0x4304   :  { %5677 = vtanh.f32 %v7620_v17 }
0x4308   :  { %v5676_v24 = vpop.eup %5675 }
0x4309   :  { %4525 = vrot.lane.b32.xlu1 %v5676_v24, %s5792_s4  ;;  %v4658_v24 = vrot.slane %v7617_v21, 6 }
0x430a   :  { %v5678_v25 = vpop.eup %5677 }
0x430b   :  { %4565 = vrot.lane.b32.xlu0 %v5678_v25, %s5792_s4 }
0x437b   :  { %v4526_v62 = vpop.permute.xlu1 %4525 }
0x437c   :  { %v4528_v49 = vmul.f32 %v4526_v62, %v4506_v58 }
0x437d   :  { %v4566_v0 = vpop.permute.xlu0 %4565 }
0x437e   :  { %4570 = vrot.lane.b32.xlu2 %v4528_v49, %s5793_s15  ;;  %v7626_v2 = vmul.f32 %v4566_v0, %v4546_v44 }
0x4380   :  { %v4579_v12 = vrot.slane %v7626_v2, 6 }
0x4382   :  { %4580 = vrot.lane.b32.xlu0 %v4579_v12, %s5792_s4  ;;  %v4698_v12 = vrot.slane %v7620_v17, 2 }
0x43d8   :  { %v4571_v60 = vpop.permute.xlu2 %4570 }
0x43f4   :  { %v4581_v7 = vpop.permute.xlu0 %4580 }
0x43f5   :  { %v4583_v6 = vsel %vm113_vm2, %v4571_v60, %v4581_v7 }
0x43f6   :  { %5197 = vmatmul.msk.f32.vlgmr.msra.gmra.mxu0 %vm208_vm12, %v4583_v6  ;;  %5198 = vmatmul.msk.f32.vlgmr.msra.gmra.mxu1 %vm208_vm12, %v4583_v6 }
0x4473   :  { %v4604_v43 = vpop.f32.mrf.mxu0  ;;  %v4624_v28 = vpop.f32.mrf.mxu1 }
0x4474   :  { %v4629_v14 = vrot.slane %v4604_v43, 6  ;;  %v4634_v3 = vrot.slane %v4624_v28, 4 }
0x4476   :  { %v4631_v54 = vadd.f32 %v4629_v14, %v4627_v53  ;;  %v4636_v19 = vadd.f32 %v4634_v3, %v4632_v35 }
0x4478   :  { %5679 = vtanh.f32 %v4631_v54  ;;  %v5199_v55 = vmul.f32 -1.442695, %v4631_v54  ;;  %v5200_v39 = vmul.f32 -1.442695, %v4636_v19 }
0x4479   :  { %5681 = vtanh.f32 %v4636_v19 }
0x447a   :  { %5683 = vpow2.f32 %v5199_v55 }
0x447e   :  { %v5680_v20 = vpop.eup %5679 }
0x447f   :  { %v5682_v48 = vpop.eup %5681  ;;  %4662 = vrot.lane.b32.xlu2 %v5680_v20, %s5792_s4 }
0x4480   :  { %4702 = vrot.lane.b32.xlu1 %v5682_v48, %s5792_s4  ;;  %v5684_v15 = vpop.eup %5683 }
0x4481   :  { %v4640_v51 = vadd.f32 1.0, %v5684_v15 }
0x4483   :  { %5685 = vrcp.f32 %v4640_v51  ;;  %v4652_v44 = vand.u32 2147483648, %v4640_v51  ;;  %vm4646_vm9 = vweird.f32 %v4640_v51  ;;  %v4650_v31 = vand.u32 2147483647, %v4640_v51 }
0x4484   :  { %5687 = vpow2.f32 %v5200_v39 }
0x4485   :  { %v4653_v38 = vor.u32 1.1754944e-38, %v4652_v44  ;;  %vm4651_vm13 = vcmp.eq.f32.partialorder %v4650_v31, 8.507059e+37 }
0x4489   :  { %v5686_v9 = vpop.eup %5685 }
0x448a   :  { %v4642_v22 = vmul.f32 %v5686_v9, %v4640_v51  ;;  %v5688_v40 = vpop.eup %5687  ;;  %vm4647_vm7 = vweird.f32 %v5686_v9  ;;  %v4776_v51 = vld [vmem:[#allocation2 + $0x28] sm:$0x30] }
0x448b   :  { %v4680_v50 = vadd.f32 1.0, %v5688_v40  ;;  %vm4648_vm10 = vmor %vm4646_vm9, %vm4647_vm7 }
0x448c   :  { %v4643_v1 = vsub.f32 1.0, %v4642_v22 }
0x448d   :  { %5689 = vrcp.f32 %v4680_v50  ;;  %v4692_v11 = vand.u32 2147483648, %v4680_v50  ;;  %vm4686_vm6 = vweird.f32 %v4680_v50  ;;  %v4690_v56 = vand.u32 2147483647, %v4680_v50 }
0x448e   :  { %v4644_v61 = vmul.f32 %v5686_v9, %v4643_v1 }
0x448f   :  { %v4693_v42 = vor.u32 1.1754944e-38, %v4692_v11  ;;  %vm4691_vm15 = vcmp.eq.f32.partialorder %v4690_v56, 8.507059e+37 }
0x4490   :  { %v4645_v27 = vadd.f32 %v5686_v9, %v4644_v61 }
0x4492   :  { %v4649_v41 = vsel %vm4648_vm10, %v5686_v9, %v4645_v27  ;;  %v4781_v9 = vld [vmem:[#allocation2] sm:$0xc] }
0x4493   :  { %v4654_v34 = vsel %vm4651_vm13, %v4653_v38, %v4649_v41  ;;  %v5690_v26 = vpop.eup %5689 }
0x4494   :  { %v4682_v18 = vmul.f32 %v5690_v26, %v4680_v50  ;;  %vm4687_vm11 = vweird.f32 %v5690_v26  ;;  %v4660_v25 = vmul.f32 %v4658_v24, %v4654_v34 }
0x4495   :  { %vm4688_vm1 = vmor %vm4686_vm6, %vm4687_vm11 }
0x4496   :  { %v4683_v23 = vsub.f32 1.0, %v4682_v18 }
0x4498   :  { %v4684_v47 = vmul.f32 %v5690_v26, %v4683_v23 }
0x449a   :  { %v4685_v58 = vadd.f32 %v5690_v26, %v4684_v47 }
0x449c   :  { %v4689_v4 = vsel %vm4688_vm1, %v5690_v26, %v4685_v58 }
0x449d   :  { %v4694_v10 = vsel %vm4691_vm15, %v4693_v42, %v4689_v4 }
0x449e   :  { %v4700_v60 = vmul.f32 %v4698_v12, %v4694_v10 }
0x44d9   :  { %v4663_v45 = vpop.permute.xlu2 %4662 }
0x44da   :  { %v4665_v5 = vmul.f32 %v4663_v45, %v4654_v34 }
0x44dc   :  { %4667 = vrot.lane.b32.xlu1 %v4665_v5, %s5793_s15 }
0x44f2   :  { %v4703_v29 = vpop.permute.xlu1 %4702 }
0x44f3   :  { %v4705_v36 = vmul.f32 %v4703_v29, %v4694_v10 }
0x44f5   :  { %4707 = vrot.lane.b32.xlu0 %v4705_v36, %s5793_s15 }
0x454e   :  { %v4668_v62 = vpop.permute.xlu1 %4667 }
0x454f   :  { %v7638_v49 = vadd.f32 %v4668_v62, %v4660_v25 }
0x4551   :  { %5691 = vtanh.f32 %v7638_v49 }
0x4557   :  { %v5692_v0 = vpop.eup %5691 }
0x4558   :  { %4673 = vrot.lane.b32.xlu0 %v5692_v0, %s5792_s4 }
0x4567   :  { %v4708_v7 = vpop.permute.xlu0 %4707 }
0x4568   :  { %v7643_v6 = vadd.f32 %v4708_v7, %v4700_v60 }
0x456a   :  { %5693 = vtanh.f32 %v7643_v6 }
0x4570   :  { %v5694_v43 = vpop.eup %5693 }
0x4571   :  { %4713 = vrot.lane.b32.xlu2 %v5694_v43, %s5792_s4 }
0x45ca   :  { %v4674_v21 = vpop.permute.xlu0 %4673 }
0x45cb   :  { %v4714_v28 = vpop.permute.xlu2 %4713  ;;  %v4676_v14 = vmul.f32 %v4674_v21, %v4654_v34  ;;  %v4847_v21 = vrot.slane %v7643_v6, 2 }
0x45cc   :  { %v7647_v3 = vmul.f32 %v4714_v28, %v4694_v10 }
0x45cd   :  { %4718 = vrot.lane.b32.xlu1 %v4676_v14, %s5793_s15 }
0x45ce   :  { %v4727_v53 = vrot.slane %v7647_v3, 2 }
0x45d0   :  { %4728 = vrot.lane.b32.xlu2 %v4727_v53, %s5792_s4 }
0x462a   :  { %v4729_v17 = vpop.permute.xlu2 %4728 }
0x463f   :  { %v4719_v35 = vpop.permute.xlu1 %4718 }
0x4640   :  { %v4731_v54 = vsel %vm113_vm2, %v4719_v35, %v4729_v17  ;;  %v4807_v35 = vrot.slane %v7638_v49, 6 }
0x4641   :  { %v4733_v19 = vrot.slane %v4731_v54, 2 }
0x4643   :  { %5201 = vmatmul.msk.f32.vlgmr.msrb.gmra.mxu2 %vm208_vm12, %v4733_v19  ;;  %5202 = vmatmul.msk.f32.vlgmr.msra.gmra.mxu3 %vm208_vm12, %v4733_v19 }
0x46c6   :  { %v4753_v20 = vpop.f32.mrf.mxu2  ;;  %v4773_v48 = vpop.f32.mrf.mxu3 }
0x46c7   :  { %v4778_v55 = vrot.slane %v4753_v20, 4  ;;  %v4783_v15 = vrot.slane %v4773_v48, 6 }
0x46c9   :  { %v4780_v39 = vadd.f32 %v4778_v55, %v4776_v51  ;;  %v4785_v22 = vadd.f32 %v4783_v15, %v4781_v9 }
0x46cb   :  { %5695 = vtanh.f32 %v4780_v39  ;;  %v5203_v40 = vmul.f32 -1.442695, %v4780_v39  ;;  %v5204_v50 = vmul.f32 -1.442695, %v4785_v22 }
0x46cc   :  { %5697 = vtanh.f32 %v4785_v22 }
0x46cd   :  { %5699 = vpow2.f32 %v5203_v40 }
0x46ce   :  { %5701 = vpow2.f32 %v5204_v50  ;;  %v4925_v50 = vld [vmem:[#allocation2 + $0x28] sm:$0xc0] }
0x46d1   :  { %v5696_v1 = vpop.eup %5695 }
0x46d2   :  { %v5698_v61 = vpop.eup %5697  ;;  %4811 = vrot.lane.b32.xlu1 %v5696_v1, %s5792_s4 }
0x46d3   :  { %4851 = vrot.lane.b32.xlu0 %v5698_v61, %s5792_s4  ;;  %v5700_v27 = vpop.eup %5699 }
0x46d4   :  { %v5702_v44 = vpop.eup %5701  ;;  %v4789_v31 = vadd.f32 1.0, %v5700_v27 }
0x46d5   :  { %v4829_v41 = vadd.f32 1.0, %v5702_v44 }
0x46d6   :  { %5703 = vrcp.f32 %v4789_v31  ;;  %v4801_v56 = vand.u32 2147483648, %v4789_v31  ;;  %vm4795_vm4 = vweird.f32 %v4789_v31  ;;  %v4799_v42 = vand.u32 2147483647, %v4789_v31 }
0x46d7   :  { %5705 = vrcp.f32 %v4829_v41  ;;  %v4841_v4 = vand.u32 2147483648, %v4829_v41  ;;  %vm4835_vm5 = vweird.f32 %v4829_v41  ;;  %v4839_v29 = vand.u32 2147483647, %v4829_v41 }
0x46d8   :  { %v4802_v24 = vor.u32 1.1754944e-38, %v4801_v56  ;;  %vm4800_vm10 = vcmp.eq.f32.partialorder %v4799_v42, 8.507059e+37 }
0x46d9   :  { %v4842_v25 = vor.u32 1.1754944e-38, %v4841_v4  ;;  %vm4840_vm13 = vcmp.eq.f32.partialorder %v4839_v29, 8.507059e+37 }
0x46dc   :  { %v5704_v38 = vpop.eup %5703 }
0x46dd   :  { %v5706_v45 = vpop.eup %5705  ;;  %v4791_v34 = vmul.f32 %v5704_v38, %v4789_v31  ;;  %vm4796_vm0 = vweird.f32 %v5704_v38 }
0x46de   :  { %v4831_v5 = vmul.f32 %v5706_v45, %v4829_v41  ;;  %vm4836_vm3 = vweird.f32 %v5706_v45  ;;  %vm4797_vm7 = vmor %vm4795_vm4, %vm4796_vm0 }
0x46df   :  { %v4792_v26 = vsub.f32 1.0, %v4791_v34  ;;  %vm4837_vm9 = vmor %vm4835_vm5, %vm4836_vm3 }
0x46e0   :  { %v4832_v18 = vsub.f32 1.0, %v4831_v5 }
0x46e1   :  { %v4793_v23 = vmul.f32 %v5704_v38, %v4792_v26 }
0x46e2   :  { %v4833_v47 = vmul.f32 %v5706_v45, %v4832_v18 }
0x46e3   :  { %v4794_v58 = vadd.f32 %v5704_v38, %v4793_v23 }
0x46e4   :  { %v4834_v11 = vadd.f32 %v5706_v45, %v4833_v47 }
0x46e5   :  { %v4798_v10 = vsel %vm4797_vm7, %v5704_v38, %v4794_v58 }
0x46e6   :  { %v4838_v36 = vsel %vm4837_vm9, %v5706_v45, %v4834_v11  ;;  %v4803_v0 = vsel %vm4800_vm10, %v4802_v24, %v4798_v10 }
0x46e7   :  { %v4843_v60 = vsel %vm4840_vm13, %v4842_v25, %v4838_v36  ;;  %v4809_v54 = vmul.f32 %v4807_v35, %v4803_v0 }
0x46e8   :  { %v4849_v28 = vmul.f32 %v4847_v21, %v4843_v60 }
0x4744   :  { %v4812_v62 = vpop.permute.xlu1 %4811 }
0x4745   :  { %v4852_v12 = vpop.permute.xlu0 %4851  ;;  %v4814_v7 = vmul.f32 %v4812_v62, %v4803_v0  ;;  %v4930_v62 = vld [vmem:[#allocation2] sm:$0x3] }
0x4746   :  { %v4854_v43 = vmul.f32 %v4852_v12, %v4843_v60 }
0x4747   :  { %4816 = vrot.lane.b32.xlu0 %v4814_v7, %s5793_s15 }
0x4748   :  { %4856 = vrot.lane.b32.xlu2 %v4854_v43, %s5793_s15 }
0x47a2   :  { %v4857_v14 = vpop.permute.xlu2 %4856 }
0x47a3   :  { %v7660_v53 = vadd.f32 %v4857_v14, %v4849_v28 }
0x47a5   :  { %5707 = vtanh.f32 %v7660_v53 }
0x47ab   :  { %v5708_v17 = vpop.eup %5707 }
0x47ac   :  { %4862 = vrot.lane.b32.xlu1 %v5708_v17, %s5792_s4 }
0x47b9   :  { %v4817_v19 = vpop.permute.xlu0 %4816 }
0x47ba   :  { %v4819_v20 = vadd.f32 %v4817_v19, %v4809_v54 }
0x47bc   :  { %5709 = vtanh.f32 %v4819_v20  ;;  %v4953_v29 = vrot.slane %v4819_v20, 6 }
0x47c2   :  { %v5710_v48 = vpop.eup %5709 }
0x47c3   :  { %4822 = vrot.lane.b32.xlu2 %v5710_v48, %s5792_s4 }
0x481d   :  { %v4823_v55 = vpop.permute.xlu2 %4822 }
0x481e   :  { %v4863_v6 = vpop.permute.xlu1 %4862  ;;  %v4825_v15 = vmul.f32 %v4823_v55, %v4803_v0 }
0x481f   :  { %v7666_v51 = vmul.f32 %v4863_v6, %v4843_v60 }
0x4820   :  { %4867 = vrot.lane.b32.xlu0 %v4825_v15, %s5793_s15 }
0x4821   :  { %v4876_v9 = vrot.slane %v7666_v51, 6 }
0x4823   :  { %4877 = vrot.lane.b32.xlu1 %v4876_v9, %s5792_s4 }
0x4892   :  { %v4868_v39 = vpop.permute.xlu0 %4867 }
0x4895   :  { %v4878_v49 = vpop.permute.xlu1 %4877 }
0x4896   :  { %v4880_v22 = vsel %vm113_vm2, %v4868_v39, %v4878_v49 }
0x4897   :  { %v4882_v1 = vrot.slane %v4880_v22, 4  ;;  %v5025_v22 = vld [vmem:[%s7755_s9 + $0x10] sm:$0xff] }
0x4899   :  { %5205 = vmatmul.msk.f32.vlgmr.msrb.gmra.mxu0 %vm208_vm12, %v4882_v1  ;;  %5206 = vmatmul.msk.f32.vlgmr.msrb.gmra.mxu1 %vm208_vm12, %v4882_v1  ;;  %v5024_v1 = vld [vmem:[%s7755_s9 + $0x8] sm:$0xff] }
0x4916   :  { %v4902_v61 = vpop.f32.mrf.mxu0  ;;  %v4922_v25 = vpop.f32.mrf.mxu1 }
0x4917   :  { %v4927_v40 = vrot.slane %v4902_v61, 2  ;;  %v4931_v0 = vadd.f32 %v4930_v62, %v4922_v25  ;;  %v5023_v61 = vld [vmem:[%s7755_s9] sm:$0xff] }
0x4919   :  { %v4929_v27 = vadd.f32 %v4927_v40, %v4925_v50  ;;  %v5208_v7 = vmul.f32 -1.442695, %v4931_v0  ;;  %v4993_v40 = vrot.slane %v7660_v53, 2 }
0x491b   :  { %5711 = vtanh.f32 %v4929_v27  ;;  %v5207_v31 = vmul.f32 -1.442695, %v4929_v27 }
0x491d   :  { %5713 = vpow2.f32 %v5207_v31 }
0x4921   :  { %v5712_v44 = vpop.eup %5711 }
0x4922   :  { %4957 = vrot.lane.b32.xlu2 %v5712_v44, %s5792_s4 }
0x4923   :  { %v5714_v41 = vpop.eup %5713 }
0x4924   :  { %v4935_v38 = vadd.f32 1.0, %v5714_v41 }
0x4926   :  { %5715 = vrcp.f32 %v4935_v38  ;;  %v4947_v23 = vand.u32 2147483648, %v4935_v38  ;;  %vm4941_vm11 = vweird.f32 %v4935_v38  ;;  %v4945_v47 = vand.u32 2147483647, %v4935_v38 }
0x4928   :  { %v4948_v11 = vor.u32 1.1754944e-38, %v4947_v23  ;;  %vm4946_vm1 = vcmp.eq.f32.partialorder %v4945_v47, 8.507059e+37 }
0x492a   :  { %2808 = vrot.lane.b32.xlu2 %v7047_v52, %s5792_s4 }
0x492c   :  { %v5716_v45 = vpop.eup %5715 }
0x492d   :  { %v4937_v34 = vmul.f32 %v5716_v45, %v4935_v38  ;;  %vm4942_vm2 = vweird.f32 %v5716_v45 }
0x492e   :  { %vm4943_vm6 = vmor %vm4941_vm11, %vm4942_vm2 }
0x492f   :  { %v4938_v5 = vsub.f32 1.0, %v4937_v34 }
0x4931   :  { %v4939_v26 = vmul.f32 %v5716_v45, %v4938_v5 }
0x4933   :  { %v4940_v18 = vadd.f32 %v5716_v45, %v4939_v26 }
0x4935   :  { %v4944_v58 = vsel %vm4943_vm6, %v5716_v45, %v4940_v18  ;;  %v16_v18 = vstv %s7756_s10 }
0x4936   :  { %v4949_v52 = vsel %vm4946_vm1, %v4948_v11, %v4944_v58  ;;  %17 = vst [vmem:[#allocation5] sm:$0x1] %v16_v18 }
0x4937   :  { %v4955_v10 = vmul.f32 %v4953_v29, %v4949_v52 }
0x493d   :  { %v5214_v11 = vld [vmem:[#allocation5] ss:$0 sm:$0xff] }
0x497c   :  { %v4958_v56 = vpop.permute.xlu2 %4957 }
0x497d   :  { %v4960_v4 = vmul.f32 %v4958_v56, %v4949_v52 }
0x497f   :  { %4962 = vrot.lane.b32.xlu0 %v4960_v4, %s5793_s15 }
0x4984   :  { %v2809_v42 = vpop.permute.xlu2 %2808 }
0x4985   :  { %2811 = vst.msk [vmem:[#allocation4 + $0x18] sm:$0xc0] %vm343_vm8, %v2809_v42 }
0x49f1   :  { %v4963_v36 = vpop.permute.xlu0 %4962 }
0x49f2   :  { %v4965_v24 = vadd.f32 %v4963_v36, %v4955_v10 }
0x49f4   :  { %5717 = vtanh.f32 %v4965_v24 }
0x49f5   :  { %5719 = vtanh.f32 %v4931_v0 }
0x49f6   :  { %5721 = vpow2.f32 %v5208_v7 }
0x49fa   :  { %v5718_v12 = vpop.eup %5717 }
0x49fb   :  { %4968 = vrot.lane.b32.xlu1 %v5718_v12, %s5792_s4  ;;  %v5720_v60 = vpop.eup %5719 }
0x49fc   :  { %v5722_v43 = vpop.eup %5721 }
0x49fd   :  { %v4975_v21 = vadd.f32 1.0, %v5722_v43 }
0x49ff   :  { %5723 = vrcp.f32 %v4975_v21  ;;  %vm4981_vm15 = vweird.f32 %v4975_v21 }
0x4a03   :  { %4997 = vrot.lane.b32.xlu1 %v5720_v60, %s5792_s4 }
0x4a05   :  { %v5724_v28 = vpop.eup %5723 }
0x4a06   :  { %v4977_v14 = vmul.f32 %v5724_v28, %v4975_v21  ;;  %vm4982_vm8 = vweird.f32 %v5724_v28 }
0x4a07   :  { %vm4983_vm0 = vmor %vm4981_vm15, %vm4982_vm8 }
0x4a0b   :  { %2956 = vrot.lane.b32.xlu1 %v7084_v16, %s5792_s4  ;;  %v4978_v16 = vsub.f32 1.0, %v4977_v14 }
0x4a0d   :  { %v4979_v17 = vmul.f32 %v5724_v28, %v4978_v16 }
0x4a0f   :  { %v4980_v54 = vadd.f32 %v5724_v28, %v4979_v17 }
0x4a13   :  { %3397 = vrot.lane.b32.xlu1 %v7244_v33, %s5792_s4 }
0x4a1b   :  { %3840 = vrot.lane.b32.xlu1 %v7392_v57, %s5792_s4  ;;  %v4987_v57 = vand.u32 2147483648, %v4975_v21 }
0x4a1d   :  { %v4988_v19 = vor.u32 1.1754944e-38, %v4987_v57 }
0x4a23   :  { %4283 = vrot.lane.b32.xlu1 %v7551_v30, %s5792_s4  ;;  %v4985_v30 = vand.u32 2147483647, %v4975_v21 }
0x4a25   :  { %vm4986_vm3 = vcmp.eq.f32.partialorder %v4985_v30, 8.507059e+37 }
0x4a2b   :  { %4723 = vrot.lane.b32.xlu1 %v7647_v3, %s5792_s4  ;;  %v4984_v3 = vsel %vm4983_vm0, %v5724_v28, %v4980_v54 }
0x4a2c   :  { %v4989_v20 = vsel %vm4986_vm3, %v4988_v19, %v4984_v3 }
0x4a2d   :  { %v4995_v50 = vmul.f32 %v4993_v40, %v4989_v20 }
0x4a6d   :  { %v4969_v35 = vpop.permute.xlu1 %4968 }
0x4a6e   :  { %v4971_v33 = vmul.f32 %v4969_v35, %v4949_v52 }
0x4a70   :  { %5013 = vrot.lane.b32.xlu0 %v4971_v33, %s5793_s15 }
0x4a75   :  { %v4998_v48 = vpop.permute.xlu1 %4997 }
0x4a76   :  { %v5000_v55 = vmul.f32 %v4998_v48, %v4989_v20 }
0x4a78   :  { %5002 = vrot.lane.b32.xlu2 %v5000_v55, %s5793_s15 }
0x4a7d   :  { %v2957_v6 = vpop.permute.xlu1 %2956 }
0x4a80   :  { %3105 = vrot.lane.b32.xlu2 %v7122_v59, %s5792_s4  ;;  %v5030_v59 = vld [vmem:[%s7755_s9 + $0x38] sm:$0xff] }
0x4a81   :  { %5046 = vmatpush.msra.mxu2 %v5030_v59 }
0x4a85   :  { %v3398_v15 = vpop.permute.xlu1 %3397 }
0x4a88   :  { %3545 = vrot.lane.b32.xlu2 %v7316_v63, %s5792_s4  ;;  %v5029_v63 = vld [vmem:[%s7755_s9 + $0x30] sm:$0xff] }
0x4a89   :  { %5047 = vmatpush.msra.mxu2 %v5029_v63 }
0x4a8d   :  { %v3841_v9 = vpop.permute.xlu1 %3840 }
0x4a90   :  { %3986 = vrot.lane.b32.xlu2 %v7431_v8, %s5792_s4  ;;  %v5028_v8 = vld [vmem:[%s7755_s9 + $0x28] sm:$0xff] }
0x4a91   :  { %5048 = vmatpush.msra.mxu2 %v5028_v8 }
0x4a95   :  { %v4284_v39 = vpop.permute.xlu1 %4283 }
0x4a98   :  { %4429 = vrot.lane.b32.xlu2 %v7603_v32, %s5792_s4  ;;  %v5027_v32 = vld [vmem:[%s7755_s9 + $0x20] sm:$0xff] }
0x4a99   :  { %5049 = vmatpush.msra.mxu2 %v5027_v32 }
0x4a9d   :  { %v4724_v49 = vpop.permute.xlu1 %4723 }
0x4aa0   :  { %4872 = vrot.lane.b32.xlu2 %v7666_v51, %s5792_s4  ;;  %v5026_v51 = vld [vmem:[%s7755_s9 + $0x18] sm:$0xff] }
0x4aa1   :  { %5050 = vmatpush.msra.mxu2 %v5026_v51 }
0x4aa3   :  { %5051 = vmatpush.msra.mxu2 %v5025_v22 }
0x4aa5   :  { %5052 = vmatpush.msra.mxu2 %v5024_v1 }
0x4aa7   :  { %5053 = vmatpush.msra.mxu2 %v5023_v61 }
0x4ad2   :  { %v5003_v27 = vpop.permute.xlu2 %5002 }
0x4ad3   :  { %v5005_v44 = vadd.f32 %v5003_v27, %v4995_v50 }
0x4ad5   :  { %5725 = vtanh.f32 %v5005_v44 }
0x4ada   :  { %v3106_v31 = vpop.permute.xlu2 %3105 }
0x4adb   :  { %v5726_v41 = vpop.eup %5725 }
0x4adc   :  { %5008 = vrot.lane.b32.xlu0 %v5726_v41, %s5792_s4 }
0x4ae2   :  { %v5014_v38 = vpop.permute.xlu0 %5013  ;;  %v3546_v45 = vpop.permute.xlu2 %3545 }
0x4ae3   :  { %5016 = vst.msk [vmem:[#allocation4 + $0x18] sm:$0xc0] %vm786_vm14, %v5014_v38 }
0x4ae4   :  { %3251 = vrot.lane.b32.xlu0 %v7160_v46, %s5792_s4 }
0x4aea   :  { %v3987_v34 = vpop.permute.xlu2 %3986  ;;  %v5022_v5 = vld [vmem:[#allocation4 + $0x1e] sm:$0x3] }
0x4aeb   :  { %5209 = vmatmul.msk.f32.vlgmr.msra.gmra.mxu2 %vm208_vm12, %v5022_v5  ;;  %vm5058_vm12 = vcmask 1024  }
0x4aec   :  { %3694 = vrot.lane.b32.xlu0 %v7354_v13, %s5792_s4 }
0x4af2   :  { %v4430_v53 = vpop.permute.xlu2 %4429 }
0x4af4   :  { %4134 = vrot.lane.b32.xlu0 %v7468_v37, %s5792_s4 }
0x4afa   :  { %v4873_v26 = vpop.permute.xlu2 %4872 }
0x4afc   :  { %4575 = vrot.lane.b32.xlu0 %v7626_v2, %s5792_s4 }
0x4b4e   :  { %v5009_v46 = vpop.permute.xlu0 %5008 }
0x4b4f   :  { %v5011_v23 = vmul.f32 %v5009_v46, %v4989_v20 }
0x4b51   :  { %5018 = vrot.lane.b32.xlu0 %v5011_v23, %s5792_s4 }
0x4b56   :  { %v3252_v47 = vpop.permute.xlu0 %3251 }
0x4b5e   :  { %v3695_v58 = vpop.permute.xlu0 %3694 }
0x4b66   :  { %v4135_v13 = vpop.permute.xlu0 %4134 }
0x4b6e   :  { %v5055_v56 = vpop.f32.mrf.mxu2  ;;  %v4576_v37 = vpop.permute.xlu0 %4575 }
0x4b6f   :  { %v5056_v52 = vadd.f32 %v5214_v11, %v5055_v56 }
0x4b71   :  { %5059 = vst.msk [vmem:[%s7757_s11] sm:$0x3] %vm5058_vm12, %v5056_v52 }
0x4bc3   :  { %v5019_v2 = vpop.permute.xlu0 %5018 }

</bundles_post_ra>
